<compile_context>
chip_gen: v5e
topology: v5e:2x2
jax: 0.10.0
libtpu: 0.0.40
codegen_flags: <defaults>
</compile_context>

<pallas_src>
import functools
import math

import jax
import jax.numpy as jnp
from jax.experimental import pallas as pl
from jax.experimental.pallas import tpu as pltpu


# ----------------------------------------------------------------------------
# In-kernel helpers (traced inside the fused stack kernels)
# ----------------------------------------------------------------------------
def _ln(x, g, b, eps):
    """LayerNorm over the last dim of a (rows, D) value; g/b are (1, D)."""
    mu = jnp.mean(x, axis=-1, keepdims=True)
    var = jnp.mean(jnp.square(x - mu), axis=-1, keepdims=True)
    return (x - mu) * jax.lax.rsqrt(var + eps) * g + b


def _proj(x_bf16, w_bf16, b_f32):
    """bf16 matmul on the MXU with f32 accumulation, f32 bias add."""
    return jnp.dot(x_bf16, w_bf16, preferred_element_type=jnp.float32) + b_f32


def _mha(q, k, v, mask, w_o, b_o, num_heads):
    """Multi-head attention for one batch element.

    q: (T, D) f32, k/v: (S, D) f32, mask: bool broadcastable to (T, S),
    w_o: (D, D) bf16, b_o: (1, D) f32.

    Per-head scores/ctx use lane-aligned D/num_heads slices (tiny but
    lowering-robust).  The per-head ctx blocks are concatenated back into
    their lane-aligned slots so the output projection is ONE full-K
    (T, D) @ (D, D) matmul instead of num_heads K=dh matmuls + VPU adds.
    """
    T, D = q.shape
    dh = D // num_heads
    scale = 1.0 / math.sqrt(dh)
    qb = q.astype(jnp.bfloat16)          # hoisted casts: one per operand
    kb = k.astype(jnp.bfloat16)
    vb = v.astype(jnp.bfloat16)
    ctx_parts = []
    for h in range(num_heads):           # static unroll, num_heads small
        sl = slice(h * dh, (h + 1) * dh)
        # q @ k^T without an explicit transpose (contract on the dh axis).
        s = jax.lax.dot_general(qb[:, sl], kb[:, sl],
                                (((1,), (1,)), ((), ())),
                                preferred_element_type=jnp.float32) * scale
        s = jnp.where(mask, s, jnp.float32(-1e9))
        s = s - jnp.max(s, axis=-1, keepdims=True)
        p = jnp.exp(s)
        p = p * pl.reciprocal(jnp.sum(p, axis=-1, keepdims=True), approx=True)
        ctx_parts.append(jnp.dot(p.astype(jnp.bfloat16), vb[:, sl],
                                 preferred_element_type=jnp.float32))
    ctx = jnp.concatenate(ctx_parts, axis=-1)        # (T, D), lane-aligned
    return jnp.dot(ctx.astype(jnp.bfloat16), w_o,
                   preferred_element_type=jnp.float32) + b_o


def _rep_spec(arr):
    """Grid-invariant (weight) BlockSpec: whole array, same block every step."""
    nd = arr.ndim
    return pl.BlockSpec(arr.shape, lambda b, _nd=nd: (0,) * _nd)


def _nbytes(*arrays):
    return int(sum(a.size * a.dtype.itemsize for a in arrays))


# ----------------------------------------------------------------------------
# Fused encoder stack: embedding LN + all BERT layers in one pallas_call
# ----------------------------------------------------------------------------
def _encoder_stack_kernel(emb_ref, mask_ref, eg_ref, eb_ref,
                          wqkv_ref, bqkv_ref, wo_ref, bo_ref,
                          ln1g_ref, ln1b_ref, w1_ref, b1_ref, w2_ref, b2_ref,
                          ln2g_ref, ln2b_ref, o_ref,
                          *, num_layers, num_heads, eps):
    D = emb_ref.shape[-1]
    key_mask = mask_ref[...] > 0                      # (1, L) -> bcast (L, L)
    x = _ln(emb_ref[...], eg_ref[...], eb_ref[...], eps)   # embedding LN
    for l in range(num_layers):                       # static unroll; weights
        xb = x.astype(jnp.bfloat16)                   # stay VMEM-resident
        qkv = _proj(xb, wqkv_ref[l], bqkv_ref[l])     # (L, 3D) fused QKV
        attn = _mha(qkv[:, :D], qkv[:, D:2 * D], qkv[:, 2 * D:],
                    key_mask, wo_ref[l], bo_ref[l], num_heads)
        x = _ln(attn + x, ln1g_ref[l], ln1b_ref[l], eps)    # post-LN (BERT)
        h = jax.nn.gelu(_proj(x.astype(jnp.bfloat16), w1_ref[l], b1_ref[l]),
                        approximate=True)
        h = _proj(h.astype(jnp.bfloat16), w2_ref[l], b2_ref[l])
        x = _ln(h + x, ln2g_ref[l], ln2b_ref[l], eps)
    o_ref[...] = x


def encoder_stack(emb, key_mask, p, cfg):
    B, L, D = emb.shape
    H, F, NL = cfg["num_heads"], cfg["d_ff"], cfg["num_enc_layers"]
    args = (emb, key_mask, p["emb_ln_g"], p["emb_ln_b"],
            p["w_qkv"], p["b_qkv"], p["w_o"], p["b_o"],
            p["ln1_g"], p["ln1_b"], p["w1"], p["b1"], p["w2"], p["b2"],
            p["ln2_g"], p["ln2_b"])
    in_specs = [pl.BlockSpec((None, L, D), lambda b: (b, 0, 0)),
                pl.BlockSpec((None, 1, L), lambda b: (b, 0, 0))]
    in_specs += [_rep_spec(a) for a in args[2:]]
    flops = B * NL * (2 * L * D * 3 * D + 4 * L * L * D + 2 * L * D * D
                      + 4 * L * D * F) + 10 * B * L * D * (2 * NL + 1)
    trans = B * NL * (H * L * L + L * F) + B * L * (2 * NL + 1)
    return pl.pallas_call(
        functools.partial(_encoder_stack_kernel, num_layers=NL,
                          num_heads=H, eps=1e-12),
        out_shape=jax.ShapeDtypeStruct((B, L, D), jnp.float32),
        grid=(B,),                                    # B=2: both v7x TCs busy
        in_specs=in_specs,
        out_specs=pl.BlockSpec((None, L, D), lambda b: (b, 0, 0)),
        compiler_params=pltpu.CompilerParams(
            dimension_semantics=("parallel",)),
        cost_estimate=pl.CostEstimate(
            flops=int(flops), transcendentals=int(trans),
            bytes_accessed=_nbytes(*args) + B * L * D * 4),
    )(*args)


# ----------------------------------------------------------------------------
# Fused decoder stack: all pre-LN decoder layers + final LN + output proj
# ----------------------------------------------------------------------------
def _decoder_stack_kernel(trg_ref, pe_ref, mem_ref, srcm_ref, trgm_ref,
                          swqkv_ref, sbqkv_ref, swo_ref, sbo_ref,
                          cwq_ref, cbq_ref, cwkv_ref, cbkv_ref,
                          cwo_ref, cbo_ref,
                          w1_ref, b1_ref, w2_ref, b2_ref,
                          ln1g_ref, ln1b_ref, ln2g_ref, ln2b_ref,
                          ln3g_ref, ln3b_ref,
                          fing_ref, finb_ref, outw_ref, outb_ref,
                          logits_ref, hidden_ref,
                          *, num_layers, num_heads, eps):
    D = trg_ref.shape[-1]
    src_mask = srcm_ref[...] > 0                      # (1, S) key mask
    trg_mask = trgm_ref[...] > 0                      # (T, T) target mask
    # TODO(synk): if trg_mask is always causal it could be generated in-kernel
    # with jax.lax.broadcasted_iota; it is kept as an input to match the
    # module's forward(trg_mask) signature.
    x = trg_ref[...] + pe_ref[...]                    # add sinusoidal PE
    mem_b = mem_ref[...].astype(jnp.bfloat16)         # hoisted bf16 memory
    for l in range(num_layers):                       # static unroll
        # --- masked self-attention (pre-LN) ---
        xn = _ln(x, ln1g_ref[l], ln1b_ref[l], eps).astype(jnp.bfloat16)
        qkv = _proj(xn, swqkv_ref[l], sbqkv_ref[l])   # (T, 3D) fused QKV
        x = x + _mha(qkv[:, :D], qkv[:, D:2 * D], qkv[:, 2 * D:],
                     trg_mask, swo_ref[l], sbo_ref[l], num_heads)
        # --- cross-attention over encoder memory ---
        xn = _ln(x, ln2g_ref[l], ln2b_ref[l], eps).astype(jnp.bfloat16)
        q = _proj(xn, cwq_ref[l], cbq_ref[l])
        kv = _proj(mem_b, cwkv_ref[l], cbkv_ref[l])   # (S, 2D) fused KV
        x = x + _mha(q, kv[:, :D], kv[:, D:], src_mask,
                     cwo_ref[l], cbo_ref[l], num_heads)
        # --- position-wise FFN ---
        xn = _ln(x, ln3g_ref[l], ln3b_ref[l], eps).astype(jnp.bfloat16)
        h = jnp.maximum(_proj(xn, w1_ref[l], b1_ref[l]), 0.0)
        h = _proj(h.astype(jnp.bfloat16), w2_ref[l], b2_ref[l])
        x = x + h
    hid = _ln(x, fing_ref[...], finb_ref[...], eps)   # final LN
    hidden_ref[...] = hid
    logits_ref[...] = _proj(hid.astype(jnp.bfloat16), outw_ref[...],
                            outb_ref[...])            # fused output projection


def decoder_stack(trg_embed, memory, src_mask, trg_mask, p, cfg):
    B, T, D = trg_embed.shape
    S = memory.shape[1]
    H, F, NL = cfg["num_heads"], cfg["d_ff"], cfg["num_dec_layers"]
    out_dim = cfg["out_dim"]
    pe = sinusoidal_pe(T, D)
    args = (trg_embed, pe, memory, src_mask, trg_mask,
            p["s_w_qkv"], p["s_b_qkv"], p["s_w_o"], p["s_b_o"],
            p["c_w_q"], p["c_b_q"], p["c_w_kv"], p["c_b_kv"],
            p["c_w_o"], p["c_b_o"],
            p["w1"], p["b1"], p["w2"], p["b2"],
            p["ln1_g"], p["ln1_b"], p["ln2_g"], p["ln2_b"],
            p["ln3_g"], p["ln3_b"],
            p["final_ln_g"], p["final_ln_b"], p["out_w"], p["out_b"])
    in_specs = [pl.BlockSpec((None, T, D), lambda b: (b, 0, 0)),
                _rep_spec(pe),
                pl.BlockSpec((None, S, D), lambda b: (b, 0, 0)),
                pl.BlockSpec((None, 1, S), lambda b: (b, 0, 0)),
                pl.BlockSpec((None, T, T), lambda b: (b, 0, 0))]
    in_specs += [_rep_spec(a) for a in args[5:]]
    flops = B * NL * (2 * T * D * 3 * D + 4 * T * T * D + 2 * T * D * D
                      + 2 * T * D * D + 4 * S * D * D + 4 * T * S * D
                      + 2 * T * D * D + 4 * T * D * F)
    flops += B * (2 * T * D * out_dim) + 10 * B * T * D * (3 * NL + 1)
    trans = B * NL * (H * T * T + H * T * S) + B * T * (3 * NL + 1)
    return pl.pallas_call(
        functools.partial(_decoder_stack_kernel, num_layers=NL,
                          num_heads=H, eps=1e-6),
        out_shape=(jax.ShapeDtypeStruct((B, T, out_dim), jnp.float32),
                   jax.ShapeDtypeStruct((B, T, D), jnp.float32)),
        grid=(B,),
        in_specs=in_specs,
        out_specs=[pl.BlockSpec((None, T, out_dim), lambda b: (b, 0, 0)),
                   pl.BlockSpec((None, T, D), lambda b: (b, 0, 0))],
        compiler_params=pltpu.CompilerParams(
            dimension_semantics=("parallel",)),
        cost_estimate=pl.CostEstimate(
            flops=int(flops), transcendentals=int(trans),
            bytes_accessed=_nbytes(*args) + B * T * (out_dim + D) * 4),
    )(*args)


# ----------------------------------------------------------------------------
# Model (thin JAX glue around the two fused stack kernels)
# ----------------------------------------------------------------------------
def bert_encoder(input_ids, attention_mask, token_type_ids, params, cfg):
    B, L = input_ids.shape
    # TODO(synk): embedding-table gather stays in plain JAX (no Pallas gather
    # is warranted at these sizes); everything downstream is one fused kernel.
    emb = (params["word_emb"][input_ids]
           + params["pos_emb"][jnp.arange(L)][None, :, :]
           + params["type_emb"][token_type_ids])
    key_mask = attention_mask.astype(jnp.int32)[:, None, :]   # (B, 1, L) int32
    return encoder_stack(emb, key_mask, params, cfg)


def sinusoidal_pe(length, d_model):
    pos = jnp.arange(length, dtype=jnp.float32)[:, None]
    div = jnp.exp(jnp.arange(0, d_model, 2, dtype=jnp.float32)
                  * (-math.log(10000.0) / d_model))
    pe = jnp.zeros((length, d_model), jnp.float32)
    pe = pe.at[:, 0::2].set(jnp.sin(pos * div))
    pe = pe.at[:, 1::2].set(jnp.cos(pos * div))
    return pe


def transformer_decoder(trg_embed, encoder_output, src_mask, trg_mask,
                        params, cfg):
    """Pre-LN transformer decoder (joeynmt-style) with cross-attention."""
    B, T, D = trg_embed.shape
    # TODO(synk): exact TransformerDecoder internals (layout heads) are not
    # given in the reference; standard joeynmt decoder semantics are used.
    logits, hidden = decoder_stack(trg_embed, encoder_output,
                                   src_mask.astype(jnp.int32),
                                   trg_mask.astype(jnp.int32), params, cfg)
    return logits, hidden


def text2layout_forward(input_ids, attention_mask, token_type_ids,
                        trg_input, trg_mask, params, cfg):
    # TODO(synk): BertTokenizer.batch_encode_plus is host-side string
    # processing with no Pallas equivalent; inputs arrive pre-tokenized.
    encoder_output = bert_encoder(input_ids, attention_mask, token_type_ids,
                                  params["encoder"], cfg)
    src_mask = attention_mask[:, None, :]       # == attention_mask.unsqueeze(1)
    return transformer_decoder(trg_input, encoder_output, src_mask, trg_mask,
                               params["decoder"], cfg)


# ----------------------------------------------------------------------------
# Deterministic synthetic parameters (bf16 matmul weights, f32 bias/LN),
# stacked with a leading num_layers dim so each stack is ONE kernel's inputs.
# ----------------------------------------------------------------------------
def init_params(key, cfg):
    D, F = cfg["d_model"], cfg["d_ff"]
    NLe, NLd = cfg["num_enc_layers"], cfg["num_dec_layers"]
    keys = iter(jax.random.split(key, 64))

    def w(*shape):
        return (jax.random.normal(next(keys), shape, jnp.float32)
                * 0.02).astype(jnp.bfloat16)

    def zeros(*shape):
        return jnp.zeros(shape, jnp.float32)

    def ones_l(n):
        return jnp.ones((n, 1, D), jnp.float32)

    def zeros_l(n):
        return jnp.zeros((n, 1, D), jnp.float32)

    enc = dict(
        word_emb=jax.random.normal(next(keys), (cfg["vocab"], D),
                                   jnp.float32) * 0.02,
        pos_emb=jax.random.normal(next(keys), (cfg["max_pos"], D),
                                  jnp.float32) * 0.02,
        type_emb=jax.random.normal(next(keys), (cfg["type_vocab"], D),
                                   jnp.float32) * 0.02,
        emb_ln_g=jnp.ones((1, D), jnp.float32),
        emb_ln_b=jnp.zeros((1, D), jnp.float32),
        w_qkv=w(NLe, D, 3 * D), b_qkv=zeros(NLe, 1, 3 * D),
        w_o=w(NLe, D, D), b_o=zeros(NLe, 1, D),
        w1=w(NLe, D, F), b1=zeros(NLe, 1, F),
        w2=w(NLe, F, D), b2=zeros(NLe, 1, D),
        ln1_g=ones_l(NLe), ln1_b=zeros_l(NLe),
        ln2_g=ones_l(NLe), ln2_b=zeros_l(NLe),
    )
    dec = dict(
        s_w_qkv=w(NLd, D, 3 * D), s_b_qkv=zeros(NLd, 1, 3 * D),
        s_w_o=w(NLd, D, D), s_b_o=zeros(NLd, 1, D),
        c_w_q=w(NLd, D, D), c_b_q=zeros(NLd, 1, D),
        c_w_kv=w(NLd, D, 2 * D), c_b_kv=zeros(NLd, 1, 2 * D),
        c_w_o=w(NLd, D, D), c_b_o=zeros(NLd, 1, D),
        w1=w(NLd, D, F), b1=zeros(NLd, 1, F),
        w2=w(NLd, F, D), b2=zeros(NLd, 1, D),
        ln1_g=ones_l(NLd), ln1_b=zeros_l(NLd),
        ln2_g=ones_l(NLd), ln2_b=zeros_l(NLd),
        ln3_g=ones_l(NLd), ln3_b=zeros_l(NLd),
        final_ln_g=jnp.ones((1, D), jnp.float32),
        final_ln_b=jnp.zeros((1, D), jnp.float32),
        out_w=w(D, cfg["out_dim"]), out_b=zeros(1, cfg["out_dim"]),
    )
    return dict(encoder=enc, decoder=dec)


# ----------------------------------------------------------------------------
if __name__ == "__main__":
    cfg = dict(d_model=128, num_heads=4, d_ff=256,
               num_enc_layers=2, num_dec_layers=2,
               vocab=64, type_vocab=2, max_pos=64, out_dim=128)
    B, SRC_LEN, TRG_LEN = 2, 16, 8
    D = cfg["d_model"]

    root = jax.random.PRNGKey(0)
    k_param, k_ids, k_trg = jax.random.split(root, 3)
    params = init_params(k_param, cfg)

    input_ids = jax.random.randint(k_ids, (B, SRC_LEN), 0, cfg["vocab"],
                                   jnp.int32)
    lengths = jnp.array([SRC_LEN, SRC_LEN - 4], jnp.int32)
    attention_mask = (jnp.arange(SRC_LEN)[None, :]
                      < lengths[:, None]).astype(jnp.int32)
    token_type_ids = jnp.zeros((B, SRC_LEN), jnp.int32)
    trg_input = jax.random.normal(k_trg, (B, TRG_LEN, D), jnp.float32)
    trg_mask = jnp.broadcast_to(
        jnp.tril(jnp.ones((TRG_LEN, TRG_LEN), jnp.int32))[None],
        (B, TRG_LEN, TRG_LEN))

    fwd = jax.jit(lambda ids, am, tti, trg, tm, p:
                  text2layout_forward(ids, am, tti, trg, tm, p, cfg))
    logits, hidden = fwd(input_ids, attention_mask, token_type_ids,
                         trg_input, trg_mask, params)
    jax.block_until_ready(logits)
    jax.block_until_ready(hidden)
    assert logits.shape == (B, TRG_LEN, cfg["out_dim"])
    assert hidden.shape == (B, TRG_LEN, D)
    assert bool(jnp.all(jnp.isfinite(logits)))
    assert bool(jnp.all(jnp.isfinite(hidden)))
    print("KERNEL_OK")
</pallas_src>

<mosaic_0001>
module attributes {stable_mosaic.version = 11 : i64} {
  func.func @_decoder_stack_kernel(%arg0: i32, %arg1: memref<1x8x128xf32, #tpu.memory_space<vmem>>, %arg2: memref<8x128xf32, #tpu.memory_space<vmem>>, %arg3: memref<1x16x128xf32, #tpu.memory_space<vmem>>, %arg4: memref<1x1x16xi32, #tpu.memory_space<vmem>>, %arg5: memref<1x8x8xi32, #tpu.memory_space<vmem>>, %arg6: memref<2x128x384xbf16, #tpu.memory_space<vmem>>, %arg7: memref<2x1x384xf32, #tpu.memory_space<vmem>>, %arg8: memref<2x128x128xbf16, #tpu.memory_space<vmem>>, %arg9: memref<2x1x128xf32, #tpu.memory_space<vmem>>, %arg10: memref<2x128x128xbf16, #tpu.memory_space<vmem>>, %arg11: memref<2x1x128xf32, #tpu.memory_space<vmem>>, %arg12: memref<2x128x256xbf16, #tpu.memory_space<vmem>>, %arg13: memref<2x1x256xf32, #tpu.memory_space<vmem>>, %arg14: memref<2x128x128xbf16, #tpu.memory_space<vmem>>, %arg15: memref<2x1x128xf32, #tpu.memory_space<vmem>>, %arg16: memref<2x128x256xbf16, #tpu.memory_space<vmem>>, %arg17: memref<2x1x256xf32, #tpu.memory_space<vmem>>, %arg18: memref<2x256x128xbf16, #tpu.memory_space<vmem>>, %arg19: memref<2x1x128xf32, #tpu.memory_space<vmem>>, %arg20: memref<2x1x128xf32, #tpu.memory_space<vmem>>, %arg21: memref<2x1x128xf32, #tpu.memory_space<vmem>>, %arg22: memref<2x1x128xf32, #tpu.memory_space<vmem>>, %arg23: memref<2x1x128xf32, #tpu.memory_space<vmem>>, %arg24: memref<2x1x128xf32, #tpu.memory_space<vmem>>, %arg25: memref<2x1x128xf32, #tpu.memory_space<vmem>>, %arg26: memref<1x128xf32, #tpu.memory_space<vmem>>, %arg27: memref<1x128xf32, #tpu.memory_space<vmem>>, %arg28: memref<128x128xbf16, #tpu.memory_space<vmem>>, %arg29: memref<1x128xf32, #tpu.memory_space<vmem>>, %arg30: memref<1x8x128xf32, #tpu.memory_space<vmem>>, %arg31: memref<1x8x128xf32, #tpu.memory_space<vmem>>) attributes {dimension_semantics = [#tpu.dimension_semantics<parallel>], iteration_bounds = array<i64: 2>, scalar_prefetch = 0 : i64, scratch_operands = 0 : i64, tpu.core_type = #tpu.core_type<tc>, window_params = [{transform_indices = @transform_0, window_bounds = array<i64: 1, 8, 128>}, {pipeline_mode = #tpu.pipeline_mode<synchronous>, transform_indices = @transform_1, window_bounds = array<i64: 8, 128>}, {transform_indices = @transform_2, window_bounds = array<i64: 1, 16, 128>}, {transform_indices = @transform_3, window_bounds = array<i64: 1, 1, 16>}, {transform_indices = @transform_4, window_bounds = array<i64: 1, 8, 8>}, {pipeline_mode = #tpu.pipeline_mode<synchronous>, transform_indices = @transform_5, window_bounds = array<i64: 2, 128, 384>}, {pipeline_mode = #tpu.pipeline_mode<synchronous>, transform_indices = @transform_6, window_bounds = array<i64: 2, 1, 384>}, {pipeline_mode = #tpu.pipeline_mode<synchronous>, transform_indices = @transform_7, window_bounds = array<i64: 2, 128, 128>}, {pipeline_mode = #tpu.pipeline_mode<synchronous>, transform_indices = @transform_8, window_bounds = array<i64: 2, 1, 128>}, {pipeline_mode = #tpu.pipeline_mode<synchronous>, transform_indices = @transform_9, window_bounds = array<i64: 2, 128, 128>}, {pipeline_mode = #tpu.pipeline_mode<synchronous>, transform_indices = @transform_10, window_bounds = array<i64: 2, 1, 128>}, {pipeline_mode = #tpu.pipeline_mode<synchronous>, transform_indices = @transform_11, window_bounds = array<i64: 2, 128, 256>}, {pipeline_mode = #tpu.pipeline_mode<synchronous>, transform_indices = @transform_12, window_bounds = array<i64: 2, 1, 256>}, {pipeline_mode = #tpu.pipeline_mode<synchronous>, transform_indices = @transform_13, window_bounds = array<i64: 2, 128, 128>}, {pipeline_mode = #tpu.pipeline_mode<synchronous>, transform_indices = @transform_14, window_bounds = array<i64: 2, 1, 128>}, {pipeline_mode = #tpu.pipeline_mode<synchronous>, transform_indices = @transform_15, window_bounds = array<i64: 2, 128, 256>}, {pipeline_mode = #tpu.pipeline_mode<synchronous>, transform_indices = @transform_16, window_bounds = array<i64: 2, 1, 256>}, {pipeline_mode = #tpu.pipeline_mode<synchronous>, transform_indices = @transform_17, window_bounds = array<i64: 2, 256, 128>}, {pipeline_mode = #tpu.pipeline_mode<synchronous>, transform_indices = @transform_18, window_bounds = array<i64: 2, 1, 128>}, {pipeline_mode = #tpu.pipeline_mode<synchronous>, transform_indices = @transform_19, window_bounds = array<i64: 2, 1, 128>}, {pipeline_mode = #tpu.pipeline_mode<synchronous>, transform_indices = @transform_20, window_bounds = array<i64: 2, 1, 128>}, {pipeline_mode = #tpu.pipeline_mode<synchronous>, transform_indices = @transform_21, window_bounds = array<i64: 2, 1, 128>}, {pipeline_mode = #tpu.pipeline_mode<synchronous>, transform_indices = @transform_22, window_bounds = array<i64: 2, 1, 128>}, {pipeline_mode = #tpu.pipeline_mode<synchronous>, transform_indices = @transform_23, window_bounds = array<i64: 2, 1, 128>}, {pipeline_mode = #tpu.pipeline_mode<synchronous>, transform_indices = @transform_24, window_bounds = array<i64: 2, 1, 128>}, {pipeline_mode = #tpu.pipeline_mode<synchronous>, transform_indices = @transform_25, window_bounds = array<i64: 1, 128>}, {pipeline_mode = #tpu.pipeline_mode<synchronous>, transform_indices = @transform_26, window_bounds = array<i64: 1, 128>}, {pipeline_mode = #tpu.pipeline_mode<synchronous>, transform_indices = @transform_27, window_bounds = array<i64: 128, 128>}, {pipeline_mode = #tpu.pipeline_mode<synchronous>, transform_indices = @transform_28, window_bounds = array<i64: 1, 128>}, {transform_indices = @transform_29, window_bounds = array<i64: 1, 8, 128>}, {transform_indices = @transform_30, window_bounds = array<i64: 1, 8, 128>}]} {
    %c0 = arith.constant 0 : index
    %c0_0 = arith.constant 0 : index
    %c0_1 = arith.constant 0 : index
    %0 = vector.load %arg4[%c0, %c0_0, %c0_1] : memref<1x1x16xi32, #tpu.memory_space<vmem>>, vector<1x1x16xi32>
    %1 = vector.shape_cast %0 : vector<1x1x16xi32> to vector<1x16xi32>
    %c0_i32 = arith.constant 0 : i32
    %2 = vector.broadcast %c0_i32 : i32 to vector<1x16xi32>
    %3 = arith.cmpi sgt, %1, %2 : vector<1x16xi32>
    %c0_2 = arith.constant 0 : index
    %c0_3 = arith.constant 0 : index
    %c0_4 = arith.constant 0 : index
    %4 = vector.load %arg5[%c0_2, %c0_3, %c0_4] : memref<1x8x8xi32, #tpu.memory_space<vmem>>, vector<1x8x8xi32>
    %5 = vector.shape_cast %4 : vector<1x8x8xi32> to vector<8x8xi32>
    %c0_i32_5 = arith.constant 0 : i32
    %6 = vector.broadcast %c0_i32_5 : i32 to vector<8x8xi32>
    %7 = arith.cmpi sgt, %5, %6 : vector<8x8xi32>
    %c0_6 = arith.constant 0 : index
    %c0_7 = arith.constant 0 : index
    %c0_8 = arith.constant 0 : index
    %8 = vector.load %arg1[%c0_6, %c0_7, %c0_8] : memref<1x8x128xf32, #tpu.memory_space<vmem>>, vector<1x8x128xf32>
    %9 = vector.shape_cast %8 : vector<1x8x128xf32> to vector<8x128xf32>
    %c0_9 = arith.constant 0 : index
    %c0_10 = arith.constant 0 : index
    %10 = vector.load %arg2[%c0_9, %c0_10] : memref<8x128xf32, #tpu.memory_space<vmem>>, vector<8x128xf32>
    %11 = arith.addf %9, %10 : vector<8x128xf32>
    %c0_11 = arith.constant 0 : index
    %c0_12 = arith.constant 0 : index
    %c0_13 = arith.constant 0 : index
    %12 = vector.load %arg3[%c0_11, %c0_12, %c0_13] : memref<1x16x128xf32, #tpu.memory_space<vmem>>, vector<1x16x128xf32>
    %13 = vector.shape_cast %12 : vector<1x16x128xf32> to vector<16x128xf32>
    %14 = arith.truncf %13 : vector<16x128xf32> to vector<16x128xbf16>
    %c0_14 = arith.constant 0 : index
    %c0_15 = arith.constant 0 : index
    %c0_16 = arith.constant 0 : index
    %15 = vector.load %arg20[%c0_14, %c0_15, %c0_16] : memref<2x1x128xf32, #tpu.memory_space<vmem>>, vector<1x1x128xf32>
    %16 = vector.shape_cast %15 : vector<1x1x128xf32> to vector<1x128xf32>
    %c0_17 = arith.constant 0 : index
    %c0_18 = arith.constant 0 : index
    %c0_19 = arith.constant 0 : index
    %17 = vector.load %arg21[%c0_17, %c0_18, %c0_19] : memref<2x1x128xf32, #tpu.memory_space<vmem>>, vector<1x1x128xf32>
    %18 = vector.shape_cast %17 : vector<1x1x128xf32> to vector<1x128xf32>
    %cst = arith.constant dense<0.000000e+00> : vector<8xf32>
    %19 = vector.multi_reduction <add>, %11, %cst [1] : vector<8x128xf32> to vector<8xf32>
    %20 = vector.shape_cast %19 : vector<8xf32> to vector<8x1xf32>
    %cst_20 = arith.constant 1.280000e+02 : f32
    %21 = vector.broadcast %cst_20 : f32 to vector<8x1xf32>
    %22 = arith.divf %20, %21 : vector<8x1xf32>
    %23 = vector.broadcast %22 : vector<8x1xf32> to vector<8x128xf32>
    %24 = arith.subf %11, %23 : vector<8x128xf32>
    %25 = arith.mulf %24, %24 : vector<8x128xf32>
    %cst_21 = arith.constant dense<0.000000e+00> : vector<8xf32>
    %26 = vector.multi_reduction <add>, %25, %cst_21 [1] : vector<8x128xf32> to vector<8xf32>
    %27 = vector.shape_cast %26 : vector<8xf32> to vector<8x1xf32>
    %cst_22 = arith.constant 1.280000e+02 : f32
    %28 = vector.broadcast %cst_22 : f32 to vector<8x1xf32>
    %29 = arith.divf %27, %28 : vector<8x1xf32>
    %30 = vector.broadcast %22 : vector<8x1xf32> to vector<8x128xf32>
    %31 = arith.subf %11, %30 : vector<8x128xf32>
    %cst_23 = arith.constant 9.99999997E-7 : f32
    %32 = vector.broadcast %cst_23 : f32 to vector<8x1xf32>
    %33 = arith.addf %29, %32 : vector<8x1xf32>
    %34 = math.rsqrt %33 : vector<8x1xf32>
    %35 = vector.broadcast %34 : vector<8x1xf32> to vector<8x128xf32>
    %36 = arith.mulf %31, %35 : vector<8x128xf32>
    %37 = vector.broadcast %16 : vector<1x128xf32> to vector<8x128xf32>
    %38 = arith.mulf %36, %37 : vector<8x128xf32>
    %39 = vector.broadcast %18 : vector<1x128xf32> to vector<8x128xf32>
    %40 = arith.addf %38, %39 : vector<8x128xf32>
    %41 = arith.truncf %40 : vector<8x128xf32> to vector<8x128xbf16>
    %c0_24 = arith.constant 0 : index
    %c0_25 = arith.constant 0 : index
    %c0_26 = arith.constant 0 : index
    %42 = vector.load %arg6[%c0_24, %c0_25, %c0_26] : memref<2x128x384xbf16, #tpu.memory_space<vmem>>, vector<1x128x384xbf16>
    %43 = vector.shape_cast %42 : vector<1x128x384xbf16> to vector<128x384xbf16>
    %c0_27 = arith.constant 0 : index
    %c0_28 = arith.constant 0 : index
    %c0_29 = arith.constant 0 : index
    %44 = vector.load %arg7[%c0_27, %c0_28, %c0_29] : memref<2x1x384xf32, #tpu.memory_space<vmem>>, vector<1x1x384xf32>
    %45 = vector.shape_cast %44 : vector<1x1x384xf32> to vector<1x384xf32>
    %cst_30 = arith.constant dense<0.000000e+00> : vector<8x384xf32>
    %46 = tpu.matmul %41, %43, %cst_30 {dimension_numbers = #tpu.dot_dimension_numbers<[1], [0], [0], [1], [0, 0, 1, 1], [], []>} : vector<8x128xbf16>, vector<128x384xbf16>, vector<8x384xf32> -> vector<8x384xf32>
    %47 = vector.broadcast %45 : vector<1x384xf32> to vector<8x384xf32>
    %48 = arith.addf %46, %47 : vector<8x384xf32>
    %49 = vector.extract_strided_slice %48 {offsets = [0, 0], sizes = [8, 128], strides = [1, 1]} : vector<8x384xf32> to vector<8x128xf32>
    %50 = vector.extract_strided_slice %48 {offsets = [0, 128], sizes = [8, 128], strides = [1, 1]} : vector<8x384xf32> to vector<8x128xf32>
    %51 = vector.extract_strided_slice %48 {offsets = [0, 256], sizes = [8, 128], strides = [1, 1]} : vector<8x384xf32> to vector<8x128xf32>
    %c0_31 = arith.constant 0 : index
    %c0_32 = arith.constant 0 : index
    %c0_33 = arith.constant 0 : index
    %52 = vector.load %arg8[%c0_31, %c0_32, %c0_33] : memref<2x128x128xbf16, #tpu.memory_space<vmem>>, vector<1x128x128xbf16>
    %53 = vector.shape_cast %52 : vector<1x128x128xbf16> to vector<128x128xbf16>
    %c0_34 = arith.constant 0 : index
    %c0_35 = arith.constant 0 : index
    %c0_36 = arith.constant 0 : index
    %54 = vector.load %arg9[%c0_34, %c0_35, %c0_36] : memref<2x1x128xf32, #tpu.memory_space<vmem>>, vector<1x1x128xf32>
    %55 = vector.shape_cast %54 : vector<1x1x128xf32> to vector<1x128xf32>
    %56 = arith.truncf %49 : vector<8x128xf32> to vector<8x128xbf16>
    %57 = arith.truncf %50 : vector<8x128xf32> to vector<8x128xbf16>
    %58 = arith.truncf %51 : vector<8x128xf32> to vector<8x128xbf16>
    %59 = vector.extract_strided_slice %56 {offsets = [0, 0], sizes = [8, 32], strides = [1, 1]} : vector<8x128xbf16> to vector<8x32xbf16>
    %60 = vector.extract_strided_slice %57 {offsets = [0, 0], sizes = [8, 32], strides = [1, 1]} : vector<8x128xbf16> to vector<8x32xbf16>
    %cst_37 = arith.constant dense<0.000000e+00> : vector<8x8xf32>
    %61 = tpu.matmul %59, %60, %cst_37 {dimension_numbers = #tpu.dot_dimension_numbers<[1], [1], [0], [0], [0, 0, 1, 0], [], []>} : vector<8x32xbf16>, vector<8x32xbf16>, vector<8x8xf32> -> vector<8x8xf32>
    %cst_38 = arith.constant 0.176776692 : f32
    %62 = vector.broadcast %cst_38 : f32 to vector<8x8xf32>
    %63 = arith.mulf %61, %62 : vector<8x8xf32>
    %cst_39 = arith.constant -1.000000e+09 : f32
    %64 = vector.broadcast %cst_39 : f32 to vector<8x8xf32>
    %65 = arith.select %7, %63, %64 : vector<8x8xi1>, vector<8x8xf32>
    %cst_40 = arith.constant dense<0xFF800000> : vector<8xf32>
    %66 = vector.multi_reduction <maximumf>, %65, %cst_40 [1] : vector<8x8xf32> to vector<8xf32>
    %67 = vector.shape_cast %66 : vector<8xf32> to vector<8x1xf32>
    %68 = vector.broadcast %67 : vector<8x1xf32> to vector<8x8xf32>
    %69 = arith.subf %65, %68 : vector<8x8xf32>
    %70 = math.exp %69 : vector<8x8xf32>
    %cst_41 = arith.constant dense<0.000000e+00> : vector<8xf32>
    %71 = vector.multi_reduction <add>, %70, %cst_41 [1] : vector<8x8xf32> to vector<8xf32>
    %72 = vector.shape_cast %71 : vector<8xf32> to vector<8x1xf32>
    %73 = tpu.reciprocal %72 {approx = true} : vector<8x1xf32> -> vector<8x1xf32>
    %74 = vector.broadcast %73 : vector<8x1xf32> to vector<8x8xf32>
    %75 = arith.mulf %70, %74 : vector<8x8xf32>
    %76 = arith.truncf %75 : vector<8x8xf32> to vector<8x8xbf16>
    %77 = vector.extract_strided_slice %58 {offsets = [0, 0], sizes = [8, 32], strides = [1, 1]} : vector<8x128xbf16> to vector<8x32xbf16>
    %cst_42 = arith.constant dense<0.000000e+00> : vector<8x32xf32>
    %78 = tpu.matmul %76, %77, %cst_42 {dimension_numbers = #tpu.dot_dimension_numbers<[1], [0], [0], [1], [0, 0, 1, 1], [], []>} : vector<8x8xbf16>, vector<8x32xbf16>, vector<8x32xf32> -> vector<8x32xf32>
    %79 = vector.extract_strided_slice %56 {offsets = [0, 32], sizes = [8, 32], strides = [1, 1]} : vector<8x128xbf16> to vector<8x32xbf16>
    %80 = vector.extract_strided_slice %57 {offsets = [0, 32], sizes = [8, 32], strides = [1, 1]} : vector<8x128xbf16> to vector<8x32xbf16>
    %cst_43 = arith.constant dense<0.000000e+00> : vector<8x8xf32>
    %81 = tpu.matmul %79, %80, %cst_43 {dimension_numbers = #tpu.dot_dimension_numbers<[1], [1], [0], [0], [0, 0, 1, 0], [], []>} : vector<8x32xbf16>, vector<8x32xbf16>, vector<8x8xf32> -> vector<8x8xf32>
    %cst_44 = arith.constant 0.176776692 : f32
    %82 = vector.broadcast %cst_44 : f32 to vector<8x8xf32>
    %83 = arith.mulf %81, %82 : vector<8x8xf32>
    %cst_45 = arith.constant -1.000000e+09 : f32
    %84 = vector.broadcast %cst_45 : f32 to vector<8x8xf32>
    %85 = arith.select %7, %83, %84 : vector<8x8xi1>, vector<8x8xf32>
    %cst_46 = arith.constant dense<0xFF800000> : vector<8xf32>
    %86 = vector.multi_reduction <maximumf>, %85, %cst_46 [1] : vector<8x8xf32> to vector<8xf32>
    %87 = vector.shape_cast %86 : vector<8xf32> to vector<8x1xf32>
    %88 = vector.broadcast %87 : vector<8x1xf32> to vector<8x8xf32>
    %89 = arith.subf %85, %88 : vector<8x8xf32>
    %90 = math.exp %89 : vector<8x8xf32>
    %cst_47 = arith.constant dense<0.000000e+00> : vector<8xf32>
    %91 = vector.multi_reduction <add>, %90, %cst_47 [1] : vector<8x8xf32> to vector<8xf32>
    %92 = vector.shape_cast %91 : vector<8xf32> to vector<8x1xf32>
    %93 = tpu.reciprocal %92 {approx = true} : vector<8x1xf32> -> vector<8x1xf32>
    %94 = vector.broadcast %93 : vector<8x1xf32> to vector<8x8xf32>
    %95 = arith.mulf %90, %94 : vector<8x8xf32>
    %96 = arith.truncf %95 : vector<8x8xf32> to vector<8x8xbf16>
    %97 = vector.extract_strided_slice %58 {offsets = [0, 32], sizes = [8, 32], strides = [1, 1]} : vector<8x128xbf16> to vector<8x32xbf16>
    %cst_48 = arith.constant dense<0.000000e+00> : vector<8x32xf32>
    %98 = tpu.matmul %96, %97, %cst_48 {dimension_numbers = #tpu.dot_dimension_numbers<[1], [0], [0], [1], [0, 0, 1, 1], [], []>} : vector<8x8xbf16>, vector<8x32xbf16>, vector<8x32xf32> -> vector<8x32xf32>
    %99 = vector.extract_strided_slice %56 {offsets = [0, 64], sizes = [8, 32], strides = [1, 1]} : vector<8x128xbf16> to vector<8x32xbf16>
    %100 = vector.extract_strided_slice %57 {offsets = [0, 64], sizes = [8, 32], strides = [1, 1]} : vector<8x128xbf16> to vector<8x32xbf16>
    %cst_49 = arith.constant dense<0.000000e+00> : vector<8x8xf32>
    %101 = tpu.matmul %99, %100, %cst_49 {dimension_numbers = #tpu.dot_dimension_numbers<[1], [1], [0], [0], [0, 0, 1, 0], [], []>} : vector<8x32xbf16>, vector<8x32xbf16>, vector<8x8xf32> -> vector<8x8xf32>
    %cst_50 = arith.constant 0.176776692 : f32
    %102 = vector.broadcast %cst_50 : f32 to vector<8x8xf32>
    %103 = arith.mulf %101, %102 : vector<8x8xf32>
    %cst_51 = arith.constant -1.000000e+09 : f32
    %104 = vector.broadcast %cst_51 : f32 to vector<8x8xf32>
    %105 = arith.select %7, %103, %104 : vector<8x8xi1>, vector<8x8xf32>
    %cst_52 = arith.constant dense<0xFF800000> : vector<8xf32>
    %106 = vector.multi_reduction <maximumf>, %105, %cst_52 [1] : vector<8x8xf32> to vector<8xf32>
    %107 = vector.shape_cast %106 : vector<8xf32> to vector<8x1xf32>
    %108 = vector.broadcast %107 : vector<8x1xf32> to vector<8x8xf32>
    %109 = arith.subf %105, %108 : vector<8x8xf32>
    %110 = math.exp %109 : vector<8x8xf32>
    %cst_53 = arith.constant dense<0.000000e+00> : vector<8xf32>
    %111 = vector.multi_reduction <add>, %110, %cst_53 [1] : vector<8x8xf32> to vector<8xf32>
    %112 = vector.shape_cast %111 : vector<8xf32> to vector<8x1xf32>
    %113 = tpu.reciprocal %112 {approx = true} : vector<8x1xf32> -> vector<8x1xf32>
    %114 = vector.broadcast %113 : vector<8x1xf32> to vector<8x8xf32>
    %115 = arith.mulf %110, %114 : vector<8x8xf32>
    %116 = arith.truncf %115 : vector<8x8xf32> to vector<8x8xbf16>
    %117 = vector.extract_strided_slice %58 {offsets = [0, 64], sizes = [8, 32], strides = [1, 1]} : vector<8x128xbf16> to vector<8x32xbf16>
    %cst_54 = arith.constant dense<0.000000e+00> : vector<8x32xf32>
    %118 = tpu.matmul %116, %117, %cst_54 {dimension_numbers = #tpu.dot_dimension_numbers<[1], [0], [0], [1], [0, 0, 1, 1], [], []>} : vector<8x8xbf16>, vector<8x32xbf16>, vector<8x32xf32> -> vector<8x32xf32>
    %119 = vector.extract_strided_slice %56 {offsets = [0, 96], sizes = [8, 32], strides = [1, 1]} : vector<8x128xbf16> to vector<8x32xbf16>
    %120 = vector.extract_strided_slice %57 {offsets = [0, 96], sizes = [8, 32], strides = [1, 1]} : vector<8x128xbf16> to vector<8x32xbf16>
    %cst_55 = arith.constant dense<0.000000e+00> : vector<8x8xf32>
    %121 = tpu.matmul %119, %120, %cst_55 {dimension_numbers = #tpu.dot_dimension_numbers<[1], [1], [0], [0], [0, 0, 1, 0], [], []>} : vector<8x32xbf16>, vector<8x32xbf16>, vector<8x8xf32> -> vector<8x8xf32>
    %cst_56 = arith.constant 0.176776692 : f32
    %122 = vector.broadcast %cst_56 : f32 to vector<8x8xf32>
    %123 = arith.mulf %121, %122 : vector<8x8xf32>
    %cst_57 = arith.constant -1.000000e+09 : f32
    %124 = vector.broadcast %cst_57 : f32 to vector<8x8xf32>
    %125 = arith.select %7, %123, %124 : vector<8x8xi1>, vector<8x8xf32>
    %cst_58 = arith.constant dense<0xFF800000> : vector<8xf32>
    %126 = vector.multi_reduction <maximumf>, %125, %cst_58 [1] : vector<8x8xf32> to vector<8xf32>
    %127 = vector.shape_cast %126 : vector<8xf32> to vector<8x1xf32>
    %128 = vector.broadcast %127 : vector<8x1xf32> to vector<8x8xf32>
    %129 = arith.subf %125, %128 : vector<8x8xf32>
    %130 = math.exp %129 : vector<8x8xf32>
    %cst_59 = arith.constant dense<0.000000e+00> : vector<8xf32>
    %131 = vector.multi_reduction <add>, %130, %cst_59 [1] : vector<8x8xf32> to vector<8xf32>
    %132 = vector.shape_cast %131 : vector<8xf32> to vector<8x1xf32>
    %133 = tpu.reciprocal %132 {approx = true} : vector<8x1xf32> -> vector<8x1xf32>
    %134 = vector.broadcast %133 : vector<8x1xf32> to vector<8x8xf32>
    %135 = arith.mulf %130, %134 : vector<8x8xf32>
    %136 = arith.truncf %135 : vector<8x8xf32> to vector<8x8xbf16>
    %137 = vector.extract_strided_slice %58 {offsets = [0, 96], sizes = [8, 32], strides = [1, 1]} : vector<8x128xbf16> to vector<8x32xbf16>
    %cst_60 = arith.constant dense<0.000000e+00> : vector<8x32xf32>
    %138 = tpu.matmul %136, %137, %cst_60 {dimension_numbers = #tpu.dot_dimension_numbers<[1], [0], [0], [1], [0, 0, 1, 1], [], []>} : vector<8x8xbf16>, vector<8x32xbf16>, vector<8x32xf32> -> vector<8x32xf32>
    %139 = tpu.concatenate %78, %98, %118, %138 in 1 : vector<8x32xf32>, vector<8x32xf32>, vector<8x32xf32>, vector<8x32xf32> -> vector<8x128xf32>
    %140 = arith.truncf %139 : vector<8x128xf32> to vector<8x128xbf16>
    %cst_61 = arith.constant dense<0.000000e+00> : vector<8x128xf32>
    %141 = tpu.matmul %140, %53, %cst_61 {dimension_numbers = #tpu.dot_dimension_numbers<[1], [0], [0], [1], [0, 0, 1, 1], [], []>} : vector<8x128xbf16>, vector<128x128xbf16>, vector<8x128xf32> -> vector<8x128xf32>
    %142 = vector.broadcast %55 : vector<1x128xf32> to vector<8x128xf32>
    %143 = arith.addf %141, %142 : vector<8x128xf32>
    %144 = arith.addf %11, %143 : vector<8x128xf32>
    %c0_62 = arith.constant 0 : index
    %c0_63 = arith.constant 0 : index
    %c0_64 = arith.constant 0 : index
    %145 = vector.load %arg22[%c0_62, %c0_63, %c0_64] : memref<2x1x128xf32, #tpu.memory_space<vmem>>, vector<1x1x128xf32>
    %146 = vector.shape_cast %145 : vector<1x1x128xf32> to vector<1x128xf32>
    %c0_65 = arith.constant 0 : index
    %c0_66 = arith.constant 0 : index
    %c0_67 = arith.constant 0 : index
    %147 = vector.load %arg23[%c0_65, %c0_66, %c0_67] : memref<2x1x128xf32, #tpu.memory_space<vmem>>, vector<1x1x128xf32>
    %148 = vector.shape_cast %147 : vector<1x1x128xf32> to vector<1x128xf32>
    %cst_68 = arith.constant dense<0.000000e+00> : vector<8xf32>
    %149 = vector.multi_reduction <add>, %144, %cst_68 [1] : vector<8x128xf32> to vector<8xf32>
    %150 = vector.shape_cast %149 : vector<8xf32> to vector<8x1xf32>
    %cst_69 = arith.constant 1.280000e+02 : f32
    %151 = vector.broadcast %cst_69 : f32 to vector<8x1xf32>
    %152 = arith.divf %150, %151 : vector<8x1xf32>
    %153 = vector.broadcast %152 : vector<8x1xf32> to vector<8x128xf32>
    %154 = arith.subf %144, %153 : vector<8x128xf32>
    %155 = arith.mulf %154, %154 : vector<8x128xf32>
    %cst_70 = arith.constant dense<0.000000e+00> : vector<8xf32>
    %156 = vector.multi_reduction <add>, %155, %cst_70 [1] : vector<8x128xf32> to vector<8xf32>
    %157 = vector.shape_cast %156 : vector<8xf32> to vector<8x1xf32>
    %cst_71 = arith.constant 1.280000e+02 : f32
    %158 = vector.broadcast %cst_71 : f32 to vector<8x1xf32>
    %159 = arith.divf %157, %158 : vector<8x1xf32>
    %160 = vector.broadcast %152 : vector<8x1xf32> to vector<8x128xf32>
    %161 = arith.subf %144, %160 : vector<8x128xf32>
    %cst_72 = arith.constant 9.99999997E-7 : f32
    %162 = vector.broadcast %cst_72 : f32 to vector<8x1xf32>
    %163 = arith.addf %159, %162 : vector<8x1xf32>
    %164 = math.rsqrt %163 : vector<8x1xf32>
    %165 = vector.broadcast %164 : vector<8x1xf32> to vector<8x128xf32>
    %166 = arith.mulf %161, %165 : vector<8x128xf32>
    %167 = vector.broadcast %146 : vector<1x128xf32> to vector<8x128xf32>
    %168 = arith.mulf %166, %167 : vector<8x128xf32>
    %169 = vector.broadcast %148 : vector<1x128xf32> to vector<8x128xf32>
    %170 = arith.addf %168, %169 : vector<8x128xf32>
    %171 = arith.truncf %170 : vector<8x128xf32> to vector<8x128xbf16>
    %c0_73 = arith.constant 0 : index
    %c0_74 = arith.constant 0 : index
    %c0_75 = arith.constant 0 : index
    %172 = vector.load %arg10[%c0_73, %c0_74, %c0_75] : memref<2x128x128xbf16, #tpu.memory_space<vmem>>, vector<1x128x128xbf16>
    %173 = vector.shape_cast %172 : vector<1x128x128xbf16> to vector<128x128xbf16>
    %c0_76 = arith.constant 0 : index
    %c0_77 = arith.constant 0 : index
    %c0_78 = arith.constant 0 : index
    %174 = vector.load %arg11[%c0_76, %c0_77, %c0_78] : memref<2x1x128xf32, #tpu.memory_space<vmem>>, vector<1x1x128xf32>
    %175 = vector.shape_cast %174 : vector<1x1x128xf32> to vector<1x128xf32>
    %cst_79 = arith.constant dense<0.000000e+00> : vector<8x128xf32>
    %176 = tpu.matmul %171, %173, %cst_79 {dimension_numbers = #tpu.dot_dimension_numbers<[1], [0], [0], [1], [0, 0, 1, 1], [], []>} : vector<8x128xbf16>, vector<128x128xbf16>, vector<8x128xf32> -> vector<8x128xf32>
    %177 = vector.broadcast %175 : vector<1x128xf32> to vector<8x128xf32>
    %178 = arith.addf %176, %177 : vector<8x128xf32>
    %c0_80 = arith.constant 0 : index
    %c0_81 = arith.constant 0 : index
    %c0_82 = arith.constant 0 : index
    %179 = vector.load %arg12[%c0_80, %c0_81, %c0_82] : memref<2x128x256xbf16, #tpu.memory_space<vmem>>, vector<1x128x256xbf16>
    %180 = vector.shape_cast %179 : vector<1x128x256xbf16> to vector<128x256xbf16>
    %c0_83 = arith.constant 0 : index
    %c0_84 = arith.constant 0 : index
    %c0_85 = arith.constant 0 : index
    %181 = vector.load %arg13[%c0_83, %c0_84, %c0_85] : memref<2x1x256xf32, #tpu.memory_space<vmem>>, vector<1x1x256xf32>
    %182 = vector.shape_cast %181 : vector<1x1x256xf32> to vector<1x256xf32>
    %cst_86 = arith.constant dense<0.000000e+00> : vector<16x256xf32>
    %183 = tpu.matmul %14, %180, %cst_86 {dimension_numbers = #tpu.dot_dimension_numbers<[1], [0], [0], [1], [0, 0, 1, 1], [], []>} : vector<16x128xbf16>, vector<128x256xbf16>, vector<16x256xf32> -> vector<16x256xf32>
    %184 = vector.broadcast %182 : vector<1x256xf32> to vector<16x256xf32>
    %185 = arith.addf %183, %184 : vector<16x256xf32>
    %186 = vector.extract_strided_slice %185 {offsets = [0, 0], sizes = [16, 128], strides = [1, 1]} : vector<16x256xf32> to vector<16x128xf32>
    %187 = vector.extract_strided_slice %185 {offsets = [0, 128], sizes = [16, 128], strides = [1, 1]} : vector<16x256xf32> to vector<16x128xf32>
    %c0_87 = arith.constant 0 : index
    %c0_88 = arith.constant 0 : index
    %c0_89 = arith.constant 0 : index
    %188 = vector.load %arg14[%c0_87, %c0_88, %c0_89] : memref<2x128x128xbf16, #tpu.memory_space<vmem>>, vector<1x128x128xbf16>
    %189 = vector.shape_cast %188 : vector<1x128x128xbf16> to vector<128x128xbf16>
    %c0_90 = arith.constant 0 : index
    %c0_91 = arith.constant 0 : index
    %c0_92 = arith.constant 0 : index
    %190 = vector.load %arg15[%c0_90, %c0_91, %c0_92] : memref<2x1x128xf32, #tpu.memory_space<vmem>>, vector<1x1x128xf32>
    %191 = vector.shape_cast %190 : vector<1x1x128xf32> to vector<1x128xf32>
    %192 = arith.truncf %178 : vector<8x128xf32> to vector<8x128xbf16>
    %193 = arith.truncf %186 : vector<16x128xf32> to vector<16x128xbf16>
    %194 = arith.truncf %187 : vector<16x128xf32> to vector<16x128xbf16>
    %195 = vector.extract_strided_slice %192 {offsets = [0, 0], sizes = [8, 32], strides = [1, 1]} : vector<8x128xbf16> to vector<8x32xbf16>
    %196 = vector.extract_strided_slice %193 {offsets = [0, 0], sizes = [16, 32], strides = [1, 1]} : vector<16x128xbf16> to vector<16x32xbf16>
    %cst_93 = arith.constant dense<0.000000e+00> : vector<8x16xf32>
    %197 = tpu.matmul %195, %196, %cst_93 {dimension_numbers = #tpu.dot_dimension_numbers<[1], [1], [0], [0], [0, 0, 1, 0], [], []>} : vector<8x32xbf16>, vector<16x32xbf16>, vector<8x16xf32> -> vector<8x16xf32>
    %cst_94 = arith.constant 0.176776692 : f32
    %198 = vector.broadcast %cst_94 : f32 to vector<8x16xf32>
    %199 = arith.mulf %197, %198 : vector<8x16xf32>
    %cst_95 = arith.constant -1.000000e+09 : f32
    %200 = vector.shape_cast %3 : vector<1x16xi1> to vector<1x16xi1>
    %201 = vector.broadcast %200 : vector<1x16xi1> to vector<8x16xi1>
    %202 = vector.broadcast %cst_95 : f32 to vector<8x16xf32>
    %203 = arith.select %201, %199, %202 : vector<8x16xi1>, vector<8x16xf32>
    %cst_96 = arith.constant dense<0xFF800000> : vector<8xf32>
    %204 = vector.multi_reduction <maximumf>, %203, %cst_96 [1] : vector<8x16xf32> to vector<8xf32>
    %205 = vector.shape_cast %204 : vector<8xf32> to vector<8x1xf32>
    %206 = vector.broadcast %205 : vector<8x1xf32> to vector<8x16xf32>
    %207 = arith.subf %203, %206 : vector<8x16xf32>
    %208 = math.exp %207 : vector<8x16xf32>
    %cst_97 = arith.constant dense<0.000000e+00> : vector<8xf32>
    %209 = vector.multi_reduction <add>, %208, %cst_97 [1] : vector<8x16xf32> to vector<8xf32>
    %210 = vector.shape_cast %209 : vector<8xf32> to vector<8x1xf32>
    %211 = tpu.reciprocal %210 {approx = true} : vector<8x1xf32> -> vector<8x1xf32>
    %212 = vector.broadcast %211 : vector<8x1xf32> to vector<8x16xf32>
    %213 = arith.mulf %208, %212 : vector<8x16xf32>
    %214 = arith.truncf %213 : vector<8x16xf32> to vector<8x16xbf16>
    %215 = vector.extract_strided_slice %194 {offsets = [0, 0], sizes = [16, 32], strides = [1, 1]} : vector<16x128xbf16> to vector<16x32xbf16>
    %cst_98 = arith.constant dense<0.000000e+00> : vector<8x32xf32>
    %216 = tpu.matmul %214, %215, %cst_98 {dimension_numbers = #tpu.dot_dimension_numbers<[1], [0], [0], [1], [0, 0, 1, 1], [], []>} : vector<8x16xbf16>, vector<16x32xbf16>, vector<8x32xf32> -> vector<8x32xf32>
    %217 = vector.extract_strided_slice %192 {offsets = [0, 32], sizes = [8, 32], strides = [1, 1]} : vector<8x128xbf16> to vector<8x32xbf16>
    %218 = vector.extract_strided_slice %193 {offsets = [0, 32], sizes = [16, 32], strides = [1, 1]} : vector<16x128xbf16> to vector<16x32xbf16>
    %cst_99 = arith.constant dense<0.000000e+00> : vector<8x16xf32>
    %219 = tpu.matmul %217, %218, %cst_99 {dimension_numbers = #tpu.dot_dimension_numbers<[1], [1], [0], [0], [0, 0, 1, 0], [], []>} : vector<8x32xbf16>, vector<16x32xbf16>, vector<8x16xf32> -> vector<8x16xf32>
    %cst_100 = arith.constant 0.176776692 : f32
    %220 = vector.broadcast %cst_100 : f32 to vector<8x16xf32>
    %221 = arith.mulf %219, %220 : vector<8x16xf32>
    %cst_101 = arith.constant -1.000000e+09 : f32
    %222 = vector.shape_cast %3 : vector<1x16xi1> to vector<1x16xi1>
    %223 = vector.broadcast %222 : vector<1x16xi1> to vector<8x16xi1>
    %224 = vector.broadcast %cst_101 : f32 to vector<8x16xf32>
    %225 = arith.select %223, %221, %224 : vector<8x16xi1>, vector<8x16xf32>
    %cst_102 = arith.constant dense<0xFF800000> : vector<8xf32>
    %226 = vector.multi_reduction <maximumf>, %225, %cst_102 [1] : vector<8x16xf32> to vector<8xf32>
    %227 = vector.shape_cast %226 : vector<8xf32> to vector<8x1xf32>
    %228 = vector.broadcast %227 : vector<8x1xf32> to vector<8x16xf32>
    %229 = arith.subf %225, %228 : vector<8x16xf32>
    %230 = math.exp %229 : vector<8x16xf32>
    %cst_103 = arith.constant dense<0.000000e+00> : vector<8xf32>
    %231 = vector.multi_reduction <add>, %230, %cst_103 [1] : vector<8x16xf32> to vector<8xf32>
    %232 = vector.shape_cast %231 : vector<8xf32> to vector<8x1xf32>
    %233 = tpu.reciprocal %232 {approx = true} : vector<8x1xf32> -> vector<8x1xf32>
    %234 = vector.broadcast %233 : vector<8x1xf32> to vector<8x16xf32>
    %235 = arith.mulf %230, %234 : vector<8x16xf32>
    %236 = arith.truncf %235 : vector<8x16xf32> to vector<8x16xbf16>
    %237 = vector.extract_strided_slice %194 {offsets = [0, 32], sizes = [16, 32], strides = [1, 1]} : vector<16x128xbf16> to vector<16x32xbf16>
    %cst_104 = arith.constant dense<0.000000e+00> : vector<8x32xf32>
    %238 = tpu.matmul %236, %237, %cst_104 {dimension_numbers = #tpu.dot_dimension_numbers<[1], [0], [0], [1], [0, 0, 1, 1], [], []>} : vector<8x16xbf16>, vector<16x32xbf16>, vector<8x32xf32> -> vector<8x32xf32>
    %239 = vector.extract_strided_slice %192 {offsets = [0, 64], sizes = [8, 32], strides = [1, 1]} : vector<8x128xbf16> to vector<8x32xbf16>
    %240 = vector.extract_strided_slice %193 {offsets = [0, 64], sizes = [16, 32], strides = [1, 1]} : vector<16x128xbf16> to vector<16x32xbf16>
    %cst_105 = arith.constant dense<0.000000e+00> : vector<8x16xf32>
    %241 = tpu.matmul %239, %240, %cst_105 {dimension_numbers = #tpu.dot_dimension_numbers<[1], [1], [0], [0], [0, 0, 1, 0], [], []>} : vector<8x32xbf16>, vector<16x32xbf16>, vector<8x16xf32> -> vector<8x16xf32>
    %cst_106 = arith.constant 0.176776692 : f32
    %242 = vector.broadcast %cst_106 : f32 to vector<8x16xf32>
    %243 = arith.mulf %241, %242 : vector<8x16xf32>
    %cst_107 = arith.constant -1.000000e+09 : f32
    %244 = vector.shape_cast %3 : vector<1x16xi1> to vector<1x16xi1>
    %245 = vector.broadcast %244 : vector<1x16xi1> to vector<8x16xi1>
    %246 = vector.broadcast %cst_107 : f32 to vector<8x16xf32>
    %247 = arith.select %245, %243, %246 : vector<8x16xi1>, vector<8x16xf32>
    %cst_108 = arith.constant dense<0xFF800000> : vector<8xf32>
    %248 = vector.multi_reduction <maximumf>, %247, %cst_108 [1] : vector<8x16xf32> to vector<8xf32>
    %249 = vector.shape_cast %248 : vector<8xf32> to vector<8x1xf32>
    %250 = vector.broadcast %249 : vector<8x1xf32> to vector<8x16xf32>
    %251 = arith.subf %247, %250 : vector<8x16xf32>
    %252 = math.exp %251 : vector<8x16xf32>
    %cst_109 = arith.constant dense<0.000000e+00> : vector<8xf32>
    %253 = vector.multi_reduction <add>, %252, %cst_109 [1] : vector<8x16xf32> to vector<8xf32>
    %254 = vector.shape_cast %253 : vector<8xf32> to vector<8x1xf32>
    %255 = tpu.reciprocal %254 {approx = true} : vector<8x1xf32> -> vector<8x1xf32>
    %256 = vector.broadcast %255 : vector<8x1xf32> to vector<8x16xf32>
    %257 = arith.mulf %252, %256 : vector<8x16xf32>
    %258 = arith.truncf %257 : vector<8x16xf32> to vector<8x16xbf16>
    %259 = vector.extract_strided_slice %194 {offsets = [0, 64], sizes = [16, 32], strides = [1, 1]} : vector<16x128xbf16> to vector<16x32xbf16>
    %cst_110 = arith.constant dense<0.000000e+00> : vector<8x32xf32>
    %260 = tpu.matmul %258, %259, %cst_110 {dimension_numbers = #tpu.dot_dimension_numbers<[1], [0], [0], [1], [0, 0, 1, 1], [], []>} : vector<8x16xbf16>, vector<16x32xbf16>, vector<8x32xf32> -> vector<8x32xf32>
    %261 = vector.extract_strided_slice %192 {offsets = [0, 96], sizes = [8, 32], strides = [1, 1]} : vector<8x128xbf16> to vector<8x32xbf16>
    %262 = vector.extract_strided_slice %193 {offsets = [0, 96], sizes = [16, 32], strides = [1, 1]} : vector<16x128xbf16> to vector<16x32xbf16>
    %cst_111 = arith.constant dense<0.000000e+00> : vector<8x16xf32>
    %263 = tpu.matmul %261, %262, %cst_111 {dimension_numbers = #tpu.dot_dimension_numbers<[1], [1], [0], [0], [0, 0, 1, 0], [], []>} : vector<8x32xbf16>, vector<16x32xbf16>, vector<8x16xf32> -> vector<8x16xf32>
    %cst_112 = arith.constant 0.176776692 : f32
    %264 = vector.broadcast %cst_112 : f32 to vector<8x16xf32>
    %265 = arith.mulf %263, %264 : vector<8x16xf32>
    %cst_113 = arith.constant -1.000000e+09 : f32
    %266 = vector.shape_cast %3 : vector<1x16xi1> to vector<1x16xi1>
    %267 = vector.broadcast %266 : vector<1x16xi1> to vector<8x16xi1>
    %268 = vector.broadcast %cst_113 : f32 to vector<8x16xf32>
    %269 = arith.select %267, %265, %268 : vector<8x16xi1>, vector<8x16xf32>
    %cst_114 = arith.constant dense<0xFF800000> : vector<8xf32>
    %270 = vector.multi_reduction <maximumf>, %269, %cst_114 [1] : vector<8x16xf32> to vector<8xf32>
    %271 = vector.shape_cast %270 : vector<8xf32> to vector<8x1xf32>
    %272 = vector.broadcast %271 : vector<8x1xf32> to vector<8x16xf32>
    %273 = arith.subf %269, %272 : vector<8x16xf32>
    %274 = math.exp %273 : vector<8x16xf32>
    %cst_115 = arith.constant dense<0.000000e+00> : vector<8xf32>
    %275 = vector.multi_reduction <add>, %274, %cst_115 [1] : vector<8x16xf32> to vector<8xf32>
    %276 = vector.shape_cast %275 : vector<8xf32> to vector<8x1xf32>
    %277 = tpu.reciprocal %276 {approx = true} : vector<8x1xf32> -> vector<8x1xf32>
    %278 = vector.broadcast %277 : vector<8x1xf32> to vector<8x16xf32>
    %279 = arith.mulf %274, %278 : vector<8x16xf32>
    %280 = arith.truncf %279 : vector<8x16xf32> to vector<8x16xbf16>
    %281 = vector.extract_strided_slice %194 {offsets = [0, 96], sizes = [16, 32], strides = [1, 1]} : vector<16x128xbf16> to vector<16x32xbf16>
    %cst_116 = arith.constant dense<0.000000e+00> : vector<8x32xf32>
    %282 = tpu.matmul %280, %281, %cst_116 {dimension_numbers = #tpu.dot_dimension_numbers<[1], [0], [0], [1], [0, 0, 1, 1], [], []>} : vector<8x16xbf16>, vector<16x32xbf16>, vector<8x32xf32> -> vector<8x32xf32>
    %283 = tpu.concatenate %216, %238, %260, %282 in 1 : vector<8x32xf32>, vector<8x32xf32>, vector<8x32xf32>, vector<8x32xf32> -> vector<8x128xf32>
    %284 = arith.truncf %283 : vector<8x128xf32> to vector<8x128xbf16>
    %cst_117 = arith.constant dense<0.000000e+00> : vector<8x128xf32>
    %285 = tpu.matmul %284, %189, %cst_117 {dimension_numbers = #tpu.dot_dimension_numbers<[1], [0], [0], [1], [0, 0, 1, 1], [], []>} : vector<8x128xbf16>, vector<128x128xbf16>, vector<8x128xf32> -> vector<8x128xf32>
    %286 = vector.broadcast %191 : vector<1x128xf32> to vector<8x128xf32>
    %287 = arith.addf %285, %286 : vector<8x128xf32>
    %288 = arith.addf %144, %287 : vector<8x128xf32>
    %c0_118 = arith.constant 0 : index
    %c0_119 = arith.constant 0 : index
    %c0_120 = arith.constant 0 : index
    %289 = vector.load %arg24[%c0_118, %c0_119, %c0_120] : memref<2x1x128xf32, #tpu.memory_space<vmem>>, vector<1x1x128xf32>
    %290 = vector.shape_cast %289 : vector<1x1x128xf32> to vector<1x128xf32>
    %c0_121 = arith.constant 0 : index
    %c0_122 = arith.constant 0 : index
    %c0_123 = arith.constant 0 : index
    %291 = vector.load %arg25[%c0_121, %c0_122, %c0_123] : memref<2x1x128xf32, #tpu.memory_space<vmem>>, vector<1x1x128xf32>
    %292 = vector.shape_cast %291 : vector<1x1x128xf32> to vector<1x128xf32>
    %cst_124 = arith.constant dense<0.000000e+00> : vector<8xf32>
    %293 = vector.multi_reduction <add>, %288, %cst_124 [1] : vector<8x128xf32> to vector<8xf32>
    %294 = vector.shape_cast %293 : vector<8xf32> to vector<8x1xf32>
    %cst_125 = arith.constant 1.280000e+02 : f32
    %295 = vector.broadcast %cst_125 : f32 to vector<8x1xf32>
    %296 = arith.divf %294, %295 : vector<8x1xf32>
    %297 = vector.broadcast %296 : vector<8x1xf32> to vector<8x128xf32>
    %298 = arith.subf %288, %297 : vector<8x128xf32>
    %299 = arith.mulf %298, %298 : vector<8x128xf32>
    %cst_126 = arith.constant dense<0.000000e+00> : vector<8xf32>
    %300 = vector.multi_reduction <add>, %299, %cst_126 [1] : vector<8x128xf32> to vector<8xf32>
    %301 = vector.shape_cast %300 : vector<8xf32> to vector<8x1xf32>
    %cst_127 = arith.constant 1.280000e+02 : f32
    %302 = vector.broadcast %cst_127 : f32 to vector<8x1xf32>
    %303 = arith.divf %301, %302 : vector<8x1xf32>
    %304 = vector.broadcast %296 : vector<8x1xf32> to vector<8x128xf32>
    %305 = arith.subf %288, %304 : vector<8x128xf32>
    %cst_128 = arith.constant 9.99999997E-7 : f32
    %306 = vector.broadcast %cst_128 : f32 to vector<8x1xf32>
    %307 = arith.addf %303, %306 : vector<8x1xf32>
    %308 = math.rsqrt %307 : vector<8x1xf32>
    %309 = vector.broadcast %308 : vector<8x1xf32> to vector<8x128xf32>
    %310 = arith.mulf %305, %309 : vector<8x128xf32>
    %311 = vector.broadcast %290 : vector<1x128xf32> to vector<8x128xf32>
    %312 = arith.mulf %310, %311 : vector<8x128xf32>
    %313 = vector.broadcast %292 : vector<1x128xf32> to vector<8x128xf32>
    %314 = arith.addf %312, %313 : vector<8x128xf32>
    %315 = arith.truncf %314 : vector<8x128xf32> to vector<8x128xbf16>
    %c0_129 = arith.constant 0 : index
    %c0_130 = arith.constant 0 : index
    %c0_131 = arith.constant 0 : index
    %316 = vector.load %arg16[%c0_129, %c0_130, %c0_131] : memref<2x128x256xbf16, #tpu.memory_space<vmem>>, vector<1x128x256xbf16>
    %317 = vector.shape_cast %316 : vector<1x128x256xbf16> to vector<128x256xbf16>
    %c0_132 = arith.constant 0 : index
    %c0_133 = arith.constant 0 : index
    %c0_134 = arith.constant 0 : index
    %318 = vector.load %arg17[%c0_132, %c0_133, %c0_134] : memref<2x1x256xf32, #tpu.memory_space<vmem>>, vector<1x1x256xf32>
    %319 = vector.shape_cast %318 : vector<1x1x256xf32> to vector<1x256xf32>
    %cst_135 = arith.constant dense<0.000000e+00> : vector<8x256xf32>
    %320 = tpu.matmul %315, %317, %cst_135 {dimension_numbers = #tpu.dot_dimension_numbers<[1], [0], [0], [1], [0, 0, 1, 1], [], []>} : vector<8x128xbf16>, vector<128x256xbf16>, vector<8x256xf32> -> vector<8x256xf32>
    %321 = vector.broadcast %319 : vector<1x256xf32> to vector<8x256xf32>
    %322 = arith.addf %320, %321 : vector<8x256xf32>
    %cst_136 = arith.constant 0.000000e+00 : f32
    %323 = vector.broadcast %cst_136 : f32 to vector<8x256xf32>
    %324 = arith.maximumf %322, %323 : vector<8x256xf32>
    %325 = arith.truncf %324 : vector<8x256xf32> to vector<8x256xbf16>
    %c0_137 = arith.constant 0 : index
    %c0_138 = arith.constant 0 : index
    %c0_139 = arith.constant 0 : index
    %326 = vector.load %arg18[%c0_137, %c0_138, %c0_139] : memref<2x256x128xbf16, #tpu.memory_space<vmem>>, vector<1x256x128xbf16>
    %327 = vector.shape_cast %326 : vector<1x256x128xbf16> to vector<256x128xbf16>
    %c0_140 = arith.constant 0 : index
    %c0_141 = arith.constant 0 : index
    %c0_142 = arith.constant 0 : index
    %328 = vector.load %arg19[%c0_140, %c0_141, %c0_142] : memref<2x1x128xf32, #tpu.memory_space<vmem>>, vector<1x1x128xf32>
    %329 = vector.shape_cast %328 : vector<1x1x128xf32> to vector<1x128xf32>
    %cst_143 = arith.constant dense<0.000000e+00> : vector<8x128xf32>
    %330 = tpu.matmul %325, %327, %cst_143 {dimension_numbers = #tpu.dot_dimension_numbers<[1], [0], [0], [1], [0, 0, 1, 1], [], []>} : vector<8x256xbf16>, vector<256x128xbf16>, vector<8x128xf32> -> vector<8x128xf32>
    %331 = vector.broadcast %329 : vector<1x128xf32> to vector<8x128xf32>
    %332 = arith.addf %330, %331 : vector<8x128xf32>
    %333 = arith.addf %288, %332 : vector<8x128xf32>
    %c1 = arith.constant 1 : index
    %c0_144 = arith.constant 0 : index
    %c0_145 = arith.constant 0 : index
    %334 = vector.load %arg20[%c1, %c0_144, %c0_145] : memref<2x1x128xf32, #tpu.memory_space<vmem>>, vector<1x1x128xf32>
    %335 = vector.shape_cast %334 : vector<1x1x128xf32> to vector<1x128xf32>
    %c1_146 = arith.constant 1 : index
    %c0_147 = arith.constant 0 : index
    %c0_148 = arith.constant 0 : index
    %336 = vector.load %arg21[%c1_146, %c0_147, %c0_148] : memref<2x1x128xf32, #tpu.memory_space<vmem>>, vector<1x1x128xf32>
    %337 = vector.shape_cast %336 : vector<1x1x128xf32> to vector<1x128xf32>
    %cst_149 = arith.constant dense<0.000000e+00> : vector<8xf32>
    %338 = vector.multi_reduction <add>, %333, %cst_149 [1] : vector<8x128xf32> to vector<8xf32>
    %339 = vector.shape_cast %338 : vector<8xf32> to vector<8x1xf32>
    %cst_150 = arith.constant 1.280000e+02 : f32
    %340 = vector.broadcast %cst_150 : f32 to vector<8x1xf32>
    %341 = arith.divf %339, %340 : vector<8x1xf32>
    %342 = vector.broadcast %341 : vector<8x1xf32> to vector<8x128xf32>
    %343 = arith.subf %333, %342 : vector<8x128xf32>
    %344 = arith.mulf %343, %343 : vector<8x128xf32>
    %cst_151 = arith.constant dense<0.000000e+00> : vector<8xf32>
    %345 = vector.multi_reduction <add>, %344, %cst_151 [1] : vector<8x128xf32> to vector<8xf32>
    %346 = vector.shape_cast %345 : vector<8xf32> to vector<8x1xf32>
    %cst_152 = arith.constant 1.280000e+02 : f32
    %347 = vector.broadcast %cst_152 : f32 to vector<8x1xf32>
    %348 = arith.divf %346, %347 : vector<8x1xf32>
    %349 = vector.broadcast %341 : vector<8x1xf32> to vector<8x128xf32>
    %350 = arith.subf %333, %349 : vector<8x128xf32>
    %cst_153 = arith.constant 9.99999997E-7 : f32
    %351 = vector.broadcast %cst_153 : f32 to vector<8x1xf32>
    %352 = arith.addf %348, %351 : vector<8x1xf32>
    %353 = math.rsqrt %352 : vector<8x1xf32>
    %354 = vector.broadcast %353 : vector<8x1xf32> to vector<8x128xf32>
    %355 = arith.mulf %350, %354 : vector<8x128xf32>
    %356 = vector.broadcast %335 : vector<1x128xf32> to vector<8x128xf32>
    %357 = arith.mulf %355, %356 : vector<8x128xf32>
    %358 = vector.broadcast %337 : vector<1x128xf32> to vector<8x128xf32>
    %359 = arith.addf %357, %358 : vector<8x128xf32>
    %360 = arith.truncf %359 : vector<8x128xf32> to vector<8x128xbf16>
    %c1_154 = arith.constant 1 : index
    %c0_155 = arith.constant 0 : index
    %c0_156 = arith.constant 0 : index
    %361 = vector.load %arg6[%c1_154, %c0_155, %c0_156] : memref<2x128x384xbf16, #tpu.memory_space<vmem>>, vector<1x128x384xbf16>
    %362 = vector.shape_cast %361 : vector<1x128x384xbf16> to vector<128x384xbf16>
    %c1_157 = arith.constant 1 : index
    %c0_158 = arith.constant 0 : index
    %c0_159 = arith.constant 0 : index
    %363 = vector.load %arg7[%c1_157, %c0_158, %c0_159] : memref<2x1x384xf32, #tpu.memory_space<vmem>>, vector<1x1x384xf32>
    %364 = vector.shape_cast %363 : vector<1x1x384xf32> to vector<1x384xf32>
    %cst_160 = arith.constant dense<0.000000e+00> : vector<8x384xf32>
    %365 = tpu.matmul %360, %362, %cst_160 {dimension_numbers = #tpu.dot_dimension_numbers<[1], [0], [0], [1], [0, 0, 1, 1], [], []>} : vector<8x128xbf16>, vector<128x384xbf16>, vector<8x384xf32> -> vector<8x384xf32>
    %366 = vector.broadcast %364 : vector<1x384xf32> to vector<8x384xf32>
    %367 = arith.addf %365, %366 : vector<8x384xf32>
    %368 = vector.extract_strided_slice %367 {offsets = [0, 0], sizes = [8, 128], strides = [1, 1]} : vector<8x384xf32> to vector<8x128xf32>
    %369 = vector.extract_strided_slice %367 {offsets = [0, 128], sizes = [8, 128], strides = [1, 1]} : vector<8x384xf32> to vector<8x128xf32>
    %370 = vector.extract_strided_slice %367 {offsets = [0, 256], sizes = [8, 128], strides = [1, 1]} : vector<8x384xf32> to vector<8x128xf32>
    %c1_161 = arith.constant 1 : index
    %c0_162 = arith.constant 0 : index
    %c0_163 = arith.constant 0 : index
    %371 = vector.load %arg8[%c1_161, %c0_162, %c0_163] : memref<2x128x128xbf16, #tpu.memory_space<vmem>>, vector<1x128x128xbf16>
    %372 = vector.shape_cast %371 : vector<1x128x128xbf16> to vector<128x128xbf16>
    %c1_164 = arith.constant 1 : index
    %c0_165 = arith.constant 0 : index
    %c0_166 = arith.constant 0 : index
    %373 = vector.load %arg9[%c1_164, %c0_165, %c0_166] : memref<2x1x128xf32, #tpu.memory_space<vmem>>, vector<1x1x128xf32>
    %374 = vector.shape_cast %373 : vector<1x1x128xf32> to vector<1x128xf32>
    %375 = arith.truncf %368 : vector<8x128xf32> to vector<8x128xbf16>
    %376 = arith.truncf %369 : vector<8x128xf32> to vector<8x128xbf16>
    %377 = arith.truncf %370 : vector<8x128xf32> to vector<8x128xbf16>
    %378 = vector.extract_strided_slice %375 {offsets = [0, 0], sizes = [8, 32], strides = [1, 1]} : vector<8x128xbf16> to vector<8x32xbf16>
    %379 = vector.extract_strided_slice %376 {offsets = [0, 0], sizes = [8, 32], strides = [1, 1]} : vector<8x128xbf16> to vector<8x32xbf16>
    %cst_167 = arith.constant dense<0.000000e+00> : vector<8x8xf32>
    %380 = tpu.matmul %378, %379, %cst_167 {dimension_numbers = #tpu.dot_dimension_numbers<[1], [1], [0], [0], [0, 0, 1, 0], [], []>} : vector<8x32xbf16>, vector<8x32xbf16>, vector<8x8xf32> -> vector<8x8xf32>
    %cst_168 = arith.constant 0.176776692 : f32
    %381 = vector.broadcast %cst_168 : f32 to vector<8x8xf32>
    %382 = arith.mulf %380, %381 : vector<8x8xf32>
    %cst_169 = arith.constant -1.000000e+09 : f32
    %383 = vector.broadcast %cst_169 : f32 to vector<8x8xf32>
    %384 = arith.select %7, %382, %383 : vector<8x8xi1>, vector<8x8xf32>
    %cst_170 = arith.constant dense<0xFF800000> : vector<8xf32>
    %385 = vector.multi_reduction <maximumf>, %384, %cst_170 [1] : vector<8x8xf32> to vector<8xf32>
    %386 = vector.shape_cast %385 : vector<8xf32> to vector<8x1xf32>
    %387 = vector.broadcast %386 : vector<8x1xf32> to vector<8x8xf32>
    %388 = arith.subf %384, %387 : vector<8x8xf32>
    %389 = math.exp %388 : vector<8x8xf32>
    %cst_171 = arith.constant dense<0.000000e+00> : vector<8xf32>
    %390 = vector.multi_reduction <add>, %389, %cst_171 [1] : vector<8x8xf32> to vector<8xf32>
    %391 = vector.shape_cast %390 : vector<8xf32> to vector<8x1xf32>
    %392 = tpu.reciprocal %391 {approx = true} : vector<8x1xf32> -> vector<8x1xf32>
    %393 = vector.broadcast %392 : vector<8x1xf32> to vector<8x8xf32>
    %394 = arith.mulf %389, %393 : vector<8x8xf32>
    %395 = arith.truncf %394 : vector<8x8xf32> to vector<8x8xbf16>
    %396 = vector.extract_strided_slice %377 {offsets = [0, 0], sizes = [8, 32], strides = [1, 1]} : vector<8x128xbf16> to vector<8x32xbf16>
    %cst_172 = arith.constant dense<0.000000e+00> : vector<8x32xf32>
    %397 = tpu.matmul %395, %396, %cst_172 {dimension_numbers = #tpu.dot_dimension_numbers<[1], [0], [0], [1], [0, 0, 1, 1], [], []>} : vector<8x8xbf16>, vector<8x32xbf16>, vector<8x32xf32> -> vector<8x32xf32>
    %398 = vector.extract_strided_slice %375 {offsets = [0, 32], sizes = [8, 32], strides = [1, 1]} : vector<8x128xbf16> to vector<8x32xbf16>
    %399 = vector.extract_strided_slice %376 {offsets = [0, 32], sizes = [8, 32], strides = [1, 1]} : vector<8x128xbf16> to vector<8x32xbf16>
    %cst_173 = arith.constant dense<0.000000e+00> : vector<8x8xf32>
    %400 = tpu.matmul %398, %399, %cst_173 {dimension_numbers = #tpu.dot_dimension_numbers<[1], [1], [0], [0], [0, 0, 1, 0], [], []>} : vector<8x32xbf16>, vector<8x32xbf16>, vector<8x8xf32> -> vector<8x8xf32>
    %cst_174 = arith.constant 0.176776692 : f32
    %401 = vector.broadcast %cst_174 : f32 to vector<8x8xf32>
    %402 = arith.mulf %400, %401 : vector<8x8xf32>
    %cst_175 = arith.constant -1.000000e+09 : f32
    %403 = vector.broadcast %cst_175 : f32 to vector<8x8xf32>
    %404 = arith.select %7, %402, %403 : vector<8x8xi1>, vector<8x8xf32>
    %cst_176 = arith.constant dense<0xFF800000> : vector<8xf32>
    %405 = vector.multi_reduction <maximumf>, %404, %cst_176 [1] : vector<8x8xf32> to vector<8xf32>
    %406 = vector.shape_cast %405 : vector<8xf32> to vector<8x1xf32>
    %407 = vector.broadcast %406 : vector<8x1xf32> to vector<8x8xf32>
    %408 = arith.subf %404, %407 : vector<8x8xf32>
    %409 = math.exp %408 : vector<8x8xf32>
    %cst_177 = arith.constant dense<0.000000e+00> : vector<8xf32>
    %410 = vector.multi_reduction <add>, %409, %cst_177 [1] : vector<8x8xf32> to vector<8xf32>
    %411 = vector.shape_cast %410 : vector<8xf32> to vector<8x1xf32>
    %412 = tpu.reciprocal %411 {approx = true} : vector<8x1xf32> -> vector<8x1xf32>
    %413 = vector.broadcast %412 : vector<8x1xf32> to vector<8x8xf32>
    %414 = arith.mulf %409, %413 : vector<8x8xf32>
    %415 = arith.truncf %414 : vector<8x8xf32> to vector<8x8xbf16>
    %416 = vector.extract_strided_slice %377 {offsets = [0, 32], sizes = [8, 32], strides = [1, 1]} : vector<8x128xbf16> to vector<8x32xbf16>
    %cst_178 = arith.constant dense<0.000000e+00> : vector<8x32xf32>
    %417 = tpu.matmul %415, %416, %cst_178 {dimension_numbers = #tpu.dot_dimension_numbers<[1], [0], [0], [1], [0, 0, 1, 1], [], []>} : vector<8x8xbf16>, vector<8x32xbf16>, vector<8x32xf32> -> vector<8x32xf32>
    %418 = vector.extract_strided_slice %375 {offsets = [0, 64], sizes = [8, 32], strides = [1, 1]} : vector<8x128xbf16> to vector<8x32xbf16>
    %419 = vector.extract_strided_slice %376 {offsets = [0, 64], sizes = [8, 32], strides = [1, 1]} : vector<8x128xbf16> to vector<8x32xbf16>
    %cst_179 = arith.constant dense<0.000000e+00> : vector<8x8xf32>
    %420 = tpu.matmul %418, %419, %cst_179 {dimension_numbers = #tpu.dot_dimension_numbers<[1], [1], [0], [0], [0, 0, 1, 0], [], []>} : vector<8x32xbf16>, vector<8x32xbf16>, vector<8x8xf32> -> vector<8x8xf32>
    %cst_180 = arith.constant 0.176776692 : f32
    %421 = vector.broadcast %cst_180 : f32 to vector<8x8xf32>
    %422 = arith.mulf %420, %421 : vector<8x8xf32>
    %cst_181 = arith.constant -1.000000e+09 : f32
    %423 = vector.broadcast %cst_181 : f32 to vector<8x8xf32>
    %424 = arith.select %7, %422, %423 : vector<8x8xi1>, vector<8x8xf32>
    %cst_182 = arith.constant dense<0xFF800000> : vector<8xf32>
    %425 = vector.multi_reduction <maximumf>, %424, %cst_182 [1] : vector<8x8xf32> to vector<8xf32>
    %426 = vector.shape_cast %425 : vector<8xf32> to vector<8x1xf32>
    %427 = vector.broadcast %426 : vector<8x1xf32> to vector<8x8xf32>
    %428 = arith.subf %424, %427 : vector<8x8xf32>
    %429 = math.exp %428 : vector<8x8xf32>
    %cst_183 = arith.constant dense<0.000000e+00> : vector<8xf32>
    %430 = vector.multi_reduction <add>, %429, %cst_183 [1] : vector<8x8xf32> to vector<8xf32>
    %431 = vector.shape_cast %430 : vector<8xf32> to vector<8x1xf32>
    %432 = tpu.reciprocal %431 {approx = true} : vector<8x1xf32> -> vector<8x1xf32>
    %433 = vector.broadcast %432 : vector<8x1xf32> to vector<8x8xf32>
    %434 = arith.mulf %429, %433 : vector<8x8xf32>
    %435 = arith.truncf %434 : vector<8x8xf32> to vector<8x8xbf16>
    %436 = vector.extract_strided_slice %377 {offsets = [0, 64], sizes = [8, 32], strides = [1, 1]} : vector<8x128xbf16> to vector<8x32xbf16>
    %cst_184 = arith.constant dense<0.000000e+00> : vector<8x32xf32>
    %437 = tpu.matmul %435, %436, %cst_184 {dimension_numbers = #tpu.dot_dimension_numbers<[1], [0], [0], [1], [0, 0, 1, 1], [], []>} : vector<8x8xbf16>, vector<8x32xbf16>, vector<8x32xf32> -> vector<8x32xf32>
    %438 = vector.extract_strided_slice %375 {offsets = [0, 96], sizes = [8, 32], strides = [1, 1]} : vector<8x128xbf16> to vector<8x32xbf16>
    %439 = vector.extract_strided_slice %376 {offsets = [0, 96], sizes = [8, 32], strides = [1, 1]} : vector<8x128xbf16> to vector<8x32xbf16>
    %cst_185 = arith.constant dense<0.000000e+00> : vector<8x8xf32>
    %440 = tpu.matmul %438, %439, %cst_185 {dimension_numbers = #tpu.dot_dimension_numbers<[1], [1], [0], [0], [0, 0, 1, 0], [], []>} : vector<8x32xbf16>, vector<8x32xbf16>, vector<8x8xf32> -> vector<8x8xf32>
    %cst_186 = arith.constant 0.176776692 : f32
    %441 = vector.broadcast %cst_186 : f32 to vector<8x8xf32>
    %442 = arith.mulf %440, %441 : vector<8x8xf32>
    %cst_187 = arith.constant -1.000000e+09 : f32
    %443 = vector.broadcast %cst_187 : f32 to vector<8x8xf32>
    %444 = arith.select %7, %442, %443 : vector<8x8xi1>, vector<8x8xf32>
    %cst_188 = arith.constant dense<0xFF800000> : vector<8xf32>
    %445 = vector.multi_reduction <maximumf>, %444, %cst_188 [1] : vector<8x8xf32> to vector<8xf32>
    %446 = vector.shape_cast %445 : vector<8xf32> to vector<8x1xf32>
    %447 = vector.broadcast %446 : vector<8x1xf32> to vector<8x8xf32>
    %448 = arith.subf %444, %447 : vector<8x8xf32>
    %449 = math.exp %448 : vector<8x8xf32>
    %cst_189 = arith.constant dense<0.000000e+00> : vector<8xf32>
    %450 = vector.multi_reduction <add>, %449, %cst_189 [1] : vector<8x8xf32> to vector<8xf32>
    %451 = vector.shape_cast %450 : vector<8xf32> to vector<8x1xf32>
    %452 = tpu.reciprocal %451 {approx = true} : vector<8x1xf32> -> vector<8x1xf32>
    %453 = vector.broadcast %452 : vector<8x1xf32> to vector<8x8xf32>
    %454 = arith.mulf %449, %453 : vector<8x8xf32>
    %455 = arith.truncf %454 : vector<8x8xf32> to vector<8x8xbf16>
    %456 = vector.extract_strided_slice %377 {offsets = [0, 96], sizes = [8, 32], strides = [1, 1]} : vector<8x128xbf16> to vector<8x32xbf16>
    %cst_190 = arith.constant dense<0.000000e+00> : vector<8x32xf32>
    %457 = tpu.matmul %455, %456, %cst_190 {dimension_numbers = #tpu.dot_dimension_numbers<[1], [0], [0], [1], [0, 0, 1, 1], [], []>} : vector<8x8xbf16>, vector<8x32xbf16>, vector<8x32xf32> -> vector<8x32xf32>
    %458 = tpu.concatenate %397, %417, %437, %457 in 1 : vector<8x32xf32>, vector<8x32xf32>, vector<8x32xf32>, vector<8x32xf32> -> vector<8x128xf32>
    %459 = arith.truncf %458 : vector<8x128xf32> to vector<8x128xbf16>
    %cst_191 = arith.constant dense<0.000000e+00> : vector<8x128xf32>
    %460 = tpu.matmul %459, %372, %cst_191 {dimension_numbers = #tpu.dot_dimension_numbers<[1], [0], [0], [1], [0, 0, 1, 1], [], []>} : vector<8x128xbf16>, vector<128x128xbf16>, vector<8x128xf32> -> vector<8x128xf32>
    %461 = vector.broadcast %374 : vector<1x128xf32> to vector<8x128xf32>
    %462 = arith.addf %460, %461 : vector<8x128xf32>
    %463 = arith.addf %333, %462 : vector<8x128xf32>
    %c1_192 = arith.constant 1 : index
    %c0_193 = arith.constant 0 : index
    %c0_194 = arith.constant 0 : index
    %464 = vector.load %arg22[%c1_192, %c0_193, %c0_194] : memref<2x1x128xf32, #tpu.memory_space<vmem>>, vector<1x1x128xf32>
    %465 = vector.shape_cast %464 : vector<1x1x128xf32> to vector<1x128xf32>
    %c1_195 = arith.constant 1 : index
    %c0_196 = arith.constant 0 : index
    %c0_197 = arith.constant 0 : index
    %466 = vector.load %arg23[%c1_195, %c0_196, %c0_197] : memref<2x1x128xf32, #tpu.memory_space<vmem>>, vector<1x1x128xf32>
    %467 = vector.shape_cast %466 : vector<1x1x128xf32> to vector<1x128xf32>
    %cst_198 = arith.constant dense<0.000000e+00> : vector<8xf32>
    %468 = vector.multi_reduction <add>, %463, %cst_198 [1] : vector<8x128xf32> to vector<8xf32>
    %469 = vector.shape_cast %468 : vector<8xf32> to vector<8x1xf32>
    %cst_199 = arith.constant 1.280000e+02 : f32
    %470 = vector.broadcast %cst_199 : f32 to vector<8x1xf32>
    %471 = arith.divf %469, %470 : vector<8x1xf32>
    %472 = vector.broadcast %471 : vector<8x1xf32> to vector<8x128xf32>
    %473 = arith.subf %463, %472 : vector<8x128xf32>
    %474 = arith.mulf %473, %473 : vector<8x128xf32>
    %cst_200 = arith.constant dense<0.000000e+00> : vector<8xf32>
    %475 = vector.multi_reduction <add>, %474, %cst_200 [1] : vector<8x128xf32> to vector<8xf32>
    %476 = vector.shape_cast %475 : vector<8xf32> to vector<8x1xf32>
    %cst_201 = arith.constant 1.280000e+02 : f32
    %477 = vector.broadcast %cst_201 : f32 to vector<8x1xf32>
    %478 = arith.divf %476, %477 : vector<8x1xf32>
    %479 = vector.broadcast %471 : vector<8x1xf32> to vector<8x128xf32>
    %480 = arith.subf %463, %479 : vector<8x128xf32>
    %cst_202 = arith.constant 9.99999997E-7 : f32
    %481 = vector.broadcast %cst_202 : f32 to vector<8x1xf32>
    %482 = arith.addf %478, %481 : vector<8x1xf32>
    %483 = math.rsqrt %482 : vector<8x1xf32>
    %484 = vector.broadcast %483 : vector<8x1xf32> to vector<8x128xf32>
    %485 = arith.mulf %480, %484 : vector<8x128xf32>
    %486 = vector.broadcast %465 : vector<1x128xf32> to vector<8x128xf32>
    %487 = arith.mulf %485, %486 : vector<8x128xf32>
    %488 = vector.broadcast %467 : vector<1x128xf32> to vector<8x128xf32>
    %489 = arith.addf %487, %488 : vector<8x128xf32>
    %490 = arith.truncf %489 : vector<8x128xf32> to vector<8x128xbf16>
    %c1_203 = arith.constant 1 : index
    %c0_204 = arith.constant 0 : index
    %c0_205 = arith.constant 0 : index
    %491 = vector.load %arg10[%c1_203, %c0_204, %c0_205] : memref<2x128x128xbf16, #tpu.memory_space<vmem>>, vector<1x128x128xbf16>
    %492 = vector.shape_cast %491 : vector<1x128x128xbf16> to vector<128x128xbf16>
    %c1_206 = arith.constant 1 : index
    %c0_207 = arith.constant 0 : index
    %c0_208 = arith.constant 0 : index
    %493 = vector.load %arg11[%c1_206, %c0_207, %c0_208] : memref<2x1x128xf32, #tpu.memory_space<vmem>>, vector<1x1x128xf32>
    %494 = vector.shape_cast %493 : vector<1x1x128xf32> to vector<1x128xf32>
    %cst_209 = arith.constant dense<0.000000e+00> : vector<8x128xf32>
    %495 = tpu.matmul %490, %492, %cst_209 {dimension_numbers = #tpu.dot_dimension_numbers<[1], [0], [0], [1], [0, 0, 1, 1], [], []>} : vector<8x128xbf16>, vector<128x128xbf16>, vector<8x128xf32> -> vector<8x128xf32>
    %496 = vector.broadcast %494 : vector<1x128xf32> to vector<8x128xf32>
    %497 = arith.addf %495, %496 : vector<8x128xf32>
    %c1_210 = arith.constant 1 : index
    %c0_211 = arith.constant 0 : index
    %c0_212 = arith.constant 0 : index
    %498 = vector.load %arg12[%c1_210, %c0_211, %c0_212] : memref<2x128x256xbf16, #tpu.memory_space<vmem>>, vector<1x128x256xbf16>
    %499 = vector.shape_cast %498 : vector<1x128x256xbf16> to vector<128x256xbf16>
    %c1_213 = arith.constant 1 : index
    %c0_214 = arith.constant 0 : index
    %c0_215 = arith.constant 0 : index
    %500 = vector.load %arg13[%c1_213, %c0_214, %c0_215] : memref<2x1x256xf32, #tpu.memory_space<vmem>>, vector<1x1x256xf32>
    %501 = vector.shape_cast %500 : vector<1x1x256xf32> to vector<1x256xf32>
    %cst_216 = arith.constant dense<0.000000e+00> : vector<16x256xf32>
    %502 = tpu.matmul %14, %499, %cst_216 {dimension_numbers = #tpu.dot_dimension_numbers<[1], [0], [0], [1], [0, 0, 1, 1], [], []>} : vector<16x128xbf16>, vector<128x256xbf16>, vector<16x256xf32> -> vector<16x256xf32>
    %503 = vector.broadcast %501 : vector<1x256xf32> to vector<16x256xf32>
    %504 = arith.addf %502, %503 : vector<16x256xf32>
    %505 = vector.extract_strided_slice %504 {offsets = [0, 0], sizes = [16, 128], strides = [1, 1]} : vector<16x256xf32> to vector<16x128xf32>
    %506 = vector.extract_strided_slice %504 {offsets = [0, 128], sizes = [16, 128], strides = [1, 1]} : vector<16x256xf32> to vector<16x128xf32>
    %c1_217 = arith.constant 1 : index
    %c0_218 = arith.constant 0 : index
    %c0_219 = arith.constant 0 : index
    %507 = vector.load %arg14[%c1_217, %c0_218, %c0_219] : memref<2x128x128xbf16, #tpu.memory_space<vmem>>, vector<1x128x128xbf16>
    %508 = vector.shape_cast %507 : vector<1x128x128xbf16> to vector<128x128xbf16>
    %c1_220 = arith.constant 1 : index
    %c0_221 = arith.constant 0 : index
    %c0_222 = arith.constant 0 : index
    %509 = vector.load %arg15[%c1_220, %c0_221, %c0_222] : memref<2x1x128xf32, #tpu.memory_space<vmem>>, vector<1x1x128xf32>
    %510 = vector.shape_cast %509 : vector<1x1x128xf32> to vector<1x128xf32>
    %511 = arith.truncf %497 : vector<8x128xf32> to vector<8x128xbf16>
    %512 = arith.truncf %505 : vector<16x128xf32> to vector<16x128xbf16>
    %513 = arith.truncf %506 : vector<16x128xf32> to vector<16x128xbf16>
    %514 = vector.extract_strided_slice %511 {offsets = [0, 0], sizes = [8, 32], strides = [1, 1]} : vector<8x128xbf16> to vector<8x32xbf16>
    %515 = vector.extract_strided_slice %512 {offsets = [0, 0], sizes = [16, 32], strides = [1, 1]} : vector<16x128xbf16> to vector<16x32xbf16>
    %cst_223 = arith.constant dense<0.000000e+00> : vector<8x16xf32>
    %516 = tpu.matmul %514, %515, %cst_223 {dimension_numbers = #tpu.dot_dimension_numbers<[1], [1], [0], [0], [0, 0, 1, 0], [], []>} : vector<8x32xbf16>, vector<16x32xbf16>, vector<8x16xf32> -> vector<8x16xf32>
    %cst_224 = arith.constant 0.176776692 : f32
    %517 = vector.broadcast %cst_224 : f32 to vector<8x16xf32>
    %518 = arith.mulf %516, %517 : vector<8x16xf32>
    %cst_225 = arith.constant -1.000000e+09 : f32
    %519 = vector.shape_cast %3 : vector<1x16xi1> to vector<1x16xi1>
    %520 = vector.broadcast %519 : vector<1x16xi1> to vector<8x16xi1>
    %521 = vector.broadcast %cst_225 : f32 to vector<8x16xf32>
    %522 = arith.select %520, %518, %521 : vector<8x16xi1>, vector<8x16xf32>
    %cst_226 = arith.constant dense<0xFF800000> : vector<8xf32>
    %523 = vector.multi_reduction <maximumf>, %522, %cst_226 [1] : vector<8x16xf32> to vector<8xf32>
    %524 = vector.shape_cast %523 : vector<8xf32> to vector<8x1xf32>
    %525 = vector.broadcast %524 : vector<8x1xf32> to vector<8x16xf32>
    %526 = arith.subf %522, %525 : vector<8x16xf32>
    %527 = math.exp %526 : vector<8x16xf32>
    %cst_227 = arith.constant dense<0.000000e+00> : vector<8xf32>
    %528 = vector.multi_reduction <add>, %527, %cst_227 [1] : vector<8x16xf32> to vector<8xf32>
    %529 = vector.shape_cast %528 : vector<8xf32> to vector<8x1xf32>
    %530 = tpu.reciprocal %529 {approx = true} : vector<8x1xf32> -> vector<8x1xf32>
    %531 = vector.broadcast %530 : vector<8x1xf32> to vector<8x16xf32>
    %532 = arith.mulf %527, %531 : vector<8x16xf32>
    %533 = arith.truncf %532 : vector<8x16xf32> to vector<8x16xbf16>
    %534 = vector.extract_strided_slice %513 {offsets = [0, 0], sizes = [16, 32], strides = [1, 1]} : vector<16x128xbf16> to vector<16x32xbf16>
    %cst_228 = arith.constant dense<0.000000e+00> : vector<8x32xf32>
    %535 = tpu.matmul %533, %534, %cst_228 {dimension_numbers = #tpu.dot_dimension_numbers<[1], [0], [0], [1], [0, 0, 1, 1], [], []>} : vector<8x16xbf16>, vector<16x32xbf16>, vector<8x32xf32> -> vector<8x32xf32>
    %536 = vector.extract_strided_slice %511 {offsets = [0, 32], sizes = [8, 32], strides = [1, 1]} : vector<8x128xbf16> to vector<8x32xbf16>
    %537 = vector.extract_strided_slice %512 {offsets = [0, 32], sizes = [16, 32], strides = [1, 1]} : vector<16x128xbf16> to vector<16x32xbf16>
    %cst_229 = arith.constant dense<0.000000e+00> : vector<8x16xf32>
    %538 = tpu.matmul %536, %537, %cst_229 {dimension_numbers = #tpu.dot_dimension_numbers<[1], [1], [0], [0], [0, 0, 1, 0], [], []>} : vector<8x32xbf16>, vector<16x32xbf16>, vector<8x16xf32> -> vector<8x16xf32>
    %cst_230 = arith.constant 0.176776692 : f32
    %539 = vector.broadcast %cst_230 : f32 to vector<8x16xf32>
    %540 = arith.mulf %538, %539 : vector<8x16xf32>
    %cst_231 = arith.constant -1.000000e+09 : f32
    %541 = vector.shape_cast %3 : vector<1x16xi1> to vector<1x16xi1>
    %542 = vector.broadcast %541 : vector<1x16xi1> to vector<8x16xi1>
    %543 = vector.broadcast %cst_231 : f32 to vector<8x16xf32>
    %544 = arith.select %542, %540, %543 : vector<8x16xi1>, vector<8x16xf32>
    %cst_232 = arith.constant dense<0xFF800000> : vector<8xf32>
    %545 = vector.multi_reduction <maximumf>, %544, %cst_232 [1] : vector<8x16xf32> to vector<8xf32>
    %546 = vector.shape_cast %545 : vector<8xf32> to vector<8x1xf32>
    %547 = vector.broadcast %546 : vector<8x1xf32> to vector<8x16xf32>
    %548 = arith.subf %544, %547 : vector<8x16xf32>
    %549 = math.exp %548 : vector<8x16xf32>
    %cst_233 = arith.constant dense<0.000000e+00> : vector<8xf32>
    %550 = vector.multi_reduction <add>, %549, %cst_233 [1] : vector<8x16xf32> to vector<8xf32>
    %551 = vector.shape_cast %550 : vector<8xf32> to vector<8x1xf32>
    %552 = tpu.reciprocal %551 {approx = true} : vector<8x1xf32> -> vector<8x1xf32>
    %553 = vector.broadcast %552 : vector<8x1xf32> to vector<8x16xf32>
    %554 = arith.mulf %549, %553 : vector<8x16xf32>
    %555 = arith.truncf %554 : vector<8x16xf32> to vector<8x16xbf16>
    %556 = vector.extract_strided_slice %513 {offsets = [0, 32], sizes = [16, 32], strides = [1, 1]} : vector<16x128xbf16> to vector<16x32xbf16>
    %cst_234 = arith.constant dense<0.000000e+00> : vector<8x32xf32>
    %557 = tpu.matmul %555, %556, %cst_234 {dimension_numbers = #tpu.dot_dimension_numbers<[1], [0], [0], [1], [0, 0, 1, 1], [], []>} : vector<8x16xbf16>, vector<16x32xbf16>, vector<8x32xf32> -> vector<8x32xf32>
    %558 = vector.extract_strided_slice %511 {offsets = [0, 64], sizes = [8, 32], strides = [1, 1]} : vector<8x128xbf16> to vector<8x32xbf16>
    %559 = vector.extract_strided_slice %512 {offsets = [0, 64], sizes = [16, 32], strides = [1, 1]} : vector<16x128xbf16> to vector<16x32xbf16>
    %cst_235 = arith.constant dense<0.000000e+00> : vector<8x16xf32>
    %560 = tpu.matmul %558, %559, %cst_235 {dimension_numbers = #tpu.dot_dimension_numbers<[1], [1], [0], [0], [0, 0, 1, 0], [], []>} : vector<8x32xbf16>, vector<16x32xbf16>, vector<8x16xf32> -> vector<8x16xf32>
    %cst_236 = arith.constant 0.176776692 : f32
    %561 = vector.broadcast %cst_236 : f32 to vector<8x16xf32>
    %562 = arith.mulf %560, %561 : vector<8x16xf32>
    %cst_237 = arith.constant -1.000000e+09 : f32
    %563 = vector.shape_cast %3 : vector<1x16xi1> to vector<1x16xi1>
    %564 = vector.broadcast %563 : vector<1x16xi1> to vector<8x16xi1>
    %565 = vector.broadcast %cst_237 : f32 to vector<8x16xf32>
    %566 = arith.select %564, %562, %565 : vector<8x16xi1>, vector<8x16xf32>
    %cst_238 = arith.constant dense<0xFF800000> : vector<8xf32>
    %567 = vector.multi_reduction <maximumf>, %566, %cst_238 [1] : vector<8x16xf32> to vector<8xf32>
    %568 = vector.shape_cast %567 : vector<8xf32> to vector<8x1xf32>
    %569 = vector.broadcast %568 : vector<8x1xf32> to vector<8x16xf32>
    %570 = arith.subf %566, %569 : vector<8x16xf32>
    %571 = math.exp %570 : vector<8x16xf32>
    %cst_239 = arith.constant dense<0.000000e+00> : vector<8xf32>
    %572 = vector.multi_reduction <add>, %571, %cst_239 [1] : vector<8x16xf32> to vector<8xf32>
    %573 = vector.shape_cast %572 : vector<8xf32> to vector<8x1xf32>
    %574 = tpu.reciprocal %573 {approx = true} : vector<8x1xf32> -> vector<8x1xf32>
    %575 = vector.broadcast %574 : vector<8x1xf32> to vector<8x16xf32>
    %576 = arith.mulf %571, %575 : vector<8x16xf32>
    %577 = arith.truncf %576 : vector<8x16xf32> to vector<8x16xbf16>
    %578 = vector.extract_strided_slice %513 {offsets = [0, 64], sizes = [16, 32], strides = [1, 1]} : vector<16x128xbf16> to vector<16x32xbf16>
    %cst_240 = arith.constant dense<0.000000e+00> : vector<8x32xf32>
    %579 = tpu.matmul %577, %578, %cst_240 {dimension_numbers = #tpu.dot_dimension_numbers<[1], [0], [0], [1], [0, 0, 1, 1], [], []>} : vector<8x16xbf16>, vector<16x32xbf16>, vector<8x32xf32> -> vector<8x32xf32>
    %580 = vector.extract_strided_slice %511 {offsets = [0, 96], sizes = [8, 32], strides = [1, 1]} : vector<8x128xbf16> to vector<8x32xbf16>
    %581 = vector.extract_strided_slice %512 {offsets = [0, 96], sizes = [16, 32], strides = [1, 1]} : vector<16x128xbf16> to vector<16x32xbf16>
    %cst_241 = arith.constant dense<0.000000e+00> : vector<8x16xf32>
    %582 = tpu.matmul %580, %581, %cst_241 {dimension_numbers = #tpu.dot_dimension_numbers<[1], [1], [0], [0], [0, 0, 1, 0], [], []>} : vector<8x32xbf16>, vector<16x32xbf16>, vector<8x16xf32> -> vector<8x16xf32>
    %cst_242 = arith.constant 0.176776692 : f32
    %583 = vector.broadcast %cst_242 : f32 to vector<8x16xf32>
    %584 = arith.mulf %582, %583 : vector<8x16xf32>
    %cst_243 = arith.constant -1.000000e+09 : f32
    %585 = vector.shape_cast %3 : vector<1x16xi1> to vector<1x16xi1>
    %586 = vector.broadcast %585 : vector<1x16xi1> to vector<8x16xi1>
    %587 = vector.broadcast %cst_243 : f32 to vector<8x16xf32>
    %588 = arith.select %586, %584, %587 : vector<8x16xi1>, vector<8x16xf32>
    %cst_244 = arith.constant dense<0xFF800000> : vector<8xf32>
    %589 = vector.multi_reduction <maximumf>, %588, %cst_244 [1] : vector<8x16xf32> to vector<8xf32>
    %590 = vector.shape_cast %589 : vector<8xf32> to vector<8x1xf32>
    %591 = vector.broadcast %590 : vector<8x1xf32> to vector<8x16xf32>
    %592 = arith.subf %588, %591 : vector<8x16xf32>
    %593 = math.exp %592 : vector<8x16xf32>
    %cst_245 = arith.constant dense<0.000000e+00> : vector<8xf32>
    %594 = vector.multi_reduction <add>, %593, %cst_245 [1] : vector<8x16xf32> to vector<8xf32>
    %595 = vector.shape_cast %594 : vector<8xf32> to vector<8x1xf32>
    %596 = tpu.reciprocal %595 {approx = true} : vector<8x1xf32> -> vector<8x1xf32>
    %597 = vector.broadcast %596 : vector<8x1xf32> to vector<8x16xf32>
    %598 = arith.mulf %593, %597 : vector<8x16xf32>
    %599 = arith.truncf %598 : vector<8x16xf32> to vector<8x16xbf16>
    %600 = vector.extract_strided_slice %513 {offsets = [0, 96], sizes = [16, 32], strides = [1, 1]} : vector<16x128xbf16> to vector<16x32xbf16>
    %cst_246 = arith.constant dense<0.000000e+00> : vector<8x32xf32>
    %601 = tpu.matmul %599, %600, %cst_246 {dimension_numbers = #tpu.dot_dimension_numbers<[1], [0], [0], [1], [0, 0, 1, 1], [], []>} : vector<8x16xbf16>, vector<16x32xbf16>, vector<8x32xf32> -> vector<8x32xf32>
    %602 = tpu.concatenate %535, %557, %579, %601 in 1 : vector<8x32xf32>, vector<8x32xf32>, vector<8x32xf32>, vector<8x32xf32> -> vector<8x128xf32>
    %603 = arith.truncf %602 : vector<8x128xf32> to vector<8x128xbf16>
    %cst_247 = arith.constant dense<0.000000e+00> : vector<8x128xf32>
    %604 = tpu.matmul %603, %508, %cst_247 {dimension_numbers = #tpu.dot_dimension_numbers<[1], [0], [0], [1], [0, 0, 1, 1], [], []>} : vector<8x128xbf16>, vector<128x128xbf16>, vector<8x128xf32> -> vector<8x128xf32>
    %605 = vector.broadcast %510 : vector<1x128xf32> to vector<8x128xf32>
    %606 = arith.addf %604, %605 : vector<8x128xf32>
    %607 = arith.addf %463, %606 : vector<8x128xf32>
    %c1_248 = arith.constant 1 : index
    %c0_249 = arith.constant 0 : index
    %c0_250 = arith.constant 0 : index
    %608 = vector.load %arg24[%c1_248, %c0_249, %c0_250] : memref<2x1x128xf32, #tpu.memory_space<vmem>>, vector<1x1x128xf32>
    %609 = vector.shape_cast %608 : vector<1x1x128xf32> to vector<1x128xf32>
    %c1_251 = arith.constant 1 : index
    %c0_252 = arith.constant 0 : index
    %c0_253 = arith.constant 0 : index
    %610 = vector.load %arg25[%c1_251, %c0_252, %c0_253] : memref<2x1x128xf32, #tpu.memory_space<vmem>>, vector<1x1x128xf32>
    %611 = vector.shape_cast %610 : vector<1x1x128xf32> to vector<1x128xf32>
    %cst_254 = arith.constant dense<0.000000e+00> : vector<8xf32>
    %612 = vector.multi_reduction <add>, %607, %cst_254 [1] : vector<8x128xf32> to vector<8xf32>
    %613 = vector.shape_cast %612 : vector<8xf32> to vector<8x1xf32>
    %cst_255 = arith.constant 1.280000e+02 : f32
    %614 = vector.broadcast %cst_255 : f32 to vector<8x1xf32>
    %615 = arith.divf %613, %614 : vector<8x1xf32>
    %616 = vector.broadcast %615 : vector<8x1xf32> to vector<8x128xf32>
    %617 = arith.subf %607, %616 : vector<8x128xf32>
    %618 = arith.mulf %617, %617 : vector<8x128xf32>
    %cst_256 = arith.constant dense<0.000000e+00> : vector<8xf32>
    %619 = vector.multi_reduction <add>, %618, %cst_256 [1] : vector<8x128xf32> to vector<8xf32>
    %620 = vector.shape_cast %619 : vector<8xf32> to vector<8x1xf32>
    %cst_257 = arith.constant 1.280000e+02 : f32
    %621 = vector.broadcast %cst_257 : f32 to vector<8x1xf32>
    %622 = arith.divf %620, %621 : vector<8x1xf32>
    %623 = vector.broadcast %615 : vector<8x1xf32> to vector<8x128xf32>
    %624 = arith.subf %607, %623 : vector<8x128xf32>
    %cst_258 = arith.constant 9.99999997E-7 : f32
    %625 = vector.broadcast %cst_258 : f32 to vector<8x1xf32>
    %626 = arith.addf %622, %625 : vector<8x1xf32>
    %627 = math.rsqrt %626 : vector<8x1xf32>
    %628 = vector.broadcast %627 : vector<8x1xf32> to vector<8x128xf32>
    %629 = arith.mulf %624, %628 : vector<8x128xf32>
    %630 = vector.broadcast %609 : vector<1x128xf32> to vector<8x128xf32>
    %631 = arith.mulf %629, %630 : vector<8x128xf32>
    %632 = vector.broadcast %611 : vector<1x128xf32> to vector<8x128xf32>
    %633 = arith.addf %631, %632 : vector<8x128xf32>
    %634 = arith.truncf %633 : vector<8x128xf32> to vector<8x128xbf16>
    %c1_259 = arith.constant 1 : index
    %c0_260 = arith.constant 0 : index
    %c0_261 = arith.constant 0 : index
    %635 = vector.load %arg16[%c1_259, %c0_260, %c0_261] : memref<2x128x256xbf16, #tpu.memory_space<vmem>>, vector<1x128x256xbf16>
    %636 = vector.shape_cast %635 : vector<1x128x256xbf16> to vector<128x256xbf16>
    %c1_262 = arith.constant 1 : index
    %c0_263 = arith.constant 0 : index
    %c0_264 = arith.constant 0 : index
    %637 = vector.load %arg17[%c1_262, %c0_263, %c0_264] : memref<2x1x256xf32, #tpu.memory_space<vmem>>, vector<1x1x256xf32>
    %638 = vector.shape_cast %637 : vector<1x1x256xf32> to vector<1x256xf32>
    %cst_265 = arith.constant dense<0.000000e+00> : vector<8x256xf32>
    %639 = tpu.matmul %634, %636, %cst_265 {dimension_numbers = #tpu.dot_dimension_numbers<[1], [0], [0], [1], [0, 0, 1, 1], [], []>} : vector<8x128xbf16>, vector<128x256xbf16>, vector<8x256xf32> -> vector<8x256xf32>
    %640 = vector.broadcast %638 : vector<1x256xf32> to vector<8x256xf32>
    %641 = arith.addf %639, %640 : vector<8x256xf32>
    %cst_266 = arith.constant 0.000000e+00 : f32
    %642 = vector.broadcast %cst_266 : f32 to vector<8x256xf32>
    %643 = arith.maximumf %641, %642 : vector<8x256xf32>
    %644 = arith.truncf %643 : vector<8x256xf32> to vector<8x256xbf16>
    %c1_267 = arith.constant 1 : index
    %c0_268 = arith.constant 0 : index
    %c0_269 = arith.constant 0 : index
    %645 = vector.load %arg18[%c1_267, %c0_268, %c0_269] : memref<2x256x128xbf16, #tpu.memory_space<vmem>>, vector<1x256x128xbf16>
    %646 = vector.shape_cast %645 : vector<1x256x128xbf16> to vector<256x128xbf16>
    %c1_270 = arith.constant 1 : index
    %c0_271 = arith.constant 0 : index
    %c0_272 = arith.constant 0 : index
    %647 = vector.load %arg19[%c1_270, %c0_271, %c0_272] : memref<2x1x128xf32, #tpu.memory_space<vmem>>, vector<1x1x128xf32>
    %648 = vector.shape_cast %647 : vector<1x1x128xf32> to vector<1x128xf32>
    %cst_273 = arith.constant dense<0.000000e+00> : vector<8x128xf32>
    %649 = tpu.matmul %644, %646, %cst_273 {dimension_numbers = #tpu.dot_dimension_numbers<[1], [0], [0], [1], [0, 0, 1, 1], [], []>} : vector<8x256xbf16>, vector<256x128xbf16>, vector<8x128xf32> -> vector<8x128xf32>
    %650 = vector.broadcast %648 : vector<1x128xf32> to vector<8x128xf32>
    %651 = arith.addf %649, %650 : vector<8x128xf32>
    %652 = arith.addf %607, %651 : vector<8x128xf32>
    %c0_274 = arith.constant 0 : index
    %c0_275 = arith.constant 0 : index
    %653 = vector.load %arg26[%c0_274, %c0_275] : memref<1x128xf32, #tpu.memory_space<vmem>>, vector<1x128xf32>
    %c0_276 = arith.constant 0 : index
    %c0_277 = arith.constant 0 : index
    %654 = vector.load %arg27[%c0_276, %c0_277] : memref<1x128xf32, #tpu.memory_space<vmem>>, vector<1x128xf32>
    %cst_278 = arith.constant dense<0.000000e+00> : vector<8xf32>
    %655 = vector.multi_reduction <add>, %652, %cst_278 [1] : vector<8x128xf32> to vector<8xf32>
    %656 = vector.shape_cast %655 : vector<8xf32> to vector<8x1xf32>
    %cst_279 = arith.constant 1.280000e+02 : f32
    %657 = vector.broadcast %cst_279 : f32 to vector<8x1xf32>
    %658 = arith.divf %656, %657 : vector<8x1xf32>
    %659 = vector.broadcast %658 : vector<8x1xf32> to vector<8x128xf32>
    %660 = arith.subf %652, %659 : vector<8x128xf32>
    %661 = arith.mulf %660, %660 : vector<8x128xf32>
    %cst_280 = arith.constant dense<0.000000e+00> : vector<8xf32>
    %662 = vector.multi_reduction <add>, %661, %cst_280 [1] : vector<8x128xf32> to vector<8xf32>
    %663 = vector.shape_cast %662 : vector<8xf32> to vector<8x1xf32>
    %cst_281 = arith.constant 1.280000e+02 : f32
    %664 = vector.broadcast %cst_281 : f32 to vector<8x1xf32>
    %665 = arith.divf %663, %664 : vector<8x1xf32>
    %666 = vector.broadcast %658 : vector<8x1xf32> to vector<8x128xf32>
    %667 = arith.subf %652, %666 : vector<8x128xf32>
    %cst_282 = arith.constant 9.99999997E-7 : f32
    %668 = vector.broadcast %cst_282 : f32 to vector<8x1xf32>
    %669 = arith.addf %665, %668 : vector<8x1xf32>
    %670 = math.rsqrt %669 : vector<8x1xf32>
    %671 = vector.broadcast %670 : vector<8x1xf32> to vector<8x128xf32>
    %672 = arith.mulf %667, %671 : vector<8x128xf32>
    %673 = vector.broadcast %653 : vector<1x128xf32> to vector<8x128xf32>
    %674 = arith.mulf %672, %673 : vector<8x128xf32>
    %675 = vector.broadcast %654 : vector<1x128xf32> to vector<8x128xf32>
    %676 = arith.addf %674, %675 : vector<8x128xf32>
    %c0_283 = arith.constant 0 : index
    %c0_284 = arith.constant 0 : index
    %c0_285 = arith.constant 0 : index
    %677 = vector.load %arg31[%c0_283, %c0_284, %c0_285] : memref<1x8x128xf32, #tpu.memory_space<vmem>>, vector<1x8x128xf32>
    %678 = vector.shape_cast %677 : vector<1x8x128xf32> to vector<8x128xf32>
    %679 = vector.shape_cast %676 : vector<8x128xf32> to vector<1x8x128xf32>
    tpu.vector_store %arg31[%c0_283, %c0_284, %c0_285], %679 {strides = array<i32>} : memref<1x8x128xf32, #tpu.memory_space<vmem>>, vector<1x8x128xf32>,
    %680 = arith.truncf %676 : vector<8x128xf32> to vector<8x128xbf16>
    %c0_286 = arith.constant 0 : index
    %c0_287 = arith.constant 0 : index
    %681 = vector.load %arg28[%c0_286, %c0_287] : memref<128x128xbf16, #tpu.memory_space<vmem>>, vector<128x128xbf16>
    %c0_288 = arith.constant 0 : index
    %c0_289 = arith.constant 0 : index
    %682 = vector.load %arg29[%c0_288, %c0_289] : memref<1x128xf32, #tpu.memory_space<vmem>>, vector<1x128xf32>
    %cst_290 = arith.constant dense<0.000000e+00> : vector<8x128xf32>
    %683 = tpu.matmul %680, %681, %cst_290 {dimension_numbers = #tpu.dot_dimension_numbers<[1], [0], [0], [1], [0, 0, 1, 1], [], []>} : vector<8x128xbf16>, vector<128x128xbf16>, vector<8x128xf32> -> vector<8x128xf32>
    %684 = vector.broadcast %682 : vector<1x128xf32> to vector<8x128xf32>
    %685 = arith.addf %683, %684 : vector<8x128xf32>
    %c0_291 = arith.constant 0 : index
    %c0_292 = arith.constant 0 : index
    %c0_293 = arith.constant 0 : index
    %686 = vector.load %arg30[%c0_291, %c0_292, %c0_293] : memref<1x8x128xf32, #tpu.memory_space<vmem>>, vector<1x8x128xf32>
    %687 = vector.shape_cast %686 : vector<1x8x128xf32> to vector<8x128xf32>
    %688 = vector.shape_cast %685 : vector<8x128xf32> to vector<1x8x128xf32>
    tpu.vector_store %arg30[%c0_291, %c0_292, %c0_293], %688 {strides = array<i32>} : memref<1x8x128xf32, #tpu.memory_space<vmem>>, vector<1x8x128xf32>,
    return
  }
  func.func @transform_0(%arg0: i32) -> (i32, i32, i32) {
    %c0_i32 = arith.constant 0 : i32
    %c0_i32_0 = arith.constant 0 : i32
    %c0_i32_1 = arith.constant 0 : i32
    return %arg0, %c0_i32, %c0_i32_0 : i32, i32, i32
  }
  func.func @transform_1(%arg0: i32) -> (i32, i32) {
    %c0_i32 = arith.constant 0 : i32
    %c0_i32_0 = arith.constant 0 : i32
    %c0_i32_1 = arith.constant 0 : i32
    return %c0_i32, %c0_i32_0 : i32, i32
  }
  func.func @transform_2(%arg0: i32) -> (i32, i32, i32) {
    %c0_i32 = arith.constant 0 : i32
    %c0_i32_0 = arith.constant 0 : i32
    %c0_i32_1 = arith.constant 0 : i32
    return %arg0, %c0_i32, %c0_i32_0 : i32, i32, i32
  }
  func.func @transform_3(%arg0: i32) -> (i32, i32, i32) {
    %c0_i32 = arith.constant 0 : i32
    %c0_i32_0 = arith.constant 0 : i32
    %c0_i32_1 = arith.constant 0 : i32
    return %arg0, %c0_i32, %c0_i32_0 : i32, i32, i32
  }
  func.func @transform_4(%arg0: i32) -> (i32, i32, i32) {
    %c0_i32 = arith.constant 0 : i32
    %c0_i32_0 = arith.constant 0 : i32
    %c0_i32_1 = arith.constant 0 : i32
    return %arg0, %c0_i32, %c0_i32_0 : i32, i32, i32
  }
  func.func @transform_5(%arg0: i32) -> (i32, i32, i32) {
    %c0_i32 = arith.constant 0 : i32
    %c0_i32_0 = arith.constant 0 : i32
    %c0_i32_1 = arith.constant 0 : i32
    %c0_i32_2 = arith.constant 0 : i32
    return %c0_i32, %c0_i32_0, %c0_i32_1 : i32, i32, i32
  }
  func.func @transform_6(%arg0: i32) -> (i32, i32, i32) {
    %c0_i32 = arith.constant 0 : i32
    %c0_i32_0 = arith.constant 0 : i32
    %c0_i32_1 = arith.constant 0 : i32
    %c0_i32_2 = arith.constant 0 : i32
    return %c0_i32, %c0_i32_0, %c0_i32_1 : i32, i32, i32
  }
  func.func @transform_7(%arg0: i32) -> (i32, i32, i32) {
    %c0_i32 = arith.constant 0 : i32
    %c0_i32_0 = arith.constant 0 : i32
    %c0_i32_1 = arith.constant 0 : i32
    %c0_i32_2 = arith.constant 0 : i32
    return %c0_i32, %c0_i32_0, %c0_i32_1 : i32, i32, i32
  }
  func.func @transform_8(%arg0: i32) -> (i32, i32, i32) {
    %c0_i32 = arith.constant 0 : i32
    %c0_i32_0 = arith.constant 0 : i32
    %c0_i32_1 = arith.constant 0 : i32
    %c0_i32_2 = arith.constant 0 : i32
    return %c0_i32, %c0_i32_0, %c0_i32_1 : i32, i32, i32
  }
  func.func @transform_9(%arg0: i32) -> (i32, i32, i32) {
    %c0_i32 = arith.constant 0 : i32
    %c0_i32_0 = arith.constant 0 : i32
    %c0_i32_1 = arith.constant 0 : i32
    %c0_i32_2 = arith.constant 0 : i32
    return %c0_i32, %c0_i32_0, %c0_i32_1 : i32, i32, i32
  }
  func.func @transform_10(%arg0: i32) -> (i32, i32, i32) {
    %c0_i32 = arith.constant 0 : i32
    %c0_i32_0 = arith.constant 0 : i32
    %c0_i32_1 = arith.constant 0 : i32
    %c0_i32_2 = arith.constant 0 : i32
    return %c0_i32, %c0_i32_0, %c0_i32_1 : i32, i32, i32
  }
  func.func @transform_11(%arg0: i32) -> (i32, i32, i32) {
    %c0_i32 = arith.constant 0 : i32
    %c0_i32_0 = arith.constant 0 : i32
    %c0_i32_1 = arith.constant 0 : i32
    %c0_i32_2 = arith.constant 0 : i32
    return %c0_i32, %c0_i32_0, %c0_i32_1 : i32, i32, i32
  }
  func.func @transform_12(%arg0: i32) -> (i32, i32, i32) {
    %c0_i32 = arith.constant 0 : i32
    %c0_i32_0 = arith.constant 0 : i32
    %c0_i32_1 = arith.constant 0 : i32
    %c0_i32_2 = arith.constant 0 : i32
    return %c0_i32, %c0_i32_0, %c0_i32_1 : i32, i32, i32
  }
  func.func @transform_13(%arg0: i32) -> (i32, i32, i32) {
    %c0_i32 = arith.constant 0 : i32
    %c0_i32_0 = arith.constant 0 : i32
    %c0_i32_1 = arith.constant 0 : i32
    %c0_i32_2 = arith.constant 0 : i32
    return %c0_i32, %c0_i32_0, %c0_i32_1 : i32, i32, i32
  }
  func.func @transform_14(%arg0: i32) -> (i32, i32, i32) {
    %c0_i32 = arith.constant 0 : i32
    %c0_i32_0 = arith.constant 0 : i32
    %c0_i32_1 = arith.constant 0 : i32
    %c0_i32_2 = arith.constant 0 : i32
    return %c0_i32, %c0_i32_0, %c0_i32_1 : i32, i32, i32
  }
  func.func @transform_15(%arg0: i32) -> (i32, i32, i32) {
    %c0_i32 = arith.constant 0 : i32
    %c0_i32_0 = arith.constant 0 : i32
    %c0_i32_1 = arith.constant 0 : i32
    %c0_i32_2 = arith.constant 0 : i32
    return %c0_i32, %c0_i32_0, %c0_i32_1 : i32, i32, i32
  }
  func.func @transform_16(%arg0: i32) -> (i32, i32, i32) {
    %c0_i32 = arith.constant 0 : i32
    %c0_i32_0 = arith.constant 0 : i32
    %c0_i32_1 = arith.constant 0 : i32
    %c0_i32_2 = arith.constant 0 : i32
    return %c0_i32, %c0_i32_0, %c0_i32_1 : i32, i32, i32
  }
  func.func @transform_17(%arg0: i32) -> (i32, i32, i32) {
    %c0_i32 = arith.constant 0 : i32
    %c0_i32_0 = arith.constant 0 : i32
    %c0_i32_1 = arith.constant 0 : i32
    %c0_i32_2 = arith.constant 0 : i32
    return %c0_i32, %c0_i32_0, %c0_i32_1 : i32, i32, i32
  }
  func.func @transform_18(%arg0: i32) -> (i32, i32, i32) {
    %c0_i32 = arith.constant 0 : i32
    %c0_i32_0 = arith.constant 0 : i32
    %c0_i32_1 = arith.constant 0 : i32
    %c0_i32_2 = arith.constant 0 : i32
    return %c0_i32, %c0_i32_0, %c0_i32_1 : i32, i32, i32
  }
  func.func @transform_19(%arg0: i32) -> (i32, i32, i32) {
    %c0_i32 = arith.constant 0 : i32
    %c0_i32_0 = arith.constant 0 : i32
    %c0_i32_1 = arith.constant 0 : i32
    %c0_i32_2 = arith.constant 0 : i32
    return %c0_i32, %c0_i32_0, %c0_i32_1 : i32, i32, i32
  }
  func.func @transform_20(%arg0: i32) -> (i32, i32, i32) {
    %c0_i32 = arith.constant 0 : i32
    %c0_i32_0 = arith.constant 0 : i32
    %c0_i32_1 = arith.constant 0 : i32
    %c0_i32_2 = arith.constant 0 : i32
    return %c0_i32, %c0_i32_0, %c0_i32_1 : i32, i32, i32
  }
  func.func @transform_21(%arg0: i32) -> (i32, i32, i32) {
    %c0_i32 = arith.constant 0 : i32
    %c0_i32_0 = arith.constant 0 : i32
    %c0_i32_1 = arith.constant 0 : i32
    %c0_i32_2 = arith.constant 0 : i32
    return %c0_i32, %c0_i32_0, %c0_i32_1 : i32, i32, i32
  }
  func.func @transform_22(%arg0: i32) -> (i32, i32, i32) {
    %c0_i32 = arith.constant 0 : i32
    %c0_i32_0 = arith.constant 0 : i32
    %c0_i32_1 = arith.constant 0 : i32
    %c0_i32_2 = arith.constant 0 : i32
    return %c0_i32, %c0_i32_0, %c0_i32_1 : i32, i32, i32
  }
  func.func @transform_23(%arg0: i32) -> (i32, i32, i32) {
    %c0_i32 = arith.constant 0 : i32
    %c0_i32_0 = arith.constant 0 : i32
    %c0_i32_1 = arith.constant 0 : i32
    %c0_i32_2 = arith.constant 0 : i32
    return %c0_i32, %c0_i32_0, %c0_i32_1 : i32, i32, i32
  }
  func.func @transform_24(%arg0: i32) -> (i32, i32, i32) {
    %c0_i32 = arith.constant 0 : i32
    %c0_i32_0 = arith.constant 0 : i32
    %c0_i32_1 = arith.constant 0 : i32
    %c0_i32_2 = arith.constant 0 : i32
    return %c0_i32, %c0_i32_0, %c0_i32_1 : i32, i32, i32
  }
  func.func @transform_25(%arg0: i32) -> (i32, i32) {
    %c0_i32 = arith.constant 0 : i32
    %c0_i32_0 = arith.constant 0 : i32
    %c0_i32_1 = arith.constant 0 : i32
    return %c0_i32, %c0_i32_0 : i32, i32
  }
  func.func @transform_26(%arg0: i32) -> (i32, i32) {
    %c0_i32 = arith.constant 0 : i32
    %c0_i32_0 = arith.constant 0 : i32
    %c0_i32_1 = arith.constant 0 : i32
    return %c0_i32, %c0_i32_0 : i32, i32
  }
  func.func @transform_27(%arg0: i32) -> (i32, i32) {
    %c0_i32 = arith.constant 0 : i32
    %c0_i32_0 = arith.constant 0 : i32
    %c0_i32_1 = arith.constant 0 : i32
    return %c0_i32, %c0_i32_0 : i32, i32
  }
  func.func @transform_28(%arg0: i32) -> (i32, i32) {
    %c0_i32 = arith.constant 0 : i32
    %c0_i32_0 = arith.constant 0 : i32
    %c0_i32_1 = arith.constant 0 : i32
    return %c0_i32, %c0_i32_0 : i32, i32
  }
  func.func @transform_29(%arg0: i32) -> (i32, i32, i32) {
    %c0_i32 = arith.constant 0 : i32
    %c0_i32_0 = arith.constant 0 : i32
    %c0_i32_1 = arith.constant 0 : i32
    return %arg0, %c0_i32, %c0_i32_0 : i32, i32, i32
  }
  func.func @transform_30(%arg0: i32) -> (i32, i32, i32) {
    %c0_i32 = arith.constant 0 : i32
    %c0_i32_0 = arith.constant 0 : i32
    %c0_i32_1 = arith.constant 0 : i32
    return %arg0, %c0_i32, %c0_i32_0 : i32, i32, i32
  }
}

module attributes {stable_mosaic.version = 11 : i64} {
  func.func @_encoder_stack_kernel(%arg0: i32, %arg1: memref<1x16x128xf32, #tpu.memory_space<vmem>>, %arg2: memref<1x1x16xi32, #tpu.memory_space<vmem>>, %arg3: memref<1x128xf32, #tpu.memory_space<vmem>>, %arg4: memref<1x128xf32, #tpu.memory_space<vmem>>, %arg5: memref<2x128x384xbf16, #tpu.memory_space<vmem>>, %arg6: memref<2x1x384xf32, #tpu.memory_space<vmem>>, %arg7: memref<2x128x128xbf16, #tpu.memory_space<vmem>>, %arg8: memref<2x1x128xf32, #tpu.memory_space<vmem>>, %arg9: memref<2x1x128xf32, #tpu.memory_space<vmem>>, %arg10: memref<2x1x128xf32, #tpu.memory_space<vmem>>, %arg11: memref<2x128x256xbf16, #tpu.memory_space<vmem>>, %arg12: memref<2x1x256xf32, #tpu.memory_space<vmem>>, %arg13: memref<2x256x128xbf16, #tpu.memory_space<vmem>>, %arg14: memref<2x1x128xf32, #tpu.memory_space<vmem>>, %arg15: memref<2x1x128xf32, #tpu.memory_space<vmem>>, %arg16: memref<2x1x128xf32, #tpu.memory_space<vmem>>, %arg17: memref<1x16x128xf32, #tpu.memory_space<vmem>>) attributes {dimension_semantics = [#tpu.dimension_semantics<parallel>], iteration_bounds = array<i64: 2>, scalar_prefetch = 0 : i64, scratch_operands = 0 : i64, tpu.core_type = #tpu.core_type<tc>, window_params = [{transform_indices = @transform_0, window_bounds = array<i64: 1, 16, 128>}, {transform_indices = @transform_1, window_bounds = array<i64: 1, 1, 16>}, {pipeline_mode = #tpu.pipeline_mode<synchronous>, transform_indices = @transform_2, window_bounds = array<i64: 1, 128>}, {pipeline_mode = #tpu.pipeline_mode<synchronous>, transform_indices = @transform_3, window_bounds = array<i64: 1, 128>}, {pipeline_mode = #tpu.pipeline_mode<synchronous>, transform_indices = @transform_4, window_bounds = array<i64: 2, 128, 384>}, {pipeline_mode = #tpu.pipeline_mode<synchronous>, transform_indices = @transform_5, window_bounds = array<i64: 2, 1, 384>}, {pipeline_mode = #tpu.pipeline_mode<synchronous>, transform_indices = @transform_6, window_bounds = array<i64: 2, 128, 128>}, {pipeline_mode = #tpu.pipeline_mode<synchronous>, transform_indices = @transform_7, window_bounds = array<i64: 2, 1, 128>}, {pipeline_mode = #tpu.pipeline_mode<synchronous>, transform_indices = @transform_8, window_bounds = array<i64: 2, 1, 128>}, {pipeline_mode = #tpu.pipeline_mode<synchronous>, transform_indices = @transform_9, window_bounds = array<i64: 2, 1, 128>}, {pipeline_mode = #tpu.pipeline_mode<synchronous>, transform_indices = @transform_10, window_bounds = array<i64: 2, 128, 256>}, {pipeline_mode = #tpu.pipeline_mode<synchronous>, transform_indices = @transform_11, window_bounds = array<i64: 2, 1, 256>}, {pipeline_mode = #tpu.pipeline_mode<synchronous>, transform_indices = @transform_12, window_bounds = array<i64: 2, 256, 128>}, {pipeline_mode = #tpu.pipeline_mode<synchronous>, transform_indices = @transform_13, window_bounds = array<i64: 2, 1, 128>}, {pipeline_mode = #tpu.pipeline_mode<synchronous>, transform_indices = @transform_14, window_bounds = array<i64: 2, 1, 128>}, {pipeline_mode = #tpu.pipeline_mode<synchronous>, transform_indices = @transform_15, window_bounds = array<i64: 2, 1, 128>}, {transform_indices = @transform_16, window_bounds = array<i64: 1, 16, 128>}]} {
    %c0 = arith.constant 0 : index
    %c0_0 = arith.constant 0 : index
    %c0_1 = arith.constant 0 : index
    %0 = vector.load %arg2[%c0, %c0_0, %c0_1] : memref<1x1x16xi32, #tpu.memory_space<vmem>>, vector<1x1x16xi32>
    %1 = vector.shape_cast %0 : vector<1x1x16xi32> to vector<1x16xi32>
    %c0_i32 = arith.constant 0 : i32
    %2 = vector.broadcast %c0_i32 : i32 to vector<1x16xi32>
    %3 = arith.cmpi sgt, %1, %2 : vector<1x16xi32>
    %c0_2 = arith.constant 0 : index
    %c0_3 = arith.constant 0 : index
    %c0_4 = arith.constant 0 : index
    %4 = vector.load %arg1[%c0_2, %c0_3, %c0_4] : memref<1x16x128xf32, #tpu.memory_space<vmem>>, vector<1x16x128xf32>
    %5 = vector.shape_cast %4 : vector<1x16x128xf32> to vector<16x128xf32>
    %c0_5 = arith.constant 0 : index
    %c0_6 = arith.constant 0 : index
    %6 = vector.load %arg3[%c0_5, %c0_6] : memref<1x128xf32, #tpu.memory_space<vmem>>, vector<1x128xf32>
    %c0_7 = arith.constant 0 : index
    %c0_8 = arith.constant 0 : index
    %7 = vector.load %arg4[%c0_7, %c0_8] : memref<1x128xf32, #tpu.memory_space<vmem>>, vector<1x128xf32>
    %cst = arith.constant dense<0.000000e+00> : vector<16xf32>
    %8 = vector.multi_reduction <add>, %5, %cst [1] : vector<16x128xf32> to vector<16xf32>
    %9 = vector.shape_cast %8 : vector<16xf32> to vector<16x1xf32>
    %cst_9 = arith.constant 1.280000e+02 : f32
    %10 = vector.broadcast %cst_9 : f32 to vector<16x1xf32>
    %11 = arith.divf %9, %10 : vector<16x1xf32>
    %12 = vector.broadcast %11 : vector<16x1xf32> to vector<16x128xf32>
    %13 = arith.subf %5, %12 : vector<16x128xf32>
    %14 = arith.mulf %13, %13 : vector<16x128xf32>
    %cst_10 = arith.constant dense<0.000000e+00> : vector<16xf32>
    %15 = vector.multi_reduction <add>, %14, %cst_10 [1] : vector<16x128xf32> to vector<16xf32>
    %16 = vector.shape_cast %15 : vector<16xf32> to vector<16x1xf32>
    %cst_11 = arith.constant 1.280000e+02 : f32
    %17 = vector.broadcast %cst_11 : f32 to vector<16x1xf32>
    %18 = arith.divf %16, %17 : vector<16x1xf32>
    %19 = vector.broadcast %11 : vector<16x1xf32> to vector<16x128xf32>
    %20 = arith.subf %5, %19 : vector<16x128xf32>
    %cst_12 = arith.constant 9.99999996E-13 : f32
    %21 = vector.broadcast %cst_12 : f32 to vector<16x1xf32>
    %22 = arith.addf %18, %21 : vector<16x1xf32>
    %23 = math.rsqrt %22 : vector<16x1xf32>
    %24 = vector.broadcast %23 : vector<16x1xf32> to vector<16x128xf32>
    %25 = arith.mulf %20, %24 : vector<16x128xf32>
    %26 = vector.broadcast %6 : vector<1x128xf32> to vector<16x128xf32>
    %27 = arith.mulf %25, %26 : vector<16x128xf32>
    %28 = vector.broadcast %7 : vector<1x128xf32> to vector<16x128xf32>
    %29 = arith.addf %27, %28 : vector<16x128xf32>
    %30 = arith.truncf %29 : vector<16x128xf32> to vector<16x128xbf16>
    %c0_13 = arith.constant 0 : index
    %c0_14 = arith.constant 0 : index
    %c0_15 = arith.constant 0 : index
    %31 = vector.load %arg5[%c0_13, %c0_14, %c0_15] : memref<2x128x384xbf16, #tpu.memory_space<vmem>>, vector<1x128x384xbf16>
    %32 = vector.shape_cast %31 : vector<1x128x384xbf16> to vector<128x384xbf16>
    %c0_16 = arith.constant 0 : index
    %c0_17 = arith.constant 0 : index
    %c0_18 = arith.constant 0 : index
    %33 = vector.load %arg6[%c0_16, %c0_17, %c0_18] : memref<2x1x384xf32, #tpu.memory_space<vmem>>, vector<1x1x384xf32>
    %34 = vector.shape_cast %33 : vector<1x1x384xf32> to vector<1x384xf32>
    %cst_19 = arith.constant dense<0.000000e+00> : vector<16x384xf32>
    %35 = tpu.matmul %30, %32, %cst_19 {dimension_numbers = #tpu.dot_dimension_numbers<[1], [0], [0], [1], [0, 0, 1, 1], [], []>} : vector<16x128xbf16>, vector<128x384xbf16>, vector<16x384xf32> -> vector<16x384xf32>
    %36 = vector.broadcast %34 : vector<1x384xf32> to vector<16x384xf32>
    %37 = arith.addf %35, %36 : vector<16x384xf32>
    %38 = vector.extract_strided_slice %37 {offsets = [0, 0], sizes = [16, 128], strides = [1, 1]} : vector<16x384xf32> to vector<16x128xf32>
    %39 = vector.extract_strided_slice %37 {offsets = [0, 128], sizes = [16, 128], strides = [1, 1]} : vector<16x384xf32> to vector<16x128xf32>
    %40 = vector.extract_strided_slice %37 {offsets = [0, 256], sizes = [16, 128], strides = [1, 1]} : vector<16x384xf32> to vector<16x128xf32>
    %c0_20 = arith.constant 0 : index
    %c0_21 = arith.constant 0 : index
    %c0_22 = arith.constant 0 : index
    %41 = vector.load %arg7[%c0_20, %c0_21, %c0_22] : memref<2x128x128xbf16, #tpu.memory_space<vmem>>, vector<1x128x128xbf16>
    %42 = vector.shape_cast %41 : vector<1x128x128xbf16> to vector<128x128xbf16>
    %c0_23 = arith.constant 0 : index
    %c0_24 = arith.constant 0 : index
    %c0_25 = arith.constant 0 : index
    %43 = vector.load %arg8[%c0_23, %c0_24, %c0_25] : memref<2x1x128xf32, #tpu.memory_space<vmem>>, vector<1x1x128xf32>
    %44 = vector.shape_cast %43 : vector<1x1x128xf32> to vector<1x128xf32>
    %45 = arith.truncf %38 : vector<16x128xf32> to vector<16x128xbf16>
    %46 = arith.truncf %39 : vector<16x128xf32> to vector<16x128xbf16>
    %47 = arith.truncf %40 : vector<16x128xf32> to vector<16x128xbf16>
    %48 = vector.extract_strided_slice %45 {offsets = [0, 0], sizes = [16, 32], strides = [1, 1]} : vector<16x128xbf16> to vector<16x32xbf16>
    %49 = vector.extract_strided_slice %46 {offsets = [0, 0], sizes = [16, 32], strides = [1, 1]} : vector<16x128xbf16> to vector<16x32xbf16>
    %cst_26 = arith.constant dense<0.000000e+00> : vector<16x16xf32>
    %50 = tpu.matmul %48, %49, %cst_26 {dimension_numbers = #tpu.dot_dimension_numbers<[1], [1], [0], [0], [0, 0, 1, 0], [], []>} : vector<16x32xbf16>, vector<16x32xbf16>, vector<16x16xf32> -> vector<16x16xf32>
    %cst_27 = arith.constant 0.176776692 : f32
    %51 = vector.broadcast %cst_27 : f32 to vector<16x16xf32>
    %52 = arith.mulf %50, %51 : vector<16x16xf32>
    %cst_28 = arith.constant -1.000000e+09 : f32
    %53 = vector.shape_cast %3 : vector<1x16xi1> to vector<1x16xi1>
    %54 = vector.broadcast %53 : vector<1x16xi1> to vector<16x16xi1>
    %55 = vector.broadcast %cst_28 : f32 to vector<16x16xf32>
    %56 = arith.select %54, %52, %55 : vector<16x16xi1>, vector<16x16xf32>
    %cst_29 = arith.constant dense<0xFF800000> : vector<16xf32>
    %57 = vector.multi_reduction <maximumf>, %56, %cst_29 [1] : vector<16x16xf32> to vector<16xf32>
    %58 = vector.shape_cast %57 : vector<16xf32> to vector<16x1xf32>
    %59 = vector.broadcast %58 : vector<16x1xf32> to vector<16x16xf32>
    %60 = arith.subf %56, %59 : vector<16x16xf32>
    %61 = math.exp %60 : vector<16x16xf32>
    %cst_30 = arith.constant dense<0.000000e+00> : vector<16xf32>
    %62 = vector.multi_reduction <add>, %61, %cst_30 [1] : vector<16x16xf32> to vector<16xf32>
    %63 = vector.shape_cast %62 : vector<16xf32> to vector<16x1xf32>
    %64 = tpu.reciprocal %63 {approx = true} : vector<16x1xf32> -> vector<16x1xf32>
    %65 = vector.broadcast %64 : vector<16x1xf32> to vector<16x16xf32>
    %66 = arith.mulf %61, %65 : vector<16x16xf32>
    %67 = arith.truncf %66 : vector<16x16xf32> to vector<16x16xbf16>
    %68 = vector.extract_strided_slice %47 {offsets = [0, 0], sizes = [16, 32], strides = [1, 1]} : vector<16x128xbf16> to vector<16x32xbf16>
    %cst_31 = arith.constant dense<0.000000e+00> : vector<16x32xf32>
    %69 = tpu.matmul %67, %68, %cst_31 {dimension_numbers = #tpu.dot_dimension_numbers<[1], [0], [0], [1], [0, 0, 1, 1], [], []>} : vector<16x16xbf16>, vector<16x32xbf16>, vector<16x32xf32> -> vector<16x32xf32>
    %70 = vector.extract_strided_slice %45 {offsets = [0, 32], sizes = [16, 32], strides = [1, 1]} : vector<16x128xbf16> to vector<16x32xbf16>
    %71 = vector.extract_strided_slice %46 {offsets = [0, 32], sizes = [16, 32], strides = [1, 1]} : vector<16x128xbf16> to vector<16x32xbf16>
    %cst_32 = arith.constant dense<0.000000e+00> : vector<16x16xf32>
    %72 = tpu.matmul %70, %71, %cst_32 {dimension_numbers = #tpu.dot_dimension_numbers<[1], [1], [0], [0], [0, 0, 1, 0], [], []>} : vector<16x32xbf16>, vector<16x32xbf16>, vector<16x16xf32> -> vector<16x16xf32>
    %cst_33 = arith.constant 0.176776692 : f32
    %73 = vector.broadcast %cst_33 : f32 to vector<16x16xf32>
    %74 = arith.mulf %72, %73 : vector<16x16xf32>
    %cst_34 = arith.constant -1.000000e+09 : f32
    %75 = vector.shape_cast %3 : vector<1x16xi1> to vector<1x16xi1>
    %76 = vector.broadcast %75 : vector<1x16xi1> to vector<16x16xi1>
    %77 = vector.broadcast %cst_34 : f32 to vector<16x16xf32>
    %78 = arith.select %76, %74, %77 : vector<16x16xi1>, vector<16x16xf32>
    %cst_35 = arith.constant dense<0xFF800000> : vector<16xf32>
    %79 = vector.multi_reduction <maximumf>, %78, %cst_35 [1] : vector<16x16xf32> to vector<16xf32>
    %80 = vector.shape_cast %79 : vector<16xf32> to vector<16x1xf32>
    %81 = vector.broadcast %80 : vector<16x1xf32> to vector<16x16xf32>
    %82 = arith.subf %78, %81 : vector<16x16xf32>
    %83 = math.exp %82 : vector<16x16xf32>
    %cst_36 = arith.constant dense<0.000000e+00> : vector<16xf32>
    %84 = vector.multi_reduction <add>, %83, %cst_36 [1] : vector<16x16xf32> to vector<16xf32>
    %85 = vector.shape_cast %84 : vector<16xf32> to vector<16x1xf32>
    %86 = tpu.reciprocal %85 {approx = true} : vector<16x1xf32> -> vector<16x1xf32>
    %87 = vector.broadcast %86 : vector<16x1xf32> to vector<16x16xf32>
    %88 = arith.mulf %83, %87 : vector<16x16xf32>
    %89 = arith.truncf %88 : vector<16x16xf32> to vector<16x16xbf16>
    %90 = vector.extract_strided_slice %47 {offsets = [0, 32], sizes = [16, 32], strides = [1, 1]} : vector<16x128xbf16> to vector<16x32xbf16>
    %cst_37 = arith.constant dense<0.000000e+00> : vector<16x32xf32>
    %91 = tpu.matmul %89, %90, %cst_37 {dimension_numbers = #tpu.dot_dimension_numbers<[1], [0], [0], [1], [0, 0, 1, 1], [], []>} : vector<16x16xbf16>, vector<16x32xbf16>, vector<16x32xf32> -> vector<16x32xf32>
    %92 = vector.extract_strided_slice %45 {offsets = [0, 64], sizes = [16, 32], strides = [1, 1]} : vector<16x128xbf16> to vector<16x32xbf16>
    %93 = vector.extract_strided_slice %46 {offsets = [0, 64], sizes = [16, 32], strides = [1, 1]} : vector<16x128xbf16> to vector<16x32xbf16>
    %cst_38 = arith.constant dense<0.000000e+00> : vector<16x16xf32>
    %94 = tpu.matmul %92, %93, %cst_38 {dimension_numbers = #tpu.dot_dimension_numbers<[1], [1], [0], [0], [0, 0, 1, 0], [], []>} : vector<16x32xbf16>, vector<16x32xbf16>, vector<16x16xf32> -> vector<16x16xf32>
    %cst_39 = arith.constant 0.176776692 : f32
    %95 = vector.broadcast %cst_39 : f32 to vector<16x16xf32>
    %96 = arith.mulf %94, %95 : vector<16x16xf32>
    %cst_40 = arith.constant -1.000000e+09 : f32
    %97 = vector.shape_cast %3 : vector<1x16xi1> to vector<1x16xi1>
    %98 = vector.broadcast %97 : vector<1x16xi1> to vector<16x16xi1>
    %99 = vector.broadcast %cst_40 : f32 to vector<16x16xf32>
    %100 = arith.select %98, %96, %99 : vector<16x16xi1>, vector<16x16xf32>
    %cst_41 = arith.constant dense<0xFF800000> : vector<16xf32>
    %101 = vector.multi_reduction <maximumf>, %100, %cst_41 [1] : vector<16x16xf32> to vector<16xf32>
    %102 = vector.shape_cast %101 : vector<16xf32> to vector<16x1xf32>
    %103 = vector.broadcast %102 : vector<16x1xf32> to vector<16x16xf32>
    %104 = arith.subf %100, %103 : vector<16x16xf32>
    %105 = math.exp %104 : vector<16x16xf32>
    %cst_42 = arith.constant dense<0.000000e+00> : vector<16xf32>
    %106 = vector.multi_reduction <add>, %105, %cst_42 [1] : vector<16x16xf32> to vector<16xf32>
    %107 = vector.shape_cast %106 : vector<16xf32> to vector<16x1xf32>
    %108 = tpu.reciprocal %107 {approx = true} : vector<16x1xf32> -> vector<16x1xf32>
    %109 = vector.broadcast %108 : vector<16x1xf32> to vector<16x16xf32>
    %110 = arith.mulf %105, %109 : vector<16x16xf32>
    %111 = arith.truncf %110 : vector<16x16xf32> to vector<16x16xbf16>
    %112 = vector.extract_strided_slice %47 {offsets = [0, 64], sizes = [16, 32], strides = [1, 1]} : vector<16x128xbf16> to vector<16x32xbf16>
    %cst_43 = arith.constant dense<0.000000e+00> : vector<16x32xf32>
    %113 = tpu.matmul %111, %112, %cst_43 {dimension_numbers = #tpu.dot_dimension_numbers<[1], [0], [0], [1], [0, 0, 1, 1], [], []>} : vector<16x16xbf16>, vector<16x32xbf16>, vector<16x32xf32> -> vector<16x32xf32>
    %114 = vector.extract_strided_slice %45 {offsets = [0, 96], sizes = [16, 32], strides = [1, 1]} : vector<16x128xbf16> to vector<16x32xbf16>
    %115 = vector.extract_strided_slice %46 {offsets = [0, 96], sizes = [16, 32], strides = [1, 1]} : vector<16x128xbf16> to vector<16x32xbf16>
    %cst_44 = arith.constant dense<0.000000e+00> : vector<16x16xf32>
    %116 = tpu.matmul %114, %115, %cst_44 {dimension_numbers = #tpu.dot_dimension_numbers<[1], [1], [0], [0], [0, 0, 1, 0], [], []>} : vector<16x32xbf16>, vector<16x32xbf16>, vector<16x16xf32> -> vector<16x16xf32>
    %cst_45 = arith.constant 0.176776692 : f32
    %117 = vector.broadcast %cst_45 : f32 to vector<16x16xf32>
    %118 = arith.mulf %116, %117 : vector<16x16xf32>
    %cst_46 = arith.constant -1.000000e+09 : f32
    %119 = vector.shape_cast %3 : vector<1x16xi1> to vector<1x16xi1>
    %120 = vector.broadcast %119 : vector<1x16xi1> to vector<16x16xi1>
    %121 = vector.broadcast %cst_46 : f32 to vector<16x16xf32>
    %122 = arith.select %120, %118, %121 : vector<16x16xi1>, vector<16x16xf32>
    %cst_47 = arith.constant dense<0xFF800000> : vector<16xf32>
    %123 = vector.multi_reduction <maximumf>, %122, %cst_47 [1] : vector<16x16xf32> to vector<16xf32>
    %124 = vector.shape_cast %123 : vector<16xf32> to vector<16x1xf32>
    %125 = vector.broadcast %124 : vector<16x1xf32> to vector<16x16xf32>
    %126 = arith.subf %122, %125 : vector<16x16xf32>
    %127 = math.exp %126 : vector<16x16xf32>
    %cst_48 = arith.constant dense<0.000000e+00> : vector<16xf32>
    %128 = vector.multi_reduction <add>, %127, %cst_48 [1] : vector<16x16xf32> to vector<16xf32>
    %129 = vector.shape_cast %128 : vector<16xf32> to vector<16x1xf32>
    %130 = tpu.reciprocal %129 {approx = true} : vector<16x1xf32> -> vector<16x1xf32>
    %131 = vector.broadcast %130 : vector<16x1xf32> to vector<16x16xf32>
    %132 = arith.mulf %127, %131 : vector<16x16xf32>
    %133 = arith.truncf %132 : vector<16x16xf32> to vector<16x16xbf16>
    %134 = vector.extract_strided_slice %47 {offsets = [0, 96], sizes = [16, 32], strides = [1, 1]} : vector<16x128xbf16> to vector<16x32xbf16>
    %cst_49 = arith.constant dense<0.000000e+00> : vector<16x32xf32>
    %135 = tpu.matmul %133, %134, %cst_49 {dimension_numbers = #tpu.dot_dimension_numbers<[1], [0], [0], [1], [0, 0, 1, 1], [], []>} : vector<16x16xbf16>, vector<16x32xbf16>, vector<16x32xf32> -> vector<16x32xf32>
    %136 = tpu.concatenate %69, %91, %113, %135 in 1 : vector<16x32xf32>, vector<16x32xf32>, vector<16x32xf32>, vector<16x32xf32> -> vector<16x128xf32>
    %137 = arith.truncf %136 : vector<16x128xf32> to vector<16x128xbf16>
    %cst_50 = arith.constant dense<0.000000e+00> : vector<16x128xf32>
    %138 = tpu.matmul %137, %42, %cst_50 {dimension_numbers = #tpu.dot_dimension_numbers<[1], [0], [0], [1], [0, 0, 1, 1], [], []>} : vector<16x128xbf16>, vector<128x128xbf16>, vector<16x128xf32> -> vector<16x128xf32>
    %139 = vector.broadcast %44 : vector<1x128xf32> to vector<16x128xf32>
    %140 = arith.addf %138, %139 : vector<16x128xf32>
    %141 = arith.addf %140, %29 : vector<16x128xf32>
    %c0_51 = arith.constant 0 : index
    %c0_52 = arith.constant 0 : index
    %c0_53 = arith.constant 0 : index
    %142 = vector.load %arg9[%c0_51, %c0_52, %c0_53] : memref<2x1x128xf32, #tpu.memory_space<vmem>>, vector<1x1x128xf32>
    %143 = vector.shape_cast %142 : vector<1x1x128xf32> to vector<1x128xf32>
    %c0_54 = arith.constant 0 : index
    %c0_55 = arith.constant 0 : index
    %c0_56 = arith.constant 0 : index
    %144 = vector.load %arg10[%c0_54, %c0_55, %c0_56] : memref<2x1x128xf32, #tpu.memory_space<vmem>>, vector<1x1x128xf32>
    %145 = vector.shape_cast %144 : vector<1x1x128xf32> to vector<1x128xf32>
    %cst_57 = arith.constant dense<0.000000e+00> : vector<16xf32>
    %146 = vector.multi_reduction <add>, %141, %cst_57 [1] : vector<16x128xf32> to vector<16xf32>
    %147 = vector.shape_cast %146 : vector<16xf32> to vector<16x1xf32>
    %cst_58 = arith.constant 1.280000e+02 : f32
    %148 = vector.broadcast %cst_58 : f32 to vector<16x1xf32>
    %149 = arith.divf %147, %148 : vector<16x1xf32>
    %150 = vector.broadcast %149 : vector<16x1xf32> to vector<16x128xf32>
    %151 = arith.subf %141, %150 : vector<16x128xf32>
    %152 = arith.mulf %151, %151 : vector<16x128xf32>
    %cst_59 = arith.constant dense<0.000000e+00> : vector<16xf32>
    %153 = vector.multi_reduction <add>, %152, %cst_59 [1] : vector<16x128xf32> to vector<16xf32>
    %154 = vector.shape_cast %153 : vector<16xf32> to vector<16x1xf32>
    %cst_60 = arith.constant 1.280000e+02 : f32
    %155 = vector.broadcast %cst_60 : f32 to vector<16x1xf32>
    %156 = arith.divf %154, %155 : vector<16x1xf32>
    %157 = vector.broadcast %149 : vector<16x1xf32> to vector<16x128xf32>
    %158 = arith.subf %141, %157 : vector<16x128xf32>
    %cst_61 = arith.constant 9.99999996E-13 : f32
    %159 = vector.broadcast %cst_61 : f32 to vector<16x1xf32>
    %160 = arith.addf %156, %159 : vector<16x1xf32>
    %161 = math.rsqrt %160 : vector<16x1xf32>
    %162 = vector.broadcast %161 : vector<16x1xf32> to vector<16x128xf32>
    %163 = arith.mulf %158, %162 : vector<16x128xf32>
    %164 = vector.broadcast %143 : vector<1x128xf32> to vector<16x128xf32>
    %165 = arith.mulf %163, %164 : vector<16x128xf32>
    %166 = vector.broadcast %145 : vector<1x128xf32> to vector<16x128xf32>
    %167 = arith.addf %165, %166 : vector<16x128xf32>
    %168 = arith.truncf %167 : vector<16x128xf32> to vector<16x128xbf16>
    %c0_62 = arith.constant 0 : index
    %c0_63 = arith.constant 0 : index
    %c0_64 = arith.constant 0 : index
    %169 = vector.load %arg11[%c0_62, %c0_63, %c0_64] : memref<2x128x256xbf16, #tpu.memory_space<vmem>>, vector<1x128x256xbf16>
    %170 = vector.shape_cast %169 : vector<1x128x256xbf16> to vector<128x256xbf16>
    %c0_65 = arith.constant 0 : index
    %c0_66 = arith.constant 0 : index
    %c0_67 = arith.constant 0 : index
    %171 = vector.load %arg12[%c0_65, %c0_66, %c0_67] : memref<2x1x256xf32, #tpu.memory_space<vmem>>, vector<1x1x256xf32>
    %172 = vector.shape_cast %171 : vector<1x1x256xf32> to vector<1x256xf32>
    %cst_68 = arith.constant dense<0.000000e+00> : vector<16x256xf32>
    %173 = tpu.matmul %168, %170, %cst_68 {dimension_numbers = #tpu.dot_dimension_numbers<[1], [0], [0], [1], [0, 0, 1, 1], [], []>} : vector<16x128xbf16>, vector<128x256xbf16>, vector<16x256xf32> -> vector<16x256xf32>
    %174 = vector.broadcast %172 : vector<1x256xf32> to vector<16x256xf32>
    %175 = arith.addf %173, %174 : vector<16x256xf32>
    %176 = arith.mulf %175, %175 : vector<16x256xf32>
    %177 = arith.mulf %175, %176 : vector<16x256xf32>
    %cst_69 = arith.constant 4.471500e-02 : f32
    %178 = vector.broadcast %cst_69 : f32 to vector<16x256xf32>
    %179 = arith.mulf %178, %177 : vector<16x256xf32>
    %180 = arith.addf %175, %179 : vector<16x256xf32>
    %cst_70 = arith.constant 0.797884583 : f32
    %181 = vector.broadcast %cst_70 : f32 to vector<16x256xf32>
    %182 = arith.mulf %181, %180 : vector<16x256xf32>
    %183 = math.tanh %182 : vector<16x256xf32>
    %cst_71 = arith.constant 1.000000e+00 : f32
    %184 = vector.broadcast %cst_71 : f32 to vector<16x256xf32>
    %185 = arith.addf %184, %183 : vector<16x256xf32>
    %cst_72 = arith.constant 5.000000e-01 : f32
    %186 = vector.broadcast %cst_72 : f32 to vector<16x256xf32>
    %187 = arith.mulf %186, %185 : vector<16x256xf32>
    %188 = arith.mulf %175, %187 : vector<16x256xf32>
    %189 = arith.truncf %188 : vector<16x256xf32> to vector<16x256xbf16>
    %c0_73 = arith.constant 0 : index
    %c0_74 = arith.constant 0 : index
    %c0_75 = arith.constant 0 : index
    %190 = vector.load %arg13[%c0_73, %c0_74, %c0_75] : memref<2x256x128xbf16, #tpu.memory_space<vmem>>, vector<1x256x128xbf16>
    %191 = vector.shape_cast %190 : vector<1x256x128xbf16> to vector<256x128xbf16>
    %c0_76 = arith.constant 0 : index
    %c0_77 = arith.constant 0 : index
    %c0_78 = arith.constant 0 : index
    %192 = vector.load %arg14[%c0_76, %c0_77, %c0_78] : memref<2x1x128xf32, #tpu.memory_space<vmem>>, vector<1x1x128xf32>
    %193 = vector.shape_cast %192 : vector<1x1x128xf32> to vector<1x128xf32>
    %cst_79 = arith.constant dense<0.000000e+00> : vector<16x128xf32>
    %194 = tpu.matmul %189, %191, %cst_79 {dimension_numbers = #tpu.dot_dimension_numbers<[1], [0], [0], [1], [0, 0, 1, 1], [], []>} : vector<16x256xbf16>, vector<256x128xbf16>, vector<16x128xf32> -> vector<16x128xf32>
    %195 = vector.broadcast %193 : vector<1x128xf32> to vector<16x128xf32>
    %196 = arith.addf %194, %195 : vector<16x128xf32>
    %197 = arith.addf %196, %167 : vector<16x128xf32>
    %c0_80 = arith.constant 0 : index
    %c0_81 = arith.constant 0 : index
    %c0_82 = arith.constant 0 : index
    %198 = vector.load %arg15[%c0_80, %c0_81, %c0_82] : memref<2x1x128xf32, #tpu.memory_space<vmem>>, vector<1x1x128xf32>
    %199 = vector.shape_cast %198 : vector<1x1x128xf32> to vector<1x128xf32>
    %c0_83 = arith.constant 0 : index
    %c0_84 = arith.constant 0 : index
    %c0_85 = arith.constant 0 : index
    %200 = vector.load %arg16[%c0_83, %c0_84, %c0_85] : memref<2x1x128xf32, #tpu.memory_space<vmem>>, vector<1x1x128xf32>
    %201 = vector.shape_cast %200 : vector<1x1x128xf32> to vector<1x128xf32>
    %cst_86 = arith.constant dense<0.000000e+00> : vector<16xf32>
    %202 = vector.multi_reduction <add>, %197, %cst_86 [1] : vector<16x128xf32> to vector<16xf32>
    %203 = vector.shape_cast %202 : vector<16xf32> to vector<16x1xf32>
    %cst_87 = arith.constant 1.280000e+02 : f32
    %204 = vector.broadcast %cst_87 : f32 to vector<16x1xf32>
    %205 = arith.divf %203, %204 : vector<16x1xf32>
    %206 = vector.broadcast %205 : vector<16x1xf32> to vector<16x128xf32>
    %207 = arith.subf %197, %206 : vector<16x128xf32>
    %208 = arith.mulf %207, %207 : vector<16x128xf32>
    %cst_88 = arith.constant dense<0.000000e+00> : vector<16xf32>
    %209 = vector.multi_reduction <add>, %208, %cst_88 [1] : vector<16x128xf32> to vector<16xf32>
    %210 = vector.shape_cast %209 : vector<16xf32> to vector<16x1xf32>
    %cst_89 = arith.constant 1.280000e+02 : f32
    %211 = vector.broadcast %cst_89 : f32 to vector<16x1xf32>
    %212 = arith.divf %210, %211 : vector<16x1xf32>
    %213 = vector.broadcast %205 : vector<16x1xf32> to vector<16x128xf32>
    %214 = arith.subf %197, %213 : vector<16x128xf32>
    %cst_90 = arith.constant 9.99999996E-13 : f32
    %215 = vector.broadcast %cst_90 : f32 to vector<16x1xf32>
    %216 = arith.addf %212, %215 : vector<16x1xf32>
    %217 = math.rsqrt %216 : vector<16x1xf32>
    %218 = vector.broadcast %217 : vector<16x1xf32> to vector<16x128xf32>
    %219 = arith.mulf %214, %218 : vector<16x128xf32>
    %220 = vector.broadcast %199 : vector<1x128xf32> to vector<16x128xf32>
    %221 = arith.mulf %219, %220 : vector<16x128xf32>
    %222 = vector.broadcast %201 : vector<1x128xf32> to vector<16x128xf32>
    %223 = arith.addf %221, %222 : vector<16x128xf32>
    %224 = arith.truncf %223 : vector<16x128xf32> to vector<16x128xbf16>
    %c1 = arith.constant 1 : index
    %c0_91 = arith.constant 0 : index
    %c0_92 = arith.constant 0 : index
    %225 = vector.load %arg5[%c1, %c0_91, %c0_92] : memref<2x128x384xbf16, #tpu.memory_space<vmem>>, vector<1x128x384xbf16>
    %226 = vector.shape_cast %225 : vector<1x128x384xbf16> to vector<128x384xbf16>
    %c1_93 = arith.constant 1 : index
    %c0_94 = arith.constant 0 : index
    %c0_95 = arith.constant 0 : index
    %227 = vector.load %arg6[%c1_93, %c0_94, %c0_95] : memref<2x1x384xf32, #tpu.memory_space<vmem>>, vector<1x1x384xf32>
    %228 = vector.shape_cast %227 : vector<1x1x384xf32> to vector<1x384xf32>
    %cst_96 = arith.constant dense<0.000000e+00> : vector<16x384xf32>
    %229 = tpu.matmul %224, %226, %cst_96 {dimension_numbers = #tpu.dot_dimension_numbers<[1], [0], [0], [1], [0, 0, 1, 1], [], []>} : vector<16x128xbf16>, vector<128x384xbf16>, vector<16x384xf32> -> vector<16x384xf32>
    %230 = vector.broadcast %228 : vector<1x384xf32> to vector<16x384xf32>
    %231 = arith.addf %229, %230 : vector<16x384xf32>
    %232 = vector.extract_strided_slice %231 {offsets = [0, 0], sizes = [16, 128], strides = [1, 1]} : vector<16x384xf32> to vector<16x128xf32>
    %233 = vector.extract_strided_slice %231 {offsets = [0, 128], sizes = [16, 128], strides = [1, 1]} : vector<16x384xf32> to vector<16x128xf32>
    %234 = vector.extract_strided_slice %231 {offsets = [0, 256], sizes = [16, 128], strides = [1, 1]} : vector<16x384xf32> to vector<16x128xf32>
    %c1_97 = arith.constant 1 : index
    %c0_98 = arith.constant 0 : index
    %c0_99 = arith.constant 0 : index
    %235 = vector.load %arg7[%c1_97, %c0_98, %c0_99] : memref<2x128x128xbf16, #tpu.memory_space<vmem>>, vector<1x128x128xbf16>
    %236 = vector.shape_cast %235 : vector<1x128x128xbf16> to vector<128x128xbf16>
    %c1_100 = arith.constant 1 : index
    %c0_101 = arith.constant 0 : index
    %c0_102 = arith.constant 0 : index
    %237 = vector.load %arg8[%c1_100, %c0_101, %c0_102] : memref<2x1x128xf32, #tpu.memory_space<vmem>>, vector<1x1x128xf32>
    %238 = vector.shape_cast %237 : vector<1x1x128xf32> to vector<1x128xf32>
    %239 = arith.truncf %232 : vector<16x128xf32> to vector<16x128xbf16>
    %240 = arith.truncf %233 : vector<16x128xf32> to vector<16x128xbf16>
    %241 = arith.truncf %234 : vector<16x128xf32> to vector<16x128xbf16>
    %242 = vector.extract_strided_slice %239 {offsets = [0, 0], sizes = [16, 32], strides = [1, 1]} : vector<16x128xbf16> to vector<16x32xbf16>
    %243 = vector.extract_strided_slice %240 {offsets = [0, 0], sizes = [16, 32], strides = [1, 1]} : vector<16x128xbf16> to vector<16x32xbf16>
    %cst_103 = arith.constant dense<0.000000e+00> : vector<16x16xf32>
    %244 = tpu.matmul %242, %243, %cst_103 {dimension_numbers = #tpu.dot_dimension_numbers<[1], [1], [0], [0], [0, 0, 1, 0], [], []>} : vector<16x32xbf16>, vector<16x32xbf16>, vector<16x16xf32> -> vector<16x16xf32>
    %cst_104 = arith.constant 0.176776692 : f32
    %245 = vector.broadcast %cst_104 : f32 to vector<16x16xf32>
    %246 = arith.mulf %244, %245 : vector<16x16xf32>
    %cst_105 = arith.constant -1.000000e+09 : f32
    %247 = vector.shape_cast %3 : vector<1x16xi1> to vector<1x16xi1>
    %248 = vector.broadcast %247 : vector<1x16xi1> to vector<16x16xi1>
    %249 = vector.broadcast %cst_105 : f32 to vector<16x16xf32>
    %250 = arith.select %248, %246, %249 : vector<16x16xi1>, vector<16x16xf32>
    %cst_106 = arith.constant dense<0xFF800000> : vector<16xf32>
    %251 = vector.multi_reduction <maximumf>, %250, %cst_106 [1] : vector<16x16xf32> to vector<16xf32>
    %252 = vector.shape_cast %251 : vector<16xf32> to vector<16x1xf32>
    %253 = vector.broadcast %252 : vector<16x1xf32> to vector<16x16xf32>
    %254 = arith.subf %250, %253 : vector<16x16xf32>
    %255 = math.exp %254 : vector<16x16xf32>
    %cst_107 = arith.constant dense<0.000000e+00> : vector<16xf32>
    %256 = vector.multi_reduction <add>, %255, %cst_107 [1] : vector<16x16xf32> to vector<16xf32>
    %257 = vector.shape_cast %256 : vector<16xf32> to vector<16x1xf32>
    %258 = tpu.reciprocal %257 {approx = true} : vector<16x1xf32> -> vector<16x1xf32>
    %259 = vector.broadcast %258 : vector<16x1xf32> to vector<16x16xf32>
    %260 = arith.mulf %255, %259 : vector<16x16xf32>
    %261 = arith.truncf %260 : vector<16x16xf32> to vector<16x16xbf16>
    %262 = vector.extract_strided_slice %241 {offsets = [0, 0], sizes = [16, 32], strides = [1, 1]} : vector<16x128xbf16> to vector<16x32xbf16>
    %cst_108 = arith.constant dense<0.000000e+00> : vector<16x32xf32>
    %263 = tpu.matmul %261, %262, %cst_108 {dimension_numbers = #tpu.dot_dimension_numbers<[1], [0], [0], [1], [0, 0, 1, 1], [], []>} : vector<16x16xbf16>, vector<16x32xbf16>, vector<16x32xf32> -> vector<16x32xf32>
    %264 = vector.extract_strided_slice %239 {offsets = [0, 32], sizes = [16, 32], strides = [1, 1]} : vector<16x128xbf16> to vector<16x32xbf16>
    %265 = vector.extract_strided_slice %240 {offsets = [0, 32], sizes = [16, 32], strides = [1, 1]} : vector<16x128xbf16> to vector<16x32xbf16>
    %cst_109 = arith.constant dense<0.000000e+00> : vector<16x16xf32>
    %266 = tpu.matmul %264, %265, %cst_109 {dimension_numbers = #tpu.dot_dimension_numbers<[1], [1], [0], [0], [0, 0, 1, 0], [], []>} : vector<16x32xbf16>, vector<16x32xbf16>, vector<16x16xf32> -> vector<16x16xf32>
    %cst_110 = arith.constant 0.176776692 : f32
    %267 = vector.broadcast %cst_110 : f32 to vector<16x16xf32>
    %268 = arith.mulf %266, %267 : vector<16x16xf32>
    %cst_111 = arith.constant -1.000000e+09 : f32
    %269 = vector.shape_cast %3 : vector<1x16xi1> to vector<1x16xi1>
    %270 = vector.broadcast %269 : vector<1x16xi1> to vector<16x16xi1>
    %271 = vector.broadcast %cst_111 : f32 to vector<16x16xf32>
    %272 = arith.select %270, %268, %271 : vector<16x16xi1>, vector<16x16xf32>
    %cst_112 = arith.constant dense<0xFF800000> : vector<16xf32>
    %273 = vector.multi_reduction <maximumf>, %272, %cst_112 [1] : vector<16x16xf32> to vector<16xf32>
    %274 = vector.shape_cast %273 : vector<16xf32> to vector<16x1xf32>
    %275 = vector.broadcast %274 : vector<16x1xf32> to vector<16x16xf32>
    %276 = arith.subf %272, %275 : vector<16x16xf32>
    %277 = math.exp %276 : vector<16x16xf32>
    %cst_113 = arith.constant dense<0.000000e+00> : vector<16xf32>
    %278 = vector.multi_reduction <add>, %277, %cst_113 [1] : vector<16x16xf32> to vector<16xf32>
    %279 = vector.shape_cast %278 : vector<16xf32> to vector<16x1xf32>
    %280 = tpu.reciprocal %279 {approx = true} : vector<16x1xf32> -> vector<16x1xf32>
    %281 = vector.broadcast %280 : vector<16x1xf32> to vector<16x16xf32>
    %282 = arith.mulf %277, %281 : vector<16x16xf32>
    %283 = arith.truncf %282 : vector<16x16xf32> to vector<16x16xbf16>
    %284 = vector.extract_strided_slice %241 {offsets = [0, 32], sizes = [16, 32], strides = [1, 1]} : vector<16x128xbf16> to vector<16x32xbf16>
    %cst_114 = arith.constant dense<0.000000e+00> : vector<16x32xf32>
    %285 = tpu.matmul %283, %284, %cst_114 {dimension_numbers = #tpu.dot_dimension_numbers<[1], [0], [0], [1], [0, 0, 1, 1], [], []>} : vector<16x16xbf16>, vector<16x32xbf16>, vector<16x32xf32> -> vector<16x32xf32>
    %286 = vector.extract_strided_slice %239 {offsets = [0, 64], sizes = [16, 32], strides = [1, 1]} : vector<16x128xbf16> to vector<16x32xbf16>
    %287 = vector.extract_strided_slice %240 {offsets = [0, 64], sizes = [16, 32], strides = [1, 1]} : vector<16x128xbf16> to vector<16x32xbf16>
    %cst_115 = arith.constant dense<0.000000e+00> : vector<16x16xf32>
    %288 = tpu.matmul %286, %287, %cst_115 {dimension_numbers = #tpu.dot_dimension_numbers<[1], [1], [0], [0], [0, 0, 1, 0], [], []>} : vector<16x32xbf16>, vector<16x32xbf16>, vector<16x16xf32> -> vector<16x16xf32>
    %cst_116 = arith.constant 0.176776692 : f32
    %289 = vector.broadcast %cst_116 : f32 to vector<16x16xf32>
    %290 = arith.mulf %288, %289 : vector<16x16xf32>
    %cst_117 = arith.constant -1.000000e+09 : f32
    %291 = vector.shape_cast %3 : vector<1x16xi1> to vector<1x16xi1>
    %292 = vector.broadcast %291 : vector<1x16xi1> to vector<16x16xi1>
    %293 = vector.broadcast %cst_117 : f32 to vector<16x16xf32>
    %294 = arith.select %292, %290, %293 : vector<16x16xi1>, vector<16x16xf32>
    %cst_118 = arith.constant dense<0xFF800000> : vector<16xf32>
    %295 = vector.multi_reduction <maximumf>, %294, %cst_118 [1] : vector<16x16xf32> to vector<16xf32>
    %296 = vector.shape_cast %295 : vector<16xf32> to vector<16x1xf32>
    %297 = vector.broadcast %296 : vector<16x1xf32> to vector<16x16xf32>
    %298 = arith.subf %294, %297 : vector<16x16xf32>
    %299 = math.exp %298 : vector<16x16xf32>
    %cst_119 = arith.constant dense<0.000000e+00> : vector<16xf32>
    %300 = vector.multi_reduction <add>, %299, %cst_119 [1] : vector<16x16xf32> to vector<16xf32>
    %301 = vector.shape_cast %300 : vector<16xf32> to vector<16x1xf32>
    %302 = tpu.reciprocal %301 {approx = true} : vector<16x1xf32> -> vector<16x1xf32>
    %303 = vector.broadcast %302 : vector<16x1xf32> to vector<16x16xf32>
    %304 = arith.mulf %299, %303 : vector<16x16xf32>
    %305 = arith.truncf %304 : vector<16x16xf32> to vector<16x16xbf16>
    %306 = vector.extract_strided_slice %241 {offsets = [0, 64], sizes = [16, 32], strides = [1, 1]} : vector<16x128xbf16> to vector<16x32xbf16>
    %cst_120 = arith.constant dense<0.000000e+00> : vector<16x32xf32>
    %307 = tpu.matmul %305, %306, %cst_120 {dimension_numbers = #tpu.dot_dimension_numbers<[1], [0], [0], [1], [0, 0, 1, 1], [], []>} : vector<16x16xbf16>, vector<16x32xbf16>, vector<16x32xf32> -> vector<16x32xf32>
    %308 = vector.extract_strided_slice %239 {offsets = [0, 96], sizes = [16, 32], strides = [1, 1]} : vector<16x128xbf16> to vector<16x32xbf16>
    %309 = vector.extract_strided_slice %240 {offsets = [0, 96], sizes = [16, 32], strides = [1, 1]} : vector<16x128xbf16> to vector<16x32xbf16>
    %cst_121 = arith.constant dense<0.000000e+00> : vector<16x16xf32>
    %310 = tpu.matmul %308, %309, %cst_121 {dimension_numbers = #tpu.dot_dimension_numbers<[1], [1], [0], [0], [0, 0, 1, 0], [], []>} : vector<16x32xbf16>, vector<16x32xbf16>, vector<16x16xf32> -> vector<16x16xf32>
    %cst_122 = arith.constant 0.176776692 : f32
    %311 = vector.broadcast %cst_122 : f32 to vector<16x16xf32>
    %312 = arith.mulf %310, %311 : vector<16x16xf32>
    %cst_123 = arith.constant -1.000000e+09 : f32
    %313 = vector.shape_cast %3 : vector<1x16xi1> to vector<1x16xi1>
    %314 = vector.broadcast %313 : vector<1x16xi1> to vector<16x16xi1>
    %315 = vector.broadcast %cst_123 : f32 to vector<16x16xf32>
    %316 = arith.select %314, %312, %315 : vector<16x16xi1>, vector<16x16xf32>
    %cst_124 = arith.constant dense<0xFF800000> : vector<16xf32>
    %317 = vector.multi_reduction <maximumf>, %316, %cst_124 [1] : vector<16x16xf32> to vector<16xf32>
    %318 = vector.shape_cast %317 : vector<16xf32> to vector<16x1xf32>
    %319 = vector.broadcast %318 : vector<16x1xf32> to vector<16x16xf32>
    %320 = arith.subf %316, %319 : vector<16x16xf32>
    %321 = math.exp %320 : vector<16x16xf32>
    %cst_125 = arith.constant dense<0.000000e+00> : vector<16xf32>
    %322 = vector.multi_reduction <add>, %321, %cst_125 [1] : vector<16x16xf32> to vector<16xf32>
    %323 = vector.shape_cast %322 : vector<16xf32> to vector<16x1xf32>
    %324 = tpu.reciprocal %323 {approx = true} : vector<16x1xf32> -> vector<16x1xf32>
    %325 = vector.broadcast %324 : vector<16x1xf32> to vector<16x16xf32>
    %326 = arith.mulf %321, %325 : vector<16x16xf32>
    %327 = arith.truncf %326 : vector<16x16xf32> to vector<16x16xbf16>
    %328 = vector.extract_strided_slice %241 {offsets = [0, 96], sizes = [16, 32], strides = [1, 1]} : vector<16x128xbf16> to vector<16x32xbf16>
    %cst_126 = arith.constant dense<0.000000e+00> : vector<16x32xf32>
    %329 = tpu.matmul %327, %328, %cst_126 {dimension_numbers = #tpu.dot_dimension_numbers<[1], [0], [0], [1], [0, 0, 1, 1], [], []>} : vector<16x16xbf16>, vector<16x32xbf16>, vector<16x32xf32> -> vector<16x32xf32>
    %330 = tpu.concatenate %263, %285, %307, %329 in 1 : vector<16x32xf32>, vector<16x32xf32>, vector<16x32xf32>, vector<16x32xf32> -> vector<16x128xf32>
    %331 = arith.truncf %330 : vector<16x128xf32> to vector<16x128xbf16>
    %cst_127 = arith.constant dense<0.000000e+00> : vector<16x128xf32>
    %332 = tpu.matmul %331, %236, %cst_127 {dimension_numbers = #tpu.dot_dimension_numbers<[1], [0], [0], [1], [0, 0, 1, 1], [], []>} : vector<16x128xbf16>, vector<128x128xbf16>, vector<16x128xf32> -> vector<16x128xf32>
    %333 = vector.broadcast %238 : vector<1x128xf32> to vector<16x128xf32>
    %334 = arith.addf %332, %333 : vector<16x128xf32>
    %335 = arith.addf %334, %223 : vector<16x128xf32>
    %c1_128 = arith.constant 1 : index
    %c0_129 = arith.constant 0 : index
    %c0_130 = arith.constant 0 : index
    %336 = vector.load %arg9[%c1_128, %c0_129, %c0_130] : memref<2x1x128xf32, #tpu.memory_space<vmem>>, vector<1x1x128xf32>
    %337 = vector.shape_cast %336 : vector<1x1x128xf32> to vector<1x128xf32>
    %c1_131 = arith.constant 1 : index
    %c0_132 = arith.constant 0 : index
    %c0_133 = arith.constant 0 : index
    %338 = vector.load %arg10[%c1_131, %c0_132, %c0_133] : memref<2x1x128xf32, #tpu.memory_space<vmem>>, vector<1x1x128xf32>
    %339 = vector.shape_cast %338 : vector<1x1x128xf32> to vector<1x128xf32>
    %cst_134 = arith.constant dense<0.000000e+00> : vector<16xf32>
    %340 = vector.multi_reduction <add>, %335, %cst_134 [1] : vector<16x128xf32> to vector<16xf32>
    %341 = vector.shape_cast %340 : vector<16xf32> to vector<16x1xf32>
    %cst_135 = arith.constant 1.280000e+02 : f32
    %342 = vector.broadcast %cst_135 : f32 to vector<16x1xf32>
    %343 = arith.divf %341, %342 : vector<16x1xf32>
    %344 = vector.broadcast %343 : vector<16x1xf32> to vector<16x128xf32>
    %345 = arith.subf %335, %344 : vector<16x128xf32>
    %346 = arith.mulf %345, %345 : vector<16x128xf32>
    %cst_136 = arith.constant dense<0.000000e+00> : vector<16xf32>
    %347 = vector.multi_reduction <add>, %346, %cst_136 [1] : vector<16x128xf32> to vector<16xf32>
    %348 = vector.shape_cast %347 : vector<16xf32> to vector<16x1xf32>
    %cst_137 = arith.constant 1.280000e+02 : f32
    %349 = vector.broadcast %cst_137 : f32 to vector<16x1xf32>
    %350 = arith.divf %348, %349 : vector<16x1xf32>
    %351 = vector.broadcast %343 : vector<16x1xf32> to vector<16x128xf32>
    %352 = arith.subf %335, %351 : vector<16x128xf32>
    %cst_138 = arith.constant 9.99999996E-13 : f32
    %353 = vector.broadcast %cst_138 : f32 to vector<16x1xf32>
    %354 = arith.addf %350, %353 : vector<16x1xf32>
    %355 = math.rsqrt %354 : vector<16x1xf32>
    %356 = vector.broadcast %355 : vector<16x1xf32> to vector<16x128xf32>
    %357 = arith.mulf %352, %356 : vector<16x128xf32>
    %358 = vector.broadcast %337 : vector<1x128xf32> to vector<16x128xf32>
    %359 = arith.mulf %357, %358 : vector<16x128xf32>
    %360 = vector.broadcast %339 : vector<1x128xf32> to vector<16x128xf32>
    %361 = arith.addf %359, %360 : vector<16x128xf32>
    %362 = arith.truncf %361 : vector<16x128xf32> to vector<16x128xbf16>
    %c1_139 = arith.constant 1 : index
    %c0_140 = arith.constant 0 : index
    %c0_141 = arith.constant 0 : index
    %363 = vector.load %arg11[%c1_139, %c0_140, %c0_141] : memref<2x128x256xbf16, #tpu.memory_space<vmem>>, vector<1x128x256xbf16>
    %364 = vector.shape_cast %363 : vector<1x128x256xbf16> to vector<128x256xbf16>
    %c1_142 = arith.constant 1 : index
    %c0_143 = arith.constant 0 : index
    %c0_144 = arith.constant 0 : index
    %365 = vector.load %arg12[%c1_142, %c0_143, %c0_144] : memref<2x1x256xf32, #tpu.memory_space<vmem>>, vector<1x1x256xf32>
    %366 = vector.shape_cast %365 : vector<1x1x256xf32> to vector<1x256xf32>
    %cst_145 = arith.constant dense<0.000000e+00> : vector<16x256xf32>
    %367 = tpu.matmul %362, %364, %cst_145 {dimension_numbers = #tpu.dot_dimension_numbers<[1], [0], [0], [1], [0, 0, 1, 1], [], []>} : vector<16x128xbf16>, vector<128x256xbf16>, vector<16x256xf32> -> vector<16x256xf32>
    %368 = vector.broadcast %366 : vector<1x256xf32> to vector<16x256xf32>
    %369 = arith.addf %367, %368 : vector<16x256xf32>
    %370 = arith.mulf %369, %369 : vector<16x256xf32>
    %371 = arith.mulf %369, %370 : vector<16x256xf32>
    %cst_146 = arith.constant 4.471500e-02 : f32
    %372 = vector.broadcast %cst_146 : f32 to vector<16x256xf32>
    %373 = arith.mulf %372, %371 : vector<16x256xf32>
    %374 = arith.addf %369, %373 : vector<16x256xf32>
    %cst_147 = arith.constant 0.797884583 : f32
    %375 = vector.broadcast %cst_147 : f32 to vector<16x256xf32>
    %376 = arith.mulf %375, %374 : vector<16x256xf32>
    %377 = math.tanh %376 : vector<16x256xf32>
    %cst_148 = arith.constant 1.000000e+00 : f32
    %378 = vector.broadcast %cst_148 : f32 to vector<16x256xf32>
    %379 = arith.addf %378, %377 : vector<16x256xf32>
    %cst_149 = arith.constant 5.000000e-01 : f32
    %380 = vector.broadcast %cst_149 : f32 to vector<16x256xf32>
    %381 = arith.mulf %380, %379 : vector<16x256xf32>
    %382 = arith.mulf %369, %381 : vector<16x256xf32>
    %383 = arith.truncf %382 : vector<16x256xf32> to vector<16x256xbf16>
    %c1_150 = arith.constant 1 : index
    %c0_151 = arith.constant 0 : index
    %c0_152 = arith.constant 0 : index
    %384 = vector.load %arg13[%c1_150, %c0_151, %c0_152] : memref<2x256x128xbf16, #tpu.memory_space<vmem>>, vector<1x256x128xbf16>
    %385 = vector.shape_cast %384 : vector<1x256x128xbf16> to vector<256x128xbf16>
    %c1_153 = arith.constant 1 : index
    %c0_154 = arith.constant 0 : index
    %c0_155 = arith.constant 0 : index
    %386 = vector.load %arg14[%c1_153, %c0_154, %c0_155] : memref<2x1x128xf32, #tpu.memory_space<vmem>>, vector<1x1x128xf32>
    %387 = vector.shape_cast %386 : vector<1x1x128xf32> to vector<1x128xf32>
    %cst_156 = arith.constant dense<0.000000e+00> : vector<16x128xf32>
    %388 = tpu.matmul %383, %385, %cst_156 {dimension_numbers = #tpu.dot_dimension_numbers<[1], [0], [0], [1], [0, 0, 1, 1], [], []>} : vector<16x256xbf16>, vector<256x128xbf16>, vector<16x128xf32> -> vector<16x128xf32>
    %389 = vector.broadcast %387 : vector<1x128xf32> to vector<16x128xf32>
    %390 = arith.addf %388, %389 : vector<16x128xf32>
    %391 = arith.addf %390, %361 : vector<16x128xf32>
    %c1_157 = arith.constant 1 : index
    %c0_158 = arith.constant 0 : index
    %c0_159 = arith.constant 0 : index
    %392 = vector.load %arg15[%c1_157, %c0_158, %c0_159] : memref<2x1x128xf32, #tpu.memory_space<vmem>>, vector<1x1x128xf32>
    %393 = vector.shape_cast %392 : vector<1x1x128xf32> to vector<1x128xf32>
    %c1_160 = arith.constant 1 : index
    %c0_161 = arith.constant 0 : index
    %c0_162 = arith.constant 0 : index
    %394 = vector.load %arg16[%c1_160, %c0_161, %c0_162] : memref<2x1x128xf32, #tpu.memory_space<vmem>>, vector<1x1x128xf32>
    %395 = vector.shape_cast %394 : vector<1x1x128xf32> to vector<1x128xf32>
    %cst_163 = arith.constant dense<0.000000e+00> : vector<16xf32>
    %396 = vector.multi_reduction <add>, %391, %cst_163 [1] : vector<16x128xf32> to vector<16xf32>
    %397 = vector.shape_cast %396 : vector<16xf32> to vector<16x1xf32>
    %cst_164 = arith.constant 1.280000e+02 : f32
    %398 = vector.broadcast %cst_164 : f32 to vector<16x1xf32>
    %399 = arith.divf %397, %398 : vector<16x1xf32>
    %400 = vector.broadcast %399 : vector<16x1xf32> to vector<16x128xf32>
    %401 = arith.subf %391, %400 : vector<16x128xf32>
    %402 = arith.mulf %401, %401 : vector<16x128xf32>
    %cst_165 = arith.constant dense<0.000000e+00> : vector<16xf32>
    %403 = vector.multi_reduction <add>, %402, %cst_165 [1] : vector<16x128xf32> to vector<16xf32>
    %404 = vector.shape_cast %403 : vector<16xf32> to vector<16x1xf32>
    %cst_166 = arith.constant 1.280000e+02 : f32
    %405 = vector.broadcast %cst_166 : f32 to vector<16x1xf32>
    %406 = arith.divf %404, %405 : vector<16x1xf32>
    %407 = vector.broadcast %399 : vector<16x1xf32> to vector<16x128xf32>
    %408 = arith.subf %391, %407 : vector<16x128xf32>
    %cst_167 = arith.constant 9.99999996E-13 : f32
    %409 = vector.broadcast %cst_167 : f32 to vector<16x1xf32>
    %410 = arith.addf %406, %409 : vector<16x1xf32>
    %411 = math.rsqrt %410 : vector<16x1xf32>
    %412 = vector.broadcast %411 : vector<16x1xf32> to vector<16x128xf32>
    %413 = arith.mulf %408, %412 : vector<16x128xf32>
    %414 = vector.broadcast %393 : vector<1x128xf32> to vector<16x128xf32>
    %415 = arith.mulf %413, %414 : vector<16x128xf32>
    %416 = vector.broadcast %395 : vector<1x128xf32> to vector<16x128xf32>
    %417 = arith.addf %415, %416 : vector<16x128xf32>
    %c0_168 = arith.constant 0 : index
    %c0_169 = arith.constant 0 : index
    %c0_170 = arith.constant 0 : index
    %418 = vector.load %arg17[%c0_168, %c0_169, %c0_170] : memref<1x16x128xf32, #tpu.memory_space<vmem>>, vector<1x16x128xf32>
    %419 = vector.shape_cast %418 : vector<1x16x128xf32> to vector<16x128xf32>
    %420 = vector.shape_cast %417 : vector<16x128xf32> to vector<1x16x128xf32>
    tpu.vector_store %arg17[%c0_168, %c0_169, %c0_170], %420 {strides = array<i32>} : memref<1x16x128xf32, #tpu.memory_space<vmem>>, vector<1x16x128xf32>,
    return
  }
  func.func @transform_0(%arg0: i32) -> (i32, i32, i32) {
    %c0_i32 = arith.constant 0 : i32
    %c0_i32_0 = arith.constant 0 : i32
    %c0_i32_1 = arith.constant 0 : i32
    return %arg0, %c0_i32, %c0_i32_0 : i32, i32, i32
  }
  func.func @transform_1(%arg0: i32) -> (i32, i32, i32) {
    %c0_i32 = arith.constant 0 : i32
    %c0_i32_0 = arith.constant 0 : i32
    %c0_i32_1 = arith.constant 0 : i32
    return %arg0, %c0_i32, %c0_i32_0 : i32, i32, i32
  }
  func.func @transform_2(%arg0: i32) -> (i32, i32) {
    %c0_i32 = arith.constant 0 : i32
    %c0_i32_0 = arith.constant 0 : i32
    %c0_i32_1 = arith.constant 0 : i32
    return %c0_i32, %c0_i32_0 : i32, i32
  }
  func.func @transform_3(%arg0: i32) -> (i32, i32) {
    %c0_i32 = arith.constant 0 : i32
    %c0_i32_0 = arith.constant 0 : i32
    %c0_i32_1 = arith.constant 0 : i32
    return %c0_i32, %c0_i32_0 : i32, i32
  }
  func.func @transform_4(%arg0: i32) -> (i32, i32, i32) {
    %c0_i32 = arith.constant 0 : i32
    %c0_i32_0 = arith.constant 0 : i32
    %c0_i32_1 = arith.constant 0 : i32
    %c0_i32_2 = arith.constant 0 : i32
    return %c0_i32, %c0_i32_0, %c0_i32_1 : i32, i32, i32
  }
  func.func @transform_5(%arg0: i32) -> (i32, i32, i32) {
    %c0_i32 = arith.constant 0 : i32
    %c0_i32_0 = arith.constant 0 : i32
    %c0_i32_1 = arith.constant 0 : i32
    %c0_i32_2 = arith.constant 0 : i32
    return %c0_i32, %c0_i32_0, %c0_i32_1 : i32, i32, i32
  }
  func.func @transform_6(%arg0: i32) -> (i32, i32, i32) {
    %c0_i32 = arith.constant 0 : i32
    %c0_i32_0 = arith.constant 0 : i32
    %c0_i32_1 = arith.constant 0 : i32
    %c0_i32_2 = arith.constant 0 : i32
    return %c0_i32, %c0_i32_0, %c0_i32_1 : i32, i32, i32
  }
  func.func @transform_7(%arg0: i32) -> (i32, i32, i32) {
    %c0_i32 = arith.constant 0 : i32
    %c0_i32_0 = arith.constant 0 : i32
    %c0_i32_1 = arith.constant 0 : i32
    %c0_i32_2 = arith.constant 0 : i32
    return %c0_i32, %c0_i32_0, %c0_i32_1 : i32, i32, i32
  }
  func.func @transform_8(%arg0: i32) -> (i32, i32, i32) {
    %c0_i32 = arith.constant 0 : i32
    %c0_i32_0 = arith.constant 0 : i32
    %c0_i32_1 = arith.constant 0 : i32
    %c0_i32_2 = arith.constant 0 : i32
    return %c0_i32, %c0_i32_0, %c0_i32_1 : i32, i32, i32
  }
  func.func @transform_9(%arg0: i32) -> (i32, i32, i32) {
    %c0_i32 = arith.constant 0 : i32
    %c0_i32_0 = arith.constant 0 : i32
    %c0_i32_1 = arith.constant 0 : i32
    %c0_i32_2 = arith.constant 0 : i32
    return %c0_i32, %c0_i32_0, %c0_i32_1 : i32, i32, i32
  }
  func.func @transform_10(%arg0: i32) -> (i32, i32, i32) {
    %c0_i32 = arith.constant 0 : i32
    %c0_i32_0 = arith.constant 0 : i32
    %c0_i32_1 = arith.constant 0 : i32
    %c0_i32_2 = arith.constant 0 : i32
    return %c0_i32, %c0_i32_0, %c0_i32_1 : i32, i32, i32
  }
  func.func @transform_11(%arg0: i32) -> (i32, i32, i32) {
    %c0_i32 = arith.constant 0 : i32
    %c0_i32_0 = arith.constant 0 : i32
    %c0_i32_1 = arith.constant 0 : i32
    %c0_i32_2 = arith.constant 0 : i32
    return %c0_i32, %c0_i32_0, %c0_i32_1 : i32, i32, i32
  }
  func.func @transform_12(%arg0: i32) -> (i32, i32, i32) {
    %c0_i32 = arith.constant 0 : i32
    %c0_i32_0 = arith.constant 0 : i32
    %c0_i32_1 = arith.constant 0 : i32
    %c0_i32_2 = arith.constant 0 : i32
    return %c0_i32, %c0_i32_0, %c0_i32_1 : i32, i32, i32
  }
  func.func @transform_13(%arg0: i32) -> (i32, i32, i32) {
    %c0_i32 = arith.constant 0 : i32
    %c0_i32_0 = arith.constant 0 : i32
    %c0_i32_1 = arith.constant 0 : i32
    %c0_i32_2 = arith.constant 0 : i32
    return %c0_i32, %c0_i32_0, %c0_i32_1 : i32, i32, i32
  }
  func.func @transform_14(%arg0: i32) -> (i32, i32, i32) {
    %c0_i32 = arith.constant 0 : i32
    %c0_i32_0 = arith.constant 0 : i32
    %c0_i32_1 = arith.constant 0 : i32
    %c0_i32_2 = arith.constant 0 : i32
    return %c0_i32, %c0_i32_0, %c0_i32_1 : i32, i32, i32
  }
  func.func @transform_15(%arg0: i32) -> (i32, i32, i32) {
    %c0_i32 = arith.constant 0 : i32
    %c0_i32_0 = arith.constant 0 : i32
    %c0_i32_1 = arith.constant 0 : i32
    %c0_i32_2 = arith.constant 0 : i32
    return %c0_i32, %c0_i32_0, %c0_i32_1 : i32, i32, i32
  }
  func.func @transform_16(%arg0: i32) -> (i32, i32, i32) {
    %c0_i32 = arith.constant 0 : i32
    %c0_i32_0 = arith.constant 0 : i32
    %c0_i32_1 = arith.constant 0 : i32
    return %arg0, %c0_i32, %c0_i32_0 : i32, i32, i32
  }
}

</mosaic_0001>

<bundles_post_ra>
// kernel: _lambda_.2
= control target key start
LH: loop header
LB: loop body
LE: loop exit
PB: predicated region body
PF: predicated region fallthrough
CT: control target
= control target key end

     0   :  { %s4809_s0 = inlined_call_operand.vmem [shape: f32[2,16,128], index: 0, kind: input, shape index: {}]   ;;  %s4810_s1 = inlined_call_operand.vmem [shape: s32[2,1,16], index: 1, kind: input, shape index: {}]   ;;  %s4811_s2 = inlined_call_operand.vmem [shape: f32[1,128], index: 2, kind: input, shape index: {}]   ;;  %s4812_s3 = inlined_call_operand.vmem [shape: f32[1,128], index: 3, kind: input, shape index: {}]   ;;  %s4813_s4 = inlined_call_operand.vmem [shape: bf16[2,128,384], index: 4, kind: input, shape index: {}]   ;;  %s4814_s5 = inlined_call_operand.vmem [shape: f32[2,1,384], index: 5, kind: input, shape index: {}]   ;;  %s4815_s6 = inlined_call_operand.hbm [shape: bf16[2,128,128], index: 6, kind: input, shape index: {}]   ;;  %s4816_s7 = inlined_call_operand.vmem [shape: f32[2,1,128], index: 7, kind: input, shape index: {}]   ;;  %s4817_s8 = inlined_call_operand.vmem [shape: f32[2,1,128], index: 8, kind: input, shape index: {}]   ;;  %s4818_s9 = inlined_call_operand.vmem [shape: f32[2,1,128], index: 9, kind: input, shape index: {}]   ;;  %s4819_s10 = inlined_call_operand.vmem [shape: bf16[2,128,256], index: 10, kind: input, shape index: {}]   ;;  %s4820_s11 = inlined_call_operand.vmem [shape: f32[2,1,256], index: 11, kind: input, shape index: {}]   ;;  %s4821_s12 = inlined_call_operand.vmem [shape: bf16[2,256,128], index: 12, kind: input, shape index: {}]   ;;  %s4822_s13 = inlined_call_operand.vmem [shape: f32[2,1,128], index: 13, kind: input, shape index: {}]   ;;  %s4823_s14 = inlined_call_operand.vmem [shape: f32[2,1,128], index: 14, kind: input, shape index: {}]   ;;  %s4824_s15 = inlined_call_operand.vmem [shape: f32[2,1,128], index: 15, kind: input, shape index: {}]   ;;  %s4825_s16 = inlined_call_operand.vmem [shape: f32[2,16,128], index: 16, kind: output, shape index: {}]  }
   0x1   :  { %4829 = sst [smem:[#allocation5_spill]] %s4809_s0 }
   0x2   :  { %21 = vsyncpa [#allocation3], 0  ;;  %s3900_s21 = smov 0  }
   0x3 LB: > { %s427_s24 = sshll.u32 %s4815_s6, 4  ;;  %s2834_s25 = sadd.s32 4294967295, %s3805_s21   ;;  %s3805_s21 = sphi %s3900_s21, %s27_s21   ;;  %s428_s24 = int_to_ptr.hbm [resolvable:$true] %s427_s24 }
   0x4   : > { %p2836_p0 = scmp.ge.s32.totalorder %s3805_s21, 1  ;;  %p404_p1 = scmp.lt.s32.totalorder %s3805_s21, 3 }
   0x5   : > { %p3601_p2 = scmp.eq.s32.totalorder %s2834_s25, 0  ;;  %s3807_s26 = smov [#allocation2]  }
   0x6   : > { %p405_p3 = pnand %p2836_p0, %p404_p1  ;;  %s429_s27 = sshll.u32 %s3807_s26, 4  ;;  %s430_s27 = int_to_ptr.vmem [resolvable:$true] %s429_s27 }
   0x7   : > { %s3808_s28 = smov 64   ;;  %s3809_s29 = smov 4  }
   0x8   : > { %p3597_p4 = pneg %p405_p3  ;;  %486 = sbr.rel (%p405_p3) target bundleno = 4448 (0x1160), region = 84 }
   0xa   : > { %p3598_p5 = pnand %p3601_p2, %p3597_p4 }
   0xc   : > { %3600 = dma.hbm_to_vmem [thread:$0]  (!%p3598_p5), %s428_s24, 2048, %s430_s27, [#allocation3], %s3808_s28, %s3808_s28, %s3809_s29  }
   0xd   : > { %3800 = dma.done.wait (%p3601_p2), [#allocation3], 2048  }
   0xe   : > { %3802 = vsyncadd (%p3601_p2), [#allocation3], 4294965248  ;;  %p540_p6 = scmp.lt.s32.totalorder %s2834_s25, 1  ;;  %s4830_s18 = sld [smem:[#allocation5_spill]]  ;;  %v3810_v2 = vmov 128.0   ;;  %vm861_vm7 = vcmask 261120  }
   0xf   : > { %3663 = vrcp.f32 %v3810_v2  ;;  %v2931_v17 = vld [vmem:[%s4813_s4 + $0xa8] sm:$0xf]  ;;  %v3487_v18 = vld [vmem:[%s4813_s4 + $0xb0] sm:$0xf0]  ;;  %v3486_v19 = vld [vmem:[%s4813_s4 + $0xac] sm:$0xf] }
  0x10   : > { %s4836_s25 = smov (!%p540_p6, %s2834_s25), 1  ;;  %v2932_v20 = vor.u32 %v3487_v18, %v2931_v17  ;;  %v2933_v21 = vld [vmem:[%s4813_s4 + $0xb4] sm:$0xf0]  ;;  %v2939_v22 = vld [vmem:[%s4813_s4 + $0xb0] sm:$0xf]  ;;  %s3811_s28 = smov 96  }
  0x11   : > { %s4826_s30 = sshll.u32 %s4836_s25, 4  ;;  %v3488_v23 = vld [vmem:[%s4813_s4 + $0xb8] sm:$0xf0]  ;;  %v2936_v24 = vor.u32 %v3486_v19, %v2933_v21  ;;  %v2919_v26 = vld [vmem:[%s4813_s4 + $0x90] sm:$0xf]  ;;  %s547_s17 = scalar_lea.vmem %s4810_s1, %s4836_s25  ;;  %vm889_vm10 = vcmask 130048  }
  0x12   : > { %v2940_v25 = vor.u32 %v3488_v23, %v2939_v22  ;;  %786 = vmatpush.bf16.msra.mxu0 %v2932_v20  ;;  %v3484_v27 = vld [vmem:[%s4813_s4 + $0x98] sm:$0xf0]  ;;  %v3483_v28 = vld [vmem:[%s4813_s4 + $0x94] sm:$0xf]  ;;  %v2921_v30 = vld [vmem:[%s4813_s4 + $0x9c] sm:$0xf0] }
  0x13   : > { %800 = vmatpush.bf16.msra.mxu1 %v2936_v24  ;;  %v2920_v29 = vor.u32 %v3484_v27, %v2919_v26  ;;  %v2927_v31 = vld [vmem:[%s4813_s4 + $0x98] sm:$0xf]  ;;  %v3485_v32 = vld [vmem:[%s4813_s4 + $0xa0] sm:$0xf0]  ;;  %v2924_v33 = vor.u32 %v3483_v28, %v2921_v30  ;;  %v3480_v37 = vld [vmem:[%s4813_s4 + $0x7c] sm:$0xf] }
  0x14   : > { %s544_s19 = scalar_lea.vmem %s4830_s18, %s4826_s30  ;;  %814 = vmatpush.bf16.msra.mxu2 %v2940_v25  ;;  %v2928_v34 = vor.u32 %v3485_v32, %v2927_v31  ;;  %v2907_v35 = vld [vmem:[%s4813_s4 + $0x78] sm:$0xf]  ;;  %v3481_v36 = vld [vmem:[%s4813_s4 + $0x80] sm:$0xf0]  ;;  %v2909_v39 = vld [vmem:[%s4813_s4 + $0x84] sm:$0xf0] }
  0x15   : > { %v556_v0 = vld [vmem:[%s544_s19] sm:$0xff]  ;;  %v557_v1 = vld [vmem:[%s544_s19 + $0x8] sm:$0xff]  ;;  %v3664_v3 = vpop.eup %3663  ;;  %v2908_v38 = vor.u32 %v3481_v36, %v2907_v35  ;;  %v2912_v42 = vor.u32 %v3480_v37, %v2909_v39  ;;  %v2897_v48 = vld [vmem:[%s4813_s4 + $0x6c] sm:$0xf0]  ;;  %s4827_s18 = smov 32   ;;  %s3814_s19 = smov 64  }
  0x16   : > { %560 = vadd.xlane.f32.xlu0 %v556_v0  ;;  %v565_v4 = vmul.f32 128.0, %v3664_v3  ;;  %vm569_vm0 = vweird.f32 %v3664_v3  ;;  %787 = vmatpush.bf16.msra.mxu0 %v2920_v29  ;;  %v2915_v40 = vld [vmem:[%s4813_s4 + $0x80] sm:$0xf]  ;;  %v3482_v41 = vld [vmem:[%s4813_s4 + $0x88] sm:$0xf0]  ;;  %vm1175_vm11 = vcmask 523264  }
  0x17   : > { %801 = vmatpush.bf16.msra.mxu1 %v2924_v33  ;;  %v2916_v43 = vor.u32 %v3482_v41, %v2915_v40  ;;  %v2895_v44 = vld [vmem:[%s4813_s4 + $0x60] sm:$0xf]  ;;  %v3478_v45 = vld [vmem:[%s4813_s4 + $0x68] sm:$0xf0]  ;;  %v3477_v46 = vld [vmem:[%s4813_s4 + $0x64] sm:$0xf] }
  0x18   : > { %v566_v5 = vsub.f32 1.0, %v565_v4  ;;  %815 = vmatpush.bf16.msra.mxu2 %v2928_v34  ;;  %v2896_v47 = vor.u32 %v3478_v45, %v2895_v44  ;;  %v2903_v49 = vld [vmem:[%s4813_s4 + $0x68] sm:$0xf]  ;;  %v3479_v50 = vld [vmem:[%s4813_s4 + $0x70] sm:$0xf0]  ;;  %v2900_v51 = vor.u32 %v3477_v46, %v2897_v48  ;;  %vm1178_vm12 = vcmask 785408  }
  0x19   : > { %v2904_v52 = vor.u32 %v3479_v50, %v2903_v49  ;;  %v2883_v53 = vld [vmem:[%s4813_s4 + $0x48] sm:$0xf]  ;;  %v3475_v54 = vld [vmem:[%s4813_s4 + $0x50] sm:$0xf0]  ;;  %v3474_v55 = vld [vmem:[%s4813_s4 + $0x4c] sm:$0xf] }
  0x1a   : > { %v567_v6 = vmul.f32 %v3664_v3, %v566_v5  ;;  %788 = vmatpush.bf16.msra.mxu0 %v2908_v38  ;;  %v2884_v56 = vor.u32 %v3475_v54, %v2883_v53  ;;  %v2885_v57 = vld [vmem:[%s4813_s4 + $0x54] sm:$0xf0]  ;;  %v2891_v58 = vld [vmem:[%s4813_s4 + $0x50] sm:$0xf]  ;;  %v3476_v59 = vld [vmem:[%s4813_s4 + $0x58] sm:$0xf0] }
  0x1b   : > { %802 = vmatpush.bf16.msra.mxu1 %v2912_v42  ;;  %v2888_v60 = vor.u32 %v3474_v55, %v2885_v57  ;;  %v2892_v61 = vor.u32 %v3476_v59, %v2891_v58  ;;  %v2871_v62 = vld [vmem:[%s4813_s4 + $0x30] sm:$0xf]  ;;  %v3472_v63 = vld [vmem:[%s4813_s4 + $0x38] sm:$0xf0]  ;;  %v2873_v2 = vld [vmem:[%s4813_s4 + $0x3c] sm:$0xf0] }
  0x1c   : > { %v568_v7 = vadd.f32 %v3664_v3, %v567_v6  ;;  %816 = vmatpush.bf16.msra.mxu2 %v2916_v43  ;;  %v3473_v4 = vld [vmem:[%s4813_s4 + $0x40] sm:$0xf0]  ;;  %v2847_v19 = vld [vmem:[%s4813_s4] sm:$0xf]  ;;  %v3466_v20 = vld [vmem:[%s4813_s4 + $0x8] sm:$0xf0] }
  0x1d   : > { %v3465_v21 = vld [vmem:[%s4813_s4 + $0x4] sm:$0xf]  ;;  %v2848_v23 = vor.u32 %v3466_v20, %v2847_v19  ;;  %v2849_v24 = vld [vmem:[%s4813_s4 + $0xc] sm:$0xf0]  ;;  %v2855_v25 = vld [vmem:[%s4813_s4 + $0x8] sm:$0xf] }
  0x1e   : > { %562 = vadd.xlane.f32.xlu0 %v557_v1  ;;  %v3919_v8 = vsel %vm569_vm0, %v3664_v3, %v568_v7  ;;  %789 = vmatpush.bf16.msra.mxu0 %v2896_v47  ;;  %v2879_v3 = vld [vmem:[%s4813_s4 + $0x38] sm:$0xf]  ;;  %v3467_v26 = vld [vmem:[%s4813_s4 + $0x10] sm:$0xf0]  ;;  %v2852_v28 = vor.u32 %v3465_v21, %v2849_v24  ;;  %v3649_v47 = vld [vmem:[%s4811_s2] ss:$0 sm:$0xff] }
  0x1f   : > { %803 = vmatpush.bf16.msra.mxu1 %v2900_v51  ;;  %v2880_v6 = vor.u32 %v3473_v4, %v2879_v3  ;;  %v2859_v7 = vld [vmem:[%s4813_s4 + $0x18] sm:$0xf]  ;;  %v2856_v29 = vor.u32 %v3467_v26, %v2855_v25  ;;  %v554_v26 = vld [vmem:[%s547_s17] sm:$0x1]  ;;  %s4833_s26 = smov 32   ;;  %s4834_s17 = sshll.u32 %s4836_s25, 4 }
  0x20   : > { %817 = vmatpush.bf16.msra.mxu2 %v2904_v52  ;;  %v3650_v52 = vld [vmem:[%s4812_s3] ss:$0 sm:$0xff]  ;;  %vm555_vm8 = vcmp.gt.s32.totalorder %v554_v26, 0  ;;  %s552_s22 = scalar_lea.vmem %s4825_s16, %s4834_s17 }
  0x22   : > { %790 = vmatpush.bf16.msra.mxu0 %v2884_v56 }
  0x23   : > { %804 = vmatpush.bf16.msra.mxu1 %v2888_v60 }
  0x24   : > { %818 = vmatpush.bf16.msra.mxu2 %v2892_v61 }
  0x28   : > { %819 = vmatpush.bf16.msra.mxu2 %v2880_v6 }
  0x89   : > { %v561_v9 = vpop.xlane.xlu0 %560 }
  0x8a   : > { %v571_v10 = vmul.f32 %v3919_v8, %v561_v9  ;;  %v3469_v9 = vld [vmem:[%s4813_s4 + $0x20] sm:$0xf0] }
  0x8c   : > { %v3922_v11 = vsub.f32 %v556_v0, %v571_v10  ;;  %v3471_v0 = vld [vmem:[%s4813_s4 + $0x34] sm:$0xf]  ;;  %v3468_v10 = vld [vmem:[%s4813_s4 + $0x1c] sm:$0xf] }
  0x8d   : > { %v2876_v5 = vor.u32 %v3471_v0, %v2873_v2 }
  0x8e   : > { %v575_v12 = vmul.f32 %v3922_v11, %v3922_v11 }
  0x8f   : > { %805 = vmatpush.bf16.msra.mxu1 %v2876_v5 }
  0x90   : > { %577 = vadd.xlane.f32.xlu1 %v575_v12  ;;  %v2860_v12 = vor.u32 %v3469_v9, %v2859_v7 }
  0x91   : > { %v563_v13 = vpop.xlane.xlu0 %562 }
  0x92   : > { %v572_v14 = vmul.f32 %v3919_v8, %v563_v13  ;;  %v2861_v13 = vld [vmem:[%s4813_s4 + $0x24] sm:$0xf0] }
  0x93   : > { %v2864_v17 = vor.u32 %v3468_v10, %v2861_v13 }
  0x94   : > { %v3927_v15 = vsub.f32 %v557_v1, %v572_v14  ;;  %v2872_v1 = vor.u32 %v3472_v63, %v2871_v62  ;;  %v2867_v14 = vld [vmem:[%s4813_s4 + $0x20] sm:$0xf] }
  0x95   : > { %806 = vmatpush.bf16.msra.mxu1 %v2864_v17 }
  0x96   : > { %v576_v16 = vmul.f32 %v3927_v15, %v3927_v15  ;;  %791 = vmatpush.bf16.msra.mxu0 %v2872_v1 }
  0x98   : > { %579 = vadd.xlane.f32.xlu1 %v576_v16  ;;  %v3470_v16 = vld [vmem:[%s4813_s4 + $0x28] sm:$0xf0] }
  0x99   : > { %v2868_v18 = vor.u32 %v3470_v16, %v2867_v14  ;;  %807 = vmatpush.bf16.msra.mxu1 %v2852_v28 }
  0x9a   : > { %792 = vmatpush.bf16.msra.mxu0 %v2860_v12 }
  0x9b   : > { %820 = vmatpush.bf16.msra.mxu2 %v2868_v18 }
  0x9e   : > { %793 = vmatpush.bf16.msra.mxu0 %v2848_v23 }
  0x9f   : > { %821 = vmatpush.bf16.msra.mxu2 %v2856_v29 }
 0x103   : > { %v578_v22 = vpop.xlane.xlu1 %577 }
 0x104   : > { %v581_v27 = vmul.f32 %v578_v22, %v3919_v8 }
 0x106   : > { %v583_v30 = vadd.f32 1e-12, %v581_v27  ;;  %v3812_v27 = vmov 0  }
 0x107   : > { %v884_v28 = vsel %vm555_vm8, 1, %v3812_v27 }
 0x108   : > { %3665 = vrsqrt.f32 %v583_v30  ;;  %vm591_vm2 = vweird.f32 %v583_v30  ;;  %v885_v29 = vperm.slane %v884_v28, 0 }
 0x10a   : > { %vm4104_vm9 = vcmp.eq.s32.totalorder %v885_v29, 1 }
 0x10b   : > { %v580_v31 = vpop.xlane.xlu1 %579 }
 0x10c   : > { %v582_v32 = vmul.f32 %v580_v31, %v3919_v8 }
 0x10e   : > { %v3666_v33 = vpop.eup %3665  ;;  %v584_v34 = vadd.f32 1e-12, %v582_v32 }
 0x10f   : > { %v586_v35 = vmul.f32 %v3666_v33, %v583_v30  ;;  %vm592_vm1 = vweird.f32 %v3666_v33 }
 0x110   : > { %3667 = vrsqrt.f32 %v584_v34  ;;  %vm593_vm3 = vmor %vm591_vm2, %vm592_vm1  ;;  %vm601_vm5 = vweird.f32 %v584_v34 }
 0x111   : > { %v587_v36 = vmul.f32 %v3666_v33, %v586_v35 }
 0x113   : > { %v588_v37 = vmul.f32 0.5, %v587_v36 }
 0x115   : > { %v589_v38 = vsub.f32 1.5, %v588_v37 }
 0x116   : > { %v3668_v39 = vpop.eup %3667 }
 0x117   : > { %v590_v40 = vmul.f32 %v3666_v33, %v589_v38  ;;  %v596_v41 = vmul.f32 %v3668_v39, %v584_v34  ;;  %vm602_vm4 = vweird.f32 %v3668_v39 }
 0x118   : > { %vm603_vm6 = vmor %vm601_vm5, %vm602_vm4 }
 0x119   : > { %v597_v42 = vmul.f32 %v3668_v39, %v596_v41  ;;  %v594_v43 = vsel %vm593_vm3, %v3666_v33, %v590_v40 }
 0x11a   : > { %v605_v46 = vmul.f32 %v594_v43, %v3922_v11 }
 0x11b   : > { %v598_v44 = vmul.f32 0.5, %v597_v42 }
 0x11c   : > { %v610_v51 = vmul.f32 %v3649_v47, %v605_v46 }
 0x11d   : > { %v599_v45 = vsub.f32 1.5, %v598_v44 }
 0x11e   : > { %v4085_v54 = vadd.f32 %v3650_v52, %v610_v51 }
 0x11f   : > { %v600_v48 = vmul.f32 %v3668_v39, %v599_v45 }
 0x121   : > { %v604_v49 = vsel %vm603_vm6, %v3668_v39, %v600_v48 }
 0x122   : > { %v606_v50 = vmul.f32 %v604_v49, %v3927_v15  ;;  %v650_v15 = vld [vmem:[%s4814_s5] sm:$0x7] }
 0x123   : > { %v652_v58 = vperm.slane %v650_v15, 0  ;;  %v653_v59 = vperm.slane %v650_v15, 1  ;;  %v654_v63 = vperm.slane %v650_v15, 2 }
 0x124   : > { %v611_v53 = vmul.f32 %v3649_v47, %v606_v50 }
 0x126   : > { %v4087_v55 = vadd.f32 %v3650_v52, %v611_v53 }
 0x128   : > { %v617_v11 = vpack.c.bf16 %v4087_v55, %v4085_v54 }
 0x12a   : > { %794 = vmatmul.bf16.vlgmr.msra.gmra.mxu0 %v617_v11  ;;  %808 = vmatmul.bf16.vlgmr.msra.gmra.mxu1 %v617_v11 }
 0x12b   : > { %822 = vmatmul.bf16.vlgmr.msra.gmra.mxu2 %v617_v11 }
 0x1a7   : > { %v795_v56 = vpop.f32.mrf.mxu0  ;;  %v809_v57 = vpop.f32.mrf.mxu1 }
 0x1a8   : > { %v796_v60 = vadd.f32 %v795_v56, %v652_v58  ;;  %v810_v61 = vadd.f32 %v809_v57, %v653_v59 }
 0x1aa   : > { %v845_v2 = vpack.c.bf16 %v796_v60, %v796_v60  ;;  %v847_v3 = vpack.c.bf16 %v810_v61, %v810_v61 }
 0x1ac   : > { %v853_v10 = vunpack.c.l.b16 %v845_v2  ;;  %v858_v12 = vunpack.c.l.b16 %v847_v3 }
 0x1ae   : > { %v823_v62 = vpop.f32.mrf.mxu2 }
 0x1af   : > { %v797_v0 = vpop.f32.mrf.mxu0  ;;  %v811_v1 = vpop.f32.mrf.mxu1  ;;  %v824_v9 = vadd.f32 %v823_v62, %v654_v63 }
 0x1b0   : > { %v798_v4 = vadd.f32 %v797_v0, %v652_v58  ;;  %v812_v5 = vadd.f32 %v811_v1, %v653_v59 }
 0x1b1   : > { %v849_v19 = vpack.c.bf16 %v824_v9, %v824_v9 }
 0x1b2   : > { %v846_v6 = vpack.c.bf16 %v798_v4, %v798_v4  ;;  %v848_v7 = vpack.c.bf16 %v812_v5, %v812_v5 }
 0x1b3   : > { %v915_v23 = vunpack.c.l.b16 %v849_v19 }
 0x1b4   : > { %v854_v13 = vunpack.c.l.b16 %v846_v6  ;;  %v859_v14 = vunpack.c.l.b16 %v848_v7 }
 0x1b6   : > { %v855_v16 = vpack.c.b16 %v854_v13, %v853_v10  ;;  %v860_v17 = vpack.c.b16 %v859_v14, %v858_v12  ;;  %v825_v18 = vpop.f32.mrf.mxu2 }
 0x1b7   : > { %v826_v20 = vadd.f32 %v825_v18, %v654_v63 }
 0x1b8   : > { %936 = vrot.lane.b32.xlu0 %v855_v16, %s3811_s28  ;;  %v866_v21 = vsel %vm861_vm7, %v860_v17, 0 }
 0x1b9   : > { %v850_v22 = vpack.c.bf16 %v826_v20, %v826_v20  ;;  %875 = vmatpush.bf16.xpose.msra.mxu3 %v866_v21 }
 0x1bb   : > { %v916_v24 = vunpack.c.l.b16 %v850_v22 }
 0x1bd   : > { %v4096_v25 = vpack.c.b16 %v916_v24, %v915_v23 }
 0x1c0   : > { %2941 = vmatmul.msk.bf16.vlgmr.msra.gmra.mxu3 %vm861_vm7, %v855_v16 }
 0x1c1   : > { %929 = vmatpush.bf16.msrb.mxu3 %v4096_v25 }
 0x22a   : > { %v937_v51 = vpop.permute.xlu0 %936 }
 0x243   : > { %v877_v31 = vpop.f32.mrf.mxu3 }
 0x244   : > { %v882_v32 = vmul.f32 0.17677669, %v877_v31 }
 0x246   : > { %v887_v33 = vsel %vm4104_vm9, %v882_v32, -1e+09 }
 0x247   : > { %v890_v34 = vsel %vm889_vm10, %v887_v33, -inf }
 0x248   : > { %891 = vmax.xlane.f32.xlu2 %v890_v34 }
 0x24b   : > { %v879_v35 = vpop.f32.mrf.mxu3 }
 0x24c   : > { %v883_v36 = vmul.f32 0.17677669, %v879_v35 }
 0x24e   : > { %v888_v37 = vsel %vm4104_vm9, %v883_v36, -1e+09 }
 0x24f   : > { %v893_v38 = vsel %vm889_vm10, %v888_v37, -inf }
 0x250   : > { %894 = vmax.xlane.f32.xlu2 %v893_v38 }
 0x268   : > { %938 = vrot.lane.b32.xlu2 %v860_v17, %s3811_s28 }
 0x270   : > { %1080 = vrot.lane.b32.xlu2 %v860_v17, %s4827_s18 }
 0x278   : > { %1078 = vrot.lane.b32.xlu2 %v855_v16, %s4827_s18 }
 0x2bb   : > { %v892_v39 = vpop.xlane.xlu2 %891 }
 0x2bc   : > { %v896_v40 = vsub.f32 %v887_v33, %v892_v39 }
 0x2be   : > { %v898_v41 = vmul.f32 1.442695, %v896_v40 }
 0x2c0   : > { %3669 = vpow2.f32 %v898_v41 }
 0x2c3   : > { %v895_v42 = vpop.xlane.xlu2 %894 }
 0x2c4   : > { %v897_v43 = vsub.f32 %v888_v37, %v895_v42 }
 0x2c6   : > { %v3670_v44 = vpop.eup %3669  ;;  %v900_v45 = vmul.f32 1.442695, %v897_v43 }
 0x2c7   : > { %v902_v46 = vsel %vm889_vm10, %v3670_v44, 0.0 }
 0x2c8   : > { %3671 = vpow2.f32 %v900_v45  ;;  %903 = vadd.xlane.f32.xlu0 %v902_v46 }
 0x2cb   : > { %v939_v47 = vpop.permute.xlu2 %938 }
 0x2cc   : > { %v944_v48 = vsel %vm861_vm7, %v939_v47, 0 }
 0x2cd   : > { %953 = vmatpush.bf16.xpose.msra.mxu3 %v944_v48 }
 0x2ce   : > { %v3672_v49 = vpop.eup %3671 }
 0x2cf   : > { %v905_v50 = vsel %vm889_vm10, %v3672_v49, 0.0 }
 0x2d0   : > { %906 = vadd.xlane.f32.xlu1 %v905_v50 }
 0x2d3   : > { %v1081_v58 = vpop.permute.xlu2 %1080 }
 0x2d4   : > { %v1086_v60 = vsel %vm861_vm7, %v1081_v58, 0 }
 0x2db   : > { %v1079_v0 = vpop.permute.xlu2 %1078 }
 0x2dc   : > { %1007 = vrot.lane.b32.xlu0 %v855_v16, %s3814_s19 }
 0x2e9   : > { %1009 = vrot.lane.b32.xlu1 %v860_v17, %s3814_s19 }
 0x33b   : > { %v904_v52 = vpop.xlane.xlu0 %903 }
 0x33c   : > { %3673 = vrcp.f32 %v904_v52 }
 0x342   : > { %v3674_v11 = vpop.eup %3673 }
 0x343   : > { %v907_v53 = vpop.xlane.xlu1 %906  ;;  %v910_v56 = vmul.f32 %v3674_v11, %v3670_v44 }
 0x344   : > { %3675 = vrcp.f32 %v907_v53 }
 0x34a   : > { %v3676_v15 = vpop.eup %3675 }
 0x34b   : > { %v911_v57 = vmul.f32 %v3676_v15, %v3672_v49 }
 0x34d   : > { %v912_v59 = vpack.c.bf16 %v911_v57, %v910_v56 }
 0x34e   : > { %v1008_v63 = vpop.permute.xlu0 %1007 }
 0x34f   : > { %2942 = vmatmul.msk.bf16.vlgmr.msrb.gmra.mxu3 %vm889_vm10, %v912_v59 }
 0x350   : > { %1095 = vmatpush.bf16.xpose.msrb.mxu3 %v1086_v60 }
 0x35b   : > { %v1010_v61 = vpop.permute.xlu1 %1009 }
 0x35c   : > { %v1015_v62 = vsel %vm861_vm7, %v1010_v61, 0 }
 0x35d   : > { %1024 = vmatpush.bf16.xpose.msrb.mxu2 %v1015_v62 }
 0x35f   : > { %2943 = vmatmul.msk.bf16.vlgmr.msra.gmra.mxu3 %vm861_vm7, %v937_v51 }
 0x364   : > { %2945 = vmatmul.msk.bf16.vlgmr.msrb.gmra.mxu2 %vm861_vm7, %v1008_v63 }
 0x36f   : > { %2947 = vmatmul.msk.bf16.vlgmr.msrb.gmra.mxu3 %vm861_vm7, %v1079_v0 }
 0x3d2   : > { %v4128_v1 = vpop.f32.mrf.mxu3 }
 0x3da   : > { %v4130_v2 = vpop.f32.mrf.mxu3 }
 0x3e2   : > { %v955_v3 = vpop.f32.mrf.mxu3 }
 0x3e3   : > { %v960_v4 = vmul.f32 0.17677669, %v955_v3 }
 0x3e5   : > { %v962_v5 = vsel %vm4104_vm9, %v960_v4, -1e+09 }
 0x3e6   : > { %v964_v6 = vsel %vm889_vm10, %v962_v5, -inf }
 0x3e7   : > { %v1026_v7 = vpop.f32.mrf.mxu2  ;;  %965 = vmax.xlane.f32.xlu1 %v964_v6 }
 0x3e8   : > { %v1031_v9 = vmul.f32 0.17677669, %v1026_v7 }
 0x3ea   : > { %v957_v10 = vpop.f32.mrf.mxu3  ;;  %v1033_v12 = vsel %vm4104_vm9, %v1031_v9, -1e+09 }
 0x3eb   : > { %v961_v13 = vmul.f32 0.17677669, %v957_v10  ;;  %v1035_v14 = vsel %vm889_vm10, %v1033_v12, -inf }
 0x3ec   : > { %1036 = vmax.xlane.f32.xlu2 %v1035_v14 }
 0x3ed   : > { %v963_v16 = vsel %vm4104_vm9, %v961_v13, -1e+09 }
 0x3ee   : > { %v967_v17 = vsel %vm889_vm10, %v963_v16, -inf }
 0x3ef   : > { %v1028_v18 = vpop.f32.mrf.mxu2  ;;  %968 = vmax.xlane.f32.xlu0 %v967_v17 }
 0x3f0   : > { %v1032_v19 = vmul.f32 0.17677669, %v1028_v18 }
 0x3f2   : > { %v1097_v20 = vpop.f32.mrf.mxu3  ;;  %v1034_v21 = vsel %vm4104_vm9, %v1032_v19, -1e+09 }
 0x3f3   : > { %v1102_v22 = vmul.f32 0.17677669, %v1097_v20  ;;  %v1038_v23 = vsel %vm889_vm10, %v1034_v21, -inf }
 0x3f4   : > { %1039 = vmax.xlane.f32.xlu1 %v1038_v23 }
 0x3f5   : > { %v1104_v24 = vsel %vm4104_vm9, %v1102_v22, -1e+09 }
 0x3f6   : > { %v1106_v26 = vsel %vm889_vm10, %v1104_v24, -inf }
 0x3f7   : > { %1107 = vmax.xlane.f32.xlu0 %v1106_v26 }
 0x3fa   : > { %v1099_v27 = vpop.f32.mrf.mxu3 }
 0x3fb   : > { %v1103_v28 = vmul.f32 0.17677669, %v1099_v27 }
 0x3fd   : > { %v1105_v29 = vsel %vm4104_vm9, %v1103_v28, -1e+09  ;;  %v3496_v28 = vld [vmem:[#allocation2 + $0x38] sm:$0xff] }
 0x3fe   : > { %v1109_v31 = vsel %vm889_vm10, %v1105_v29, -inf  ;;  %1233 = vmatpush.bf16.msrb.mxu1 %v3496_v28 }
 0x3ff   : > { %1110 = vmax.xlane.f32.xlu2 %v1109_v31 }
 0x417   : > { %987 = vrot.lane.b32.xlu2 %v4096_v25, %s3811_s28 }
 0x45a   : > { %v966_v32 = vpop.xlane.xlu1 %965 }
 0x45b   : > { %v970_v35 = vsub.f32 %v962_v5, %v966_v32  ;;  %v3494_v32 = vld [vmem:[#allocation2 + $0x28] sm:$0xff] }
 0x45d   : > { %v972_v38 = vmul.f32 1.442695, %v970_v35 }
 0x45f   : > { %v1037_v33 = vpop.xlane.xlu2 %1036 }
 0x460   : > { %v1041_v34 = vsub.f32 %v1033_v12, %v1037_v33 }
 0x462   : > { %v1043_v36 = vmul.f32 1.442695, %v1041_v34  ;;  %v969_v37 = vpop.xlane.xlu0 %968 }
 0x463   : > { %v971_v41 = vsub.f32 %v963_v16, %v969_v37 }
 0x464   : > { %3677 = vpow2.f32 %v1043_v36 }
 0x465   : > { %3679 = vpow2.f32 %v972_v38  ;;  %v974_v47 = vmul.f32 1.442695, %v971_v41  ;;  %v3492_v41 = vld [vmem:[#allocation2 + $0x18] sm:$0xff] }
 0x467   : > { %v1040_v39 = vpop.xlane.xlu1 %1039 }
 0x468   : > { %v1042_v40 = vsub.f32 %v1034_v21, %v1040_v39 }
 0x46a   : > { %v3678_v42 = vpop.eup %3677  ;;  %v1045_v43 = vmul.f32 1.442695, %v1042_v40  ;;  %v1108_v44 = vpop.xlane.xlu0 %1107  ;;  %v3493_v40 = vld [vmem:[#allocation2 + $0x20] sm:$0xff] }
 0x46b   : > { %v1112_v45 = vsub.f32 %v1104_v24, %v1108_v44  ;;  %v1047_v46 = vsel %vm889_vm10, %v3678_v42, 0.0  ;;  %v3680_v49 = vpop.eup %3679  ;;  %v3489_v44 = vld [vmem:[#allocation2] sm:$0xff] }
 0x46c   : > { %3681 = vpow2.f32 %v1045_v43  ;;  %1048 = vadd.xlane.f32.xlu1 %v1047_v46  ;;  %v976_v11 = vsel %vm889_vm10, %v3680_v49, 0.0  ;;  %v3490_v43 = vld [vmem:[#allocation2 + $0x8] sm:$0xff] }
 0x46d   : > { %v1114_v48 = vmul.f32 1.442695, %v1112_v45  ;;  %3683 = vpow2.f32 %v974_v47 }
 0x46f   : > { %3685 = vpow2.f32 %v1114_v48 }
 0x472   : > { %v3682_v50 = vpop.eup %3681  ;;  %v1111_v51 = vpop.xlane.xlu2 %1110 }
 0x473   : > { %v1113_v52 = vsub.f32 %v1105_v29, %v1111_v51  ;;  %v1050_v53 = vsel %vm889_vm10, %v3682_v50, 0.0  ;;  %v3684_v56 = vpop.eup %3683  ;;  %v3495_v29 = vld [vmem:[#allocation2 + $0x30] sm:$0xff] }
 0x474   : > { %1051 = vadd.xlane.f32.xlu0 %v1050_v53  ;;  %977 = vadd.xlane.f32.xlu1 %v976_v11  ;;  %v979_v59 = vsel %vm889_vm10, %v3684_v56, 0.0 }
 0x475   : > { %v1116_v15 = vmul.f32 1.442695, %v1113_v52  ;;  %v3686_v57 = vpop.eup %3685  ;;  %1234 = vmatpush.bf16.msrb.mxu1 %v3495_v29  ;;  %v3025_v29 = vld [vmem:[%s4819_s10 + $0x58] sm:$0xf0] }
 0x476   : > { %v1118_v60 = vsel %vm889_vm10, %v3686_v57, 0.0 }
 0x477   : > { %3687 = vpow2.f32 %v1116_v15 }
 0x479   : > { %1235 = vmatpush.bf16.msrb.mxu1 %v3494_v32  ;;  %v3015_v32 = vld [vmem:[%s4819_s10 + $0x40] sm:$0xf] }
 0x47a   : > { %v988_v58 = vpop.permute.xlu2 %987 }
 0x47b   : > { %1000 = vmatpush.bf16.msrb.mxu0 %v988_v58 }
 0x47c   : > { %980 = vadd.xlane.f32.xlu0 %v979_v59  ;;  %1119 = vadd.xlane.f32.xlu1 %v1118_v60 }
 0x47d   : > { %v3688_v61 = vpop.eup %3687  ;;  %1236 = vmatpush.bf16.msrb.mxu1 %v3493_v40  ;;  %v3503_v40 = vld [vmem:[%s4819_s10 + $0x34] sm:$0xf] }
 0x47e   : > { %v1121_v62 = vsel %vm889_vm10, %v3688_v61, 0.0 }
 0x481   : > { %1237 = vmatpush.bf16.msrb.mxu1 %v3492_v41 }
 0x484   : > { %1122 = vadd.xlane.f32.xlu0 %v1121_v62 }
 0x495   : > { %1058 = vrot.lane.b32.xlu1 %v4096_v25, %s3814_s19 }
 0x498   : > { %1129 = vrot.lane.b32.xlu0 %v4096_v25, %s4827_s18 }
 0x4df   : > { %v1049_v63 = vpop.xlane.xlu1 %1048 }
 0x4e7   : > { %v1052_v0 = vpop.xlane.xlu0 %1051  ;;  %v978_v3 = vpop.xlane.xlu1 %977 }
 0x4e8   : > { %3689 = vrcp.f32 %v978_v3 }
 0x4ee   : > { %v3690_v5 = vpop.eup %3689 }
 0x4ef   : > { %v981_v4 = vpop.xlane.xlu0 %980  ;;  %v984_v7 = vmul.f32 %v3690_v5, %v3680_v49  ;;  %v1120_v13 = vpop.xlane.xlu1 %1119 }
 0x4f0   : > { %3691 = vrcp.f32 %v981_v4 }
 0x4f1   : > { %3693 = vrcp.f32 %v1052_v0 }
 0x4f2   : > { %3695 = vrcp.f32 %v1049_v63 }
 0x4f6   : > { %v3692_v6 = vpop.eup %3691 }
 0x4f7   : > { %v985_v9 = vmul.f32 %v3692_v6, %v3684_v56  ;;  %v1123_v12 = vpop.xlane.xlu0 %1122  ;;  %v3694_v25 = vpop.eup %3693 }
 0x4f8   : > { %3697 = vrcp.f32 %v1123_v12  ;;  %v3696_v14 = vpop.eup %3695  ;;  %v1056_v17 = vmul.f32 %v3694_v25, %v3682_v50  ;;  %v3511_v25 = vld [vmem:[%s4819_s10 + $0x74] sm:$0xf] }
 0x4f9   : > { %v986_v10 = vpack.c.bf16 %v985_v9, %v984_v7  ;;  %3699 = vrcp.f32 %v1120_v13  ;;  %v1055_v19 = vmul.f32 %v3696_v14, %v3678_v42  ;;  %v3491_v42 = vld [vmem:[#allocation2 + $0x10] sm:$0xff]  ;;  %v3512_v13 = vld [vmem:[%s4819_s10 + $0x74] sm:$0xf0] }
 0x4fa   : > { %1238 = vmatpush.bf16.msrb.mxu1 %v3491_v42  ;;  %v3009_v42 = vld [vmem:[%s4819_s10 + $0x38] sm:$0xf0] }
 0x4fb   : > { %2944 = vmatmul.msk.bf16.vlgmr.msrb.gmra.mxu0 %vm889_vm10, %v986_v10  ;;  %v1057_v22 = vpack.c.bf16 %v1056_v17, %v1055_v19  ;;  %v3510_v19 = vld [vmem:[%s4819_s10 + $0x64] sm:$0xf0] }
 0x4fe   : > { %v3698_v16 = vpop.eup %3697  ;;  %1239 = vmatpush.bf16.msrb.mxu1 %v3490_v43  ;;  %v3012_v43 = vor.u32 %v3503_v40, %v3009_v42  ;;  %v3523_v40 = vld [vmem:[%s4821_s12 + $0x50] sm:$0xff]  ;;  %v3514_v42 = vld [vmem:[%s4821_s12 + $0x8] sm:$0xff] }
 0x4ff   : > { %v3700_v18 = vpop.eup %3699  ;;  %v1127_v21 = vmul.f32 %v3698_v16, %v3688_v61  ;;  %v3041_v16 = vld [vmem:[%s4819_s10 + $0x78] sm:$0xf0] }
 0x500   : > { %v1126_v23 = vmul.f32 %v3700_v18, %v3686_v57  ;;  %v3044_v17 = vor.u32 %v3511_v25, %v3041_v16  ;;  %v3031_v18 = vld [vmem:[%s4819_s10 + $0x60] sm:$0xf] }
 0x502   : > { %v1128_v26 = vpack.c.bf16 %v1127_v21, %v1126_v23  ;;  %1240 = vmatpush.bf16.msrb.mxu1 %v3489_v44  ;;  %1418 = vmatpush.bf16.msra.mxu3 %v3044_v17  ;;  %v3032_v21 = vor.u32 %v3510_v19, %v3031_v18  ;;  %v2999_v44 = vld [vmem:[%s4819_s10 + $0x20] sm:$0xf] }
 0x503   : > { %v3652_v19 = vld [vmem:[%s4817_s8] ss:$0 sm:$0xff] }
 0x507   : > { %v1059_v20 = vpop.permute.xlu1 %1058 }
 0x508   : > { %1071 = vmatpush.bf16.msra.mxu2 %v1059_v20  ;;  %v3509_v20 = vld [vmem:[%s4819_s10 + $0x64] sm:$0xf] }
 0x50a   : > { %v1130_v24 = vpop.permute.xlu0 %1129 }
 0x50b   : > { %2946 = vmatmul.msk.bf16.vlgmr.msra.gmra.mxu2 %vm889_vm10, %v1057_v22  ;;  %1142 = vmatpush.bf16.msra.mxu0 %v1130_v24  ;;  %v3033_v22 = vld [vmem:[%s4819_s10 + $0x68] sm:$0xf0]  ;;  %v3023_v24 = vld [vmem:[%s4819_s10 + $0x50] sm:$0xf] }
 0x50c   : > { %v3036_v23 = vor.u32 %v3509_v20, %v3033_v22 }
 0x50e   : > { %2948 = vmatmul.msk.bf16.vlgmr.msra.gmra.mxu0 %vm889_vm10, %v1128_v26  ;;  %1419 = vmatpush.bf16.msra.mxu3 %v3036_v23  ;;  %v3508_v26 = vld [vmem:[%s4819_s10 + $0x54] sm:$0xf0] }
 0x50f   : > { %v3024_v28 = vor.u32 %v3508_v26, %v3023_v24  ;;  %v3653_v24 = vld [vmem:[%s4818_s9] ss:$0 sm:$0xff] }
 0x578   : > { %v1002_v27 = vpop.f32.mrf.mxu0 }
 0x580   : > { %v1004_v33 = vpop.f32.mrf.mxu0 }
 0x581   : > { %v3624_v37 = vpack.i.bf16 %v1004_v33, %v1002_v27  ;;  %v3507_v27 = vld [vmem:[%s4819_s10 + $0x54] sm:$0xf]  ;;  %v3506_v33 = vld [vmem:[%s4819_s10 + $0x44] sm:$0xf0] }
 0x58b   : > { %v1144_v36 = vpop.f32.mrf.mxu0 }
 0x58e   : > { %v1073_v31 = vpop.f32.mrf.mxu2 }
 0x593   : > { %v1146_v38 = vpop.f32.mrf.mxu0 }
 0x594   : > { %v3629_v39 = vpack.i.bf16 %v1146_v38, %v1144_v36  ;;  %v3017_v36 = vld [vmem:[%s4819_s10 + $0x48] sm:$0xf0]  ;;  %v3007_v38 = vld [vmem:[%s4819_s10 + $0x30] sm:$0xf] }
 0x596   : > { %v1075_v34 = vpop.f32.mrf.mxu2 }
 0x597   : > { %v3619_v35 = vpack.i.bf16 %v1075_v34, %v1073_v31  ;;  %v3028_v31 = vor.u32 %v3507_v27, %v3025_v29  ;;  %v3505_v34 = vld [vmem:[%s4819_s10 + $0x44] sm:$0xf]  ;;  %v3520_v29 = vld [vmem:[%s4821_s12 + $0x38] sm:$0xff] }
 0x598   : > { %1602 = vmatpush.bf16.msrb.mxu0 %v3520_v29 }
 0x599   : > { %3620 = vrot.lane.b32.xlu2 %v3619_v35, %s3814_s19  ;;  %1420 = vmatpush.bf16.msra.mxu3 %v3028_v31  ;;  %v3016_v35 = vor.u32 %v3506_v33, %v3015_v32  ;;  %v3519_v31 = vld [vmem:[%s4821_s12 + $0x30] sm:$0xff]  ;;  %v3518_v33 = vld [vmem:[%s4821_s12 + $0x28] sm:$0xff] }
 0x59a   : > { %v3527_v32 = vld [vmem:[%s4821_s12 + $0x70] sm:$0xff] }
 0x59c   : > { %1603 = vmatpush.bf16.msrb.mxu0 %v3519_v31 }
 0x5a0   : > { %1604 = vmatpush.bf16.msrb.mxu0 %v3518_v33 }
 0x5a1   : > { %3625 = vrot.lane.b32.xlu2 %v3624_v37, %s4827_s18  ;;  %v3020_v37 = vor.u32 %v3505_v34, %v3017_v36  ;;  %v3526_v34 = vld [vmem:[%s4821_s12 + $0x68] sm:$0xff]  ;;  %v3525_v36 = vld [vmem:[%s4821_s12 + $0x60] sm:$0xff] }
 0x5a3   : > { %1421 = vmatpush.bf16.msra.mxu3 %v3020_v37  ;;  %v3516_v37 = vld [vmem:[%s4821_s12 + $0x18] sm:$0xff] }
 0x5a7   : > { %1422 = vmatpush.bf16.msra.mxu3 %v3012_v43  ;;  %v3522_v43 = vld [vmem:[%s4821_s12 + $0x48] sm:$0xff] }
 0x5a9   : > { %3630 = vrot.lane.b32.xlu2 %v3629_v39, %s3811_s28  ;;  %v3504_v39 = vld [vmem:[%s4819_s10 + $0x34] sm:$0xf0] }
 0x5aa   : > { %v3008_v41 = vor.u32 %v3504_v39, %v3007_v38  ;;  %v3524_v38 = vld [vmem:[%s4821_s12 + $0x58] sm:$0xff]  ;;  %v3515_v39 = vld [vmem:[%s4821_s12 + $0x10] sm:$0xff] }
 0x5f3   : > { %v3621_v45 = vpop.permute.xlu2 %3620 }
 0x5f4   : > { %v3623_v51 = vunpack.i.h.bf16 %v3621_v45  ;;  %v3622_v52 = vunpack.i.l.bf16 %v3621_v45  ;;  %v3502_v45 = vld [vmem:[%s4819_s10 + $0x24] sm:$0xf0] }
 0x5fb   : > { %v3626_v46 = vpop.permute.xlu2 %3625 }
 0x5fc   : > { %v3628_v47 = vunpack.i.h.bf16 %v3626_v46  ;;  %v3627_v48 = vunpack.i.l.bf16 %v3626_v46  ;;  %v3501_v46 = vld [vmem:[%s4819_s10 + $0x24] sm:$0xf] }
 0x5fe   : > { %v1174_v49 = vsel %vm861_vm7, %v4130_v2, %v3628_v47  ;;  %v1173_v50 = vsel %vm861_vm7, %v4128_v1, %v3627_v48  ;;  %v3651_v1 = vld [vmem:[%s4816_s7] ss:$0 sm:$0xff]  ;;  %v3000_v47 = vor.u32 %v3502_v45, %v2999_v44  ;;  %v3001_v48 = vld [vmem:[%s4819_s10 + $0x28] sm:$0xf0] }
 0x5ff   : > { %v1176_v56 = vsel %vm1175_vm11, %v1173_v50, %v3622_v52  ;;  %v1177_v57 = vsel %vm1175_vm11, %v1174_v49, %v3623_v51  ;;  %v3004_v49 = vor.u32 %v3501_v46, %v3001_v48  ;;  %v2991_v50 = vld [vmem:[%s4819_s10 + $0x10] sm:$0xf]  ;;  %v3500_v51 = vld [vmem:[%s4819_s10 + $0x14] sm:$0xf0]  ;;  %v3499_v52 = vld [vmem:[%s4819_s10 + $0x14] sm:$0xf] }
 0x600   : > { %v3513_v48 = vld [vmem:[%s4821_s12] sm:$0xff] }
 0x601   : > { %1423 = vmatpush.bf16.msra.mxu3 %v3004_v49  ;;  %v3521_v49 = vld [vmem:[%s4821_s12 + $0x40] sm:$0xff] }
 0x603   : > { %v3631_v53 = vpop.permute.xlu2 %3630 }
 0x604   : > { %v3633_v11 = vunpack.i.h.bf16 %v3631_v53  ;;  %v3632_v15 = vunpack.i.l.bf16 %v3631_v53  ;;  %v2992_v53 = vor.u32 %v3500_v51, %v2991_v50 }
 0x606   : > { %v1179_v58 = vsel %vm1178_vm12, %v1176_v56, %v3632_v15  ;;  %v1180_v59 = vsel %vm1178_vm12, %v1177_v57, %v3633_v11  ;;  %v2993_v11 = vld [vmem:[%s4819_s10 + $0x18] sm:$0xf0]  ;;  %v2983_v15 = vld [vmem:[%s4819_s10] sm:$0xf]  ;;  %v3498_v56 = vld [vmem:[%s4819_s10 + $0x4] sm:$0xf0] }
 0x607   : > { %v1181_v60 = vpack.c.bf16 %v1180_v59, %v1179_v58  ;;  %v2996_v58 = vor.u32 %v3499_v52, %v2993_v11  ;;  %v3497_v59 = vld [vmem:[%s4819_s10 + $0x4] sm:$0xf] }
 0x609   : > { %1241 = vmatmul.bf16.vlgmr.msrb.gmra.mxu1 %v1181_v60  ;;  %v2985_v60 = vld [vmem:[%s4819_s10 + $0x8] sm:$0xf0]  ;;  %1424 = vmatpush.bf16.msra.mxu3 %v2996_v58 }
 0x686   : > { %v1242_v2 = vpop.f32.mrf.mxu1 }
 0x687   : > { %v1243_v61 = vadd.f32 %v3651_v1, %v1242_v2  ;;  %v2984_v2 = vor.u32 %v3498_v56, %v2983_v15 }
 0x689   : > { %v1247_v62 = vadd.f32 %v1243_v61, %v4085_v54  ;;  %v2988_v61 = vor.u32 %v3497_v59, %v2985_v60 }
 0x68b   : > { %1251 = vadd.xlane.f32.xlu0 %v1247_v62  ;;  %1425 = vmatpush.bf16.msra.mxu3 %v2988_v61 }
 0x68e   : > { %v1244_v63 = vpop.f32.mrf.mxu1 }
 0x68f   : > { %v1245_v0 = vadd.f32 %v3651_v1, %v1244_v63 }
 0x691   : > { %v1248_v3 = vadd.f32 %v1245_v0, %v4087_v55  ;;  %v3039_v55 = vld [vmem:[%s4819_s10 + $0x70] sm:$0xf] }
 0x692   : > { %v3040_v14 = vor.u32 %v3512_v13, %v3039_v55 }
 0x693   : > { %1253 = vadd.xlane.f32.xlu1 %v1248_v3 }
 0x694   : > { %1404 = vmatpush.bf16.msrb.mxu2 %v3040_v14 }
 0x698   : > { %1405 = vmatpush.bf16.msrb.mxu2 %v3032_v21 }
 0x69c   : > { %1406 = vmatpush.bf16.msrb.mxu2 %v3024_v28 }
 0x6a0   : > { %1407 = vmatpush.bf16.msrb.mxu2 %v3016_v35  ;;  %v3517_v35 = vld [vmem:[%s4821_s12 + $0x20] sm:$0xff] }
 0x6a1   : > { %1605 = vmatpush.bf16.msrb.mxu0 %v3517_v35 }
 0x6a4   : > { %1408 = vmatpush.bf16.msrb.mxu2 %v3008_v41  ;;  %v1318_v41 = vld [vmem:[%s4820_s11] sm:$0x3] }
 0x6a5   : > { %1606 = vmatpush.bf16.msrb.mxu0 %v3516_v37  ;;  %v1320_v44 = vperm.slane %v1318_v41, 0  ;;  %v1321_v45 = vperm.slane %v1318_v41, 1 }
 0x6a8   : > { %1409 = vmatpush.bf16.msrb.mxu2 %v3000_v47 }
 0x6a9   : > { %1607 = vmatpush.bf16.msrb.mxu0 %v3515_v39 }
 0x6ac   : > { %1410 = vmatpush.bf16.msrb.mxu2 %v2992_v53 }
 0x6ad   : > { %1608 = vmatpush.bf16.msrb.mxu0 %v3514_v42 }
 0x6b0   : > { %1411 = vmatpush.bf16.msrb.mxu2 %v2984_v2 }
 0x6b1   : > { %1609 = vmatpush.bf16.msrb.mxu0 %v3513_v48 }
 0x6fe   : > { %v1252_v4 = vpop.xlane.xlu0 %1251 }
 0x6ff   : > { %v1255_v5 = vmul.f32 %v1252_v4, %v3919_v8 }
 0x701   : > { %v4182_v6 = vsub.f32 %v1247_v62, %v1255_v5 }
 0x703   : > { %v1259_v7 = vmul.f32 %v4182_v6, %v4182_v6 }
 0x705   : > { %1261 = vadd.xlane.f32.xlu2 %v1259_v7 }
 0x706   : > { %v1254_v9 = vpop.xlane.xlu1 %1253 }
 0x707   : > { %v1256_v10 = vmul.f32 %v1254_v9, %v3919_v8 }
 0x709   : > { %v4187_v12 = vsub.f32 %v1248_v3, %v1256_v10 }
 0x70b   : > { %v1260_v54 = vmul.f32 %v4187_v12, %v4187_v12 }
 0x70d   : > { %1263 = vadd.xlane.f32.xlu0 %v1260_v54 }
 0x778   : > { %v1262_v57 = vpop.xlane.xlu2 %1261 }
 0x779   : > { %v1265_v1 = vmul.f32 %v1262_v57, %v3919_v8 }
 0x77b   : > { %v1267_v62 = vadd.f32 1e-12, %v1265_v1 }
 0x77d   : > { %3701 = vrsqrt.f32 %v1267_v62  ;;  %vm1275_vm14 = vweird.f32 %v1267_v62 }
 0x780   : > { %v1264_v63 = vpop.xlane.xlu0 %1263 }
 0x781   : > { %v1266_v0 = vmul.f32 %v1264_v63, %v3919_v8 }
 0x783   : > { %v3702_v3 = vpop.eup %3701  ;;  %v1268_v4 = vadd.f32 1e-12, %v1266_v0 }
 0x784   : > { %v1270_v5 = vmul.f32 %v3702_v3, %v1267_v62  ;;  %vm1276_vm13 = vweird.f32 %v3702_v3 }
 0x785   : > { %3703 = vrsqrt.f32 %v1268_v4  ;;  %vm1277_vm15 = vmor %vm1275_vm14, %vm1276_vm13  ;;  %vm1285_vm1 = vweird.f32 %v1268_v4 }
 0x786   : > { %v1271_v7 = vmul.f32 %v3702_v3, %v1270_v5 }
 0x788   : > { %v1272_v9 = vmul.f32 0.5, %v1271_v7 }
 0x78a   : > { %v1273_v10 = vsub.f32 1.5, %v1272_v9 }
 0x78b   : > { %v3704_v54 = vpop.eup %3703 }
 0x78c   : > { %v1274_v55 = vmul.f32 %v3702_v3, %v1273_v10  ;;  %v1280_v13 = vmul.f32 %v3704_v54, %v1268_v4  ;;  %vm1286_vm0 = vweird.f32 %v3704_v54 }
 0x78d   : > { %vm1287_vm2 = vmor %vm1285_vm1, %vm1286_vm0 }
 0x78e   : > { %v1281_v25 = vmul.f32 %v3704_v54, %v1280_v13  ;;  %v1278_v14 = vsel %vm1277_vm15, %v3702_v3, %v1274_v55 }
 0x78f   : > { %v1289_v18 = vmul.f32 %v1278_v14, %v4182_v6 }
 0x790   : > { %v1282_v16 = vmul.f32 0.5, %v1281_v25 }
 0x791   : > { %v1294_v23 = vmul.f32 %v3652_v19, %v1289_v18 }
 0x792   : > { %v1283_v17 = vsub.f32 1.5, %v1282_v16 }
 0x793   : > { %v4297_v27 = vadd.f32 %v3653_v24, %v1294_v23 }
 0x794   : > { %v1284_v20 = vmul.f32 %v3704_v54, %v1283_v17 }
 0x796   : > { %v1288_v21 = vsel %vm1287_vm2, %v3704_v54, %v1284_v20 }
 0x797   : > { %v1290_v22 = vmul.f32 %v1288_v21, %v4187_v12  ;;  %v3528_v12 = vld [vmem:[%s4821_s12 + $0x78] sm:$0xff] }
 0x798   : > { %1616 = vmatpush.bf16.msra.mxu1 %v3528_v12 }
 0x799   : > { %v1295_v26 = vmul.f32 %v3652_v19, %v1290_v22 }
 0x79b   : > { %v4299_v28 = vadd.f32 %v3653_v24, %v1295_v26 }
 0x79c   : > { %1617 = vmatpush.bf16.msra.mxu1 %v3527_v32 }
 0x79d   : > { %v1301_v6 = vpack.c.bf16 %v4299_v28, %v4297_v27 }
 0x79f   : > { %1412 = vmatmul.bf16.vlgmr.msrb.gmra.mxu2 %v1301_v6  ;;  %1426 = vmatmul.bf16.vlgmr.msra.gmra.mxu3 %v1301_v6 }
 0x7a0   : > { %1618 = vmatpush.bf16.msra.mxu1 %v3526_v34  ;;  %v3654_v34 = vld [vmem:[%s4822_s13] ss:$0 sm:$0xff] }
 0x7a4   : > { %1619 = vmatpush.bf16.msra.mxu1 %v3525_v36 }
 0x7a8   : > { %1620 = vmatpush.bf16.msra.mxu1 %v3524_v38 }
 0x7ac   : > { %1621 = vmatpush.bf16.msra.mxu1 %v3523_v40 }
 0x7b0   : > { %1622 = vmatpush.bf16.msra.mxu1 %v3522_v43 }
 0x7b4   : > { %1623 = vmatpush.bf16.msra.mxu1 %v3521_v49 }
 0x822   : > { %v1413_v46 = vpop.f32.mrf.mxu2  ;;  %v1427_v47 = vpop.f32.mrf.mxu3 }
 0x823   : > { %v1414_v50 = vadd.f32 %v1413_v46, %v1320_v44  ;;  %v1428_v51 = vadd.f32 %v1427_v47, %v1321_v45 }
 0x825   : > { %v1432_v52 = vmul.f32 %v1414_v50, %v1414_v50  ;;  %v1433_v53 = vmul.f32 %v1428_v51, %v1428_v51 }
 0x827   : > { %v1436_v11 = vmul.f32 %v1432_v52, %v1414_v50  ;;  %v1437_v15 = vmul.f32 %v1433_v53, %v1428_v51  ;;  %v3551_v52 = vld [vmem:[%s4813_s4 + $0x170] sm:$0xf0]  ;;  %v3550_v53 = vld [vmem:[%s4813_s4 + $0x16c] sm:$0xf] }
 0x829   : > { %v1440_v56 = vmul.f32 0.044715, %v1436_v11  ;;  %v1441_v57 = vmul.f32 0.044715, %v1437_v15  ;;  %v3230_v15 = vld [vmem:[%s4813_s4 + $0x174] sm:$0xf0] }
 0x82a   : > { %v1415_v58 = vpop.f32.mrf.mxu2  ;;  %v1429_v59 = vpop.f32.mrf.mxu3 }
 0x82b   : > { %v1444_v60 = vadd.f32 %v1440_v56, %v1414_v50  ;;  %v1445_v1 = vadd.f32 %v1441_v57, %v1428_v51  ;;  %v1416_v2 = vadd.f32 %v1415_v58, %v1320_v44  ;;  %v1430_v61 = vadd.f32 %v1429_v59, %v1321_v45  ;;  %v3236_v56 = vld [vmem:[%s4813_s4 + $0x170] sm:$0xf]  ;;  %v3552_v57 = vld [vmem:[%s4813_s4 + $0x178] sm:$0xf0] }
 0x82c   : > { %v3233_v58 = vor.u32 %v3550_v53, %v3230_v15  ;;  %v3237_v59 = vor.u32 %v3552_v57, %v3236_v56  ;;  %v3144_v15 = vld [vmem:[%s4813_s4 + $0xc0] sm:$0xf]  ;;  %v3530_v56 = vld [vmem:[%s4813_s4 + $0xc8] sm:$0xf0]  ;;  %v3529_v57 = vld [vmem:[%s4813_s4 + $0xc4] sm:$0xf] }
 0x82d   : > { %v1448_v62 = vmul.f32 0.7978846, %v1444_v60  ;;  %v1434_v63 = vmul.f32 %v1416_v2, %v1416_v2  ;;  %v1435_v0 = vmul.f32 %v1430_v61, %v1430_v61  ;;  %v1449_v3 = vmul.f32 0.7978846, %v1445_v1  ;;  %v3216_v60 = vld [vmem:[%s4813_s4 + $0x150] sm:$0xf] }
 0x82e   : > { %1869 = vmatpush.bf16.msrb.mxu3 %v3233_v58  ;;  %1883 = vmatpush.bf16.msra.mxu0 %v3237_v59  ;;  %v3548_v1 = vld [vmem:[%s4813_s4 + $0x158] sm:$0xf0]  ;;  %v3145_v59 = vor.u32 %v3530_v56, %v3144_v15 }
 0x82f   : > { %v1438_v4 = vmul.f32 %v1434_v63, %v1416_v2  ;;  %v1439_v5 = vmul.f32 %v1435_v0, %v1430_v61  ;;  %3705 = vtanh.f32 %v1448_v62  ;;  %v3218_v62 = vld [vmem:[%s4813_s4 + $0x15c] sm:$0xf0]  ;;  %v3224_v63 = vld [vmem:[%s4813_s4 + $0x158] sm:$0xf]  ;;  %v3549_v0 = vld [vmem:[%s4813_s4 + $0x160] sm:$0xf0] }
 0x830   : > { %3707 = vtanh.f32 %v1449_v3 }
 0x831   : > { %v1442_v7 = vmul.f32 0.044715, %v1438_v4  ;;  %v1443_v9 = vmul.f32 0.044715, %v1439_v5  ;;  %v3225_v4 = vor.u32 %v3549_v0, %v3224_v63  ;;  %v3204_v5 = vld [vmem:[%s4813_s4 + $0x138] sm:$0xf] }
 0x833   : > { %v1446_v10 = vadd.f32 %v1442_v7, %v1416_v2  ;;  %v1447_v54 = vadd.f32 %v1443_v9, %v1430_v61  ;;  %1884 = vmatpush.bf16.msra.mxu0 %v3225_v4  ;;  %v3545_v7 = vld [vmem:[%s4813_s4 + $0x140] sm:$0xf0]  ;;  %v3544_v9 = vld [vmem:[%s4813_s4 + $0x13c] sm:$0xf] }
 0x835   : > { %v1450_v55 = vmul.f32 0.7978846, %v1446_v10  ;;  %v1451_v13 = vmul.f32 0.7978846, %v1447_v54  ;;  %v3706_v25 = vpop.eup %3705  ;;  %v3205_v10 = vor.u32 %v3545_v7, %v3204_v5  ;;  %v3206_v54 = vld [vmem:[%s4813_s4 + $0x144] sm:$0xf0] }
 0x836   : > { %v3708_v14 = vpop.eup %3707  ;;  %v1456_v16 = vadd.f32 1.0, %v3706_v25  ;;  %v3209_v25 = vor.u32 %v3544_v9, %v3206_v54 }
 0x837   : > { %3709 = vtanh.f32 %v1450_v55  ;;  %v1457_v17 = vadd.f32 1.0, %v3708_v14  ;;  %v3212_v55 = vld [vmem:[%s4813_s4 + $0x140] sm:$0xf] }
 0x838   : > { %3711 = vtanh.f32 %v1451_v13  ;;  %v1460_v20 = vmul.f32 0.5, %v1456_v16  ;;  %v3546_v13 = vld [vmem:[%s4813_s4 + $0x148] sm:$0xf0]  ;;  %v3192_v16 = vld [vmem:[%s4813_s4 + $0x120] sm:$0xf] }
 0x839   : > { %v1461_v22 = vmul.f32 0.5, %v1457_v17  ;;  %v3213_v14 = vor.u32 %v3546_v13, %v3212_v55  ;;  %v3542_v17 = vld [vmem:[%s4813_s4 + $0x128] sm:$0xf0] }
 0x83a   : > { %v1464_v6 = vmul.f32 %v1460_v20, %v1414_v50  ;;  %v3194_v20 = vld [vmem:[%s4813_s4 + $0x12c] sm:$0xf0] }
 0x83b   : > { %v1465_v12 = vmul.f32 %v1461_v22, %v1428_v51  ;;  %1885 = vmatpush.bf16.msra.mxu0 %v3213_v14  ;;  %v3543_v22 = vld [vmem:[%s4813_s4 + $0x130] sm:$0xf0] }
 0x83d   : > { %v3710_v18 = vpop.eup %3709 }
 0x83e   : > { %v3712_v19 = vpop.eup %3711  ;;  %v1458_v21 = vadd.f32 1.0, %v3710_v18  ;;  %v3541_v18 = vld [vmem:[%s4813_s4 + $0x124] sm:$0xf] }
 0x83f   : > { %v1459_v23 = vadd.f32 1.0, %v3712_v19  ;;  %v3193_v19 = vor.u32 %v3542_v17, %v3192_v16 }
 0x840   : > { %v1462_v24 = vmul.f32 0.5, %v1458_v21  ;;  %v3200_v21 = vld [vmem:[%s4813_s4 + $0x128] sm:$0xf] }
 0x841   : > { %v1463_v26 = vmul.f32 0.5, %v1459_v23  ;;  %v3197_v23 = vor.u32 %v3541_v18, %v3194_v20  ;;  %v3655_v20 = vld [vmem:[%s4823_s14] ss:$0 sm:$0xff] }
 0x842   : > { %v1466_v29 = vmul.f32 %v1462_v24, %v1416_v2  ;;  %v3547_v2 = vld [vmem:[%s4813_s4 + $0x154] sm:$0xf]  ;;  %v3201_v24 = vor.u32 %v3543_v22, %v3200_v21 }
 0x843   : > { %v1467_v31 = vmul.f32 %v1463_v26, %v1430_v61  ;;  %v3217_v61 = vor.u32 %v3548_v1, %v3216_v60  ;;  %v3221_v3 = vor.u32 %v3547_v2, %v3218_v62  ;;  %v3180_v26 = vld [vmem:[%s4813_s4 + $0x108] sm:$0xf]  ;;  %v3146_v60 = vld [vmem:[%s4813_s4 + $0xcc] sm:$0xf0]  ;;  %v3531_v2 = vld [vmem:[%s4813_s4 + $0xd0] sm:$0xf0] }
 0x844   : > { %v1468_v32 = vpack.c.bf16 %v1466_v29, %v1464_v6  ;;  %1886 = vmatpush.bf16.msra.mxu0 %v3201_v24  ;;  %v3539_v6 = vld [vmem:[%s4813_s4 + $0x110] sm:$0xf0]  ;;  %v3538_v29 = vld [vmem:[%s4813_s4 + $0x10c] sm:$0xf]  ;;  %v3152_v1 = vld [vmem:[%s4813_s4 + $0xc8] sm:$0xf] }
 0x845   : > { %v1469_v33 = vpack.c.bf16 %v1467_v31, %v1465_v12  ;;  %1870 = vmatpush.bf16.msrb.mxu3 %v3221_v3  ;;  %v3181_v12 = vor.u32 %v3539_v6, %v3180_v26  ;;  %v3182_v31 = vld [vmem:[%s4813_s4 + $0x114] sm:$0xf0]  ;;  %v3153_v62 = vor.u32 %v3531_v2, %v3152_v1  ;;  %v3656_v26 = vld [vmem:[%s4824_s15] ss:$0 sm:$0xff] }
 0x846   : > { %1610 = vmatmul.bf16.vlgmr.msrb.gmra.mxu0 %v1468_v32  ;;  %v3188_v32 = vld [vmem:[%s4813_s4 + $0x110] sm:$0xf] }
 0x847   : > { %1624 = vmatmul.bf16.vlgmr.msra.gmra.mxu1 %v1469_v33  ;;  %v3540_v33 = vld [vmem:[%s4813_s4 + $0x118] sm:$0xf0] }
 0x849   : > { %1871 = vmatpush.bf16.msrb.mxu3 %v3209_v25 }
 0x84d   : > { %1872 = vmatpush.bf16.msrb.mxu3 %v3197_v23 }
 0x8c3   : > { %v1611_v35 = vpop.f32.mrf.mxu0 }
 0x8c4   : > { %v1612_v36 = vadd.f32 %v3654_v34, %v1611_v35  ;;  %v1625_v37 = vpop.f32.mrf.mxu1  ;;  %v3189_v35 = vor.u32 %v3540_v33, %v3188_v32 }
 0x8c6   : > { %v1626_v38 = vadd.f32 %v1625_v37, %v1612_v36  ;;  %1887 = vmatpush.bf16.msra.mxu0 %v3189_v35  ;;  %v3168_v36 = vld [vmem:[%s4813_s4 + $0xf0] sm:$0xf]  ;;  %v3536_v37 = vld [vmem:[%s4813_s4 + $0xf8] sm:$0xf0] }
 0x8c8   : > { %v1630_v39 = vadd.f32 %v1626_v38, %v4297_v27  ;;  %v3535_v38 = vld [vmem:[%s4813_s4 + $0xf4] sm:$0xf] }
 0x8ca   : > { %1634 = vadd.xlane.f32.xlu1 %v1630_v39 }
 0x8cb   : > { %v1613_v40 = vpop.f32.mrf.mxu0 }
 0x8cc   : > { %v1614_v41 = vadd.f32 %v3654_v34, %v1613_v40  ;;  %v1627_v42 = vpop.f32.mrf.mxu1  ;;  %v3185_v34 = vor.u32 %v3538_v29, %v3182_v31  ;;  %v3170_v40 = vld [vmem:[%s4813_s4 + $0xfc] sm:$0xf0] }
 0x8ce   : > { %v1628_v43 = vadd.f32 %v1627_v42, %v1614_v41  ;;  %1873 = vmatpush.bf16.msrb.mxu3 %v3185_v34  ;;  %v3176_v41 = vld [vmem:[%s4813_s4 + $0xf8] sm:$0xf]  ;;  %v3537_v42 = vld [vmem:[%s4813_s4 + $0x100] sm:$0xf0] }
 0x8d0   : > { %v1631_v44 = vadd.f32 %v1628_v43, %v4299_v28  ;;  %v3228_v28 = vld [vmem:[%s4813_s4 + $0x168] sm:$0xf]  ;;  %v3173_v43 = vor.u32 %v3535_v38, %v3170_v40 }
 0x8d1   : > { %v3229_v11 = vor.u32 %v3551_v52, %v3228_v28  ;;  %v3534_v28 = vld [vmem:[%s4813_s4 + $0xe8] sm:$0xf0] }
 0x8d2   : > { %1636 = vadd.xlane.f32.xlu2 %v1631_v44  ;;  %1874 = vmatpush.bf16.msrb.mxu3 %v3173_v43 }
 0x8d3   : > { %1855 = vmatpush.bf16.msra.mxu2 %v3229_v11 }
 0x8d7   : > { %1856 = vmatpush.bf16.msra.mxu2 %v3217_v61  ;;  %v3149_v61 = vor.u32 %v3529_v57, %v3146_v60 }
 0x8db   : > { %1857 = vmatpush.bf16.msra.mxu2 %v3205_v10 }
 0x8df   : > { %1858 = vmatpush.bf16.msra.mxu2 %v3193_v19 }
 0x8e3   : > { %1859 = vmatpush.bf16.msra.mxu2 %v3181_v12 }
 0x93d   : > { %v1635_v45 = vpop.xlane.xlu1 %1634 }
 0x93e   : > { %v1638_v46 = vmul.f32 %v1635_v45, %v3919_v8  ;;  %v3156_v45 = vld [vmem:[%s4813_s4 + $0xd8] sm:$0xf] }
 0x940   : > { %v4360_v47 = vsub.f32 %v1630_v39, %v1638_v46  ;;  %v3169_v39 = vor.u32 %v3536_v37, %v3168_v36  ;;  %v3533_v46 = vld [vmem:[%s4813_s4 + $0xe0] sm:$0xf0] }
 0x942   : > { %v1642_v48 = vmul.f32 %v4360_v47, %v4360_v47  ;;  %1860 = vmatpush.bf16.msra.mxu2 %v3169_v39 }
 0x944   : > { %1644 = vadd.xlane.f32.xlu0 %v1642_v48  ;;  %v3532_v48 = vld [vmem:[%s4813_s4 + $0xdc] sm:$0xf] }
 0x945   : > { %v1637_v49 = vpop.xlane.xlu2 %1636 }
 0x946   : > { %v1639_v27 = vmul.f32 %v1637_v49, %v3919_v8  ;;  %v3157_v49 = vor.u32 %v3533_v46, %v3156_v45 }
 0x948   : > { %v4365_v50 = vsub.f32 %v1631_v44, %v1639_v27  ;;  %v3177_v44 = vor.u32 %v3537_v42, %v3176_v41  ;;  %v3158_v27 = vld [vmem:[%s4813_s4 + $0xe4] sm:$0xf0]  ;;  %1861 = vmatpush.bf16.msra.mxu2 %v3157_v49 }
 0x949   : > { %v3161_v53 = vor.u32 %v3532_v48, %v3158_v27 }
 0x94a   : > { %v1643_v51 = vmul.f32 %v4365_v50, %v4365_v50  ;;  %1888 = vmatpush.bf16.msra.mxu0 %v3177_v44 }
 0x94b   : > { %1875 = vmatpush.bf16.msrb.mxu3 %v3161_v53 }
 0x94c   : > { %1646 = vadd.xlane.f32.xlu1 %v1643_v51  ;;  %v3164_v51 = vld [vmem:[%s4813_s4 + $0xe0] sm:$0xf]  ;;  %1862 = vmatpush.bf16.msra.mxu2 %v3145_v59 }
 0x94d   : > { %v3165_v11 = vor.u32 %v3534_v28, %v3164_v51 }
 0x94f   : > { %1889 = vmatpush.bf16.msra.mxu0 %v3165_v11  ;;  %1876 = vmatpush.bf16.msrb.mxu3 %v3149_v61 }
 0x953   : > { %1890 = vmatpush.bf16.msra.mxu0 %v3153_v62 }
 0x9b7   : > { %v1645_v52 = vpop.xlane.xlu0 %1644 }
 0x9b8   : > { %v1648_v58 = vmul.f32 %v1645_v52, %v3919_v8 }
 0x9ba   : > { %v1650_v63 = vadd.f32 1e-12, %v1648_v58 }
 0x9bc   : > { %3713 = vrsqrt.f32 %v1650_v63  ;;  %vm1658_vm4 = vweird.f32 %v1650_v63 }
 0x9bf   : > { %v1647_v0 = vpop.xlane.xlu1 %1646 }
 0x9c0   : > { %v1649_v3 = vmul.f32 %v1647_v0, %v3919_v8 }
 0x9c2   : > { %v3714_v4 = vpop.eup %3713  ;;  %v1651_v5 = vadd.f32 1e-12, %v1649_v3 }
 0x9c3   : > { %v1653_v7 = vmul.f32 %v3714_v4, %v1650_v63  ;;  %vm1659_vm3 = vweird.f32 %v3714_v4 }
 0x9c4   : > { %3715 = vrsqrt.f32 %v1651_v5  ;;  %vm1660_vm5 = vmor %vm1658_vm4, %vm1659_vm3  ;;  %vm1668_vm8 = vweird.f32 %v1651_v5 }
 0x9c5   : > { %v1654_v9 = vmul.f32 %v3714_v4, %v1653_v7 }
 0x9c7   : > { %v1655_v10 = vmul.f32 0.5, %v1654_v9 }
 0x9c9   : > { %v1656_v54 = vsub.f32 1.5, %v1655_v10 }
 0x9ca   : > { %v3716_v55 = vpop.eup %3715 }
 0x9cb   : > { %v1657_v13 = vmul.f32 %v3714_v4, %v1656_v54  ;;  %v1663_v25 = vmul.f32 %v3716_v55, %v1651_v5  ;;  %vm1669_vm6 = vweird.f32 %v3716_v55 }
 0x9cc   : > { %vm1670_vm13 = vmor %vm1668_vm8, %vm1669_vm6 }
 0x9cd   : > { %v1664_v14 = vmul.f32 %v3716_v55, %v1663_v25  ;;  %v1661_v16 = vsel %vm1660_vm5, %v3714_v4, %v1657_v13 }
 0x9ce   : > { %v1672_v19 = vmul.f32 %v1661_v16, %v4360_v47 }
 0x9cf   : > { %v1665_v17 = vmul.f32 0.5, %v1664_v14 }
 0x9d0   : > { %v1677_v24 = vmul.f32 %v3655_v20, %v1672_v19 }
 0x9d1   : > { %v1666_v18 = vsub.f32 1.5, %v1665_v17 }
 0x9d2   : > { %v4523_v29 = vadd.f32 %v3656_v26, %v1677_v24 }
 0x9d3   : > { %v1667_v21 = vmul.f32 %v3716_v55, %v1666_v18 }
 0x9d5   : > { %v1671_v22 = vsel %vm1670_vm13, %v3716_v55, %v1667_v21 }
 0x9d6   : > { %v1673_v23 = vmul.f32 %v1671_v22, %v4365_v50  ;;  %v3141_v50 = vld [vmem:[%s4814_s5 + $0x3] sm:$0x7] }
 0x9d7   : > { %v1723_v32 = vperm.slane %v3141_v50, 2  ;;  %v1721_v36 = vperm.slane %v3141_v50, 0  ;;  %v1722_v37 = vperm.slane %v3141_v50, 1 }
 0x9d8   : > { %v1678_v6 = vmul.f32 %v3655_v20, %v1673_v23 }
 0x9da   : > { %v4525_v12 = vadd.f32 %v3656_v26, %v1678_v6 }
 0x9dc   : > { %v1684_v47 = vpack.c.bf16 %v4525_v12, %v4523_v29 }
 0x9de   : > { %1863 = vmatmul.bf16.vlgmr.msra.gmra.mxu2 %v1684_v47  ;;  %1877 = vmatmul.bf16.vlgmr.msrb.gmra.mxu3 %v1684_v47 }
 0x9df   : > { %1891 = vmatmul.bf16.vlgmr.msra.gmra.mxu0 %v1684_v47 }
 0xa5c   : > { %v1892_v31 = vpop.f32.mrf.mxu0 }
 0xa5d   : > { %v1893_v33 = vadd.f32 %v1892_v31, %v1723_v32 }
 0xa5f   : > { %v1920_v39 = vpack.c.bf16 %v1893_v33, %v1893_v33 }
 0xa61   : > { %v1864_v34 = vpop.f32.mrf.mxu2  ;;  %v1878_v35 = vpop.f32.mrf.mxu3  ;;  %v1981_v44 = vunpack.c.l.b16 %v1920_v39 }
 0xa62   : > { %v1865_v41 = vadd.f32 %v1864_v34, %v1721_v36  ;;  %v1879_v42 = vadd.f32 %v1878_v35, %v1722_v37 }
 0xa64   : > { %v1894_v38 = vpop.f32.mrf.mxu0  ;;  %v1916_v49 = vpack.c.bf16 %v1865_v41, %v1865_v41  ;;  %v1918_v27 = vpack.c.bf16 %v1879_v42, %v1879_v42 }
 0xa65   : > { %v1895_v40 = vadd.f32 %v1894_v38, %v1723_v32 }
 0xa66   : > { %v1924_v15 = vunpack.c.l.b16 %v1916_v49  ;;  %v1929_v56 = vunpack.c.l.b16 %v1918_v27 }
 0xa67   : > { %v1921_v43 = vpack.c.bf16 %v1895_v40, %v1895_v40 }
 0xa69   : > { %v1982_v45 = vunpack.c.l.b16 %v1921_v43  ;;  %v1866_v46 = vpop.f32.mrf.mxu2  ;;  %v1880_v48 = vpop.f32.mrf.mxu3 }
 0xa6a   : > { %v1867_v51 = vadd.f32 %v1866_v46, %v1721_v36  ;;  %v1881_v28 = vadd.f32 %v1880_v48, %v1722_v37 }
 0xa6b   : > { %v4532_v52 = vpack.c.b16 %v1982_v45, %v1981_v44 }
 0xa6c   : > { %v1917_v53 = vpack.c.bf16 %v1867_v51, %v1867_v51  ;;  %v1919_v11 = vpack.c.bf16 %v1881_v28, %v1881_v28 }
 0xa6d   : > { %1995 = vmatpush.bf16.msrb.mxu2 %v4532_v52 }
 0xa6e   : > { %v1925_v57 = vunpack.c.l.b16 %v1917_v53  ;;  %v1930_v58 = vunpack.c.l.b16 %v1919_v11 }
 0xa70   : > { %v1926_v59 = vpack.c.b16 %v1925_v57, %v1924_v15  ;;  %v1931_v60 = vpack.c.b16 %v1930_v58, %v1929_v56 }
 0xa72   : > { %2075 = vrot.lane.b32.xlu1 %v1931_v60, %s3814_s19  ;;  %2004 = vrot.lane.b32.xlu2 %v1931_v60, %s3811_s28  ;;  %v1936_v1 = vsel %vm861_vm7, %v1931_v60, 0 }
 0xa73   : > { %2002 = vrot.lane.b32.xlu0 %v1926_v59, %s3811_s28  ;;  %1945 = vmatpush.bf16.xpose.msrb.mxu1 %v1936_v1 }
 0xa7a   : > { %2144 = vrot.lane.b32.xlu1 %v1926_v59, %s4833_s26  ;;  %2073 = vrot.lane.b32.xlu2 %v1926_v59, %s3814_s19 }
 0xa7b   : > { %2146 = vrot.lane.b32.xlu0 %v1931_v60, %s4833_s26  ;;  %3239 = vmatmul.msk.bf16.vlgmr.msrb.gmra.mxu1 %vm861_vm7, %v1926_v59 }
 0xacc   : > { %v2005_v2 = vpop.permute.xlu2 %2004 }
 0xacd   : > { %v2010_v61 = vsel %vm861_vm7, %v2005_v2, 0 }
 0xace   : > { %2019 = vmatpush.bf16.xpose.msra.mxu3 %v2010_v61 }
 0xad4   : > { %v2074_v3 = vpop.permute.xlu2 %2073 }
 0xae4   : > { %v2076_v62 = vpop.permute.xlu1 %2075 }
 0xae5   : > { %v2081_v63 = vsel %vm861_vm7, %v2076_v62, 0  ;;  %v2003_v0 = vpop.permute.xlu0 %2002 }
 0xae6   : > { %3241 = vmatmul.msk.bf16.vlgmr.msra.gmra.mxu3 %vm861_vm7, %v2003_v0  ;;  %2090 = vmatpush.bf16.xpose.msra.mxu1 %v2081_v63 }
 0xaec   : > { %v2145_v7 = vpop.permute.xlu1 %2144 }
 0xaed   : > { %v2147_v4 = vpop.permute.xlu0 %2146  ;;  %3243 = vmatmul.msk.bf16.vlgmr.msra.gmra.mxu1 %vm861_vm7, %v2074_v3 }
 0xaee   : > { %v2152_v5 = vsel %vm861_vm7, %v2147_v4, 0 }
 0xaef   : > { %2161 = vmatpush.bf16.xpose.msrb.mxu3 %v2152_v5 }
 0xaf6   : > { %3245 = vmatmul.msk.bf16.vlgmr.msrb.gmra.mxu3 %vm861_vm7, %v2145_v7 }
 0xaf8   : > { %v1947_v9 = vpop.f32.mrf.mxu1 }
 0xaf9   : > { %v1952_v10 = vmul.f32 0.17677669, %v1947_v9 }
 0xafb   : > { %v1954_v54 = vsel %vm4104_vm9, %v1952_v10, -1e+09 }
 0xafc   : > { %v1956_v55 = vsel %vm889_vm10, %v1954_v54, -inf }
 0xafd   : > { %1957 = vmax.xlane.f32.xlu0 %v1956_v55 }
 0xb00   : > { %v1949_v13 = vpop.f32.mrf.mxu1 }
 0xb01   : > { %v1953_v25 = vmul.f32 0.17677669, %v1949_v13 }
 0xb03   : > { %v1955_v14 = vsel %vm4104_vm9, %v1953_v25, -1e+09 }
 0xb04   : > { %v1959_v16 = vsel %vm889_vm10, %v1955_v14, -inf }
 0xb05   : > { %1960 = vmax.xlane.f32.xlu2 %v1959_v16 }
 0xb69   : > { %v2021_v17 = vpop.f32.mrf.mxu3 }
 0xb6a   : > { %v2026_v18 = vmul.f32 0.17677669, %v2021_v17  ;;  %v2092_v19 = vpop.f32.mrf.mxu1 }
 0xb6b   : > { %v2097_v20 = vmul.f32 0.17677669, %v2092_v19 }
 0xb6c   : > { %v2028_v21 = vsel %vm4104_vm9, %v2026_v18, -1e+09 }
 0xb6d   : > { %v2030_v22 = vsel %vm889_vm10, %v2028_v21, -inf  ;;  %v2099_v23 = vsel %vm4104_vm9, %v2097_v20, -1e+09 }
 0xb6e   : > { %2031 = vmax.xlane.f32.xlu1 %v2030_v22  ;;  %v2101_v24 = vsel %vm889_vm10, %v2099_v23, -inf }
 0xb6f   : > { %2102 = vmax.xlane.f32.xlu2 %v2101_v24 }
 0xb70   : > { %v1958_v26 = vpop.xlane.xlu0 %1957 }
 0xb71   : > { %v1962_v6 = vsub.f32 %v1954_v54, %v1958_v26  ;;  %v2023_v47 = vpop.f32.mrf.mxu3 }
 0xb72   : > { %v2027_v50 = vmul.f32 0.17677669, %v2023_v47  ;;  %v2094_v31 = vpop.f32.mrf.mxu1 }
 0xb73   : > { %v1964_v32 = vmul.f32 1.442695, %v1962_v6  ;;  %v2098_v33 = vmul.f32 0.17677669, %v2094_v31 }
 0xb74   : > { %v2029_v34 = vsel %vm4104_vm9, %v2027_v50, -1e+09 }
 0xb75   : > { %3717 = vpow2.f32 %v1964_v32  ;;  %v2033_v35 = vsel %vm889_vm10, %v2029_v34, -inf  ;;  %v2100_v36 = vsel %vm4104_vm9, %v2098_v33, -1e+09 }
 0xb76   : > { %2034 = vmax.xlane.f32.xlu0 %v2033_v35  ;;  %v2104_v37 = vsel %vm889_vm10, %v2100_v36, -inf }
 0xb77   : > { %2105 = vmax.xlane.f32.xlu1 %v2104_v37 }
 0xb78   : > { %v1961_v38 = vpop.xlane.xlu2 %1960 }
 0xb79   : > { %v1963_v39 = vsub.f32 %v1955_v14, %v1961_v38  ;;  %v2163_v40 = vpop.f32.mrf.mxu3 }
 0xb7a   : > { %v2168_v41 = vmul.f32 0.17677669, %v2163_v40 }
 0xb7b   : > { %v4567_v42 = vpop.eup %3717  ;;  %v1966_v43 = vmul.f32 1.442695, %v1963_v39 }
 0xb7c   : > { %v2170_v44 = vsel %vm4104_vm9, %v2168_v41, -1e+09  ;;  %v1968_v46 = vsel %vm889_vm10, %v4567_v42, 0.0 }
 0xb7d   : > { %3719 = vpow2.f32 %v1966_v43  ;;  %v2172_v45 = vsel %vm889_vm10, %v2170_v44, -inf }
 0xb7e   : > { %2173 = vmax.xlane.f32.xlu0 %v2172_v45 }
 0xb7f   : > { %1969 = vadd.xlane.f32.xlu1 %v1968_v46 }
 0xb81   : > { %v2165_v48 = vpop.f32.mrf.mxu3 }
 0xb82   : > { %v2169_v49 = vmul.f32 0.17677669, %v2165_v48 }
 0xb83   : > { %v3720_v27 = vpop.eup %3719 }
 0xb84   : > { %v2171_v51 = vsel %vm4104_vm9, %v2169_v49, -1e+09  ;;  %v1971_v28 = vsel %vm889_vm10, %v3720_v27, 0.0 }
 0xb85   : > { %v2175_v53 = vsel %vm889_vm10, %v2171_v51, -inf }
 0xb86   : > { %2176 = vmax.xlane.f32.xlu2 %v2175_v53  ;;  %1972 = vadd.xlane.f32.xlu0 %v1971_v28 }
 0xb9a   : > { %2053 = vrot.lane.b32.xlu0 %v4532_v52, %s3811_s28 }
 0xba2   : > { %2195 = vrot.lane.b32.xlu0 %v4532_v52, %s4833_s26 }
 0xbe1   : > { %v2032_v11 = vpop.xlane.xlu1 %2031 }
 0xbe2   : > { %v2103_v15 = vpop.xlane.xlu2 %2102  ;;  %v2036_v57 = vsub.f32 %v2028_v21, %v2032_v11 }
 0xbe3   : > { %v2107_v56 = vsub.f32 %v2099_v23, %v2103_v15 }
 0xbe4   : > { %v2038_v30 = vmul.f32 1.442695, %v2036_v57 }
 0xbe5   : > { %v2109_v58 = vmul.f32 1.442695, %v2107_v56  ;;  %v3560_v56 = vld [vmem:[#allocation2 + $0x78] sm:$0xff] }
 0xbe6   : > { %2297 = vmatpush.bf16.msrb.mxu1 %v3560_v56 }
 0xbe7   : > { %3721 = vpow2.f32 %v2109_v58 }
 0xbe8   : > { %3723 = vpow2.f32 %v2038_v30 }
 0xbe9   : > { %v2035_v59 = vpop.xlane.xlu0 %2034 }
 0xbea   : > { %v2037_v60 = vsub.f32 %v2029_v34, %v2035_v59  ;;  %v2106_v1 = vpop.xlane.xlu1 %2105 }
 0xbeb   : > { %v2108_v61 = vsub.f32 %v2100_v36, %v2106_v1 }
 0xbec   : > { %v2040_v2 = vmul.f32 1.442695, %v2037_v60 }
 0xbed   : > { %v4582_v62 = vpop.eup %3721  ;;  %v2111_v0 = vmul.f32 1.442695, %v2108_v61 }
 0xbee   : > { %3725 = vpow2.f32 %v2040_v2  ;;  %v2113_v63 = vsel %vm889_vm10, %v4582_v62, 0.0  ;;  %v3724_v5 = vpop.eup %3723 }
 0xbef   : > { %2114 = vadd.xlane.f32.xlu2 %v2113_v63  ;;  %3727 = vpow2.f32 %v2111_v0  ;;  %v2042_v55 = vsel %vm889_vm10, %v3724_v5, 0.0  ;;  %v3559_v63 = vld [vmem:[#allocation2 + $0x70] sm:$0xff]  ;;  %v3558_v0 = vld [vmem:[#allocation2 + $0x68] sm:$0xff] }
 0xbf0   : > { %2298 = vmatpush.bf16.msrb.mxu1 %v3559_v63  ;;  %v3568_v63 = vld [vmem:[%s4819_s10 + $0xb4] sm:$0xf0] }
 0xbf1   : > { %v2174_v3 = vpop.xlane.xlu0 %2173 }
 0xbf2   : > { %v2178_v4 = vsub.f32 %v2170_v44, %v2174_v3  ;;  %v1970_v10 = vpop.xlane.xlu1 %1969  ;;  %v3557_v3 = vld [vmem:[#allocation2 + $0x60] sm:$0xff] }
 0xbf4   : > { %v3726_v7 = vpop.eup %3725  ;;  %v2180_v9 = vmul.f32 1.442695, %v2178_v4  ;;  %2299 = vmatpush.bf16.msrb.mxu1 %v3558_v0  ;;  %v3556_v4 = vld [vmem:[#allocation2 + $0x58] sm:$0xff]  ;;  %v3567_v0 = vld [vmem:[%s4819_s10 + $0xb4] sm:$0xf] }
 0xbf5   : > { %v2045_v54 = vsel %vm889_vm10, %v3726_v7, 0.0  ;;  %v3728_v14 = vpop.eup %3727 }
 0xbf6   : > { %3729 = vpow2.f32 %v2180_v9  ;;  %2046 = vadd.xlane.f32.xlu1 %v2045_v54  ;;  %v2116_v19 = vsel %vm889_vm10, %v3728_v14, 0.0  ;;  %v3553_v9 = vld [vmem:[#allocation2 + $0x40] sm:$0xff] }
 0xbf7   : > { %2043 = vadd.xlane.f32.xlu2 %v2042_v55  ;;  %3731 = vrcp.f32 %v1970_v10 }
 0xbf8   : > { %2300 = vmatpush.bf16.msrb.mxu1 %v3557_v3 }
 0xbf9   : > { %v1973_v13 = vpop.xlane.xlu0 %1972  ;;  %v2177_v25 = vpop.xlane.xlu2 %2176 }
 0xbfa   : > { %3733 = vrcp.f32 %v1973_v13  ;;  %v2179_v16 = vsub.f32 %v2171_v51, %v2177_v25 }
 0xbfc   : > { %v3730_v17 = vpop.eup %3729  ;;  %v2182_v18 = vmul.f32 1.442695, %v2179_v16  ;;  %2301 = vmatpush.bf16.msrb.mxu1 %v3556_v4  ;;  %v3326_v4 = vld [vmem:[%s4819_s10 + $0xb8] sm:$0xf0] }
 0xbfd   : > { %v3732_v20 = vpop.eup %3731  ;;  %v2184_v21 = vsel %vm889_vm10, %v3730_v17, 0.0 }
 0xbfe   : > { %3735 = vpow2.f32 %v2182_v18  ;;  %2117 = vadd.xlane.f32.xlu1 %v2116_v19  ;;  %v1976_v23 = vmul.f32 %v3732_v20, %v4567_v42 }
 0xbff   : > { %2185 = vadd.xlane.f32.xlu2 %v2184_v21 }
 0xc00   : > { %v3734_v22 = vpop.eup %3733 }
 0xc01   : > { %v1977_v24 = vmul.f32 %v3734_v22, %v3720_v27 }
 0xc03   : > { %v1978_v26 = vpack.c.bf16 %v1977_v24, %v1976_v23 }
 0xc04   : > { %v3736_v6 = vpop.eup %3735 }
 0xc05   : > { %3240 = vmatmul.msk.bf16.vlgmr.msrb.gmra.mxu2 %vm889_vm10, %v1978_v26  ;;  %v2187_v47 = vsel %vm889_vm10, %v3736_v6, 0.0 }
 0xc06   : > { %2188 = vadd.xlane.f32.xlu1 %v2187_v47 }
 0xc0c   : > { %v2054_v50 = vpop.permute.xlu0 %2053 }
 0xc0d   : > { %2066 = vmatpush.bf16.msrb.mxu0 %v2054_v50 }
 0xc14   : > { %v2196_v31 = vpop.permute.xlu0 %2195 }
 0xc15   : > { %2208 = vmatpush.bf16.msra.mxu0 %v2196_v31 }
 0xc17   : > { %2124 = vrot.lane.b32.xlu2 %v4532_v52, %s3814_s19 }
 0xc62   : > { %v2115_v32 = vpop.xlane.xlu2 %2114 }
 0xc69   : > { %v2047_v33 = vpop.xlane.xlu1 %2046 }
 0xc6a   : > { %3737 = vrcp.f32 %v2047_v33  ;;  %v2044_v34 = vpop.xlane.xlu2 %2043 }
 0xc6b   : > { %3739 = vrcp.f32 %v2044_v34 }
 0xc6c   : > { %3741 = vrcp.f32 %v2115_v32 }
 0xc70   : > { %v3738_v35 = vpop.eup %3737 }
 0xc71   : > { %v3740_v36 = vpop.eup %3739  ;;  %v2118_v37 = vpop.xlane.xlu1 %2117  ;;  %v2051_v38 = vmul.f32 %v3738_v35, %v3726_v7  ;;  %v3554_v7 = vld [vmem:[#allocation2 + $0x48] sm:$0xff] }
 0xc72   : > { %v2050_v39 = vmul.f32 %v3740_v36, %v3724_v5  ;;  %3743 = vrcp.f32 %v2118_v37  ;;  %v2186_v40 = vpop.xlane.xlu2 %2185  ;;  %v3742_v42 = vpop.eup %3741  ;;  %v3555_v5 = vld [vmem:[#allocation2 + $0x50] sm:$0xff] }
 0xc73   : > { %3745 = vrcp.f32 %v2186_v40  ;;  %v2121_v45 = vmul.f32 %v3742_v42, %v4582_v62  ;;  %2302 = vmatpush.bf16.msrb.mxu1 %v3555_v5  ;;  %v3576_v42 = vld [vmem:[%s4819_s10 + $0xf4] sm:$0xf0]  ;;  %v3329_v5 = vor.u32 %v3567_v0, %v3326_v4  ;;  %v3297_v0 = vld [vmem:[%s4820_s11 + $0x2] sm:$0x3]  ;;  %v3586_v4 = vld [vmem:[%s4821_s12 + $0xc8] sm:$0xff] }
 0xc74   : > { %v2052_v41 = vpack.c.bf16 %v2051_v38, %v2050_v39 }
 0xc76   : > { %3242 = vmatmul.msk.bf16.vlgmr.msrb.gmra.mxu0 %vm889_vm10, %v2052_v41 }
 0xc77   : > { %2303 = vmatpush.bf16.msrb.mxu1 %v3554_v7  ;;  %v3316_v7 = vld [vmem:[%s4819_s10 + $0xa0] sm:$0xf] }
 0xc78   : > { %v3744_v43 = vpop.eup %3743 }
 0xc79   : > { %v2122_v44 = vmul.f32 %v3744_v43, %v3728_v14  ;;  %v2189_v52 = vpop.xlane.xlu1 %2188  ;;  %v3746_v49 = vpop.eup %3745  ;;  %v3575_v43 = vld [vmem:[%s4819_s10 + $0xf4] sm:$0xf] }
 0xc7a   : > { %3747 = vrcp.f32 %v2189_v52  ;;  %v2125_v46 = vpop.permute.xlu2 %2124  ;;  %v2192_v28 = vmul.f32 %v3746_v49, %v3730_v17  ;;  %v3358_v52 = vld [vmem:[%s4819_s10 + $0xf8] sm:$0xf0]  ;;  %v3573_v49 = vld [vmem:[%s4819_s10 + $0xe4] sm:$0xf] }
 0xc7b   : > { %2137 = vmatpush.bf16.msra.mxu2 %v2125_v46  ;;  %v2123_v48 = vpack.c.bf16 %v2122_v44, %v2121_v45  ;;  %2304 = vmatpush.bf16.msrb.mxu1 %v3553_v9  ;;  %v3361_v45 = vor.u32 %v3575_v43, %v3358_v52  ;;  %v3348_v46 = vld [vmem:[%s4819_s10 + $0xe0] sm:$0xf]  ;;  %v3566_v9 = vld [vmem:[%s4819_s10 + $0xa4] sm:$0xf0] }
 0xc7d   : > { %2486 = vmatpush.bf16.msra.mxu3 %v3361_v45 }
 0xc7e   : > { %3244 = vmatmul.msk.bf16.vlgmr.msra.gmra.mxu2 %vm889_vm10, %v2123_v48  ;;  %v3574_v48 = vld [vmem:[%s4819_s10 + $0xe4] sm:$0xf0] }
 0xc80   : > { %v3748_v27 = vpop.eup %3747 }
 0xc81   : > { %v2193_v51 = vmul.f32 %v3748_v27, %v3736_v6  ;;  %v3657_v6 = vld [vmem:[%s4816_s7 + $0x1] ss:$0 sm:$0xff]  ;;  %v3349_v27 = vor.u32 %v3574_v48, %v3348_v46 }
 0xc82   : > { %v3658_v46 = vld [vmem:[%s4817_s8 + $0x1] ss:$0 sm:$0xff] }
 0xc83   : > { %v2194_v53 = vpack.c.bf16 %v2193_v51, %v2192_v28  ;;  %v3350_v51 = vld [vmem:[%s4819_s10 + $0xe8] sm:$0xf0] }
 0xc84   : > { %v3353_v28 = vor.u32 %v3573_v49, %v3350_v51 }
 0xc86   : > { %3246 = vmatmul.msk.bf16.vlgmr.msra.gmra.mxu0 %vm889_vm10, %v2194_v53  ;;  %2487 = vmatpush.bf16.msra.mxu3 %v3353_v28  ;;  %v3340_v53 = vld [vmem:[%s4819_s10 + $0xd0] sm:$0xf]  ;;  %v3659_v28 = vld [vmem:[%s4818_s9 + $0x1] ss:$0 sm:$0xff] }
 0xc88   : > { %v1997_v11 = vpop.f32.mrf.mxu2 }
 0xc90   : > { %v1999_v57 = vpop.f32.mrf.mxu2 }
 0xcf3   : > { %v2068_v15 = vpop.f32.mrf.mxu0 }
 0xcfb   : > { %v2070_v58 = vpop.f32.mrf.mxu0 }
 0xcfc   : > { %v3634_v30 = vpack.i.bf16 %v2070_v58, %v2068_v15  ;;  %v3571_v15 = vld [vmem:[%s4819_s10 + $0xd4] sm:$0xf] }
 0xcfe   : > { %3635 = vrot.lane.b32.xlu1 %v3634_v30, %s4833_s26  ;;  %v3332_v30 = vld [vmem:[%s4819_s10 + $0xc0] sm:$0xf] }
 0xd01   : > { %v2139_v59 = vpop.f32.mrf.mxu2 }
 0xd03   : > { %v2210_v60 = vpop.f32.mrf.mxu0 }
 0xd09   : > { %v2141_v1 = vpop.f32.mrf.mxu2 }
 0xd0a   : > { %v3639_v2 = vpack.i.bf16 %v2141_v1, %v2139_v59  ;;  %v3570_v59 = vld [vmem:[%s4819_s10 + $0xc4] sm:$0xf0] }
 0xd0b   : > { %v2212_v61 = vpop.f32.mrf.mxu0  ;;  %v3333_v1 = vor.u32 %v3570_v59, %v3332_v30  ;;  %v3582_v30 = vld [vmem:[%s4821_s12 + $0xa8] sm:$0xff] }
 0xd0c   : > { %3640 = vrot.lane.b32.xlu0 %v3639_v2, %s3814_s19  ;;  %v3644_v62 = vpack.i.bf16 %v2212_v61, %v2210_v60  ;;  %v3569_v60 = vld [vmem:[%s4819_s10 + $0xc4] sm:$0xf]  ;;  %v3334_v2 = vld [vmem:[%s4819_s10 + $0xc8] sm:$0xf0] }
 0xd0d   : > { %v3337_v61 = vor.u32 %v3569_v60, %v3334_v2  ;;  %v3590_v59 = vld [vmem:[%s4821_s12 + $0xe8] sm:$0xff]  ;;  %v3581_v60 = vld [vmem:[%s4821_s12 + $0xa0] sm:$0xff]  ;;  %v3580_v2 = vld [vmem:[%s4821_s12 + $0x98] sm:$0xff] }
 0xd14   : > { %3645 = vrot.lane.b32.xlu0 %v3644_v62, %s3811_s28  ;;  %v3324_v62 = vld [vmem:[%s4819_s10 + $0xb0] sm:$0xf] }
 0xd15   : > { %v3325_v3 = vor.u32 %v3568_v63, %v3324_v62  ;;  %v3579_v62 = vld [vmem:[%s4821_s12 + $0x90] sm:$0xff] }
 0xd16   : > { %v3587_v63 = vld [vmem:[%s4821_s12 + $0xd0] sm:$0xff] }
 0xd70   : > { %v3636_v54 = vpop.permute.xlu1 %3635 }
 0xd71   : > { %v3638_v55 = vunpack.i.h.bf16 %v3636_v54  ;;  %v3637_v13 = vunpack.i.l.bf16 %v3636_v54  ;;  %v3317_v54 = vor.u32 %v3566_v9, %v3316_v7  ;;  %v2389_v7 = vperm.slane %v3297_v0, 1 }
 0xd73   : > { %v2240_v17 = vsel %vm861_vm7, %v1999_v57, %v3638_v55  ;;  %v2239_v18 = vsel %vm861_vm7, %v1997_v11, %v3637_v13  ;;  %v3572_v11 = vld [vmem:[%s4819_s10 + $0xd4] sm:$0xf0]  ;;  %v3342_v57 = vld [vmem:[%s4819_s10 + $0xd8] sm:$0xf0]  ;;  %v3318_v55 = vld [vmem:[%s4819_s10 + $0xa8] sm:$0xf0] }
 0xd74   : > { %v3341_v56 = vor.u32 %v3572_v11, %v3340_v53  ;;  %v3345_v58 = vor.u32 %v3571_v15, %v3342_v57  ;;  %v3583_v57 = vld [vmem:[%s4821_s12 + $0xb0] sm:$0xff] }
 0xd76   : > { %2488 = vmatpush.bf16.msra.mxu3 %v3345_v58  ;;  %v3591_v58 = vld [vmem:[%s4821_s12 + $0xf0] sm:$0xff] }
 0xd7a   : > { %2489 = vmatpush.bf16.msra.mxu3 %v3337_v61  ;;  %v3588_v61 = vld [vmem:[%s4821_s12 + $0xd8] sm:$0xff] }
 0xd7e   : > { %v3641_v10 = vpop.permute.xlu0 %3640  ;;  %2490 = vmatpush.bf16.msra.mxu3 %v3329_v5  ;;  %v2388_v5 = vperm.slane %v3297_v0, 0 }
 0xd7f   : > { %v3643_v25 = vunpack.i.h.bf16 %v3641_v10  ;;  %v3642_v14 = vunpack.i.l.bf16 %v3641_v10  ;;  %v3565_v10 = vld [vmem:[%s4819_s10 + $0xa4] sm:$0xf] }
 0xd80   : > { %v3321_v13 = vor.u32 %v3565_v10, %v3318_v55  ;;  %v3585_v55 = vld [vmem:[%s4821_s12 + $0xc0] sm:$0xff] }
 0xd81   : > { %v2242_v21 = vsel %vm1175_vm11, %v2240_v17, %v3643_v25  ;;  %v2241_v22 = vsel %vm1175_vm11, %v2239_v18, %v3642_v14  ;;  %v3308_v25 = vld [vmem:[%s4819_s10 + $0x90] sm:$0xf]  ;;  %v3564_v14 = vld [vmem:[%s4819_s10 + $0x94] sm:$0xf0]  ;;  %v3310_v18 = vld [vmem:[%s4819_s10 + $0x98] sm:$0xf0] }
 0xd82   : > { %2491 = vmatpush.bf16.msra.mxu3 %v3321_v13  ;;  %v3309_v17 = vor.u32 %v3564_v14, %v3308_v25 }
 0xd86   : > { %v3646_v16 = vpop.permute.xlu0 %3645 }
 0xd87   : > { %v3648_v19 = vunpack.i.h.bf16 %v3646_v16  ;;  %v3647_v20 = vunpack.i.l.bf16 %v3646_v16  ;;  %v3563_v16 = vld [vmem:[%s4819_s10 + $0x94] sm:$0xf] }
 0xd89   : > { %v2243_v23 = vsel %vm1178_vm12, %v2241_v22, %v3647_v20  ;;  %v2244_v24 = vsel %vm1178_vm12, %v2242_v21, %v3648_v19  ;;  %v3300_v19 = vld [vmem:[%s4819_s10 + $0x80] sm:$0xf]  ;;  %v3562_v20 = vld [vmem:[%s4819_s10 + $0x84] sm:$0xf0]  ;;  %v3313_v22 = vor.u32 %v3563_v16, %v3310_v18 }
 0xd8a   : > { %v2245_v26 = vpack.c.bf16 %v2244_v24, %v2243_v23  ;;  %v3561_v23 = vld [vmem:[%s4819_s10 + $0x84] sm:$0xf]  ;;  %v3302_v24 = vld [vmem:[%s4819_s10 + $0x88] sm:$0xf0] }
 0xd8b   : > { %2492 = vmatpush.bf16.msra.mxu3 %v3313_v22 }
 0xd8c   : > { %2305 = vmatmul.bf16.vlgmr.msrb.gmra.mxu1 %v2245_v26 }
 0xe09   : > { %v2306_v47 = vpop.f32.mrf.mxu1 }
 0xe0a   : > { %v2307_v50 = vadd.f32 %v3657_v6, %v2306_v47  ;;  %v3305_v47 = vor.u32 %v3561_v23, %v3302_v24 }
 0xe0c   : > { %v2311_v31 = vadd.f32 %v2307_v50, %v4523_v29  ;;  %2493 = vmatpush.bf16.msra.mxu3 %v3305_v47 }
 0xe0e   : > { %2317 = vadd.xlane.f32.xlu2 %v2311_v31 }
 0xe11   : > { %v2308_v32 = vpop.f32.mrf.mxu1 }
 0xe12   : > { %v2309_v33 = vadd.f32 %v3657_v6, %v2308_v32  ;;  %v3301_v6 = vor.u32 %v3562_v20, %v3300_v19 }
 0xe14   : > { %v2312_v34 = vadd.f32 %v2309_v33, %v4525_v12  ;;  %v3356_v12 = vld [vmem:[%s4819_s10 + $0xf0] sm:$0xf] }
 0xe15   : > { %v3357_v44 = vor.u32 %v3576_v42, %v3356_v12 }
 0xe16   : > { %2319 = vadd.xlane.f32.xlu0 %v2312_v34 }
 0xe17   : > { %2472 = vmatpush.bf16.msrb.mxu2 %v3357_v44 }
 0xe1b   : > { %2473 = vmatpush.bf16.msrb.mxu2 %v3349_v27 }
 0xe1f   : > { %2474 = vmatpush.bf16.msrb.mxu2 %v3341_v56  ;;  %v3584_v56 = vld [vmem:[%s4821_s12 + $0xb8] sm:$0xff] }
 0xe20   : > { %2672 = vmatpush.bf16.msrb.mxu0 %v3584_v56 }
 0xe23   : > { %2475 = vmatpush.bf16.msrb.mxu2 %v3333_v1  ;;  %v3589_v1 = vld [vmem:[%s4821_s12 + $0xe0] sm:$0xff] }
 0xe24   : > { %2673 = vmatpush.bf16.msrb.mxu0 %v3583_v57 }
 0xe27   : > { %2476 = vmatpush.bf16.msrb.mxu2 %v3325_v3  ;;  %v3578_v3 = vld [vmem:[%s4821_s12 + $0x88] sm:$0xff] }
 0xe28   : > { %2674 = vmatpush.bf16.msrb.mxu0 %v3582_v30  ;;  %v3660_v30 = vld [vmem:[%s4822_s13 + $0x1] ss:$0 sm:$0xff] }
 0xe2b   : > { %2477 = vmatpush.bf16.msrb.mxu2 %v3317_v54  ;;  %v3577_v54 = vld [vmem:[%s4821_s12 + $0x80] sm:$0xff] }
 0xe2c   : > { %2675 = vmatpush.bf16.msrb.mxu0 %v3581_v60 }
 0xe2f   : > { %2478 = vmatpush.bf16.msrb.mxu2 %v3309_v17 }
 0xe30   : > { %2676 = vmatpush.bf16.msrb.mxu0 %v3580_v2 }
 0xe33   : > { %2479 = vmatpush.bf16.msrb.mxu2 %v3301_v6 }
 0xe34   : > { %2677 = vmatpush.bf16.msrb.mxu0 %v3579_v62 }
 0xe38   : > { %2678 = vmatpush.bf16.msrb.mxu0 %v3578_v3 }
 0xe3c   : > { %2679 = vmatpush.bf16.msrb.mxu0 %v3577_v54 }
 0xe81   : > { %v2318_v35 = vpop.xlane.xlu2 %2317 }
 0xe82   : > { %v2321_v36 = vmul.f32 %v2318_v35, %v3919_v8 }
 0xe84   : > { %v4614_v37 = vsub.f32 %v2311_v31, %v2321_v36 }
 0xe86   : > { %v2325_v38 = vmul.f32 %v4614_v37, %v4614_v37 }
 0xe88   : > { %2327 = vadd.xlane.f32.xlu1 %v2325_v38 }
 0xe89   : > { %v2320_v39 = vpop.xlane.xlu0 %2319 }
 0xe8a   : > { %v2322_v40 = vmul.f32 %v2320_v39, %v3919_v8 }
 0xe8c   : > { %v4619_v41 = vsub.f32 %v2312_v34, %v2322_v40 }
 0xe8e   : > { %v2326_v29 = vmul.f32 %v4619_v41, %v4619_v41 }
 0xe90   : > { %2329 = vadd.xlane.f32.xlu2 %v2326_v29 }
 0xefb   : > { %v2328_v21 = vpop.xlane.xlu1 %2327 }
 0xefc   : > { %v2331_v26 = vmul.f32 %v2328_v21, %v3919_v8 }
 0xefe   : > { %v2333_v50 = vadd.f32 1e-12, %v2331_v26 }
 0xf00   : > { %3749 = vrsqrt.f32 %v2333_v50  ;;  %vm2341_vm9 = vweird.f32 %v2333_v50 }
 0xf03   : > { %v2330_v31 = vpop.xlane.xlu2 %2329 }
 0xf04   : > { %v2332_v32 = vmul.f32 %v2330_v31, %v3919_v8 }
 0xf06   : > { %v3750_v33 = vpop.eup %3749  ;;  %v2334_v34 = vadd.f32 1e-12, %v2332_v32 }
 0xf07   : > { %v2336_v35 = vmul.f32 %v3750_v33, %v2333_v50  ;;  %vm2342_vm7 = vweird.f32 %v3750_v33 }
 0xf08   : > { %3751 = vrsqrt.f32 %v2334_v34  ;;  %vm2343_vm10 = vmor %vm2341_vm9, %vm2342_vm7  ;;  %vm2351_vm12 = vweird.f32 %v2334_v34 }
 0xf09   : > { %v2337_v36 = vmul.f32 %v3750_v33, %v2336_v35 }
 0xf0b   : > { %v2338_v38 = vmul.f32 0.5, %v2337_v36 }
 0xf0d   : > { %v2339_v39 = vsub.f32 1.5, %v2338_v38 }
 0xf0e   : > { %v3752_v40 = vpop.eup %3751 }
 0xf0f   : > { %v2340_v29 = vmul.f32 %v3750_v33, %v2339_v39  ;;  %v2346_v12 = vmul.f32 %v3752_v40, %v2334_v34  ;;  %vm2352_vm11 = vweird.f32 %v3752_v40 }
 0xf10   : > { %vm2353_vm14 = vmor %vm2351_vm12, %vm2352_vm11 }
 0xf11   : > { %v2347_v42 = vmul.f32 %v3752_v40, %v2346_v12  ;;  %v2344_v43 = vsel %vm2343_vm10, %v3750_v33, %v2340_v29 }
 0xf12   : > { %v2355_v45 = vmul.f32 %v2344_v43, %v4614_v37 }
 0xf13   : > { %v2348_v44 = vmul.f32 0.5, %v2347_v42 }
 0xf14   : > { %v2360_v51 = vmul.f32 %v3658_v46, %v2355_v45 }
 0xf15   : > { %v2349_v52 = vsub.f32 1.5, %v2348_v44 }
 0xf16   : > { %v4729_v11 = vadd.f32 %v3659_v28, %v2360_v51 }
 0xf17   : > { %v2350_v48 = vmul.f32 %v3752_v40, %v2349_v52 }
 0xf19   : > { %v2354_v49 = vsel %vm2353_vm14, %v3752_v40, %v2350_v48 }
 0xf1a   : > { %v2356_v27 = vmul.f32 %v2354_v49, %v4619_v41  ;;  %v3592_v41 = vld [vmem:[%s4821_s12 + $0xf8] sm:$0xff] }
 0xf1b   : > { %2686 = vmatpush.bf16.msra.mxu1 %v3592_v41 }
 0xf1c   : > { %v2361_v53 = vmul.f32 %v3658_v46, %v2356_v27 }
 0xf1e   : > { %v4731_v15 = vadd.f32 %v3659_v28, %v2361_v53 }
 0xf1f   : > { %2687 = vmatpush.bf16.msra.mxu1 %v3591_v58 }
 0xf20   : > { %v2367_v37 = vpack.c.bf16 %v4731_v15, %v4729_v11 }
 0xf22   : > { %2480 = vmatmul.bf16.vlgmr.msrb.gmra.mxu2 %v2367_v37  ;;  %2494 = vmatmul.bf16.vlgmr.msra.gmra.mxu3 %v2367_v37 }
 0xf23   : > { %2688 = vmatpush.bf16.msra.mxu1 %v3590_v59 }
 0xf27   : > { %2689 = vmatpush.bf16.msra.mxu1 %v3589_v1 }
 0xf2b   : > { %2690 = vmatpush.bf16.msra.mxu1 %v3588_v61 }
 0xf2f   : > { %2691 = vmatpush.bf16.msra.mxu1 %v3587_v63 }
 0xf33   : > { %2692 = vmatpush.bf16.msra.mxu1 %v3586_v4 }
 0xf37   : > { %2693 = vmatpush.bf16.msra.mxu1 %v3585_v55 }
 0xfa5   : > { %v2481_v9 = vpop.f32.mrf.mxu2  ;;  %v2495_v10 = vpop.f32.mrf.mxu3 }
 0xfa6   : > { %v2482_v13 = vadd.f32 %v2481_v9, %v2388_v5  ;;  %v2496_v25 = vadd.f32 %v2495_v10, %v2389_v7 }
 0xfa8   : > { %v2500_v14 = vmul.f32 %v2482_v13, %v2482_v13  ;;  %v2501_v16 = vmul.f32 %v2496_v25, %v2496_v25 }
 0xfaa   : > { %v2504_v17 = vmul.f32 %v2500_v14, %v2482_v13  ;;  %v2505_v18 = vmul.f32 %v2501_v16, %v2496_v25 }
 0xfac   : > { %v2508_v19 = vmul.f32 0.044715, %v2504_v17  ;;  %v2509_v20 = vmul.f32 0.044715, %v2505_v18 }
 0xfad   : > { %v2483_v21 = vpop.f32.mrf.mxu2  ;;  %v2497_v22 = vpop.f32.mrf.mxu3 }
 0xfae   : > { %v2512_v23 = vadd.f32 %v2508_v19, %v2482_v13  ;;  %v2513_v24 = vadd.f32 %v2509_v20, %v2496_v25  ;;  %v2484_v26 = vadd.f32 %v2483_v21, %v2388_v5  ;;  %v2498_v6 = vadd.f32 %v2497_v22, %v2389_v7 }
 0xfb0   : > { %v2516_v47 = vmul.f32 0.7978846, %v2512_v23  ;;  %v2502_v50 = vmul.f32 %v2484_v26, %v2484_v26  ;;  %v2503_v31 = vmul.f32 %v2498_v6, %v2498_v6  ;;  %v2517_v32 = vmul.f32 0.7978846, %v2513_v24 }
 0xfb2   : > { %v2506_v33 = vmul.f32 %v2502_v50, %v2484_v26  ;;  %v2507_v34 = vmul.f32 %v2503_v31, %v2498_v6  ;;  %3753 = vtanh.f32 %v2516_v47  ;;  %v3661_v47 = vld [vmem:[%s4823_s14 + $0x1] ss:$0 sm:$0xff] }
 0xfb3   : > { %3755 = vtanh.f32 %v2517_v32  ;;  %v3662_v31 = vld [vmem:[%s4824_s15 + $0x1] ss:$0 sm:$0xff] }
 0xfb4   : > { %v2510_v35 = vmul.f32 0.044715, %v2506_v33  ;;  %v2511_v36 = vmul.f32 0.044715, %v2507_v34 }
 0xfb6   : > { %v2514_v38 = vadd.f32 %v2510_v35, %v2484_v26  ;;  %v2515_v39 = vadd.f32 %v2511_v36, %v2498_v6 }
 0xfb8   : > { %v2518_v40 = vmul.f32 0.7978846, %v2514_v38  ;;  %v2519_v29 = vmul.f32 0.7978846, %v2515_v39  ;;  %v3754_v12 = vpop.eup %3753 }
 0xfb9   : > { %v3756_v42 = vpop.eup %3755  ;;  %v2524_v43 = vadd.f32 1.0, %v3754_v12 }
 0xfba   : > { %3757 = vtanh.f32 %v2518_v40  ;;  %v2525_v44 = vadd.f32 1.0, %v3756_v42 }
 0xfbb   : > { %3759 = vtanh.f32 %v2519_v29  ;;  %v2528_v46 = vmul.f32 0.5, %v2524_v43 }
 0xfbc   : > { %v2529_v49 = vmul.f32 0.5, %v2525_v44 }
 0xfbd   : > { %v2532_v53 = vmul.f32 %v2528_v46, %v2482_v13 }
 0xfbe   : > { %v2533_v56 = vmul.f32 %v2529_v49, %v2496_v25 }
 0xfc0   : > { %v3758_v52 = vpop.eup %3757 }
 0xfc1   : > { %v3760_v45 = vpop.eup %3759  ;;  %v2526_v48 = vadd.f32 1.0, %v3758_v52 }
 0xfc2   : > { %v2527_v27 = vadd.f32 1.0, %v3760_v45 }
 0xfc3   : > { %v2530_v51 = vmul.f32 0.5, %v2526_v48 }
 0xfc4   : > { %v2531_v28 = vmul.f32 0.5, %v2527_v27 }
 0xfc5   : > { %v2534_v37 = vmul.f32 %v2530_v51, %v2484_v26 }
 0xfc6   : > { %v2535_v41 = vmul.f32 %v2531_v28, %v2498_v6 }
 0xfc7   : > { %v2536_v57 = vpack.c.bf16 %v2534_v37, %v2532_v53 }
 0xfc8   : > { %v2537_v58 = vpack.c.bf16 %v2535_v41, %v2533_v56 }
 0xfc9   : > { %2680 = vmatmul.bf16.vlgmr.msrb.gmra.mxu0 %v2536_v57 }
 0xfca   : > { %2694 = vmatmul.bf16.vlgmr.msra.gmra.mxu1 %v2537_v58 }
0x1046   : > { %v2681_v59 = vpop.f32.mrf.mxu0 }
0x1047   : > { %v2682_v60 = vadd.f32 %v3660_v30, %v2681_v59  ;;  %v2695_v1 = vpop.f32.mrf.mxu1 }
0x1049   : > { %v2696_v2 = vadd.f32 %v2695_v1, %v2682_v60 }
0x104b   : > { %v2700_v61 = vadd.f32 %v2696_v2, %v4729_v11 }
0x104d   : > { %2706 = vadd.xlane.f32.xlu0 %v2700_v61 }
0x104e   : > { %v2683_v62 = vpop.f32.mrf.mxu0 }
0x104f   : > { %v2684_v63 = vadd.f32 %v3660_v30, %v2683_v62  ;;  %v2697_v0 = vpop.f32.mrf.mxu1 }
0x1051   : > { %v2698_v3 = vadd.f32 %v2697_v0, %v2684_v63 }
0x1053   : > { %v2701_v4 = vadd.f32 %v2698_v3, %v4731_v15 }
0x1055   : > { %2708 = vadd.xlane.f32.xlu1 %v2701_v4 }
0x10c0   : > { %v2707_v5 = vpop.xlane.xlu0 %2706 }
0x10c1   : > { %v2710_v7 = vmul.f32 %v2707_v5, %v3919_v8 }
0x10c3   : > { %v2712_v9 = vsub.f32 %v2700_v61, %v2710_v7 }
0x10c5   : > { %v2714_v10 = vmul.f32 %v2712_v9, %v2712_v9 }
0x10c7   : > { %2716 = vadd.xlane.f32.xlu2 %v2714_v10 }
0x10c8   : > { %v2709_v54 = vpop.xlane.xlu1 %2708 }
0x10c9   : > { %v2711_v55 = vmul.f32 %v2709_v54, %v3919_v8 }
0x10cb   : > { %v2713_v13 = vsub.f32 %v2701_v4, %v2711_v55 }
0x10cd   : > { %v2715_v25 = vmul.f32 %v2713_v13, %v2713_v13 }
0x10cf   : > { %2718 = vadd.xlane.f32.xlu0 %v2715_v25 }
0x113a   : > { %v2717_v11 = vpop.xlane.xlu2 %2716 }
0x113b   : > { %v2720_v14 = vmul.f32 %v2717_v11, %v3919_v8 }
0x113d   : > { %v2722_v16 = vadd.f32 1e-12, %v2720_v14 }
0x113f   : > { %3761 = vrsqrt.f32 %v2722_v16  ;;  %vm2730_vm0 = vweird.f32 %v2722_v16 }
0x1142   : > { %v2719_v17 = vpop.xlane.xlu0 %2718 }
0x1143   : > { %v2721_v15 = vmul.f32 %v2719_v17, %v3919_v8 }
0x1145   : > { %v3762_v18 = vpop.eup %3761  ;;  %v2723_v19 = vadd.f32 1e-12, %v2721_v15 }
0x1146   : > { %v2725_v20 = vmul.f32 %v3762_v18, %v2722_v16  ;;  %vm2731_vm15 = vweird.f32 %v3762_v18 }
0x1147   : > { %3763 = vrsqrt.f32 %v2723_v19  ;;  %vm2732_vm1 = vmor %vm2730_vm0, %vm2731_vm15  ;;  %vm2740_vm3 = vweird.f32 %v2723_v19 }
0x1148   : > { %v2726_v21 = vmul.f32 %v3762_v18, %v2725_v20 }
0x114a   : > { %v2727_v22 = vmul.f32 0.5, %v2726_v21 }
0x114c   : > { %v2728_v23 = vsub.f32 1.5, %v2727_v22 }
0x114d   : > { %v3764_v24 = vpop.eup %3763 }
0x114e   : > { %v2729_v26 = vmul.f32 %v3762_v18, %v2728_v23  ;;  %v2735_v6 = vmul.f32 %v3764_v24, %v2723_v19  ;;  %vm2741_vm2 = vweird.f32 %v3764_v24 }
0x114f   : > { %vm2742_vm4 = vmor %vm2740_vm3, %vm2741_vm2 }
0x1150   : > { %v2733_v50 = vsel %vm2732_vm1, %v3762_v18, %v2729_v26  ;;  %v2736_v8 = vmul.f32 %v3764_v24, %v2735_v6 }
0x1151   : > { %v2744_v32 = vmul.f32 %v2733_v50, %v2712_v9 }
0x1152   : > { %v2737_v33 = vmul.f32 0.5, %v2736_v8 }
0x1153   : > { %v2749_v34 = vmul.f32 %v3661_v47, %v2744_v32 }
0x1154   : > { %v2738_v35 = vsub.f32 1.5, %v2737_v33 }
0x1155   : > { %v2754_v36 = vadd.f32 %v3662_v31, %v2749_v34 }
0x1156   : > { %v2739_v38 = vmul.f32 %v3764_v24, %v2738_v35 }
0x1157   : > { %2756 = vst [vmem:[%s552_s22] sm:$0xff] %v2754_v36 }
0x1158   : > { %v2743_v39 = vsel %vm2742_vm4, %v3764_v24, %v2739_v38 }
0x1159   : > { %v2745_v40 = vmul.f32 %v2743_v39, %v2713_v13 }
0x115b   : > { %v2750_v29 = vmul.f32 %v3661_v47, %v2745_v40 }
0x115d   : > { %v2755_v12 = vadd.f32 %v3662_v31, %v2750_v29 }
0x115f   : > { %2757 = vst [vmem:[%s552_s22 + $0x8] sm:$0xff] %v2755_v12 }
0x1160 PF: > { %s27_s21 = sadd.s32 1, %s3805_s21  }
0x1161   : > { %p24_p7 = scmp.ge.s32.totalorder %s27_s21, 4  }
0x1163   :  { %26 = sbr.rel (!%p24_p7) target bundleno = 3 (0x3), region = 134 }
0x1168   :  { %2779 = vsyncpa [#allocation3], 1 }
0x1169   :  { %2781 = vsyncpa [#allocation3 + $0x1], 1 }

// kernel: _lambda_.3
= control target key start
LH: loop header
LB: loop body
LE: loop exit
PB: predicated region body
PF: predicated region fallthrough
CT: control target
= control target key end

     0   :  { %s6875_s6 = smov 1   ;;  %s6876_s10 = smov 2   ;;  %s8058_s0 = inlined_call_operand.smem [shape: u32[31], index: -1, kind: input, shape index: {}] }
   0x1   :  { %s6936_s5 = sld [smem:[%s8058_s0]]   ;;  %s6877_s14 = smov 3  }
   0x2   :  { %s6941_s9 = sld [smem:[%s8058_s0 + %s6875_s6]]   ;;  %s6878_s18 = smov 4  }
   0x3   :  { %s6946_s13 = sld [smem:[%s8058_s0 + %s6876_s10]]   ;;  %s6879_s22 = smov 5  }
   0x4   :  { %s6951_s17 = sld [smem:[%s8058_s0 + %s6877_s14]]   ;;  %s6880_s26 = smov 6  }
   0x5   :  { %s6956_s21 = sld [smem:[%s8058_s0 + %s6878_s18]]   ;;  %s6881_s30 = smov 7  }
   0x6   :  { %s6961_s25 = sld [smem:[%s8058_s0 + %s6879_s22]]   ;;  %s6882_s4 = smov 8  }
   0x7   :  { %8098 = sst [smem:[#allocation43_spill]] %s6936_s5  ;;  %s6883_s10 = smov 9  }
   0x8   :  { %8099 = sst [smem:[#allocation44_spill]] %s6941_s9  ;;  %s6884_s15 = smov 10  }
   0x9   :  { %8100 = sst [smem:[#allocation45_spill]] %s6946_s13  ;;  %s6885_s20 = smov 11  }
   0xa   :  { %8101 = sst [smem:[#allocation46_spill]] %s6951_s17  ;;  %s6887_s1 = smov 13  }
   0xb   :  { %8102 = sst [smem:[#allocation47_spill]] %s6956_s21  ;;  %s6888_s7 = smov 14  }
   0xc   :  { %8103 = sst [smem:[#allocation48_spill]] %s6961_s25  ;;  %s6890_s22 = smov 16  }
   0xd   :  { %s6966_s29 = sld [smem:[%s8058_s0 + %s6880_s26]]   ;;  %s6886_s26 = smov 12  }
   0xe   :  { %s6971_s3 = sld [smem:[%s8058_s0 + %s6881_s30]]   ;;  %s6891_s28 = smov 17  }
   0xf   :  { %s6976_s8 = sld [smem:[%s8058_s0 + %s6882_s4]]  }
  0x10   :  { %s6981_s14 = sld [smem:[%s8058_s0 + %s6883_s10]]  }
  0x11   :  { %s6986_s19 = sld [smem:[%s8058_s0 + %s6884_s15]]   ;;  %s6889_s15 = smov 15  }
  0x12   :  { %s6991_s24 = sld [smem:[%s8058_s0 + %s6885_s20]]  }
  0x13   :  { %8104 = sst [smem:[#allocation49_spill]] %s6966_s29 }
  0x14   :  { %8105 = sst [smem:[#allocation50_spill]] %s6971_s3 }
  0x15   :  { %8106 = sst [smem:[#allocation51_spill]] %s6976_s8 }
  0x16   :  { %8107 = sst [smem:[#allocation52_spill]] %s6981_s14 }
  0x17   :  { %8108 = sst [smem:[#allocation53_spill]] %s6986_s19 }
  0x18   :  { %8109 = sst [smem:[#allocation54_spill]] %s6991_s24 }
  0x19   :  { %s6996_s30 = sld [smem:[%s8058_s0 + %s6886_s26]]  }
  0x1a   :  { %s7001_s6 = sld [smem:[%s8058_s0 + %s6887_s1]]  }
  0x1b   :  { %s7006_s12 = sld [smem:[%s8058_s0 + %s6888_s7]]   ;;  %s6892_s7 = smov 18  }
  0x1c   :  { %s7011_s20 = sld [smem:[%s8058_s0 + %s6889_s15]]   ;;  %s6893_s15 = smov 19  }
  0x1d   :  { %s7016_s27 = sld [smem:[%s8058_s0 + %s6890_s22]]   ;;  %s6894_s22 = smov 20  }
  0x1e   :  { %s7021_s4 = sld [smem:[%s8058_s0 + %s6891_s28]]   ;;  %s6895_s28 = smov 21  }
  0x1f   :  { %8110 = sst [smem:[#allocation55_spill]] %s6996_s30 }
  0x20   :  { %8111 = sst [smem:[#allocation56_spill]] %s7001_s6 }
  0x21   :  { %8112 = sst [smem:[#allocation57_spill]] %s7006_s12 }
  0x22   :  { %8113 = sst [smem:[#allocation58_spill]] %s7011_s20 }
  0x23   :  { %8114 = sst [smem:[#allocation59_spill]] %s7016_s27 }
  0x24   :  { %8115 = sst [smem:[#allocation60_spill]] %s7021_s4 }
  0x25   :  { %s7026_s17 = sld [smem:[%s8058_s0 + %s6892_s7]]   ;;  %s6896_s7 = smov 22  }
  0x26   :  { %s7031_s20 = sld [smem:[%s8058_s0 + %s6893_s15]]   ;;  %s6897_s15 = smov 23  }
  0x27   :  { %s7036_s27 = sld [smem:[%s8058_s0 + %s6894_s22]]   ;;  %s6898_s22 = smov 24  }
  0x28   :  { %s7041_s4 = sld [smem:[%s8058_s0 + %s6895_s28]]   ;;  %s6899_s28 = smov 25  }
  0x29   :  { %s7051_s30 = sld [smem:[%s8058_s0 + %s6897_s15]]   ;;  %s6901_s15 = smov 27  }
  0x2a   :  { %s7056_s13 = sld [smem:[%s8058_s0 + %s6898_s22]]   ;;  %s6902_s22 = smov 28  }
  0x2b   :  { %8116 = sst [smem:[#allocation61_spill]] %s7026_s17 }
  0x2c   :  { %8117 = sst [smem:[#allocation62_spill]] %s7031_s20 }
  0x2d   :  { %s7046_s17 = sld [smem:[%s8058_s0 + %s6896_s7]]   ;;  %s6900_s7 = smov 26  }
  0x2e   :  { %8118 = sst [smem:[#allocation63_spill]] %s7041_s4 }
  0x2f   :  { %s7061_s14 = sld [smem:[%s8058_s0 + %s6899_s28]]   ;;  %s6903_s28 = smov 29  }
  0x30   :  { %8120 = sst [smem:[#allocation65_spill]] %s7056_s13 }
  0x31   :  { %s7066_s24 = sld [smem:[%s8058_s0 + %s6900_s7]]   ;;  %s6904_s7 = smov 30  }
  0x32   :  { %s7071_s3 = sld [smem:[%s8058_s0 + %s6901_s15]]  }
  0x33   :  { %8119 = sst [smem:[#allocation64_spill]] %s7046_s17 }
  0x34   :  { %s7076_s29 = sld [smem:[%s8058_s0 + %s6902_s22]]  }
  0x35   :  { %8121 = sst [smem:[#allocation66_spill]] %s7061_s14 }
  0x36   :  { %s7081_s25 = sld [smem:[%s8058_s0 + %s6903_s28]]  }
  0x37   :  { %s7086_s9 = sld [smem:[%s8058_s0 + %s6904_s7]]  }
  0x38   :  { %8122 = sst [smem:[#allocation67_spill]] %s7071_s3 }
  0x3c   :  { %8123 = sst [smem:[#allocation68_spill]] %s7081_s25 }
  0x3d   :  { %8124 = sst [smem:[#allocation69_spill]] %s7086_s9 }
  0x3e   :  { %67 = vsyncpa [#allocation3], 0 }
  0x3f   :  { %69 = vsyncpa [#allocation3 + $0x1], 0 }
  0x40   :  { %70 = vsyncpa [#allocation6], 0 }
  0x41   :  { %72 = vsyncpa [#allocation6 + $0x1], 0 }
  0x42   :  { %73 = vsyncpa [#allocation9], 0 }
  0x43   :  { %74 = vsyncpa [#allocation12], 0 }
  0x44   :  { %75 = vsyncpa [#allocation15], 0 }
  0x45   :  { %76 = vsyncpa [#allocation18], 0 }
  0x46   :  { %77 = vsyncpa [#allocation21], 0 }
  0x47   :  { %78 = vsyncpa [#allocation24], 0 }
  0x48   :  { %79 = vsyncpa [#allocation27], 0 }
  0x49   :  { %80 = vsyncpa [#allocation4], 0 }
  0x4a   :  { %82 = vsyncpa [#allocation4 + $0x1], 0 }
  0x4b   :  { %83 = vsyncpa [#allocation30], 0 }
  0x4c   :  { %85 = vsyncpa [#allocation30 + $0x1], 0  ;;  %s7088_s15 = smov 0   ;;  %s7090_s16 = smov 0  }
  0x4d   :  { %s7092_s0 = smov 0   ;;  %s7094_s18 = smov 0  }
  0x4e LB: > { %s8125_s20 = sld [smem:[#allocation62_spill]]  ;;  %s7112_s23 = sadd.s32 4294967295, %s6873_s18   ;;  %s6865_s16 = sphi %s7090_s16, %s8170_s16   ;;  %s6861_s15 = sphi %s7088_s15, %s8169_s15   ;;  %s6873_s18 = sphi %s7094_s18, %s8172_s18   ;;  %s6869_s0 = sphi %s7092_s0, %s8171_s0  }
  0x4f   : > { %s8126_s19 = sld [smem:[#allocation53_spill]]  ;;  %p4708_p0 = scmp.ge.s32.totalorder %s6873_s18, 1 }
  0x50   : > { %s8127_s17 = sld [smem:[#allocation64_spill]]  ;;  %p112_p1 = scmp.eq.s32.totalorder %s7112_s23, 0 }
  0x51   : > { %s8128_s14 = sld [smem:[#allocation66_spill]]  ;;  %p777_p2 = scmp.lt.s32.totalorder %s6873_s18, 3 }
  0x52   : > { %s8129_s13 = sld [smem:[#allocation65_spill]]  ;;  %s6905_s28 = smov [#allocation7]  }
  0x53   : > { %s8130_s12 = sld [smem:[#allocation57_spill]]  ;;  %p7117_p3 = pnand %p4708_p0, %p777_p2 }
  0x54   : > { %s8131_s6 = sld [smem:[#allocation56_spill]]  ;;  %s7121_s1 = sshll.u32 %s6905_s28, 4  ;;  %s803_s1 = int_to_ptr.vmem [resolvable:$true] %s7121_s1 }
  0x55   : > { %s8132_s4 = sld [smem:[#allocation63_spill]]  ;;  %p5984_p4 = pneg %p7117_p3 }
  0x56   : > { %s8133_s3 = sld [smem:[#allocation67_spill]]  ;;  %s817_s2 = sshll.u32 %s8126_s19, 4  ;;  %s7134_s2 = int_to_ptr.hbm [resolvable:$true] %s817_s2 }
  0x57   : > { %s8134_s8 = sld [smem:[#allocation51_spill]]  ;;  %p7130_p6 = pnand %p5984_p4, %p112_p1 }
  0x58   : > { %s8135_s26 = scalar_select %p7117_p3, 1, 0 }
  0x59   : > { %s851_s10 = sshll.u32 %s8130_s12, 4  ;;  %s6906_s11 = smov [#allocation8]   ;;  %s7157_s10 = int_to_ptr.hbm [resolvable:$true] %s851_s10 }
  0x5a   : > { %8136 = sst [smem:[#allocation70_spill]] %s8135_s26  ;;  %s7137_s28 = sshll.u32 %s6906_s11, 4  ;;  %s820_s28 = int_to_ptr.vmem [resolvable:$true] %s7137_s28 }
  0x5b   : > { %p7142_p8 = pneg %p7130_p6 }
  0x5d   : > { %s800_s22 = sshll.u32 %s8134_s8, 4  ;;  %s6266_s21 = scalar_lea.hbm %s8134_s8, 2  ;;  %s7109_s22 = int_to_ptr.hbm [resolvable:$true] %s800_s22 }
  0x5e   : > { %s6259_s25 = sshra.s32 %s7109_s22, 4  ;;  %s6260_s25 = int_to_ptr.hbm [resolvable:$true] %s6259_s25 }
  0x5f   : > { %s6261_s9 = scalar_lea.hbm %s6260_s25, 2  ;;  %p6267_p11 = scmp.lt.s32.totalorder %s6260_s25, %s8134_s8 }
  0x60   : > { %p6262_p7 = scmp.ne.s32.totalorder %s6260_s25, %s6261_s9  ;;  %p6268_p12 = scmp.lt.s32.totalorder %s6266_s21, %s6261_s9 }
  0x62   : > { %p6264_p9 = pnand %p7142_p8, %p6262_p7  ;;  %p6269_p13 = por %p6268_p12, %p6267_p11 }
  0x64   : > { %p6265_p10 = pneg %p6264_p9 }
  0x66   : > { %p6270_p0 = pnand %p6269_p13, %p6265_p10 }
  0x68   : > { %6273 = shalt.err (!%p6270_p0)
}
  0x69   : > { %s8075_s11 = smov 16   ;;  %s8077_s5 = smov 1  }
  0x6a   : > { %5987 = dma.hbm_to_vmem [thread:$0]  (!%p7130_p6), %s7109_s22, 32, %s803_s1, [#allocation6], %s8075_s11, %s8075_s11, %s8077_s5  }
  0x6b   : > { %s6289_s9 = sshra.s32 %s7134_s2, 4  ;;  %s6296_s25 = scalar_lea.hbm %s8126_s19, 2  ;;  %s6290_s9 = int_to_ptr.hbm [resolvable:$true] %s6289_s9 }
  0x6c   : > { %s6291_s21 = scalar_lea.hbm %s6290_s9, 2  ;;  %p6297_p9 = scmp.lt.s32.totalorder %s6290_s9, %s8126_s19 }
  0x6d   : > { %p6292_p2 = scmp.ne.s32.totalorder %s6290_s9, %s6291_s21  ;;  %p6298_p10 = scmp.lt.s32.totalorder %s6296_s25, %s6291_s21 }
  0x6f   : > { %p6294_p4 = pnand %p6292_p2, %p7142_p8  ;;  %p6299_p11 = por %p6298_p10, %p6297_p9 }
  0x71   : > { %p6295_p7 = pneg %p6294_p4 }
  0x73   : > { %p6300_p12 = pnand %p6299_p11, %p6295_p7 }
  0x75   : > { %6303 = shalt.err (!%p6300_p12)
}
  0x76   : > { %5990 = dma.hbm_to_vmem [thread:$0]  (!%p7130_p6), %s7134_s2, 32, %s820_s28, [#allocation9], %s8075_s11, %s8075_s11, %s8077_s5  }
  0x77   : > { %s891_s22 = sshll.u32 %s7036_s27, 4  ;;  %s6909_s1 = smov [#allocation11]   ;;  %s7171_s22 = int_to_ptr.hbm [resolvable:$true] %s891_s22 }
  0x78   : > { %s853_s8 = sshll.u32 %s6909_s1, 4  ;;  %s6319_s9 = sshra.s32 %s7157_s10, 4  ;;  %s854_s8 = int_to_ptr.vmem [resolvable:$true] %s853_s8  ;;  %s6320_s9 = int_to_ptr.hbm [resolvable:$true] %s6319_s9 }
  0x79   : > { %s6321_s21 = scalar_lea.hbm %s6320_s9, 2  ;;  %s6326_s25 = scalar_lea.hbm %s8130_s12, 2 }
  0x7a   : > { %p6322_p13 = scmp.ne.s32.totalorder %s6320_s9, %s6321_s21  ;;  %p6327_p4 = scmp.lt.s32.totalorder %s6320_s9, %s8130_s12 }
  0x7b   : > { %p6328_p7 = scmp.lt.s32.totalorder %s6326_s25, %s6321_s21 }
  0x7c   : > { %p6324_p0 = pnand %p6322_p13, %p7142_p8 }
  0x7d   : > { %p6329_p9 = por %p6328_p7, %p6327_p4 }
  0x7e   : > { %p6325_p2 = pneg %p6324_p0 }
  0x80   : > { %p6330_p10 = pnand %p6329_p9, %p6325_p2 }
  0x82   : > { %6333 = shalt.err (!%p6330_p10)
}
  0x83   : > { %5996 = dma.hbm_to_vmem [thread:$0]  (!%p7130_p6), %s7157_s10, 32, %s854_s8, [#allocation12], %s8075_s11, %s8075_s11, %s8077_s5  }
  0x84   : > { %s6910_s2 = smov [#allocation14]   ;;  %s919_s1 = sshll.u32 %s8127_s17, 4  ;;  %s7185_s1 = int_to_ptr.hbm [resolvable:$true] %s919_s1 }
  0x85   : > { %s893_s28 = sshll.u32 %s6910_s2, 4  ;;  %s6349_s9 = sshra.s32 %s7171_s22, 4  ;;  %s894_s28 = int_to_ptr.vmem [resolvable:$true] %s893_s28  ;;  %s6350_s9 = int_to_ptr.hbm [resolvable:$true] %s6349_s9 }
  0x86   : > { %s6351_s21 = scalar_lea.hbm %s6350_s9, 2  ;;  %s6356_s25 = scalar_lea.hbm %s7036_s27, 2 }
  0x87   : > { %p6352_p11 = scmp.ne.s32.totalorder %s6350_s9, %s6351_s21  ;;  %p6357_p0 = scmp.lt.s32.totalorder %s6350_s9, %s7036_s27 }
  0x88   : > { %p6358_p2 = scmp.lt.s32.totalorder %s6356_s25, %s6351_s21 }
  0x89   : > { %p6354_p12 = pnand %p6352_p11, %p7142_p8 }
  0x8a   : > { %p6359_p4 = por %p6358_p2, %p6357_p0 }
  0x8b   : > { %p6355_p13 = pneg %p6354_p12 }
  0x8d   : > { %p6360_p7 = pnand %p6359_p4, %p6355_p13 }
  0x8f   : > { %6363 = shalt.err (!%p6360_p7)
}
  0x90   : > { %6002 = dma.hbm_to_vmem [thread:$0]  (!%p7130_p6), %s7171_s22, 32, %s894_s28, [#allocation15], %s8075_s11, %s8075_s11, %s8077_s5  }
  0x91   : > { %s947_s8 = sshll.u32 %s8129_s13, 4  ;;  %s6911_s10 = smov [#allocation17]   ;;  %s7199_s8 = int_to_ptr.hbm [resolvable:$true] %s947_s8 }
  0x92   : > { %s921_s2 = sshll.u32 %s6911_s10, 4  ;;  %s6379_s9 = sshra.s32 %s7185_s1, 4  ;;  %s922_s2 = int_to_ptr.vmem [resolvable:$true] %s921_s2  ;;  %s6380_s9 = int_to_ptr.hbm [resolvable:$true] %s6379_s9 }
  0x93   : > { %s6381_s21 = scalar_lea.hbm %s6380_s9, 2  ;;  %s6386_s25 = scalar_lea.hbm %s8127_s17, 2 }
  0x94   : > { %p6382_p9 = scmp.ne.s32.totalorder %s6380_s9, %s6381_s21  ;;  %p6387_p12 = scmp.lt.s32.totalorder %s6380_s9, %s8127_s17 }
  0x95   : > { %p6388_p13 = scmp.lt.s32.totalorder %s6386_s25, %s6381_s21 }
  0x96   : > { %p6384_p10 = pnand %p6382_p9, %p7142_p8 }
  0x97   : > { %p6389_p0 = por %p6388_p13, %p6387_p12 }
  0x98   : > { %p6385_p11 = pneg %p6384_p10 }
  0x9a   : > { %p6390_p2 = pnand %p6389_p0, %p6385_p11 }
  0x9c   : > { %6393 = shalt.err (!%p6390_p2)
}
  0x9d   : > { %6008 = dma.hbm_to_vmem [thread:$0]  (!%p7130_p6), %s7185_s1, 32, %s922_s2, [#allocation18], %s8075_s11, %s8075_s11, %s8077_s5  }
  0x9e   : > { %s6912_s22 = smov [#allocation20]   ;;  %s974_s10 = sshll.u32 %s7066_s24, 4  ;;  %s7213_s10 = int_to_ptr.hbm [resolvable:$true] %s974_s10 }
  0x9f   : > { %s949_s28 = sshll.u32 %s6912_s22, 4  ;;  %s6409_s9 = sshra.s32 %s7199_s8, 4  ;;  %s950_s28 = int_to_ptr.vmem [resolvable:$true] %s949_s28  ;;  %s6410_s9 = int_to_ptr.hbm [resolvable:$true] %s6409_s9 }
  0xa0   : > { %s6411_s21 = scalar_lea.hbm %s6410_s9, 2  ;;  %s6416_s25 = scalar_lea.hbm %s8129_s13, 2 }
  0xa1   : > { %p6412_p4 = scmp.ne.s32.totalorder %s6410_s9, %s6411_s21  ;;  %p6417_p10 = scmp.lt.s32.totalorder %s6410_s9, %s8129_s13 }
  0xa2   : > { %p6418_p11 = scmp.lt.s32.totalorder %s6416_s25, %s6411_s21 }
  0xa3   : > { %p6414_p7 = pnand %p6412_p4, %p7142_p8 }
  0xa4   : > { %p6419_p12 = por %p6418_p11, %p6417_p10 }
  0xa5   : > { %p6415_p9 = pneg %p6414_p7 }
  0xa7   : > { %p6420_p13 = pnand %p6419_p12, %p6415_p9 }
  0xa9   : > { %6423 = shalt.err (!%p6420_p13)
}
  0xaa   : > { %6014 = dma.hbm_to_vmem [thread:$0]  (!%p7130_p6), %s7199_s8, 32, %s950_s28, [#allocation21], %s8075_s11, %s8075_s11, %s8077_s5  }
  0xab   : > { %s837_s1 = sshll.u32 %s8131_s6, 4  ;;  %s6913_s2 = smov [#allocation23]   ;;  %s7227_s1 = int_to_ptr.hbm [resolvable:$true] %s837_s1 }
  0xac   : > { %s976_s22 = sshll.u32 %s6913_s2, 4  ;;  %s6439_s9 = sshra.s32 %s7213_s10, 4  ;;  %s977_s22 = int_to_ptr.vmem [resolvable:$true] %s976_s22  ;;  %s6440_s9 = int_to_ptr.hbm [resolvable:$true] %s6439_s9 }
  0xad   : > { %s6441_s21 = scalar_lea.hbm %s6440_s9, 1  ;;  %s6446_s25 = scalar_lea.hbm %s7066_s24, 1 }
  0xae   : > { %p6442_p0 = scmp.ne.s32.totalorder %s6440_s9, %s6441_s21  ;;  %p6447_p7 = scmp.lt.s32.totalorder %s6440_s9, %s7066_s24 }
  0xaf   : > { %p6448_p9 = scmp.lt.s32.totalorder %s6446_s25, %s6441_s21 }
  0xb0   : > { %p6444_p2 = pnand %p6442_p0, %p7142_p8 }
  0xb1   : > { %p6449_p10 = por %p6448_p9, %p6447_p7 }
  0xb2   : > { %p6445_p4 = pneg %p6444_p2 }
  0xb4   : > { %p6450_p11 = pnand %p6449_p10, %p6445_p4 }
  0xb6   : > { %6453 = shalt.err (!%p6450_p11)
}
  0xb7   : > { %6020 = dma.hbm_to_vmem [thread:$0]  (!%p7130_p6), %s7213_s10, 16, %s977_s22, [#allocation24]  }
  0xb8   : > { %s6914_s8 = smov [#allocation10]   ;;  %s6469_s2 = sshra.s32 %s7227_s1, 4  ;;  %s6470_s2 = int_to_ptr.hbm [resolvable:$true] %s6469_s2 }
  0xb9   : > { %s839_s28 = sshll.u32 %s6914_s8, 4  ;;  %s6471_s11 = scalar_lea.hbm %s6470_s2, 128  ;;  %s840_s28 = int_to_ptr.vmem [resolvable:$true] %s839_s28 }
  0xba   : > { %p6472_p12 = scmp.ne.s32.totalorder %s6470_s2, %s6471_s11  ;;  %s6476_s9 = scalar_lea.hbm %s8131_s6, 128 }
  0xbb   : > { %p6477_p2 = scmp.lt.s32.totalorder %s6470_s2, %s8131_s6  ;;  %p6478_p4 = scmp.lt.s32.totalorder %s6476_s9, %s6471_s11 }
  0xbc   : > { %p6474_p13 = pnand %p6472_p12, %p7142_p8 }
  0xbd   : > { %p6479_p7 = por %p6478_p4, %p6477_p2 }
  0xbe   : > { %p6475_p0 = pneg %p6474_p13 }
  0xc0   : > { %p6480_p9 = pnand %p6479_p7, %p6475_p0 }
  0xc2   : > { %6483 = shalt.err (!%p6480_p9)
}
  0xc3   : > { %s8079_s21 = smov 64   ;;  %s8080_s10 = smov 4  }
  0xc4   : > { %5993 = dma.hbm_to_vmem [thread:$0]  (!%p7130_p6), %s7227_s1, 2048, %s840_s28, [#allocation9], %s8079_s21, %s8079_s21, %s8080_s10  }
  0xc5   : > { %s877_s22 = sshll.u32 %s8125_s20, 4  ;;  %s6917_s11 = smov [#allocation13]   ;;  %s878_s22 = int_to_ptr.hbm [resolvable:$true] %s877_s22 }
  0xc6   : > { %s879_s25 = sshll.u32 %s6917_s11, 4  ;;  %s905_s8 = sshll.u32 %s8132_s4, 4  ;;  %s880_s25 = int_to_ptr.vmem [resolvable:$true] %s879_s25  ;;  %s906_s8 = int_to_ptr.hbm [resolvable:$true] %s905_s8 }
  0xc7   : > { %s6499_s2 = sshra.s32 %s878_s22, 4  ;;  %s6506_s5 = scalar_lea.hbm %s8125_s20, 2  ;;  %s6500_s2 = int_to_ptr.hbm [resolvable:$true] %s6499_s2 }
  0xc8   : > { %s6501_s9 = scalar_lea.hbm %s6500_s2, 2  ;;  %p6507_p13 = scmp.lt.s32.totalorder %s6500_s2, %s8125_s20 }
  0xc9   : > { %p6502_p10 = scmp.ne.s32.totalorder %s6500_s2, %s6501_s9  ;;  %p6508_p0 = scmp.lt.s32.totalorder %s6506_s5, %s6501_s9 }
  0xcb   : > { %p6504_p11 = pnand %p6502_p10, %p7142_p8  ;;  %p6509_p2 = por %p6508_p0, %p6507_p13 }
  0xcd   : > { %p6505_p12 = pneg %p6504_p11 }
  0xcf   : > { %p6510_p4 = pnand %p6509_p2, %p6505_p12 }
  0xd1   : > { %6513 = shalt.err (!%p6510_p4)
}
  0xd2   : > { %s8139_s1 = smov 1   ;;  %s8140_s28 = smov 16  }
  0xd3   : > { %5999 = dma.hbm_to_vmem [thread:$0]  (!%p7130_p6), %s878_s22, 32, %s880_s25, [#allocation12], %s8140_s28, %s8140_s28, %s8139_s1  }
  0xd4   : > { %s6918_s11 = smov [#allocation16]   ;;  %s933_s10 = sshll.u32 %s7051_s30, 4  ;;  %s7260_s10 = int_to_ptr.hbm [resolvable:$true] %s933_s10 }
  0xd5   : > { %s907_s21 = sshll.u32 %s6918_s11, 4  ;;  %s6529_s5 = sshra.s32 %s906_s8, 4  ;;  %s908_s21 = int_to_ptr.vmem [resolvable:$true] %s907_s21  ;;  %s6530_s5 = int_to_ptr.hbm [resolvable:$true] %s6529_s5 }
  0xd6   : > { %s6531_s2 = scalar_lea.hbm %s6530_s5, 2  ;;  %s6536_s9 = scalar_lea.hbm %s8132_s4, 2 }
  0xd7   : > { %p6532_p7 = scmp.ne.s32.totalorder %s6530_s5, %s6531_s2  ;;  %p6537_p11 = scmp.lt.s32.totalorder %s6530_s5, %s8132_s4 }
  0xd8   : > { %p6538_p12 = scmp.lt.s32.totalorder %s6536_s9, %s6531_s2 }
  0xd9   : > { %p6534_p9 = pnand %p6532_p7, %p7142_p8 }
  0xda   : > { %p6539_p13 = por %p6538_p12, %p6537_p11 }
  0xdb   : > { %p6535_p10 = pneg %p6534_p9 }
  0xdd   : > { %p6540_p0 = pnand %p6539_p13, %p6535_p10 }
  0xdf   : > { %6543 = shalt.err (!%p6540_p0)
}
  0xe0   : > { %6005 = dma.hbm_to_vmem [thread:$0]  (!%p7130_p6), %s906_s8, 32, %s908_s21, [#allocation15], %s8140_s28, %s8140_s28, %s8139_s1  }
  0xe1   : > { %s962_s22 = sshll.u32 %s8128_s14, 4  ;;  %s6919_s25 = smov [#allocation19]   ;;  %s7272_s22 = int_to_ptr.hbm [resolvable:$true] %s962_s22 }
  0xe2   : > { %s935_s11 = sshll.u32 %s6919_s25, 4  ;;  %s6559_s5 = sshra.s32 %s7260_s10, 4  ;;  %s936_s11 = int_to_ptr.vmem [resolvable:$true] %s935_s11  ;;  %s6560_s5 = int_to_ptr.hbm [resolvable:$true] %s6559_s5 }
  0xe3   : > { %s6561_s2 = scalar_lea.hbm %s6560_s5, 2  ;;  %s6566_s9 = scalar_lea.hbm %s7051_s30, 2 }
  0xe4   : > { %p6562_p2 = scmp.ne.s32.totalorder %s6560_s5, %s6561_s2  ;;  %p6567_p9 = scmp.lt.s32.totalorder %s6560_s5, %s7051_s30 }
  0xe5   : > { %p6568_p10 = scmp.lt.s32.totalorder %s6566_s9, %s6561_s2 }
  0xe6   : > { %p6564_p4 = pnand %p6562_p2, %p7142_p8 }
  0xe7   : > { %p6569_p11 = por %p6568_p10, %p6567_p9 }
  0xe8   : > { %p6565_p7 = pneg %p6564_p4 }
  0xea   : > { %p6570_p12 = pnand %p6569_p11, %p6565_p7 }
  0xec   : > { %6573 = shalt.err (!%p6570_p12)
}
  0xed   : > { %6011 = dma.hbm_to_vmem [thread:$0]  (!%p7130_p6), %s7260_s10, 32, %s936_s11, [#allocation18], %s8140_s28, %s8140_s28, %s8139_s1  }
  0xee   : > { %s6920_s21 = smov [#allocation22]   ;;  %s985_s25 = sshll.u32 %s8133_s3, 4  ;;  %s7286_s25 = int_to_ptr.hbm [resolvable:$true] %s985_s25 }
  0xef   : > { %s964_s8 = sshll.u32 %s6920_s21, 4  ;;  %s6589_s5 = sshra.s32 %s7272_s22, 4  ;;  %s965_s8 = int_to_ptr.vmem [resolvable:$true] %s964_s8  ;;  %s6590_s5 = int_to_ptr.hbm [resolvable:$true] %s6589_s5 }
  0xf0   : > { %s6591_s2 = scalar_lea.hbm %s6590_s5, 1  ;;  %s6596_s9 = scalar_lea.hbm %s8128_s14, 1 }
  0xf1   : > { %p6592_p13 = scmp.ne.s32.totalorder %s6590_s5, %s6591_s2  ;;  %p6597_p4 = scmp.lt.s32.totalorder %s6590_s5, %s8128_s14 }
  0xf2   : > { %p6598_p7 = scmp.lt.s32.totalorder %s6596_s9, %s6591_s2 }
  0xf3   : > { %p6594_p0 = pnand %p6592_p13, %p7142_p8 }
  0xf4   : > { %p6599_p9 = por %p6598_p7, %p6597_p4 }
  0xf5   : > { %p6595_p2 = pneg %p6594_p0 }
  0xf7   : > { %p6600_p10 = pnand %p6599_p9, %p6595_p2 }
  0xf9   : > { %6603 = shalt.err (!%p6600_p10)
}
  0xfa   : > { %6017 = dma.hbm_to_vmem [thread:$0]  (!%p7130_p6), %s7272_s22, 16, %s965_s8, [#allocation21]  }
  0xfb   : > { %s1000_s10 = sshll.u32 %s7076_s29, 4  ;;  %s6921_s1 = smov [#allocation25]   ;;  %s7297_s10 = int_to_ptr.hbm [resolvable:$true] %s1000_s10 }
  0xfc   : > { %s987_s28 = sshll.u32 %s6921_s1, 4  ;;  %s6619_s11 = sshra.s32 %s7286_s25, 4  ;;  %s988_s28 = int_to_ptr.vmem [resolvable:$true] %s987_s28  ;;  %s6620_s11 = int_to_ptr.hbm [resolvable:$true] %s6619_s11 }
  0xfd   : > { %s6621_s21 = scalar_lea.hbm %s6620_s11, 64  ;;  %s6626_s5 = scalar_lea.hbm %s8133_s3, 64 }
  0xfe   : > { %p6622_p11 = scmp.ne.s32.totalorder %s6620_s11, %s6621_s21  ;;  %p6627_p0 = scmp.lt.s32.totalorder %s6620_s11, %s8133_s3 }
  0xff   : > { %p6628_p2 = scmp.lt.s32.totalorder %s6626_s5, %s6621_s21 }
 0x100   : > { %p6624_p12 = pnand %p6622_p11, %p7142_p8 }
 0x101   : > { %p6629_p4 = por %p6628_p2, %p6627_p0 }
 0x102   : > { %p6625_p13 = pneg %p6624_p12 }
 0x104   : > { %p6630_p7 = pnand %p6629_p4, %p6625_p13 }
 0x106   : > { %6633 = shalt.err (!%p6630_p7)
}
 0x107   : > { %s8141_s22 = smov 4   ;;  %s8142_s8 = smov 64  }
 0x108   : > { %6023 = dma.hbm_to_vmem [thread:$0]  (!%p7130_p6), %s7286_s25, 1024, %s988_s28, [#allocation24], %s8142_s8, %s8142_s8, %s8141_s22  }
 0x109   : > { %s6922_s2 = smov [#allocation26]   ;;  %s6649_s1 = sshra.s32 %s7297_s10, 4  ;;  %s6650_s1 = int_to_ptr.hbm [resolvable:$true] %s6649_s1 }
 0x10a   : > { %s1002_s9 = sshll.u32 %s6922_s2, 4  ;;  %s6651_s11 = scalar_lea.hbm %s6650_s1, 1  ;;  %s1003_s9 = int_to_ptr.vmem [resolvable:$true] %s1002_s9 }
 0x10b   : > { %p6652_p9 = scmp.ne.s32.totalorder %s6650_s1, %s6651_s11  ;;  %s6656_s21 = scalar_lea.hbm %s7076_s29, 1 }
 0x10c   : > { %p6657_p12 = scmp.lt.s32.totalorder %s6650_s1, %s7076_s29  ;;  %p6658_p13 = scmp.lt.s32.totalorder %s6656_s21, %s6651_s11 }
 0x10d   : > { %p6654_p10 = pnand %p6652_p9, %p7142_p8 }
 0x10e   : > { %p6659_p0 = por %p6658_p13, %p6657_p12 }
 0x10f   : > { %p6655_p11 = pneg %p6654_p10 }
 0x111   : > { %p6660_p2 = pnand %p6659_p0, %p6655_p11 }
 0x113   : > { %6663 = shalt.err (!%p6660_p2)
}
 0x114   : > { %6026 = dma.hbm_to_vmem [thread:$0]  (!%p7130_p6), %s7297_s10, 16, %s1003_s9, [#allocation27]  }
 0x115   : > { %s4707_s26 = sadd.s32 4294967294, %s6873_s18   ;;  %s7320_s25 = sadd.s32 1, %s6873_s18  }
 0x116   : > { %s95_s7 = ssub.s32 %s6873_s18, %s7320_s25  ;;  %s98_s28 = sadd.s32 1, %s6869_s0 }
 0x117   : > { %s8143_s5 = sld [smem:[#allocation43_spill]]  ;;  %p96_p8 = scmp.eq.s32.totalorder %s95_s7, 0 }
 0x118   : > { %p105_p4 = scmp.ne.s32.totalorder %s6869_s0, %s6865_s16  ;;  %p106_p7 = scmp.eq.s32.totalorder %s6873_s18, 0 }
 0x119   : > { %p111_p9 = scmp.ne.s32.totalorder %s6865_s16, %s6861_s15  ;;  %s8146_s2 = sld [smem:[#allocation47_spill]] }
 0x11a   : > { %s7331_s22 = scalar_select %p96_p8, %s6869_s0, %s98_s28  }
 0x11b   : > { %p7333_p10 = por %p106_p7, %p105_p4  ;;  %p7339_p6 = por %p112_p1, %p111_p9 }
 0x11c   : > { %p738_p11 = scmp.eq.s32.totalorder %s7112_s23, 1  ;;  %p744_p12 = scmp.eq.s32.totalorder %s4707_s26, 1 }
 0x11d   : > { %p6055_p13 = scmp.lt.s32.totalorder %s6873_s18, 2  ;;  %s1013_s9 = sand.u32 1, %s6869_s0  }
 0x11e   : > { %p7346_p0 = por %p738_p11, %p105_p4  ;;  %p7350_p2 = por %p744_p12, %p111_p9 }
 0x11f   : > { %s7354_s21 = sshll.u32 %s1013_s9, 3  ;;  %s4725_s7 = sshll.u32 %s6873_s18, 3 }
 0x120   : > { %s1021_s28 = scalar_lea.hbm %s8143_s5, %s4725_s7  ;;  %s1017_s3 = scalar_lea.vmem [#allocation2], %s7354_s21 }
 0x121   : > { %s1025_s4 = sshll.u32 %s1017_s3, 4  ;;  %s1023_s26 = sshll.u32 %s1021_s28, 4  ;;  %s1026_s4 = int_to_ptr.vmem [resolvable:$true] %s1025_s4  ;;  %s1024_s26 = int_to_ptr.hbm [resolvable:$true] %s1023_s26 }
 0x122   : > { %p7361_p8 = pnand %p6055_p13, %p7333_p10  ;;  %s1054_s12 = scalar_lea.hbm %s8146_s2, %s4725_s7 }
 0x123   : > { %s1046_s13 = sand.u32 1, %s6873_s18   ;;  %s1014_s14 = scalar_lea.sflag [#allocation3], %s1013_s9 }
 0x124   : > { %s6679_s17 = sshra.s32 %s1024_s26, 4  ;;  %p6683_p7 = pneg %p7361_p8  ;;  %s6680_s17 = int_to_ptr.hbm [resolvable:$true] %s6679_s17 }
 0x125   : > { %s6681_s19 = scalar_lea.hbm %s6680_s17, 8  ;;  %s6686_s3 = scalar_lea.hbm %s8143_s5, 16 }
 0x126   : > { %p6682_p4 = scmp.ne.s32.totalorder %s6680_s17, %s6681_s19  ;;  %p6687_p10 = scmp.lt.s32.totalorder %s6680_s17, %s8143_s5 }
 0x127   : > { %p6688_p12 = scmp.lt.s32.totalorder %s6686_s3, %s6681_s19 }
 0x128   : > { %p6684_p9 = pnand %p6683_p7, %p6682_p4 }
 0x129   : > { %p6689_p13 = por %p6688_p12, %p6687_p10 }
 0x12a   : > { %p6685_p11 = pneg %p6684_p9 }
 0x12c   : > { %p6690_p5 = pnand %p6689_p13, %p6685_p11 }
 0x12e   : > { %6693 = shalt.err (!%p6690_p5)
}
 0x12f   : > { %6030 = dma.hbm_to_vmem [thread:$0]  (!%p7361_p8), %s1024_s26, 128, %s1026_s4, %s1014_s14  }
 0x130   : > { %s1056_s8 = sshll.u32 %s1054_s12, 4  ;;  %s1050_s9 = scalar_lea.vmem [#allocation5], %s7354_s21  ;;  %s1057_s8 = int_to_ptr.hbm [resolvable:$true] %s1056_s8 }
 0x131   : > { %s1058_s7 = sshll.u32 %s1050_s9, 4  ;;  %s1047_s28 = scalar_lea.sflag [#allocation6], %s1046_s13  ;;  %s1059_s7 = int_to_ptr.vmem [resolvable:$true] %s1058_s7 }
 0x132   : > { %s6709_s20 = sshra.s32 %s1057_s8, 4  ;;  %s6716_s19 = scalar_lea.hbm %s8146_s2, 16  ;;  %s6710_s20 = int_to_ptr.hbm [resolvable:$true] %s6709_s20 }
 0x133   : > { %s6711_s17 = scalar_lea.hbm %s6710_s20, 8  ;;  %p6717_p11 = scmp.lt.s32.totalorder %s6710_s20, %s8146_s2 }
 0x134   : > { %p6712_p4 = scmp.ne.s32.totalorder %s6710_s20, %s6711_s17  ;;  %p6718_p10 = scmp.lt.s32.totalorder %s6716_s19, %s6711_s17 }
 0x136   : > { %p6714_p5 = pnand %p6712_p4, %p6683_p7  ;;  %p6719_p12 = por %p6718_p10, %p6717_p11 }
 0x138   : > { %p6715_p9 = pneg %p6714_p5 }
 0x13a   : > { %p6720_p13 = pnand %p6719_p12, %p6715_p9 }
 0x13c   : > { %6723 = shalt.err (!%p6720_p13)
}
 0x13d   : > { %6033 = dma.hbm_to_vmem [thread:$0]  (!%p7361_p8), %s1057_s8, 128, %s1059_s7, %s1047_s28  }
 0x13e   : > { %1067 = sbr.rel (%p7117_p3) target bundleno = 7321 (0x1c99), region = 136  ;;  %s7387_s13 = sand.u32 (!%p7117_p3), 1, %s6865_s16  }
 0x13f   : > { %s7390_s12 = sshll.u32 (!%p7117_p3), %s7387_s13, 3  ;;  %s1070_s20 = scalar_lea.sflag (!%p7117_p3), [#allocation3], %s7387_s13 }
 0x140   : > { %s1073_s4 = scalar_lea.vmem (!%p7117_p3), [#allocation2], %s7390_s12 }
 0x143   : > { %6812 = dma.done.wait (%p7339_p6), %s1070_s20, 128  }
 0x144   : > { %6814 = vsyncadd (%p7339_p6), %s1070_s20, 4294967168  ;;  %s1079_s6 = sand.u32 1, %s7112_s23   ;;  %s1083_s26 = scalar_lea.vmem [#allocation5], %s7390_s12 }
 0x145   : > { %s1080_s21 = scalar_lea.sflag [#allocation6], %s1079_s6 }
 0x146   : > { %6816 = dma.done.wait (%p7339_p6), %s1080_s21, 128  }
 0x147   : > { %6818 = vsyncadd (%p7339_p6), %s1080_s21, 4294967168 }
 0x148   : > { %6820 = dma.done.wait (%p112_p1), [#allocation6], 32  }
 0x149   : > { %6822 = vsyncadd (%p112_p1), [#allocation6], 4294967264 }
 0x14a   : > { %6824 = dma.done.wait (%p112_p1), [#allocation9], 2080  }
 0x14b   : > { %6826 = vsyncadd (%p112_p1), [#allocation9], 4294965216 }
 0x14c   : > { %6828 = dma.done.wait (%p112_p1), [#allocation12], 64  }
 0x14d   : > { %6830 = vsyncadd (%p112_p1), [#allocation12], 4294967232 }
 0x14e   : > { %6832 = dma.done.wait (%p112_p1), [#allocation15], 64  }
 0x14f   : > { %6834 = vsyncadd (%p112_p1), [#allocation15], 4294967232 }
 0x150   : > { %6836 = dma.done.wait (%p112_p1), [#allocation18], 64  }
 0x151   : > { %6838 = vsyncadd (%p112_p1), [#allocation18], 4294967232 }
 0x152   : > { %6840 = dma.done.wait (%p112_p1), [#allocation21], 48  }
 0x153   : > { %6842 = vsyncadd (%p112_p1), [#allocation21], 4294967248 }
 0x154   : > { %6844 = dma.done.wait (%p112_p1), [#allocation24], 1040  }
 0x155   : > { %6846 = vsyncadd (%p112_p1), [#allocation24], 4294966256 }
 0x156   : > { %6848 = dma.done.wait (%p112_p1), [#allocation27], 16  }
 0x157   : > { %6850 = vsyncadd (%p112_p1), [#allocation27], 4294967280  ;;  %s8151_s10 = sld [smem:[#allocation44_spill]]  ;;  %v1262_v0 = vld [vmem:[%s1073_s4] sm:$0xff]  ;;  %v6923_v3 = vmov 128.0   ;;  %vm1533_vm4 = vcmask 261120  }
 0x158   : > { %s8152_s3 = sld [smem:[#allocation48_spill]]  ;;  %6179 = vrcp.f32 %v6923_v3  ;;  %s6924_s9 = smov 64   ;;  %vm1571_vm5 = vcmask 1043456   ;;  %vm1555_vm7 = vcmask 64512   ;;  %vm1784_vm8 = vcmask 523264  }
 0x159   : > { %s8153_s8 = sld [smem:[#allocation49_spill]]  ;;  %s6925_s7 = smov 96   ;;  %vm1786_vm9 = vcmask 785408   ;;  %vm2147_vm15 = vcmask 130048  }
 0x15a   : > { %s6926_s28 = smov 32   ;;  %s8154_s17 = sld [smem:[#allocation50_spill]] }
 0x15b   : > { %s8155_s19 = sld [smem:[#allocation54_spill]]  ;;  %p1249_p1 = scmp.lt.s32.totalorder %s7112_s23, 1 }
 0x15c   : > { %s8156_s14 = sld [smem:[#allocation52_spill]] }
 0x15d   : > { %v1263_v1 = vld [vmem:[%s8151_s10] sm:$0xff]  ;;  %s8157_s20 = sld [smem:[#allocation45_spill]] }
 0x15e   : > { %v7437_v2 = vadd.f32 %v1263_v1, %v1262_v0  ;;  %v4835_v4 = vld [vmem:[%s8152_s3 + $0xa8] sm:$0xf]  ;;  %v5742_v5 = vld [vmem:[%s8152_s3 + $0xb0] sm:$0xf0]  ;;  %v5741_v6 = vld [vmem:[%s8152_s3 + $0xac] sm:$0xf]  ;;  %v6180_v13 = vpop.eup %6179 }
 0x15f   : > { %v4836_v7 = vor.u32 %v5742_v5, %v4835_v4  ;;  %v4837_v8 = vld [vmem:[%s8152_s3 + $0xb4] sm:$0xf0]  ;;  %v4843_v9 = vld [vmem:[%s8152_s3 + $0xb0] sm:$0xf]  ;;  %v5743_v10 = vld [vmem:[%s8152_s3 + $0xb8] sm:$0xf0]  ;;  %vm1277_vm0 = vweird.f32 %v6180_v13 }
 0x160   : > { %1270 = vadd.xlane.f32.xlu0 %v7437_v2  ;;  %v4840_v11 = vor.u32 %v5741_v6, %v4837_v8  ;;  %v4844_v12 = vor.u32 %v5743_v10, %v4843_v9  ;;  %v1273_v14 = vmul.f32 128.0, %v6180_v13  ;;  %v4823_v23 = vld [vmem:[%s8152_s3 + $0x90] sm:$0xf]  ;;  %v5739_v24 = vld [vmem:[%s8152_s3 + $0x98] sm:$0xf0]  ;;  %s7585_s4 = scalar_select %p1249_p1, %s7112_s23, 1 }
 0x161   : > { %1474 = vmatpush.bf16.msra.mxu0 %v4836_v7  ;;  %v5738_v25 = vld [vmem:[%s8152_s3 + $0x94] sm:$0xf]  ;;  %v4824_v26 = vor.u32 %v5739_v24, %v4823_v23  ;;  %v4825_v27 = vld [vmem:[%s8152_s3 + $0x9c] sm:$0xf0]  ;;  %v4831_v28 = vld [vmem:[%s8152_s3 + $0x98] sm:$0xf] }
 0x162   : > { %1487 = vmatpush.bf16.msra.mxu1 %v4840_v11  ;;  %1500 = vmatpush.bf16.msra.mxu2 %v4844_v12  ;;  %v1274_v15 = vsub.f32 1.0, %v1273_v14  ;;  %v5740_v29 = vld [vmem:[%s8152_s3 + $0xa0] sm:$0xf0]  ;;  %v4828_v30 = vor.u32 %v5738_v25, %v4825_v27  ;;  %v4811_v32 = vld [vmem:[%s8152_s3 + $0x78] sm:$0xf]  ;;  %s5719_s6 = sshll.u32 %s7585_s4, 4 }
 0x163   : > { %v4832_v31 = vor.u32 %v5740_v29, %v4831_v28  ;;  %v5736_v33 = vld [vmem:[%s8152_s3 + $0x80] sm:$0xf0]  ;;  %v5735_v34 = vld [vmem:[%s8152_s3 + $0x7c] sm:$0xf]  ;;  %v4813_v36 = vld [vmem:[%s8152_s3 + $0x84] sm:$0xf0]  ;;  %s1253_s21 = scalar_lea.vmem %s8157_s20, %s5719_s6 }
 0x164   : > { %v1275_v16 = vmul.f32 %v6180_v13, %v1274_v15  ;;  %v4812_v35 = vor.u32 %v5736_v33, %v4811_v32  ;;  %v4819_v37 = vld [vmem:[%s8152_s3 + $0x80] sm:$0xf]  ;;  %v5737_v38 = vld [vmem:[%s8152_s3 + $0x88] sm:$0xf0]  ;;  %v4816_v39 = vor.u32 %v5735_v34, %v4813_v36  ;;  %v5732_v43 = vld [vmem:[%s8152_s3 + $0x64] sm:$0xf] }
 0x165   : > { %1475 = vmatpush.bf16.msra.mxu0 %v4824_v26  ;;  %v4820_v40 = vor.u32 %v5737_v38, %v4819_v37  ;;  %v4799_v41 = vld [vmem:[%s8152_s3 + $0x60] sm:$0xf]  ;;  %v5733_v42 = vld [vmem:[%s8152_s3 + $0x68] sm:$0xf0]  ;;  %v4801_v45 = vld [vmem:[%s8152_s3 + $0x6c] sm:$0xf0] }
 0x166   : > { %v1276_v17 = vadd.f32 %v6180_v13, %v1275_v16  ;;  %1488 = vmatpush.bf16.msra.mxu1 %v4828_v30  ;;  %1501 = vmatpush.bf16.msra.mxu2 %v4832_v31  ;;  %v4800_v44 = vor.u32 %v5733_v42, %v4799_v41  ;;  %v4807_v46 = vld [vmem:[%s8152_s3 + $0x68] sm:$0xf]  ;;  %v5734_v47 = vld [vmem:[%s8152_s3 + $0x70] sm:$0xf0]  ;;  %v4804_v48 = vor.u32 %v5732_v43, %v4801_v45  ;;  %v5729_v52 = vld [vmem:[%s8152_s3 + $0x4c] sm:$0xf] }
 0x167   : > { %v4808_v49 = vor.u32 %v5734_v47, %v4807_v46  ;;  %v4787_v50 = vld [vmem:[%s8152_s3 + $0x48] sm:$0xf]  ;;  %v5730_v51 = vld [vmem:[%s8152_s3 + $0x50] sm:$0xf0]  ;;  %v4789_v54 = vld [vmem:[%s8152_s3 + $0x54] sm:$0xf0] }
 0x168   : > { %v7446_v18 = vsel %vm1277_vm0, %v6180_v13, %v1276_v17  ;;  %v4788_v53 = vor.u32 %v5730_v51, %v4787_v50  ;;  %v4795_v55 = vld [vmem:[%s8152_s3 + $0x50] sm:$0xf]  ;;  %v5731_v56 = vld [vmem:[%s8152_s3 + $0x58] sm:$0xf0]  ;;  %v4792_v57 = vor.u32 %v5729_v52, %v4789_v54  ;;  %v5726_v61 = vld [vmem:[%s8152_s3 + $0x34] sm:$0xf] }
 0x169   : > { %1476 = vmatpush.bf16.msra.mxu0 %v4812_v35  ;;  %v4796_v58 = vor.u32 %v5731_v56, %v4795_v55  ;;  %v4775_v59 = vld [vmem:[%s8152_s3 + $0x30] sm:$0xf]  ;;  %v5727_v60 = vld [vmem:[%s8152_s3 + $0x38] sm:$0xf0]  ;;  %v4777_v63 = vld [vmem:[%s8152_s3 + $0x3c] sm:$0xf0] }
 0x16a   : > { %1489 = vmatpush.bf16.msra.mxu1 %v4816_v39  ;;  %1502 = vmatpush.bf16.msra.mxu2 %v4820_v40  ;;  %v4776_v62 = vor.u32 %v5727_v60, %v4775_v59  ;;  %v4783_v0 = vld [vmem:[%s8152_s3 + $0x38] sm:$0xf]  ;;  %v5728_v1 = vld [vmem:[%s8152_s3 + $0x40] sm:$0xf0]  ;;  %v4780_v3 = vor.u32 %v5726_v61, %v4777_v63  ;;  %v5723_v7 = vld [vmem:[%s8152_s3 + $0x1c] sm:$0xf] }
 0x16b   : > { %v4784_v4 = vor.u32 %v5728_v1, %v4783_v0  ;;  %v4763_v5 = vld [vmem:[%s8152_s3 + $0x18] sm:$0xf]  ;;  %v5724_v6 = vld [vmem:[%s8152_s3 + $0x20] sm:$0xf0]  ;;  %v4765_v9 = vld [vmem:[%s8152_s3 + $0x24] sm:$0xf0] }
 0x16c   : > { %v4764_v8 = vor.u32 %v5724_v6, %v4763_v5  ;;  %v4771_v10 = vld [vmem:[%s8152_s3 + $0x20] sm:$0xf]  ;;  %v5725_v11 = vld [vmem:[%s8152_s3 + $0x28] sm:$0xf0]  ;;  %v4768_v12 = vor.u32 %v5723_v7, %v4765_v9  ;;  %v5720_v16 = vld [vmem:[%s8152_s3 + $0x4] sm:$0xf] }
 0x16d   : > { %1477 = vmatpush.bf16.msra.mxu0 %v4800_v44  ;;  %v4772_v13 = vor.u32 %v5725_v11, %v4771_v10  ;;  %v4751_v14 = vld [vmem:[%s8152_s3] sm:$0xf]  ;;  %v5721_v15 = vld [vmem:[%s8152_s3 + $0x8] sm:$0xf0]  ;;  %v6156_v34 = vld [vmem:[#allocation13] ss:$0 sm:$0xff] }
 0x16e   : > { %1490 = vmatpush.bf16.msra.mxu1 %v4804_v48  ;;  %1503 = vmatpush.bf16.msra.mxu2 %v4808_v49  ;;  %v4752_v17 = vor.u32 %v5721_v15, %v4751_v14  ;;  %v6157_v37 = vld [vmem:[#allocation14] ss:$0 sm:$0xff]  ;;  %v1338_v41 = vld [vmem:[%s8153_s8] sm:$0x7]  ;;  %v7513_v0 = vld [vmem:[%s1083_s26] sm:$0xff]  ;;  %s8158_s26 = sld [smem:[#allocation55_spill]] }
 0x16f   : > { %v1341_v42 = vperm.slane %v1338_v41, 1  ;;  %v1340_v43 = vperm.slane %v1338_v41, 0  ;;  %v1342_v49 = vperm.slane %v1338_v41, 2  ;;  %vm1261_vm6 = vcmp.gt.s32.totalorder %v7513_v0, 0  ;;  %s8159_s10 = sld [smem:[#allocation46_spill]] }
 0x170   : > { %s8163_s6 = sld [smem:[#allocation60_spill]] }
 0x171   : > { %1478 = vmatpush.bf16.msra.mxu0 %v4788_v53 }
 0x172   : > { %1491 = vmatpush.bf16.msra.mxu1 %v4792_v57  ;;  %1504 = vmatpush.bf16.msra.mxu2 %v4796_v58 }
 0x175   : > { %1479 = vmatpush.bf16.msra.mxu0 %v4776_v62  ;;  %s1256_s20 = scalar_lea.vmem %s8159_s10, %s7585_s4  ;;  %s8162_s4 = sld [smem:[#allocation58_spill]] }
 0x176   : > { %1492 = vmatpush.bf16.msra.mxu1 %v4780_v3  ;;  %1505 = vmatpush.bf16.msra.mxu2 %v4784_v4  ;;  %s8165_s10 = sld [smem:[#allocation61_spill]] }
 0x179   : > { %1480 = vmatpush.bf16.msra.mxu0 %v4764_v8 }
 0x17a   : > { %1493 = vmatpush.bf16.msra.mxu1 %v4768_v12  ;;  %1506 = vmatpush.bf16.msra.mxu2 %v4772_v13 }
 0x17d   : > { %1481 = vmatpush.bf16.msra.mxu0 %v4752_v17 }
 0x1d3   : > { %v1271_v19 = vpop.xlane.xlu0 %1270 }
 0x1d4   : > { %v1279_v20 = vmul.f32 %v7446_v18, %v1271_v19  ;;  %v4753_v19 = vld [vmem:[%s8152_s3 + $0xc] sm:$0xf0] }
 0x1d5   : > { %v4756_v23 = vor.u32 %v5720_v16, %v4753_v19 }
 0x1d6   : > { %v7450_v21 = vsub.f32 %v7437_v2, %v1279_v20  ;;  %v4759_v20 = vld [vmem:[%s8152_s3 + $0x8] sm:$0xf] }
 0x1d7   : > { %1494 = vmatpush.bf16.msra.mxu1 %v4756_v23 }
 0x1d8   : > { %v1281_v22 = vmul.f32 %v7450_v21, %v7450_v21 }
 0x1da   : > { %1282 = vadd.xlane.f32.xlu0 %v1281_v22  ;;  %v5722_v22 = vld [vmem:[%s8152_s3 + $0x10] sm:$0xf0] }
 0x1db   : > { %v4760_v24 = vor.u32 %v5722_v22, %v4759_v20 }
 0x1dd   : > { %1507 = vmatpush.bf16.msra.mxu2 %v4760_v24 }
 0x24d   : > { %v1283_v25 = vpop.xlane.xlu0 %1282 }
 0x24e   : > { %v1284_v26 = vmul.f32 %v1283_v25, %v7446_v18 }
 0x250   : > { %v1285_v27 = vadd.f32 1e-06, %v1284_v26 }
 0x252   : > { %6181 = vrsqrt.f32 %v1285_v27  ;;  %vm1292_vm2 = vweird.f32 %v1285_v27 }
 0x258   : > { %v6182_v28 = vpop.eup %6181 }
 0x259   : > { %v1287_v29 = vmul.f32 %v6182_v28, %v1285_v27  ;;  %vm1293_vm1 = vweird.f32 %v6182_v28 }
 0x25a   : > { %vm1294_vm3 = vmor %vm1292_vm2, %vm1293_vm1 }
 0x25b   : > { %v1288_v30 = vmul.f32 %v6182_v28, %v1287_v29 }
 0x25d   : > { %v1289_v31 = vmul.f32 0.5, %v1288_v30 }
 0x25f   : > { %v1290_v32 = vsub.f32 1.5, %v1289_v31 }
 0x261   : > { %v1291_v33 = vmul.f32 %v6182_v28, %v1290_v32 }
 0x263   : > { %v1295_v35 = vsel %vm1294_vm3, %v6182_v28, %v1291_v33 }
 0x264   : > { %v1296_v36 = vmul.f32 %v1295_v35, %v7450_v21 }
 0x266   : > { %v1300_v38 = vmul.f32 %v6156_v34, %v1296_v36 }
 0x268   : > { %v1304_v39 = vadd.f32 %v6157_v37, %v1300_v38 }
 0x26a   : > { %v1305_v40 = vpack.c.bf16 %v1304_v39, %v1304_v39 }
 0x26c   : > { %1482 = vmatmul.bf16.vlgmr.msra.gmra.mxu0 %v1305_v40  ;;  %1495 = vmatmul.bf16.vlgmr.msra.gmra.mxu1 %v1305_v40 }
 0x26d   : > { %1508 = vmatmul.bf16.vlgmr.msra.gmra.mxu2 %v1305_v40 }
 0x2e9   : > { %v1483_v44 = vpop.f32.mrf.mxu0  ;;  %v1496_v45 = vpop.f32.mrf.mxu1 }
 0x2ea   : > { %v1497_v46 = vadd.f32 %v1496_v45, %v1341_v42  ;;  %v1484_v47 = vadd.f32 %v1483_v44, %v1340_v43 }
 0x2ec   : > { %v1531_v48 = vpack.c.bf16 %v1497_v46, %v1497_v46  ;;  %v1530_v51 = vpack.c.bf16 %v1484_v47, %v1484_v47 }
 0x2ee   : > { %v1594_v50 = vunpack.c.l.b16 %v1531_v48  ;;  %v1538_v21 = vsel %vm1533_vm4, %v1531_v48, 0  ;;  %v1589_v58 = vunpack.c.l.b16 %v1530_v51 }
 0x2ef   : > { %1547 = vmatpush.bf16.xpose.msra.mxu3 %v1538_v21 }
 0x2f0   : > { %v1595_v52 = vpack.c.b16 %v1594_v50, %v1594_v50  ;;  %v1509_v53 = vpop.f32.mrf.mxu2  ;;  %v1590_v60 = vpack.c.b16 %v1589_v58, %v1589_v58 }
 0x2f1   : > { %v1510_v54 = vadd.f32 %v1509_v53, %v1342_v49  ;;  %v1485_v55 = vpop.f32.mrf.mxu0  ;;  %v1498_v56 = vpop.f32.mrf.mxu1 }
 0x2f2   : > { %1657 = vrot.lane.b32.xlu0 %v1595_v52, %s6924_s9  ;;  %1596 = vrot.lane.b32.xlu2 %v1595_v52, %s6925_s7 }
 0x2f3   : > { %v7502_v57 = vpack.c.bf16 %v1510_v54, %v1510_v54 }
 0x2f5   : > { %v1573_v59 = vsel %vm1571_vm5, %v7502_v57, 0  ;;  %v1632_v39 = vunpack.c.l.b16 %v7502_v57 }
 0x2f6   : > { %4845 = vmatmul.msk.bf16.vlgmr.msra.gmra.mxu3 %vm1533_vm4, %v1530_v51 }
 0x2f7   : > { %1582 = vmatpush.bf16.msrb.mxu3 %v1573_v59  ;;  %v1633_v42 = vpack.c.b16 %v1632_v39, %v1632_v39 }
 0x2f8   : > { %v1511_v61 = vpop.f32.mrf.mxu2 }
 0x2fa   : > { %1591 = vrot.lane.b32.xlu2 %v1590_v60, %s6925_s7 }
 0x302   : > { %1715 = vrot.lane.b32.xlu2 %v1595_v52, %s6926_s28 }
 0x30a   : > { %1713 = vrot.lane.b32.xlu2 %v1590_v60, %s6926_s28 }
 0x34c   : > { %v1597_v62 = vpop.permute.xlu2 %1596 }
 0x34d   : > { %v1602_v63 = vsel %vm1533_vm4, %v1597_v62, 0 }
 0x34e   : > { %1611 = vmatpush.bf16.xpose.msra.mxu3 %v1602_v63 }
 0x354   : > { %v1592_v19 = vpop.permute.xlu2 %1591 }
 0x35c   : > { %v1716_v20 = vpop.permute.xlu2 %1715 }
 0x35d   : > { %v1721_v22 = vsel %vm1533_vm4, %v1716_v20, 0 }
 0x364   : > { %v1658_v15 = vpop.permute.xlu0 %1657  ;;  %v1714_v24 = vpop.permute.xlu2 %1713 }
 0x365   : > { %v1663_v17 = vsel %vm1533_vm4, %v1658_v15, 0 }
 0x379   : > { %v1549_v1 = vpop.f32.mrf.mxu3 }
 0x37a   : > { %v1553_v3 = vmul.f32 0.17677669, %v1549_v1 }
 0x37c   : > { %v1554_v4 = vsel %vm1261_vm6, %v1553_v3, -1e+09 }
 0x37d   : > { %v1556_v5 = vsel %vm1555_vm7, %v1554_v4, -inf }
 0x37e   : > { %1557 = vmax.xlane.f32.xlu1 %v1556_v5 }
 0x381   : > { %v1551_v6 = vpop.f32.mrf.mxu3 }
 0x3f1   : > { %v1558_v7 = vpop.xlane.xlu1 %1557 }
 0x3f2   : > { %v1559_v8 = vsub.f32 %v1554_v4, %v1558_v7 }
 0x3f4   : > { %v1560_v9 = vmul.f32 1.442695, %v1559_v8 }
 0x3f6   : > { %6183 = vpow2.f32 %v1560_v9 }
 0x3fc   : > { %v6184_v10 = vpop.eup %6183 }
 0x3fd   : > { %v1562_v11 = vsel %vm1555_vm7, %v6184_v10, 0.0 }
 0x3fe   : > { %1563 = vadd.xlane.f32.xlu1 %v1562_v11 }
 0x417   : > { %1655 = vrot.lane.b32.xlu1 %v1590_v60, %s6924_s9 }
 0x471   : > { %v1564_v12 = vpop.xlane.xlu1 %1563 }
 0x472   : > { %6185 = vrcp.f32 %v1564_v12 }
 0x478   : > { %v6186_v13 = vpop.eup %6185 }
 0x479   : > { %v1566_v14 = vmul.f32 %v6186_v13, %v6184_v10 }
 0x47b   : > { %v1567_v16 = vpack.c.bf16 %v1566_v14, %v1566_v14 }
 0x47d   : > { %4846 = vmatmul.msk.bf16.vlgmr.msrb.gmra.mxu3 %vm1555_vm7, %v1567_v16 }
 0x47e   : > { %1672 = vmatpush.bf16.xpose.msrb.mxu3 %v1663_v17  ;;  %v5751_v17 = vld [vmem:[%s8154_s17 + $0x38] sm:$0xff] }
 0x47f   : > { %1840 = vmatpush.bf16.msrb.mxu1 %v5751_v17 }
 0x489   : > { %v1656_v23 = vpop.permute.xlu1 %1655 }
 0x48d   : > { %4847 = vmatmul.msk.bf16.vlgmr.msra.gmra.mxu3 %vm1533_vm4, %v1592_v19 }
 0x48e   : > { %1730 = vmatpush.bf16.xpose.msra.mxu3 %v1721_v22 }
 0x49d   : > { %4849 = vmatmul.msk.bf16.vlgmr.msrb.gmra.mxu3 %vm1533_vm4, %v1656_v23  ;;  %v5750_v23 = vld [vmem:[%s8154_s17 + $0x30] sm:$0xff] }
 0x49e   : > { %1841 = vmatpush.bf16.msrb.mxu1 %v5750_v23 }
 0x4ad   : > { %4851 = vmatmul.msk.bf16.vlgmr.msra.gmra.mxu3 %vm1533_vm4, %v1714_v24  ;;  %v5749_v24 = vld [vmem:[%s8154_s17 + $0x28] sm:$0xff] }
 0x4ae   : > { %1842 = vmatpush.bf16.msrb.mxu1 %v5749_v24 }
 0x500   : > { %v7527_v25 = vpop.f32.mrf.mxu3 }
 0x508   : > { %v1586_v26 = vpop.f32.mrf.mxu3 }
 0x509   : > { %v5748_v26 = vld [vmem:[%s8154_s17 + $0x20] sm:$0xff] }
 0x50a   : > { %1843 = vmatpush.bf16.msrb.mxu1 %v5748_v26  ;;  %v7607_v26 = vld [vmem:[%s8158_s26] sm:$0x3] }
 0x510   : > { %v1613_v27 = vpop.f32.mrf.mxu3 }
 0x511   : > { %v1617_v28 = vmul.f32 0.17677669, %v1613_v27  ;;  %v5747_v27 = vld [vmem:[%s8154_s17 + $0x18] sm:$0xff] }
 0x512   : > { %1844 = vmatpush.bf16.msrb.mxu1 %v5747_v27 }
 0x513   : > { %v1618_v29 = vsel %vm1261_vm6, %v1617_v28, -1e+09  ;;  %v5746_v28 = vld [vmem:[%s8154_s17 + $0x10] sm:$0xff] }
 0x514   : > { %v1619_v30 = vsel %vm1555_vm7, %v1618_v29, -inf }
 0x515   : > { %1620 = vmax.xlane.f32.xlu2 %v1619_v30  ;;  %v5744_v30 = vld [vmem:[%s8154_s17] sm:$0xff] }
 0x516   : > { %1845 = vmatpush.bf16.msrb.mxu1 %v5746_v28  ;;  %v1984_v28 = vperm.slane %v7607_v26, 0 }
 0x518   : > { %v1615_v31 = vpop.f32.mrf.mxu3 }
 0x520   : > { %v1674_v32 = vpop.f32.mrf.mxu3 }
 0x521   : > { %v1678_v33 = vmul.f32 0.17677669, %v1674_v32 }
 0x523   : > { %v1679_v34 = vsel %vm1261_vm6, %v1678_v33, -1e+09 }
 0x524   : > { %v1680_v35 = vsel %vm1555_vm7, %v1679_v34, -inf }
 0x525   : > { %1681 = vmax.xlane.f32.xlu0 %v1680_v35 }
 0x528   : > { %v1676_v36 = vpop.f32.mrf.mxu3 }
 0x530   : > { %v1732_v37 = vpop.f32.mrf.mxu3 }
 0x531   : > { %v1736_v38 = vmul.f32 0.17677669, %v1732_v37 }
 0x533   : > { %v1737_v40 = vsel %vm1261_vm6, %v1736_v38, -1e+09  ;;  %v6158_v38 = vld [vmem:[#allocation7] ss:$0 sm:$0xff] }
 0x534   : > { %v1738_v41 = vsel %vm1555_vm7, %v1737_v40, -inf }
 0x535   : > { %1739 = vmax.xlane.f32.xlu1 %v1738_v41 }
 0x538   : > { %v1734_v43 = vpop.f32.mrf.mxu3 }
 0x539   : > { %1634 = vrot.lane.b32.xlu0 %v1633_v42, %s6925_s7  ;;  %v5775_v43 = vld [vmem:[%s8155_s19 + $0x74] sm:$0xf0] }
 0x588   : > { %v1621_v44 = vpop.xlane.xlu2 %1620 }
 0x589   : > { %v1622_v45 = vsub.f32 %v1618_v29, %v1621_v44  ;;  %v5745_v29 = vld [vmem:[%s8154_s17 + $0x8] sm:$0xff]  ;;  %v4967_v44 = vld [vmem:[%s8155_s19 + $0x60] sm:$0xf] }
 0x58a   : > { %1846 = vmatpush.bf16.msrb.mxu1 %v5745_v29 }
 0x58b   : > { %v1623_v46 = vmul.f32 1.442695, %v1622_v45 }
 0x58d   : > { %6187 = vpow2.f32 %v1623_v46  ;;  %v5773_v46 = vld [vmem:[%s8155_s19 + $0x64] sm:$0xf0] }
 0x58e   : > { %1847 = vmatpush.bf16.msrb.mxu1 %v5744_v30 }
 0x593   : > { %v6188_v47 = vpop.eup %6187 }
 0x594   : > { %v1625_v48 = vsel %vm1555_vm7, %v6188_v47, 0.0 }
 0x595   : > { %1626 = vadd.xlane.f32.xlu2 %v1625_v48  ;;  %v4959_v48 = vld [vmem:[%s8155_s19 + $0x50] sm:$0xf] }
 0x598   : > { %v1682_v49 = vpop.xlane.xlu0 %1681 }
 0x599   : > { %v1683_v50 = vsub.f32 %v1679_v34, %v1682_v49  ;;  %v5771_v49 = vld [vmem:[%s8155_s19 + $0x54] sm:$0xf0] }
 0x59b   : > { %v1684_v21 = vmul.f32 1.442695, %v1683_v50  ;;  %v4960_v50 = vor.u32 %v5771_v49, %v4959_v48 }
 0x59d   : > { %6189 = vpow2.f32 %v1684_v21  ;;  %v4951_v21 = vld [vmem:[%s8155_s19 + $0x40] sm:$0xf] }
 0x5a3   : > { %v6190_v51 = vpop.eup %6189 }
 0x5a4   : > { %v1686_v52 = vsel %vm1555_vm7, %v6190_v51, 0.0 }
 0x5a5   : > { %1687 = vadd.xlane.f32.xlu2 %v1686_v52 }
 0x5a8   : > { %v1740_v53 = vpop.xlane.xlu1 %1739 }
 0x5a9   : > { %v1741_v54 = vsub.f32 %v1737_v40, %v1740_v53  ;;  %v4943_v53 = vld [vmem:[%s8155_s19 + $0x30] sm:$0xf] }
 0x5ab   : > { %v1742_v55 = vmul.f32 1.442695, %v1741_v54  ;;  %v1635_v56 = vpop.permute.xlu0 %1634  ;;  %v5767_v54 = vld [vmem:[%s8155_s19 + $0x34] sm:$0xf0] }
 0x5ac   : > { %v1640_v57 = vsel %vm1571_vm5, %v1635_v56, 0  ;;  %v4935_v56 = vld [vmem:[%s8155_s19 + $0x20] sm:$0xf] }
 0x5ad   : > { %6191 = vpow2.f32 %v1742_v55  ;;  %1649 = vmatpush.bf16.msrb.mxu0 %v1640_v57  ;;  %v4944_v55 = vor.u32 %v5767_v54, %v4943_v53  ;;  %v5765_v57 = vld [vmem:[%s8155_s19 + $0x24] sm:$0xf0] }
 0x5b3   : > { %v6192_v58 = vpop.eup %6191 }
 0x5b4   : > { %v1744_v59 = vsel %vm1555_vm7, %v6192_v58, 0.0 }
 0x5b5   : > { %1745 = vadd.xlane.f32.xlu1 %v1744_v59  ;;  %v4927_v59 = vld [vmem:[%s8155_s19 + $0x10] sm:$0xf] }
 0x5bd   : > { %1692 = vrot.lane.b32.xlu2 %v1633_v42, %s6924_s9 }
 0x5ce   : > { %1750 = vrot.lane.b32.xlu1 %v1633_v42, %s6926_s28  ;;  %v4975_v42 = vld [vmem:[%s8155_s19 + $0x70] sm:$0xf] }
 0x5cf   : > { %v4976_v45 = vor.u32 %v5775_v43, %v4975_v42 }
 0x5d1   : > { %2068 = vmatpush.bf16.msrb.mxu3 %v4976_v45 }
 0x608   : > { %v1627_v60 = vpop.xlane.xlu2 %1626 }
 0x609   : > { %6193 = vrcp.f32 %v1627_v60  ;;  %v5763_v60 = vld [vmem:[%s8155_s19 + $0x14] sm:$0xf0] }
 0x60f   : > { %v6194_v61 = vpop.eup %6193 }
 0x610   : > { %v1629_v62 = vmul.f32 %v6194_v61, %v6188_v47  ;;  %v4968_v47 = vor.u32 %v5773_v46, %v4967_v44  ;;  %v4928_v61 = vor.u32 %v5763_v60, %v4927_v59  ;;  %v4977_v59 = vld [vmem:[%s8155_s19 + $0x78] sm:$0xf0]  ;;  %v5772_v60 = vld [vmem:[%s8155_s19 + $0x64] sm:$0xf] }
 0x612   : > { %v1630_v63 = vpack.c.bf16 %v1629_v62, %v1629_v62  ;;  %2069 = vmatpush.bf16.msrb.mxu3 %v4968_v47  ;;  %v4919_v62 = vld [vmem:[%s8155_s19] sm:$0xf] }
 0x614   : > { %4848 = vmatmul.msk.bf16.vlgmr.msrb.gmra.mxu0 %vm1555_vm7, %v1630_v63  ;;  %v5761_v63 = vld [vmem:[%s8155_s19 + $0x4] sm:$0xf0] }
 0x616   : > { %2070 = vmatpush.bf16.msrb.mxu3 %v4960_v50 }
 0x618   : > { %v1688_v1 = vpop.xlane.xlu2 %1687 }
 0x619   : > { %6195 = vrcp.f32 %v1688_v1 }
 0x61f   : > { %v6196_v3 = vpop.eup %6195 }
 0x620   : > { %v1690_v4 = vmul.f32 %v6196_v3, %v6190_v51  ;;  %v1693_v5 = vpop.permute.xlu2 %1692  ;;  %v5769_v51 = vld [vmem:[%s8155_s19 + $0x44] sm:$0xf0] }
 0x621   : > { %v1698_v6 = vsel %vm1571_vm5, %v1693_v5, 0  ;;  %v4952_v52 = vor.u32 %v5769_v51, %v4951_v21  ;;  %v1265_v5 = vld [vmem:[%s1253_s21] sm:$0xff] }
 0x622   : > { %1707 = vmatpush.bf16.msrb.mxu2 %v1698_v6  ;;  %v1691_v7 = vpack.c.bf16 %v1690_v4, %v1690_v4  ;;  %v4920_v4 = vor.u32 %v5761_v63, %v4919_v62  ;;  %v1266_v6 = vld [vmem:[%s1253_s21 + $0x8] sm:$0xff]  ;;  %s8164_s21 = sld [smem:[#allocation59_spill]] }
 0x623   : > { %2071 = vmatpush.bf16.msrb.mxu3 %v4952_v52  ;;  %v4969_v63 = vld [vmem:[%s8155_s19 + $0x68] sm:$0xf0] }
 0x625   : > { %4850 = vmatmul.msk.bf16.vlgmr.msrb.gmra.mxu2 %vm1555_vm7, %v1691_v7 }
 0x627   : > { %2072 = vmatpush.bf16.msrb.mxu3 %v4944_v55 }
 0x628   : > { %v1746_v8 = vpop.xlane.xlu1 %1745 }
 0x629   : > { %6197 = vrcp.f32 %v1746_v8 }
 0x62f   : > { %v6198_v9 = vpop.eup %6197 }
 0x630   : > { %v1748_v10 = vmul.f32 %v6198_v9, %v6192_v58  ;;  %v4936_v58 = vor.u32 %v5765_v57, %v4935_v56  ;;  %v7595_v9 = vpack.c.bf16 %v1266_v6, %v1265_v5  ;;  %v4961_v5 = vld [vmem:[%s8155_s19 + $0x58] sm:$0xf0] }
 0x632   : > { %v1749_v13 = vpack.c.bf16 %v1748_v10, %v1748_v10  ;;  %2073 = vmatpush.bf16.msrb.mxu3 %v4936_v58  ;;  %v5758_v10 = vld [vmem:[%s8156_s14 + $0x30] sm:$0xff] }
 0x633   : > { %v5774_v58 = vld [vmem:[%s8155_s19 + $0x74] sm:$0xf] }
 0x634   : > { %v4980_v62 = vor.u32 %v5774_v58, %v4977_v59 }
 0x636   : > { %2074 = vmatpush.bf16.msrb.mxu3 %v4928_v61 }
 0x63a   : > { %2075 = vmatpush.bf16.msrb.mxu3 %v4920_v4  ;;  %v5770_v4 = vld [vmem:[%s8155_s19 + $0x54] sm:$0xf] }
 0x63b   : > { %v4964_v6 = vor.u32 %v5770_v4, %v4961_v5 }
 0x63d   : > { %2076 = vmatmul.bf16.vlgmr.msrb.gmra.mxu3 %v7595_v9 }
 0x640   : > { %v1751_v11 = vpop.permute.xlu1 %1750 }
 0x641   : > { %v1756_v12 = vsel %vm1571_vm5, %v1751_v11, 0  ;;  %v5757_v11 = vld [vmem:[%s8156_s14 + $0x28] sm:$0xff] }
 0x642   : > { %1765 = vmatpush.bf16.msra.mxu0 %v1756_v12  ;;  %v5756_v12 = vld [vmem:[%s8156_s14 + $0x20] sm:$0xff] }
 0x645   : > { %4852 = vmatmul.msk.bf16.vlgmr.msra.gmra.mxu0 %vm1555_vm7, %v1749_v13  ;;  %v5755_v13 = vld [vmem:[%s8156_s14 + $0x18] sm:$0xff] }
 0x646   : > { %2082 = vmatpush.bf16.msrb.mxu0 %v4980_v62 }
 0x691   : > { %v1651_v14 = vpop.f32.mrf.mxu0 }
 0x692   : > { %1772 = vrot.lane.b32.xlu0 %v1651_v14, %s6926_s28  ;;  %v5754_v14 = vld [vmem:[%s8156_s14 + $0x10] sm:$0xff] }
 0x699   : > { %v1653_v15 = vpop.f32.mrf.mxu0 }
 0x69a   : > { %v5753_v15 = vld [vmem:[%s8156_s14 + $0x8] sm:$0xff] }
 0x6a8   : > { %v1709_v16 = vpop.f32.mrf.mxu2 }
 0x6a9   : > { %1776 = vrot.lane.b32.xlu0 %v1709_v16, %s6924_s9  ;;  %v5752_v16 = vld [vmem:[%s8156_s14] sm:$0xff] }
 0x6b0   : > { %v1711_v19 = vpop.f32.mrf.mxu2 }
 0x6c0   : > { %v2077_v30 = vpop.f32.mrf.mxu3 }
 0x6c2   : > { %v1767_v20 = vpop.f32.mrf.mxu0 }
 0x6c3   : > { %1780 = vrot.lane.b32.xlu2 %v1767_v20, %s6925_s7 }
 0x6ca   : > { %v1769_v22 = vpop.f32.mrf.mxu0 }
 0x704   : > { %v1773_v31 = vpop.permute.xlu0 %1772 }
 0x705   : > { %v1783_v32 = vsel %vm1533_vm4, %v7527_v25, %v1773_v31 }
 0x71b   : > { %v1777_v33 = vpop.permute.xlu0 %1776 }
 0x71c   : > { %v1785_v34 = vsel %vm1784_vm8, %v1783_v32, %v1777_v33  ;;  %v6159_v32 = vld [vmem:[#allocation16] ss:$0 sm:$0xff]  ;;  %v2078_v33 = vadd.f32 %v2077_v30, %v1984_v28 }
 0x71d   : > { %v1781_v35 = vpop.permute.xlu2 %1780 }
 0x71e   : > { %v1787_v36 = vsel %vm1786_vm9, %v1785_v34, %v1781_v35 }
 0x71f   : > { %v1788_v37 = vpack.c.bf16 %v1787_v36, %v1787_v36  ;;  %v6160_v36 = vld [vmem:[#allocation17] ss:$0 sm:$0xff] }
 0x721   : > { %1848 = vmatmul.bf16.vlgmr.msrb.gmra.mxu1 %v1788_v37 }
 0x79e   : > { %v1849_v39 = vpop.f32.mrf.mxu1 }
 0x79f   : > { %v1850_v40 = vadd.f32 %v6158_v38, %v1849_v39  ;;  %v2114_v38 = vpack.c.bf16 %v2078_v33, %v2078_v33  ;;  %v2079_v39 = vpop.f32.mrf.mxu3  ;;  %v4921_v33 = vld [vmem:[%s8155_s19 + $0x8] sm:$0xf0] }
 0x7a1   : > { %v7567_v25 = vadd.f32 %v1850_v40, %v7437_v2  ;;  %v5759_v2 = vld [vmem:[%s8156_s14 + $0x38] sm:$0xff]  ;;  %v2120_v43 = vunpack.c.l.b16 %v2114_v38 }
 0x7a2   : > { %1953 = vmatpush.bf16.msra.mxu2 %v5759_v2  ;;  %v6161_v2 = vld [vmem:[#allocation8] ss:$0 sm:$0xff] }
 0x7a3   : > { %1856 = vadd.xlane.f32.xlu0 %v7567_v25 }
 0x7a6   : > { %v1851_v41 = vpop.f32.mrf.mxu1  ;;  %1954 = vmatpush.bf16.msra.mxu2 %v5758_v10 }
 0x7a7   : > { %v2080_v41 = vadd.f32 %v2079_v39, %v1984_v28  ;;  %v4929_v28 = vld [vmem:[%s8155_s19 + $0x18] sm:$0xf0] }
 0x7a9   : > { %v2115_v44 = vpack.c.bf16 %v2080_v41, %v2080_v41 }
 0x7aa   : > { %1955 = vmatpush.bf16.msra.mxu2 %v5757_v11  ;;  %v1258_v11 = vld [vmem:[%s1256_s20] sm:$0x1] }
 0x7ab   : > { %v2121_v45 = vunpack.c.l.b16 %v2115_v44  ;;  %vm1259_vm13 = vcmp.gt.s32.totalorder %v1258_v11, 0 }
 0x7ad   : > { %v2122_v46 = vpack.c.b16 %v2121_v45, %v2120_v43 }
 0x7ae   : > { %1956 = vmatpush.bf16.msra.mxu2 %v5756_v12 }
 0x7af   : > { %2187 = vrot.lane.b32.xlu2 %v2122_v46, %s6925_s7  ;;  %v2127_v47 = vsel %vm1533_vm4, %v2122_v46, 0 }
 0x7b0   : > { %2136 = vmatpush.bf16.xpose.msra.mxu1 %v2127_v47 }
 0x7b2   : > { %1957 = vmatpush.bf16.msra.mxu2 %v5755_v13  ;;  %v5766_v13 = vld [vmem:[%s8155_s19 + $0x34] sm:$0xf] }
 0x7b6   : > { %1958 = vmatpush.bf16.msra.mxu2 %v5754_v14  ;;  %v4945_v14 = vld [vmem:[%s8155_s19 + $0x38] sm:$0xf0] }
 0x7b7   : > { %2243 = vrot.lane.b32.xlu2 %v2122_v46, %s6924_s9 }
 0x7ba   : > { %1959 = vmatpush.bf16.msra.mxu2 %v5753_v15  ;;  %v4948_v15 = vor.u32 %v5766_v13, %v4945_v14 }
 0x7be   : > { %1960 = vmatpush.bf16.msra.mxu2 %v5752_v16  ;;  %v5764_v16 = vld [vmem:[%s8155_s19 + $0x24] sm:$0xf] }
 0x809   : > { %v2188_v48 = vpop.permute.xlu2 %2187 }
 0x80a   : > { %v2193_v49 = vsel %vm1533_vm4, %v2188_v48, 0 }
 0x80b   : > { %2202 = vmatpush.bf16.xpose.msra.mxu3 %v2193_v49 }
 0x811   : > { %v2244_v51 = vpop.permute.xlu2 %2243 }
 0x812   : > { %v2249_v52 = vsel %vm1533_vm4, %v2244_v51, 0 }
 0x813   : > { %2258 = vmatpush.bf16.xpose.msrb.mxu1 %v2249_v52 }
 0x816   : > { %v1857_v1 = vpop.xlane.xlu0 %1856 }
 0x817   : > { %v1858_v3 = vmul.f32 %v1857_v1, %v7446_v18 }
 0x819   : > { %v1859_v7 = vsub.f32 %v7567_v25, %v1858_v3  ;;  %v4972_v3 = vor.u32 %v5772_v60, %v4969_v63 }
 0x81b   : > { %v1860_v8 = vmul.f32 %v1859_v7, %v1859_v7  ;;  %2083 = vmatpush.bf16.msrb.mxu0 %v4972_v3 }
 0x81d   : > { %1861 = vadd.xlane.f32.xlu1 %v1860_v8  ;;  %v4953_v8 = vld [vmem:[%s8155_s19 + $0x48] sm:$0xf0] }
 0x81f   : > { %2084 = vmatpush.bf16.msrb.mxu0 %v4964_v6 }
 0x890   : > { %v1862_v17 = vpop.xlane.xlu1 %1861 }
 0x891   : > { %v1863_v19 = vmul.f32 %v1862_v17, %v7446_v18  ;;  %v4937_v17 = vld [vmem:[%s8155_s19 + $0x28] sm:$0xf0] }
 0x893   : > { %v1864_v20 = vadd.f32 1e-06, %v1863_v19  ;;  %v6927_v19 = vmov 0  }
 0x895   : > { %6199 = vrsqrt.f32 %v1864_v20  ;;  %vm1871_vm11 = vweird.f32 %v1864_v20 }
 0x89b   : > { %v6200_v22 = vpop.eup %6199 }
 0x89c   : > { %v1866_v23 = vmul.f32 %v6200_v22, %v1864_v20  ;;  %vm1872_vm10 = vweird.f32 %v6200_v22  ;;  %v2143_v20 = vsel %vm1259_vm13, 1, %v6927_v19 }
 0x89d   : > { %vm1873_vm12 = vmor %vm1871_vm11, %vm1872_vm10 }
 0x89e   : > { %v1867_v24 = vmul.f32 %v6200_v22, %v1866_v23  ;;  %v4940_v23 = vor.u32 %v5764_v16, %v4937_v17 }
 0x8a0   : > { %v1868_v27 = vmul.f32 0.5, %v1867_v24  ;;  %v2144_v24 = vperm.slane %v2143_v20, 0 }
 0x8a2   : > { %v1869_v29 = vsub.f32 1.5, %v1868_v27  ;;  %v5762_v27 = vld [vmem:[%s8155_s19 + $0x14] sm:$0xf]  ;;  %vm7640_vm14 = vcmp.eq.s32.totalorder %v2144_v24, 1 }
 0x8a4   : > { %v1870_v31 = vmul.f32 %v6200_v22, %v1869_v29  ;;  %v4932_v29 = vor.u32 %v5762_v27, %v4929_v28 }
 0x8a6   : > { %v1874_v34 = vsel %vm1873_vm12, %v6200_v22, %v1870_v31 }
 0x8a7   : > { %v1875_v35 = vmul.f32 %v1874_v34, %v1859_v7  ;;  %v5768_v7 = vld [vmem:[%s8155_s19 + $0x44] sm:$0xf] }
 0x8a8   : > { %v4956_v12 = vor.u32 %v5768_v7, %v4953_v8 }
 0x8a9   : > { %v1879_v37 = vmul.f32 %v6159_v32, %v1875_v35  ;;  %v5760_v32 = vld [vmem:[%s8155_s19 + $0x4] sm:$0xf] }
 0x8aa   : > { %2085 = vmatpush.bf16.msrb.mxu0 %v4956_v12 }
 0x8ab   : > { %v1883_v40 = vadd.f32 %v6160_v36, %v1879_v37  ;;  %v4924_v36 = vor.u32 %v5760_v32, %v4921_v33 }
 0x8ad   : > { %v1884_v42 = vpack.c.bf16 %v1883_v40, %v1883_v40 }
 0x8ae   : > { %2086 = vmatpush.bf16.msrb.mxu0 %v4948_v15 }
 0x8af   : > { %1961 = vmatmul.bf16.vlgmr.msra.gmra.mxu2 %v1884_v42 }
 0x8b2   : > { %2087 = vmatpush.bf16.msrb.mxu0 %v4940_v23 }
 0x8b6   : > { %2088 = vmatpush.bf16.msrb.mxu0 %v4932_v29 }
 0x8ba   : > { %2089 = vmatpush.bf16.msrb.mxu0 %v4924_v36 }
 0x8bd   : > { %2090 = vmatmul.bf16.vlgmr.msrb.gmra.mxu0 %v7595_v9 }
 0x932   : > { %v1962_v50 = vpop.f32.mrf.mxu2 }
 0x933   : > { %v1963_v21 = vadd.f32 %v6161_v2, %v1962_v50 }
 0x935   : > { %v2113_v53 = vpack.c.bf16 %v1963_v21, %v1963_v21 }
 0x937   : > { %v2183_v54 = vunpack.c.l.b16 %v2113_v53  ;;  %4981 = vmatmul.msk.bf16.vlgmr.msra.gmra.mxu1 %vm1533_vm4, %v2113_v53 }
 0x939   : > { %v2184_v55 = vpack.c.b16 %v2183_v54, %v2183_v54 }
 0x93a   : > { %v1964_v56 = vpop.f32.mrf.mxu2  ;;  %v2091_v58 = vpop.f32.mrf.mxu0 }
 0x93b   : > { %2297 = vrot.lane.b32.xlu0 %v2184_v55, %s6926_s28  ;;  %2185 = vrot.lane.b32.xlu2 %v2184_v55, %s6925_s7 }
 0x943   : > { %2299 = vrot.lane.b32.xlu2 %v2122_v46, %s6926_s28 }
 0x94b   : > { %2241 = vrot.lane.b32.xlu2 %v2184_v55, %s6924_s9 }
 0x995   : > { %v2186_v57 = vpop.permute.xlu2 %2185 }
 0x996   : > { %4983 = vmatmul.msk.bf16.vlgmr.msra.gmra.mxu3 %vm1533_vm4, %v2186_v57  ;;  %v1985_v57 = vperm.slane %v7607_v26, 1 }
 0x998   : > { %v2092_v59 = vadd.f32 %v2091_v58, %v1985_v57 }
 0x99a   : > { %v2116_v60 = vpack.c.bf16 %v2092_v59, %v2092_v59 }
 0x99c   : > { %v2162_v63 = vunpack.c.l.b16 %v2116_v60 }
 0x99d   : > { %v2300_v61 = vpop.permute.xlu2 %2299 }
 0x99e   : > { %v2305_v1 = vsel %vm1533_vm4, %v2300_v61, 0  ;;  %v2093_v61 = vpop.f32.mrf.mxu0 }
 0x99f   : > { %2314 = vmatpush.bf16.xpose.msrb.mxu3 %v2305_v1  ;;  %v2094_v62 = vadd.f32 %v2093_v61, %v1985_v57  ;;  %v5776_v57 = vld [vmem:[#allocation10] sm:$0xff] }
 0x9a1   : > { %v2117_v1 = vpack.c.bf16 %v2094_v62, %v2094_v62 }
 0x9a3   : > { %v2163_v3 = vunpack.c.l.b16 %v2117_v1 }
 0x9a5   : > { %v2242_v10 = vpop.permute.xlu2 %2241  ;;  %v2164_v4 = vpack.c.b16 %v2163_v3, %v2162_v63  ;;  %v6162_v3 = vld [vmem:[#allocation11] ss:$0 sm:$0xff] }
 0x9a6   : > { %4985 = vmatmul.msk.bf16.vlgmr.msrb.gmra.mxu1 %vm1533_vm4, %v2242_v10 }
 0x9a7   : > { %2176 = vmatpush.bf16.msrb.mxu2 %v2164_v4 }
 0x9ad   : > { %v2298_v22 = vpop.permute.xlu0 %2297 }
 0x9ae   : > { %4987 = vmatmul.msk.bf16.vlgmr.msrb.gmra.mxu3 %vm1533_vm4, %v2298_v22 }
 0x9b4   : > { %v2138_v31 = vpop.f32.mrf.mxu1 }
 0x9b5   : > { %v2142_v34 = vmul.f32 0.17677669, %v2138_v31 }
 0x9b7   : > { %v2146_v35 = vsel %vm7640_vm14, %v2142_v34, -1e+09 }
 0x9b8   : > { %v2148_v37 = vsel %vm2147_vm15, %v2146_v35, -inf }
 0x9b9   : > { %2149 = vmax.xlane.f32.xlu1 %v2148_v37 }
 0x9bc   : > { %v2140_v38 = vpop.f32.mrf.mxu1 }
 0xa19   : > { %v2204_v39 = vpop.f32.mrf.mxu3 }
 0xa1a   : > { %v2208_v40 = vmul.f32 0.17677669, %v2204_v39 }
 0xa1c   : > { %v2209_v41 = vsel %vm7640_vm14, %v2208_v40, -1e+09 }
 0xa1d   : > { %v2210_v42 = vsel %vm2147_vm15, %v2209_v41, -inf }
 0xa1e   : > { %2211 = vmax.xlane.f32.xlu2 %v2210_v42 }
 0xa21   : > { %v2206_v43 = vpop.f32.mrf.mxu3 }
 0xa23   : > { %v2260_v44 = vpop.f32.mrf.mxu1 }
 0xa24   : > { %v2264_v45 = vmul.f32 0.17677669, %v2260_v44 }
 0xa26   : > { %v2265_v46 = vsel %vm7640_vm14, %v2264_v45, -1e+09 }
 0xa27   : > { %v2266_v47 = vsel %vm2147_vm15, %v2265_v46, -inf }
 0xa28   : > { %2267 = vmax.xlane.f32.xlu1 %v2266_v47 }
 0xa2b   : > { %v2262_v48 = vpop.f32.mrf.mxu1 }
 0xa2c   : > { %v2150_v49 = vpop.xlane.xlu1 %2149 }
 0xa2d   : > { %v2151_v2 = vsub.f32 %v2146_v35, %v2150_v49 }
 0xa2f   : > { %v2152_v50 = vmul.f32 1.442695, %v2151_v2 }
 0xa31   : > { %6201 = vpow2.f32 %v2152_v50  ;;  %v2316_v21 = vpop.f32.mrf.mxu3 }
 0xa32   : > { %v2320_v51 = vmul.f32 0.17677669, %v2316_v21  ;;  %v5783_v21 = vld [vmem:[#allocation10 + $0x38] sm:$0xff] }
 0xa33   : > { %2420 = vmatpush.bf16.msra.mxu1 %v5783_v21  ;;  %v5031_v21 = vld [vmem:[%s8162_s4 + $0x10] sm:$0xf] }
 0xa34   : > { %v2321_v52 = vsel %vm7640_vm14, %v2320_v51, -1e+09  ;;  %v5782_v51 = vld [vmem:[#allocation10 + $0x30] sm:$0xff] }
 0xa35   : > { %v2322_v53 = vsel %vm2147_vm15, %v2321_v52, -inf }
 0xa36   : > { %2323 = vmax.xlane.f32.xlu1 %v2322_v53  ;;  %v5780_v53 = vld [vmem:[#allocation10 + $0x20] sm:$0xff] }
 0xa37   : > { %v6202_v54 = vpop.eup %6201  ;;  %2421 = vmatpush.bf16.msra.mxu1 %v5782_v51  ;;  %v5787_v51 = vld [vmem:[%s8162_s4 + $0x14] sm:$0xf0] }
 0xa38   : > { %v2154_v55 = vsel %vm2147_vm15, %v6202_v54, 0.0 }
 0xa39   : > { %v2318_v56 = vpop.f32.mrf.mxu3  ;;  %2155 = vadd.xlane.f32.xlu0 %v2154_v55  ;;  %v5778_v55 = vld [vmem:[#allocation10 + $0x10] sm:$0xff] }
 0xa3a   : > { %v5777_v56 = vld [vmem:[#allocation10 + $0x8] sm:$0xff] }
 0xa4d   : > { %2334 = vrot.lane.b32.xlu0 %v2164_v4, %s6926_s28 }
 0xa4f   : > { %2222 = vrot.lane.b32.xlu1 %v2164_v4, %s6925_s7 }
 0xa91   : > { %v2212_v5 = vpop.xlane.xlu2 %2211 }
 0xa92   : > { %v2213_v6 = vsub.f32 %v2209_v41, %v2212_v5 }
 0xa94   : > { %v2214_v7 = vmul.f32 1.442695, %v2213_v6 }
 0xa96   : > { %6203 = vpow2.f32 %v2214_v7 }
 0xa9b   : > { %v2268_v8 = vpop.xlane.xlu1 %2267 }
 0xa9c   : > { %v6204_v26 = vpop.eup %6203  ;;  %v2269_v10 = vsub.f32 %v2265_v46, %v2268_v8  ;;  %v5079_v8 = vld [vmem:[%s8162_s4 + $0x70] sm:$0xf] }
 0xa9d   : > { %v2216_v11 = vsel %vm2147_vm15, %v6204_v26, 0.0 }
 0xa9e   : > { %v2270_v12 = vmul.f32 1.442695, %v2269_v10  ;;  %2217 = vadd.xlane.f32.xlu1 %v2216_v11  ;;  %v5798_v10 = vld [vmem:[%s8162_s4 + $0x74] sm:$0xf] }
 0xaa0   : > { %6205 = vpow2.f32 %v2270_v12  ;;  %v5081_v12 = vld [vmem:[%s8162_s4 + $0x78] sm:$0xf0] }
 0xaa6   : > { %v6206_v13 = vpop.eup %6205 }
 0xaa7   : > { %v2272_v14 = vsel %vm2147_vm15, %v6206_v13, 0.0 }
 0xaa8   : > { %2273 = vadd.xlane.f32.xlu2 %v2272_v14 }
 0xaa9   : > { %v2324_v15 = vpop.xlane.xlu1 %2323 }
 0xaaa   : > { %v2325_v16 = vsub.f32 %v2321_v52, %v2324_v15  ;;  %v5781_v52 = vld [vmem:[#allocation10 + $0x28] sm:$0xff] }
 0xaab   : > { %2422 = vmatpush.bf16.msra.mxu1 %v5781_v52  ;;  %v5786_v52 = vld [vmem:[%s8162_s4 + $0x14] sm:$0xf] }
 0xaac   : > { %v2326_v17 = vmul.f32 1.442695, %v2325_v16  ;;  %v2156_v19 = vpop.xlane.xlu0 %2155 }
 0xaad   : > { %6207 = vrcp.f32 %v2156_v19  ;;  %v5797_v19 = vld [vmem:[%s8162_s4 + $0x64] sm:$0xf0] }
 0xaae   : > { %6209 = vpow2.f32 %v2326_v17  ;;  %v5071_v17 = vld [vmem:[%s8162_s4 + $0x60] sm:$0xf] }
 0xaaf   : > { %2423 = vmatpush.bf16.msra.mxu1 %v5780_v53  ;;  %v5032_v53 = vor.u32 %v5787_v51, %v5031_v21 }
 0xab3   : > { %v6208_v20 = vpop.eup %6207 }
 0xab4   : > { %v6210_v22 = vpop.eup %6209  ;;  %v2158_v23 = vmul.f32 %v6208_v20, %v6202_v54  ;;  %v5779_v54 = vld [vmem:[#allocation10 + $0x18] sm:$0xff]  ;;  %v5796_v20 = vld [vmem:[%s8162_s4 + $0x64] sm:$0xf] }
 0xab5   : > { %v2328_v24 = vsel %vm2147_vm15, %v6210_v22, 0.0  ;;  %2424 = vmatpush.bf16.msra.mxu1 %v5779_v54  ;;  %v5033_v54 = vld [vmem:[%s8162_s4 + $0x18] sm:$0xf0] }
 0xab6   : > { %v2159_v27 = vpack.c.bf16 %v2158_v23, %v2158_v23  ;;  %2329 = vadd.xlane.f32.xlu2 %v2328_v24  ;;  %v5073_v23 = vld [vmem:[%s8162_s4 + $0x68] sm:$0xf0] }
 0xab7   : > { %2278 = vrot.lane.b32.xlu1 %v2164_v4, %s6924_s9  ;;  %v5076_v24 = vor.u32 %v5796_v20, %v5073_v23  ;;  %v5810_v20 = vld [vmem:[%s8163_s6 + $0x50] sm:$0xff] }
 0xab8   : > { %4982 = vmatmul.msk.bf16.vlgmr.msrb.gmra.mxu2 %vm2147_vm15, %v2159_v27  ;;  %v5063_v27 = vld [vmem:[%s8162_s4 + $0x50] sm:$0xf] }
 0xab9   : > { %2425 = vmatpush.bf16.msra.mxu1 %v5778_v55  ;;  %v5023_v55 = vld [vmem:[%s8162_s4] sm:$0xf] }
 0xabd   : > { %2426 = vmatpush.bf16.msra.mxu1 %v5777_v56  ;;  %v5785_v56 = vld [vmem:[%s8162_s4 + $0x4] sm:$0xf0] }
 0xabf   : > { %v2335_v28 = vpop.permute.xlu0 %2334 }
 0xac1   : > { %v2223_v29 = vpop.permute.xlu1 %2222  ;;  %2427 = vmatpush.bf16.msra.mxu1 %v5776_v57  ;;  %v5036_v57 = vor.u32 %v5786_v52, %v5033_v54 }
 0xac2   : > { %2235 = vmatpush.bf16.msra.mxu0 %v2223_v29  ;;  %v5794_v29 = vld [vmem:[%s8162_s4 + $0x54] sm:$0xf] }
 0xac6   : > { %2347 = vmatpush.bf16.msrb.mxu0 %v2335_v28  ;;  %v5795_v28 = vld [vmem:[%s8162_s4 + $0x54] sm:$0xf0] }
 0xb11   : > { %v2218_v31 = vpop.xlane.xlu1 %2217 }
 0xb12   : > { %6211 = vrcp.f32 %v2218_v31  ;;  %v5064_v31 = vor.u32 %v5795_v28, %v5063_v27 }
 0xb18   : > { %v6212_v32 = vpop.eup %6211 }
 0xb19   : > { %v2220_v33 = vmul.f32 %v6212_v32, %v6204_v26  ;;  %v5799_v26 = vld [vmem:[%s8162_s4 + $0x74] sm:$0xf0]  ;;  %v5065_v32 = vld [vmem:[%s8162_s4 + $0x58] sm:$0xf0] }
 0xb1a   : > { %v5080_v11 = vor.u32 %v5799_v26, %v5079_v8  ;;  %v5805_v8 = vld [vmem:[%s8163_s6 + $0x28] sm:$0xff] }
 0xb1b   : > { %v2221_v34 = vpack.c.bf16 %v2220_v33, %v2220_v33  ;;  %v2274_v35 = vpop.xlane.xlu2 %2273  ;;  %v5068_v33 = vor.u32 %v5794_v29, %v5065_v32  ;;  %v5813_v26 = vld [vmem:[%s8163_s6 + $0x68] sm:$0xff]  ;;  %v6164_v29 = vld [vmem:[#allocation20] ss:$0 sm:$0xff] }
 0xb1c   : > { %6213 = vrcp.f32 %v2274_v35  ;;  %v5793_v35 = vld [vmem:[%s8162_s4 + $0x44] sm:$0xf0] }
 0xb1d   : > { %4984 = vmatmul.msk.bf16.vlgmr.msra.gmra.mxu0 %vm2147_vm15, %v2221_v34  ;;  %v5055_v34 = vld [vmem:[%s8162_s4 + $0x40] sm:$0xf] }
 0xb22   : > { %v6214_v36 = vpop.eup %6213 }
 0xb23   : > { %v2276_v37 = vmul.f32 %v6214_v36, %v6206_v13  ;;  %v5084_v13 = vor.u32 %v5798_v10, %v5081_v12  ;;  %v5792_v36 = vld [vmem:[%s8162_s4 + $0x44] sm:$0xf] }
 0xb24   : > { %v5804_v10 = vld [vmem:[%s8163_s6 + $0x20] sm:$0xff] }
 0xb25   : > { %v2277_v40 = vpack.c.bf16 %v2276_v37, %v2276_v37  ;;  %2580 = vmatpush.bf16.msra.mxu3 %v5084_v13  ;;  %v5056_v37 = vor.u32 %v5793_v35, %v5055_v34  ;;  %v5801_v34 = vld [vmem:[%s8163_s6 + $0x8] sm:$0xff] }
 0xb26   : > { %v5809_v35 = vld [vmem:[%s8163_s6 + $0x48] sm:$0xff] }
 0xb29   : > { %v2330_v38 = vpop.xlane.xlu2 %2329  ;;  %v2279_v39 = vpop.permute.xlu1 %2278  ;;  %2581 = vmatpush.bf16.msra.mxu3 %v5076_v24  ;;  %v6163_v24 = vld [vmem:[#allocation19] ss:$0 sm:$0xff] }
 0xb2a   : > { %6215 = vrcp.f32 %v2330_v38  ;;  %2291 = vmatpush.bf16.msra.mxu2 %v2279_v39  ;;  %v5057_v38 = vld [vmem:[%s8162_s4 + $0x48] sm:$0xf0] }
 0xb2b   : > { %v5060_v39 = vor.u32 %v5792_v36, %v5057_v38  ;;  %v5800_v36 = vld [vmem:[%s8163_s6] sm:$0xff] }
 0xb2c   : > { %v2481_v38 = vld [vmem:[%s8164_s21] sm:$0x3] }
 0xb2d   : > { %4986 = vmatmul.msk.bf16.vlgmr.msra.gmra.mxu2 %vm2147_vm15, %v2277_v40  ;;  %2582 = vmatpush.bf16.msra.mxu3 %v5068_v33  ;;  %v5047_v40 = vld [vmem:[%s8162_s4 + $0x30] sm:$0xf] }
 0xb2e   : > { %2567 = vmatpush.bf16.msrb.mxu2 %v5080_v11  ;;  %v5812_v11 = vld [vmem:[%s8163_s6 + $0x60] sm:$0xff] }
 0xb30   : > { %v6216_v41 = vpop.eup %6215 }
 0xb31   : > { %v2332_v42 = vmul.f32 %v6216_v41, %v6210_v22  ;;  %v5072_v22 = vor.u32 %v5797_v19, %v5071_v17  ;;  %2583 = vmatpush.bf16.msra.mxu3 %v5060_v39  ;;  %v5791_v41 = vld [vmem:[%s8162_s4 + $0x34] sm:$0xf0]  ;;  %v5802_v19 = vld [vmem:[%s8163_s6 + $0x10] sm:$0xff]  ;;  %v2483_v39 = vperm.slane %v2481_v38, 0 }
 0xb33   : > { %v2333_v43 = vpack.c.bf16 %v2332_v42, %v2332_v42  ;;  %2568 = vmatpush.bf16.msrb.mxu2 %v5072_v22  ;;  %v5790_v42 = vld [vmem:[%s8162_s4 + $0x34] sm:$0xf] }
 0xb35   : > { %4988 = vmatmul.msk.bf16.vlgmr.msrb.gmra.mxu0 %vm2147_vm15, %v2333_v43  ;;  %v5048_v43 = vor.u32 %v5791_v41, %v5047_v40  ;;  %v2484_v40 = vperm.slane %v2481_v38, 1 }
 0xb37   : > { %2569 = vmatpush.bf16.msrb.mxu2 %v5064_v31 }
 0xb3b   : > { %v2178_v44 = vpop.f32.mrf.mxu2  ;;  %2570 = vmatpush.bf16.msrb.mxu2 %v5056_v37  ;;  %v5808_v37 = vld [vmem:[%s8163_s6 + $0x40] sm:$0xff] }
 0xb3f   : > { %2571 = vmatpush.bf16.msrb.mxu2 %v5048_v43 }
 0xb43   : > { %v2180_v45 = vpop.f32.mrf.mxu2 }
 0xb9a   : > { %v2237_v46 = vpop.f32.mrf.mxu0 }
 0xb9b   : > { %2354 = vrot.lane.b32.xlu2 %v2237_v46, %s6926_s28  ;;  %v5039_v46 = vld [vmem:[%s8162_s4 + $0x20] sm:$0xf] }
 0xba2   : > { %v2239_v47 = vpop.f32.mrf.mxu0 }
 0xba3   : > { %v5789_v47 = vld [vmem:[%s8162_s4 + $0x24] sm:$0xf0] }
 0xbb0   : > { %v2293_v48 = vpop.f32.mrf.mxu2 }
 0xbb1   : > { %2358 = vrot.lane.b32.xlu1 %v2293_v48, %s6924_s9  ;;  %v5788_v48 = vld [vmem:[%s8162_s4 + $0x24] sm:$0xf] }
 0xbb2   : > { %v2349_v49 = vpop.f32.mrf.mxu0 }
 0xbb8   : > { %v2295_v2 = vpop.f32.mrf.mxu2 }
 0xbb9   : > { %2362 = vrot.lane.b32.xlu1 %v2349_v49, %s6925_s7  ;;  %v5040_v49 = vor.u32 %v5789_v47, %v5039_v46  ;;  %v5041_v2 = vld [vmem:[%s8162_s4 + $0x28] sm:$0xf0] }
 0xbba   : > { %v2351_v50 = vpop.f32.mrf.mxu0 }
 0xbbb   : > { %v5044_v50 = vor.u32 %v5788_v48, %v5041_v2  ;;  %2572 = vmatpush.bf16.msrb.mxu2 %v5040_v49  ;;  %v6165_v2 = vld [vmem:[%s8165_s10] ss:$0 sm:$0xff] }
 0xbbf   : > { %2573 = vmatpush.bf16.msrb.mxu2 %v5032_v53 }
 0xbf5   : > { %v2355_v59 = vpop.permute.xlu2 %2354 }
 0xbf6   : > { %v2365_v60 = vsel %vm1533_vm4, %v2178_v44, %v2355_v59  ;;  %v5049_v44 = vld [vmem:[%s8162_s4 + $0x38] sm:$0xf0]  ;;  %v5025_v59 = vld [vmem:[%s8162_s4 + $0x8] sm:$0xf0] }
 0xbf7   : > { %v5052_v45 = vor.u32 %v5790_v42, %v5049_v44 }
 0xbf9   : > { %2584 = vmatpush.bf16.msra.mxu3 %v5052_v45 }
 0xbfd   : > { %2585 = vmatpush.bf16.msra.mxu3 %v5044_v50 }
 0xc01   : > { %2586 = vmatpush.bf16.msra.mxu3 %v5036_v57  ;;  %v5838_v57 = vld [vmem:[%s8152_s3 + $0x170] sm:$0xf0] }
 0xc23   : > { %v2359_v58 = vpop.permute.xlu1 %2358 }
 0xc24   : > { %v2366_v61 = vsel %vm1784_vm8, %v2365_v60, %v2359_v58  ;;  %v5784_v58 = vld [vmem:[%s8162_s4 + $0x4] sm:$0xf]  ;;  %v5024_v60 = vor.u32 %v5785_v56, %v5023_v55  ;;  %v5268_v56 = vld [vmem:[%s8152_s3 + $0x168] sm:$0xf] }
 0xc26   : > { %2574 = vmatpush.bf16.msrb.mxu2 %v5024_v60  ;;  %v5270_v60 = vld [vmem:[%s8152_s3 + $0x174] sm:$0xf0] }
 0xc2b   : > { %v2363_v62 = vpop.permute.xlu1 %2362 }
 0xc2c   : > { %v2367_v63 = vsel %vm1786_vm9, %v2366_v61, %v2363_v62  ;;  %v5028_v61 = vor.u32 %v5784_v58, %v5025_v59  ;;  %v5807_v62 = vld [vmem:[%s8163_s6 + $0x38] sm:$0xff]  ;;  %v5837_v58 = vld [vmem:[%s8152_s3 + $0x16c] sm:$0xf]  ;;  %v5269_v59 = vor.u32 %v5838_v57, %v5268_v56  ;;  %v5820_v56 = vld [vmem:[%s8152_s3 + $0xe0] sm:$0xf0] }
 0xc2d   : > { %v2368_v1 = vpack.c.bf16 %v2367_v63, %v2367_v63  ;;  %v5815_v63 = vld [vmem:[%s8163_s6 + $0x78] sm:$0xff]  ;;  %2729 = vmatpush.bf16.msra.mxu0 %v5807_v62 }
 0xc2e   : > { %2587 = vmatpush.bf16.msra.mxu3 %v5028_v61  ;;  %2742 = vmatpush.bf16.msrb.mxu1 %v5815_v63  ;;  %v5276_v61 = vld [vmem:[%s8152_s3 + $0x170] sm:$0xf]  ;;  %v5839_v62 = vld [vmem:[%s8152_s3 + $0x178] sm:$0xf0]  ;;  %v5273_v63 = vor.u32 %v5837_v58, %v5270_v60  ;;  %v5204_v60 = vld [vmem:[%s8152_s3 + $0xe0] sm:$0xf] }
 0xc2f   : > { %2428 = vmatmul.bf16.vlgmr.msra.gmra.mxu1 %v2368_v1  ;;  %2959 = vmatpush.bf16.msra.mxu2 %v5269_v59  ;;  %v5819_v57 = vld [vmem:[%s8152_s3 + $0xdc] sm:$0xf]  ;;  %v5198_v59 = vld [vmem:[%s8152_s3 + $0xe4] sm:$0xf0] }
 0xc32   : > { %2972 = vmatpush.bf16.msrb.mxu3 %v5273_v63 }
 0xcac   : > { %v2429_v4 = vpop.f32.mrf.mxu1 }
 0xcad   : > { %v2430_v5 = vadd.f32 %v6162_v3, %v2429_v4  ;;  %v5806_v4 = vld [vmem:[%s8163_s6 + $0x30] sm:$0xff] }
 0xcae   : > { %2730 = vmatpush.bf16.msra.mxu0 %v5806_v4 }
 0xcaf   : > { %v7678_v6 = vadd.f32 %v2430_v5, %v7567_v25  ;;  %v5814_v5 = vld [vmem:[%s8163_s6 + $0x70] sm:$0xff] }
 0xcb0   : > { %2743 = vmatpush.bf16.msrb.mxu1 %v5814_v5 }
 0xcb1   : > { %2436 = vadd.xlane.f32.xlu0 %v7678_v6 }
 0xcb2   : > { %2731 = vmatpush.bf16.msra.mxu0 %v5805_v8  ;;  %v5835_v8 = vld [vmem:[%s8152_s3 + $0x158] sm:$0xf0] }
 0xcb4   : > { %v2431_v7 = vpop.f32.mrf.mxu1  ;;  %2744 = vmatpush.bf16.msrb.mxu1 %v5813_v26  ;;  %v5834_v26 = vld [vmem:[%s8152_s3 + $0x154] sm:$0xf] }
 0xcb6   : > { %2732 = vmatpush.bf16.msra.mxu0 %v5804_v10 }
 0xcb8   : > { %2745 = vmatpush.bf16.msrb.mxu1 %v5812_v11  ;;  %v5258_v11 = vld [vmem:[%s8152_s3 + $0x15c] sm:$0xf0] }
 0xd24   : > { %v2437_v25 = vpop.xlane.xlu0 %2436 }
 0xd25   : > { %v2438_v14 = vmul.f32 %v2437_v25, %v7446_v18  ;;  %v5803_v25 = vld [vmem:[%s8163_s6 + $0x18] sm:$0xff] }
 0xd26   : > { %2733 = vmatpush.bf16.msra.mxu0 %v5803_v25  ;;  %v5261_v25 = vor.u32 %v5834_v26, %v5258_v11  ;;  %v5818_v26 = vld [vmem:[%s8152_s3 + $0xd0] sm:$0xf0] }
 0xd27   : > { %v7687_v15 = vsub.f32 %v7678_v6, %v2438_v14  ;;  %v5811_v14 = vld [vmem:[%s8163_s6 + $0x58] sm:$0xff] }
 0xd28   : > { %2746 = vmatpush.bf16.msrb.mxu1 %v5811_v14  ;;  %2973 = vmatpush.bf16.msrb.mxu3 %v5261_v25 }
 0xd29   : > { %v2440_v16 = vmul.f32 %v7687_v15, %v7687_v15 }
 0xd2a   : > { %2734 = vmatpush.bf16.msra.mxu0 %v5802_v19  ;;  %v5831_v19 = vld [vmem:[%s8152_s3 + $0x13c] sm:$0xf] }
 0xd2b   : > { %2441 = vadd.xlane.f32.xlu1 %v2440_v16 }
 0xd2c   : > { %2747 = vmatpush.bf16.msrb.mxu1 %v5810_v20 }
 0xd2e   : > { %2735 = vmatpush.bf16.msra.mxu0 %v5801_v34  ;;  %v5234_v34 = vld [vmem:[%s8152_s3 + $0x12c] sm:$0xf0] }
 0xd30   : > { %2748 = vmatpush.bf16.msrb.mxu1 %v5809_v35  ;;  %v5240_v35 = vld [vmem:[%s8152_s3 + $0x128] sm:$0xf] }
 0xd32   : > { %2736 = vmatpush.bf16.msra.mxu0 %v5800_v36  ;;  %v5830_v36 = vld [vmem:[%s8152_s3 + $0x130] sm:$0xf0] }
 0xd33   : > { %v5241_v38 = vor.u32 %v5830_v36, %v5240_v35 }
 0xd34   : > { %2749 = vmatpush.bf16.msrb.mxu1 %v5808_v37 }
 0xd9e   : > { %v2442_v1 = vpop.xlane.xlu1 %2441 }
 0xd9f   : > { %v2443_v3 = vmul.f32 %v2442_v1, %v7446_v18 }
 0xda1   : > { %v2444_v7 = vadd.f32 1e-06, %v2443_v3 }
 0xda3   : > { %6217 = vrsqrt.f32 %v2444_v7  ;;  %vm2451_vm1 = vweird.f32 %v2444_v7 }
 0xda9   : > { %v6218_v12 = vpop.eup %6217 }
 0xdaa   : > { %v2446_v13 = vmul.f32 %v6218_v12, %v2444_v7  ;;  %vm2452_vm0 = vweird.f32 %v6218_v12  ;;  %v5256_v7 = vld [vmem:[%s8152_s3 + $0x150] sm:$0xf] }
 0xdab   : > { %vm2453_vm2 = vmor %vm2451_vm1, %vm2452_vm0  ;;  %v5257_v10 = vor.u32 %v5835_v8, %v5256_v7  ;;  %v5186_v7 = vld [vmem:[%s8152_s3 + $0xcc] sm:$0xf0]  ;;  %v5192_v8 = vld [vmem:[%s8152_s3 + $0xc8] sm:$0xf] }
 0xdac   : > { %v2447_v16 = vmul.f32 %v6218_v12, %v2446_v13  ;;  %v5836_v13 = vld [vmem:[%s8152_s3 + $0x160] sm:$0xf0]  ;;  %v5193_v11 = vor.u32 %v5818_v26, %v5192_v8 }
 0xdad   : > { %2960 = vmatpush.bf16.msra.mxu2 %v5257_v10 }
 0xdae   : > { %v2448_v17 = vmul.f32 0.5, %v2447_v16  ;;  %v5244_v16 = vld [vmem:[%s8152_s3 + $0x138] sm:$0xf] }
 0xdb0   : > { %v2449_v22 = vsub.f32 1.5, %v2448_v17  ;;  %v5832_v17 = vld [vmem:[%s8152_s3 + $0x140] sm:$0xf0] }
 0xdb1   : > { %v5245_v20 = vor.u32 %v5832_v17, %v5244_v16 }
 0xdb2   : > { %v2450_v23 = vmul.f32 %v6218_v12, %v2449_v22  ;;  %v5246_v22 = vld [vmem:[%s8152_s3 + $0x144] sm:$0xf0] }
 0xdb3   : > { %2961 = vmatpush.bf16.msra.mxu2 %v5245_v20 }
 0xdb4   : > { %v2454_v27 = vsel %vm2453_vm2, %v6218_v12, %v2450_v23  ;;  %v5264_v12 = vld [vmem:[%s8152_s3 + $0x158] sm:$0xf]  ;;  %v5252_v23 = vld [vmem:[%s8152_s3 + $0x140] sm:$0xf] }
 0xdb5   : > { %v2455_v28 = vmul.f32 %v2454_v27, %v7687_v15  ;;  %v5265_v14 = vor.u32 %v5836_v13, %v5264_v12  ;;  %v5249_v27 = vor.u32 %v5831_v19, %v5246_v22 }
 0xdb7   : > { %v2459_v31 = vmul.f32 %v6163_v24, %v2455_v28  ;;  %v5833_v24 = vld [vmem:[%s8152_s3 + $0x148] sm:$0xf0]  ;;  %2974 = vmatpush.bf16.msrb.mxu3 %v5249_v27 }
 0xdb8   : > { %v5253_v28 = vor.u32 %v5833_v24, %v5252_v23  ;;  %v6166_v23 = vld [vmem:[#allocation13 + $0x1] ss:$0 sm:$0xff] }
 0xdb9   : > { %v2463_v32 = vadd.f32 %v6164_v29, %v2459_v31  ;;  %v5232_v29 = vld [vmem:[%s8152_s3 + $0x120] sm:$0xf]  ;;  %v5829_v31 = vld [vmem:[%s8152_s3 + $0x128] sm:$0xf0] }
 0xdbb   : > { %v2464_v33 = vpack.c.bf16 %v2463_v32, %v2463_v32  ;;  %v5828_v32 = vld [vmem:[%s8152_s3 + $0x124] sm:$0xf] }
 0xdbc   : > { %v5237_v37 = vor.u32 %v5828_v32, %v5234_v34 }
 0xdbd   : > { %2575 = vmatmul.bf16.vlgmr.msrb.gmra.mxu2 %v2464_v33  ;;  %2588 = vmatmul.bf16.vlgmr.msra.gmra.mxu3 %v2464_v33  ;;  %v5233_v33 = vor.u32 %v5829_v31, %v5232_v29 }
 0xdbe   : > { %2975 = vmatpush.bf16.msrb.mxu3 %v5237_v37 }
 0xdbf   : > { %2962 = vmatpush.bf16.msra.mxu2 %v5233_v33  ;;  %v5181_v33 = vld [vmem:[%s8153_s8 + $0x3] sm:$0x7] }
 0xdc0   : > { %v2827_v34 = vperm.slane %v5181_v33, 2  ;;  %v2825_v37 = vperm.slane %v5181_v33, 0 }
 0xe40   : > { %v2576_v41 = vpop.f32.mrf.mxu2  ;;  %v2589_v15 = vpop.f32.mrf.mxu3 }
 0xe41   : > { %v2577_v42 = vadd.f32 %v2576_v41, %v2483_v39  ;;  %v2590_v43 = vadd.f32 %v2589_v15, %v2484_v40  ;;  %v5220_v39 = vld [vmem:[%s8152_s3 + $0x108] sm:$0xf]  ;;  %v5826_v40 = vld [vmem:[%s8152_s3 + $0x110] sm:$0xf0]  ;;  %v5825_v41 = vld [vmem:[%s8152_s3 + $0x10c] sm:$0xf] }
 0xe42   : > { %v5221_v15 = vor.u32 %v5826_v40, %v5220_v39 }
 0xe43   : > { %v2593_v44 = vmax.f32 %v2577_v42, 0.0  ;;  %v2594_v45 = vmax.f32 %v2590_v43, 0.0  ;;  %v5222_v42 = vld [vmem:[%s8152_s3 + $0x114] sm:$0xf0]  ;;  %v5228_v43 = vld [vmem:[%s8152_s3 + $0x110] sm:$0xf] }
 0xe44   : > { %2963 = vmatpush.bf16.msra.mxu2 %v5221_v15 }
 0xe45   : > { %v2595_v46 = vpack.c.bf16 %v2593_v44, %v2593_v44  ;;  %v2596_v47 = vpack.c.bf16 %v2594_v45, %v2594_v45  ;;  %v5827_v44 = vld [vmem:[%s8152_s3 + $0x118] sm:$0xf0]  ;;  %v5225_v45 = vor.u32 %v5825_v41, %v5222_v42 }
 0xe47   : > { %2737 = vmatmul.bf16.vlgmr.msra.gmra.mxu0 %v2595_v46  ;;  %2750 = vmatmul.bf16.vlgmr.msrb.gmra.mxu1 %v2596_v47  ;;  %v5229_v46 = vor.u32 %v5827_v44, %v5228_v43  ;;  %v5208_v47 = vld [vmem:[%s8152_s3 + $0xf0] sm:$0xf] }
 0xe48   : > { %v2578_v48 = vpop.f32.mrf.mxu2  ;;  %v2591_v49 = vpop.f32.mrf.mxu3  ;;  %2976 = vmatpush.bf16.msrb.mxu3 %v5225_v45 }
 0xe49   : > { %v5823_v48 = vld [vmem:[%s8152_s3 + $0xf8] sm:$0xf0]  ;;  %v5822_v49 = vld [vmem:[%s8152_s3 + $0xf4] sm:$0xf] }
 0xec4   : > { %v2738_v50 = vpop.f32.mrf.mxu0  ;;  %v2751_v21 = vpop.f32.mrf.mxu1 }
 0xec5   : > { %v2739_v51 = vadd.f32 %v6165_v2, %v2738_v50  ;;  %v5209_v2 = vor.u32 %v5823_v48, %v5208_v47  ;;  %v5210_v50 = vld [vmem:[%s8152_s3 + $0xfc] sm:$0xf0] }
 0xec7   : > { %v2752_v52 = vadd.f32 %v2751_v21, %v2739_v51  ;;  %v5216_v21 = vld [vmem:[%s8152_s3 + $0xf8] sm:$0xf]  ;;  %v5824_v51 = vld [vmem:[%s8152_s3 + $0x100] sm:$0xf0]  ;;  %2964 = vmatpush.bf16.msra.mxu2 %v5209_v2 }
 0xec9   : > { %v7740_v53 = vadd.f32 %v2752_v52, %v7678_v6  ;;  %v5277_v6 = vor.u32 %v5839_v62, %v5276_v61  ;;  %v5213_v52 = vor.u32 %v5822_v49, %v5210_v50  ;;  %v5821_v61 = vld [vmem:[%s8152_s3 + $0xe8] sm:$0xf0]  ;;  %v5201_v62 = vor.u32 %v5819_v57, %v5198_v59 }
 0xeca   : > { %v5205_v63 = vor.u32 %v5821_v61, %v5204_v60 }
 0xecb   : > { %2760 = vadd.xlane.f32.xlu2 %v7740_v53  ;;  %2985 = vmatpush.bf16.msrb.mxu0 %v5277_v6  ;;  %v5184_v6 = vld [vmem:[%s8152_s3 + $0xc0] sm:$0xf] }
 0xecc   : > { %v2740_v54 = vpop.f32.mrf.mxu0  ;;  %v2753_v55 = vpop.f32.mrf.mxu1  ;;  %2977 = vmatpush.bf16.msrb.mxu3 %v5213_v52 }
 0xecd   : > { %v5217_v54 = vor.u32 %v5824_v51, %v5216_v21  ;;  %v5196_v55 = vld [vmem:[%s8152_s3 + $0xd8] sm:$0xf] }
 0xece   : > { %v5197_v58 = vor.u32 %v5820_v56, %v5196_v55 }
 0xecf   : > { %2986 = vmatpush.bf16.msrb.mxu0 %v5265_v14 }
 0xed0   : > { %2965 = vmatpush.bf16.msra.mxu2 %v5197_v58  ;;  %2978 = vmatpush.bf16.msrb.mxu3 %v5201_v62 }
 0xed3   : > { %2987 = vmatpush.bf16.msrb.mxu0 %v5253_v28  ;;  %v6167_v28 = vld [vmem:[#allocation14 + $0x1] ss:$0 sm:$0xff] }
 0xed7   : > { %2988 = vmatpush.bf16.msrb.mxu0 %v5241_v38  ;;  %v2826_v38 = vperm.slane %v5181_v33, 1 }
 0xedb   : > { %2989 = vmatpush.bf16.msrb.mxu0 %v5229_v46 }
 0xedf   : > { %2990 = vmatpush.bf16.msrb.mxu0 %v5217_v54 }
 0xee3   : > { %2991 = vmatpush.bf16.msrb.mxu0 %v5205_v63 }
 0xee7   : > { %2992 = vmatpush.bf16.msrb.mxu0 %v5193_v11 }
 0xf3e   : > { %v2761_v1 = vpop.xlane.xlu2 %2760 }
 0xf3f   : > { %v2762_v3 = vmul.f32 %v2761_v1, %v7446_v18  ;;  %v5817_v1 = vld [vmem:[%s8152_s3 + $0xc8] sm:$0xf0] }
 0xf41   : > { %v7751_v4 = vsub.f32 %v7740_v53, %v2762_v3  ;;  %v5816_v3 = vld [vmem:[%s8152_s3 + $0xc4] sm:$0xf] }
 0xf42   : > { %v5189_v10 = vor.u32 %v5816_v3, %v5186_v7 }
 0xf43   : > { %v2764_v5 = vmul.f32 %v7751_v4, %v7751_v4 }
 0xf44   : > { %2979 = vmatpush.bf16.msrb.mxu3 %v5189_v10 }
 0xf45   : > { %2765 = vadd.xlane.f32.xlu0 %v2764_v5  ;;  %v5185_v5 = vor.u32 %v5817_v1, %v5184_v6 }
 0xf47   : > { %2966 = vmatpush.bf16.msra.mxu2 %v5185_v5 }
 0xfb8   : > { %v2766_v12 = vpop.xlane.xlu0 %2765 }
 0xfb9   : > { %v2767_v13 = vmul.f32 %v2766_v12, %v7446_v18 }
 0xfbb   : > { %v2768_v25 = vadd.f32 1e-06, %v2767_v13 }
 0xfbd   : > { %6219 = vrsqrt.f32 %v2768_v25  ;;  %vm2775_vm10 = vweird.f32 %v2768_v25 }
 0xfc3   : > { %v6220_v14 = vpop.eup %6219 }
 0xfc4   : > { %v2770_v16 = vmul.f32 %v6220_v14, %v2768_v25  ;;  %vm2776_vm3 = vweird.f32 %v6220_v14 }
 0xfc5   : > { %vm2777_vm11 = vmor %vm2775_vm10, %vm2776_vm3 }
 0xfc6   : > { %v2771_v17 = vmul.f32 %v6220_v14, %v2770_v16 }
 0xfc8   : > { %v2772_v19 = vmul.f32 0.5, %v2771_v17 }
 0xfca   : > { %v2773_v20 = vsub.f32 1.5, %v2772_v19 }
 0xfcc   : > { %v2774_v22 = vmul.f32 %v6220_v14, %v2773_v20 }
 0xfce   : > { %v2778_v24 = vsel %vm2777_vm11, %v6220_v14, %v2774_v22 }
 0xfcf   : > { %v2779_v27 = vmul.f32 %v2778_v24, %v7751_v4 }
 0xfd1   : > { %v2783_v29 = vmul.f32 %v6166_v23, %v2779_v27 }
 0xfd3   : > { %v2787_v31 = vadd.f32 %v6167_v28, %v2783_v29 }
 0xfd5   : > { %v2788_v32 = vpack.c.bf16 %v2787_v31, %v2787_v31 }
 0xfd7   : > { %2967 = vmatmul.bf16.vlgmr.msra.gmra.mxu2 %v2788_v32  ;;  %2980 = vmatmul.bf16.vlgmr.msrb.gmra.mxu3 %v2788_v32 }
 0xfd8   : > { %2993 = vmatmul.bf16.vlgmr.msrb.gmra.mxu0 %v2788_v32 }
0x1055   : > { %v2994_v35 = vpop.f32.mrf.mxu0 }
0x1056   : > { %v2995_v36 = vadd.f32 %v2994_v35, %v2827_v34 }
0x1058   : > { %v7800_v39 = vpack.c.bf16 %v2995_v36, %v2995_v36 }
0x105a   : > { %v3057_v40 = vsel %vm1571_vm5, %v7800_v39, 0  ;;  %v2968_v41 = vpop.f32.mrf.mxu2  ;;  %v2981_v4 = vpop.f32.mrf.mxu3  ;;  %v3116_v29 = vunpack.c.l.b16 %v7800_v39 }
0x105b   : > { %v2969_v15 = vadd.f32 %v2968_v41, %v2825_v37  ;;  %v2982_v42 = vadd.f32 %v2981_v4, %v2826_v38  ;;  %3066 = vmatpush.bf16.msrb.mxu2 %v3057_v40 }
0x105c   : > { %v3117_v31 = vpack.c.b16 %v3116_v29, %v3116_v29 }
0x105d   : > { %v3017_v43 = vpack.c.bf16 %v2969_v15, %v2969_v15  ;;  %v3018_v44 = vpack.c.bf16 %v2982_v42, %v2982_v42  ;;  %v2996_v45 = vpop.f32.mrf.mxu0 }
0x105f   : > { %v3073_v46 = vunpack.c.l.b16 %v3017_v43  ;;  %v3024_v47 = vsel %vm1533_vm4, %v3018_v44, 0  ;;  %v3078_v48 = vunpack.c.l.b16 %v3018_v44 }
0x1060   : > { %3033 = vmatpush.bf16.xpose.msra.mxu1 %v3024_v47 }
0x1061   : > { %v3074_v49 = vpack.c.b16 %v3073_v46, %v3073_v46  ;;  %v3079_v2 = vpack.c.b16 %v3078_v48, %v3078_v48 }
0x1062   : > { %v2970_v50 = vpop.f32.mrf.mxu2  ;;  %v2983_v21 = vpop.f32.mrf.mxu3 }
0x1063   : > { %3141 = vrot.lane.b32.xlu0 %v3079_v2, %s6924_s9  ;;  %3080 = vrot.lane.b32.xlu1 %v3079_v2, %s6925_s7 }
0x1064   : > { %3075 = vrot.lane.b32.xlu2 %v3074_v49, %s6925_s7 }
0x1067   : > { %5294 = vmatmul.msk.bf16.vlgmr.msra.gmra.mxu1 %vm1533_vm4, %v3017_v43 }
0x106b   : > { %3199 = vrot.lane.b32.xlu1 %v3079_v2, %s6926_s28  ;;  %3197 = vrot.lane.b32.xlu0 %v3074_v49, %s6926_s28 }
0x106c   : > { %3139 = vrot.lane.b32.xlu2 %v3074_v49, %s6924_s9 }
0x10be   : > { %v3076_v51 = vpop.permute.xlu2 %3075 }
0x10c6   : > { %v3140_v57 = vpop.permute.xlu2 %3139 }
0x10d5   : > { %v3142_v52 = vpop.permute.xlu0 %3141  ;;  %v3081_v54 = vpop.permute.xlu1 %3080 }
0x10d6   : > { %v3147_v55 = vsel %vm1533_vm4, %v3142_v52, 0  ;;  %v3086_v56 = vsel %vm1533_vm4, %v3081_v54, 0 }
0x10d7   : > { %3095 = vmatpush.bf16.xpose.msra.mxu3 %v3086_v56  ;;  %3156 = vmatpush.bf16.xpose.msrb.mxu1 %v3147_v55 }
0x10dd   : > { %v3200_v58 = vpop.permute.xlu1 %3199  ;;  %v3198_v1 = vpop.permute.xlu0 %3197 }
0x10de   : > { %v3205_v59 = vsel %vm1533_vm4, %v3200_v58, 0  ;;  %5296 = vmatmul.msk.bf16.vlgmr.msra.gmra.mxu3 %vm1533_vm4, %v3076_v51  ;;  %5298 = vmatmul.msk.bf16.vlgmr.msrb.gmra.mxu1 %vm1533_vm4, %v3140_v57 }
0x10df   : > { %3214 = vmatpush.bf16.xpose.msrb.mxu3 %v3205_v59 }
0x10e4   : > { %v3035_v60 = vpop.f32.mrf.mxu1 }
0x10e5   : > { %v3039_v61 = vmul.f32 0.17677669, %v3035_v60 }
0x10e7   : > { %v3040_v62 = vsel %vm1261_vm6, %v3039_v61, -1e+09 }
0x10e8   : > { %v3041_v63 = vsel %vm1555_vm7, %v3040_v62, -inf }
0x10e9   : > { %3042 = vmax.xlane.f32.xlu1 %v3041_v63 }
0x10ec   : > { %v3037_v6 = vpop.f32.mrf.mxu1 }
0x10ee   : > { %5300 = vmatmul.msk.bf16.vlgmr.msrb.gmra.mxu3 %vm1533_vm4, %v3198_v1 }
0x115b   : > { %v3158_v3 = vpop.f32.mrf.mxu1 }
0x115c   : > { %v3162_v5 = vmul.f32 0.17677669, %v3158_v3  ;;  %v3043_v7 = vpop.xlane.xlu1 %3042 }
0x115d   : > { %v3044_v8 = vsub.f32 %v3040_v62, %v3043_v7 }
0x115e   : > { %v3163_v26 = vsel %vm1261_vm6, %v3162_v5, -1e+09 }
0x115f   : > { %v3164_v10 = vsel %vm1555_vm7, %v3163_v26, -inf  ;;  %v3045_v11 = vmul.f32 1.442695, %v3044_v8  ;;  %v5847_v8 = vld [vmem:[%s8154_s17 + $0x78] sm:$0xff] }
0x1160   : > { %3165 = vmax.xlane.f32.xlu0 %v3164_v10  ;;  %3322 = vmatpush.bf16.msra.mxu1 %v5847_v8 }
0x1161   : > { %v3097_v12 = vpop.f32.mrf.mxu3  ;;  %6221 = vpow2.f32 %v3045_v11 }
0x1162   : > { %v3101_v13 = vmul.f32 0.17677669, %v3097_v12  ;;  %v5845_v12 = vld [vmem:[%s8154_s17 + $0x68] sm:$0xff] }
0x1163   : > { %v3160_v25 = vpop.f32.mrf.mxu1 }
0x1164   : > { %v3102_v14 = vsel %vm1261_vm6, %v3101_v13, -1e+09  ;;  %v5844_v13 = vld [vmem:[%s8154_s17 + $0x60] sm:$0xff]  ;;  %v5843_v25 = vld [vmem:[%s8154_s17 + $0x58] sm:$0xff] }
0x1165   : > { %v3103_v16 = vsel %vm1555_vm7, %v3102_v14, -inf }
0x1166   : > { %3104 = vmax.xlane.f32.xlu2 %v3103_v16 }
0x1167   : > { %v6222_v19 = vpop.eup %6221 }
0x1168   : > { %v3047_v20 = vsel %vm1555_vm7, %v6222_v19, 0.0 }
0x1169   : > { %v3099_v17 = vpop.f32.mrf.mxu3 }
0x116e   : > { %3048 = vadd.xlane.f32.xlu2 %v3047_v20  ;;  %v5840_v20 = vld [vmem:[%s8154_s17 + $0x40] sm:$0xff] }
0x1171   : > { %v3216_v22 = vpop.f32.mrf.mxu3 }
0x1172   : > { %v3220_v23 = vmul.f32 0.17677669, %v3216_v22 }
0x1174   : > { %v3221_v24 = vsel %vm1261_vm6, %v3220_v23, -1e+09 }
0x1175   : > { %v3222_v27 = vsel %vm1555_vm7, %v3221_v24, -inf }
0x1176   : > { %3223 = vmax.xlane.f32.xlu1 %v3222_v27 }
0x1179   : > { %v3218_v28 = vpop.f32.mrf.mxu3 }
0x118f   : > { %3118 = vrot.lane.b32.xlu1 %v3117_v31, %s6925_s7 }
0x11d3   : > { %v3166_v32 = vpop.xlane.xlu0 %3165 }
0x11d4   : > { %v3167_v33 = vsub.f32 %v3163_v26, %v3166_v32  ;;  %v5846_v26 = vld [vmem:[%s8154_s17 + $0x70] sm:$0xff]  ;;  %v6168_v32 = vld [vmem:[#allocation7 + $0x1] ss:$0 sm:$0xff] }
0x11d5   : > { %3323 = vmatpush.bf16.msra.mxu1 %v5846_v26 }
0x11d6   : > { %v3168_v34 = vmul.f32 1.442695, %v3167_v33 }
0x11d8   : > { %6223 = vpow2.f32 %v3168_v34 }
0x11d9   : > { %v3105_v35 = vpop.xlane.xlu2 %3104  ;;  %3324 = vmatpush.bf16.msra.mxu1 %v5845_v12 }
0x11da   : > { %v3106_v36 = vsub.f32 %v3102_v14, %v3105_v35  ;;  %v5842_v14 = vld [vmem:[%s8154_s17 + $0x50] sm:$0xff] }
0x11dc   : > { %v3107_v37 = vmul.f32 1.442695, %v3106_v36 }
0x11dd   : > { %3325 = vmatpush.bf16.msra.mxu1 %v5844_v13  ;;  %v7892_v13 = vld [vmem:[%s8158_s26 + $0x2] sm:$0x3] }
0x11de   : > { %v6224_v38 = vpop.eup %6223  ;;  %6225 = vpow2.f32 %v3107_v37  ;;  %v5457_v37 = vld [vmem:[%s8155_s19 + $0xf0] sm:$0xf] }
0x11df   : > { %v3170_v0 = vsel %vm1555_vm7, %v6224_v38, 0.0 }
0x11e0   : > { %3171 = vadd.xlane.f32.xlu2 %v3170_v0  ;;  %v5449_v0 = vld [vmem:[%s8155_s19 + $0xe0] sm:$0xf] }
0x11e1   : > { %v3049_v40 = vpop.xlane.xlu2 %3048  ;;  %3326 = vmatpush.bf16.msra.mxu1 %v5843_v25 }
0x11e2   : > { %6227 = vrcp.f32 %v3049_v40 }
0x11e4   : > { %v6226_v41 = vpop.eup %6225 }
0x11e5   : > { %v3109_v39 = vsel %vm1555_vm7, %v6226_v41, 0.0  ;;  %3327 = vmatpush.bf16.msra.mxu1 %v5842_v14  ;;  %v3472_v14 = vperm.slane %v7892_v13, 0 }
0x11e6   : > { %3110 = vadd.xlane.f32.xlu0 %v3109_v39 }
0x11e8   : > { %v6228_v4 = vpop.eup %6227 }
0x11e9   : > { %v3051_v15 = vmul.f32 %v6228_v4, %v6222_v19  ;;  %v3224_v42 = vpop.xlane.xlu1 %3223  ;;  %v5841_v19 = vld [vmem:[%s8154_s17 + $0x48] sm:$0xff]  ;;  %v5441_v4 = vld [vmem:[%s8155_s19 + $0xd0] sm:$0xf] }
0x11ea   : > { %v3225_v43 = vsub.f32 %v3221_v24, %v3224_v42  ;;  %3328 = vmatpush.bf16.msra.mxu1 %v5841_v19 }
0x11eb   : > { %v3052_v44 = vpack.c.bf16 %v3051_v15, %v3051_v15  ;;  %v5867_v15 = vld [vmem:[%s8155_s19 + $0xd4] sm:$0xf0] }
0x11ec   : > { %v3226_v45 = vmul.f32 1.442695, %v3225_v43  ;;  %v5442_v42 = vor.u32 %v5867_v15, %v5441_v4  ;;  %v5433_v43 = vld [vmem:[%s8155_s19 + $0xc0] sm:$0xf] }
0x11ed   : > { %5295 = vmatmul.msk.bf16.vlgmr.msrb.gmra.mxu2 %vm1555_vm7, %v3052_v44  ;;  %v5865_v44 = vld [vmem:[%s8155_s19 + $0xc4] sm:$0xf0]  ;;  %v6171_v4 = vld [vmem:[#allocation8 + $0x1] ss:$0 sm:$0xff] }
0x11ee   : > { %6229 = vpow2.f32 %v3226_v45  ;;  %3329 = vmatpush.bf16.msra.mxu1 %v5840_v20  ;;  %v5434_v45 = vor.u32 %v5865_v44, %v5433_v43  ;;  %v6169_v20 = vld [vmem:[#allocation16 + $0x1] ss:$0 sm:$0xff] }
0x11f4   : > { %v6230_v46 = vpop.eup %6229 }
0x11f5   : > { %v3228_v47 = vsel %vm1555_vm7, %v6230_v46, 0.0 }
0x11f6   : > { %3229 = vadd.xlane.f32.xlu0 %v3228_v47  ;;  %v5863_v47 = vld [vmem:[%s8155_s19 + $0xb4] sm:$0xf0] }
0x11f8   : > { %3176 = vrot.lane.b32.xlu2 %v3117_v31, %s6924_s9 }
0x1201   : > { %v3119_v48 = vpop.permute.xlu1 %3118 }
0x1202   : > { %v3124_v49 = vsel %vm1571_vm5, %v3119_v48, 0 }
0x1203   : > { %3133 = vmatpush.bf16.msra.mxu0 %v3124_v49  ;;  %v5417_v49 = vld [vmem:[%s8155_s19 + $0xa0] sm:$0xf] }
0x120a   : > { %3234 = vrot.lane.b32.xlu0 %v3117_v31, %s6926_s28 }
0x1253   : > { %v3172_v2 = vpop.xlane.xlu2 %3171 }
0x1254   : > { %6231 = vrcp.f32 %v3172_v2  ;;  %v5861_v2 = vld [vmem:[%s8155_s19 + $0xa4] sm:$0xf0] }
0x1259   : > { %v3111_v50 = vpop.xlane.xlu0 %3110 }
0x125a   : > { %v6232_v21 = vpop.eup %6231  ;;  %6233 = vrcp.f32 %v3111_v50  ;;  %v5418_v50 = vor.u32 %v5861_v2, %v5417_v49  ;;  %v5870_v49 = vld [vmem:[%s8155_s19 + $0xf4] sm:$0xf]  ;;  %v5459_v2 = vld [vmem:[%s8155_s19 + $0xf8] sm:$0xf0] }
0x125b   : > { %v3174_v51 = vmul.f32 %v6232_v21, %v6224_v38  ;;  %v3177_v52 = vpop.permute.xlu2 %3176  ;;  %v5871_v38 = vld [vmem:[%s8155_s19 + $0xf4] sm:$0xf0]  ;;  %v5409_v21 = vld [vmem:[%s8155_s19 + $0x90] sm:$0xf] }
0x125c   : > { %v3182_v54 = vsel %vm1571_vm5, %v3177_v52, 0  ;;  %v5458_v40 = vor.u32 %v5871_v38, %v5457_v37 }
0x125d   : > { %v3175_v55 = vpack.c.bf16 %v3174_v51, %v3174_v51  ;;  %3191 = vmatpush.bf16.msra.mxu2 %v3182_v54  ;;  %v5859_v51 = vld [vmem:[%s8155_s19 + $0x94] sm:$0xf0]  ;;  %v5401_v54 = vld [vmem:[%s8155_s19 + $0x80] sm:$0xf] }
0x125e   : > { %3556 = vmatpush.bf16.msra.mxu3 %v5458_v40  ;;  %v5410_v52 = vor.u32 %v5859_v51, %v5409_v21  ;;  %v5462_v51 = vor.u32 %v5870_v49, %v5459_v2 }
0x1260   : > { %v6234_v56 = vpop.eup %6233  ;;  %5299 = vmatmul.msk.bf16.vlgmr.msra.gmra.mxu2 %vm1555_vm7, %v3175_v55  ;;  %v5857_v55 = vld [vmem:[%s8155_s19 + $0x84] sm:$0xf0] }
0x1261   : > { %v3113_v57 = vmul.f32 %v6234_v56, %v6226_v41  ;;  %v5869_v41 = vld [vmem:[%s8155_s19 + $0xe4] sm:$0xf0] }
0x1262   : > { %v5450_v39 = vor.u32 %v5869_v41, %v5449_v0 }
0x1263   : > { %v3114_v58 = vpack.c.bf16 %v3113_v57, %v3113_v57 }
0x1264   : > { %3557 = vmatpush.bf16.msra.mxu3 %v5450_v39 }
0x1265   : > { %5297 = vmatmul.msk.bf16.vlgmr.msra.gmra.mxu0 %vm1555_vm7, %v3114_v58  ;;  %v5402_v58 = vor.u32 %v5857_v55, %v5401_v54 }
0x1268   : > { %3558 = vmatpush.bf16.msra.mxu3 %v5442_v42 }
0x1269   : > { %v3230_v59 = vpop.xlane.xlu0 %3229 }
0x126a   : > { %6235 = vrcp.f32 %v3230_v59 }
0x126c   : > { %3559 = vmatpush.bf16.msra.mxu3 %v5434_v45 }
0x1270   : > { %v3068_v60 = vpop.f32.mrf.mxu2  ;;  %v6236_v61 = vpop.eup %6235 }
0x1271   : > { %v3232_v63 = vmul.f32 %v6236_v61, %v6230_v46  ;;  %v5425_v46 = vld [vmem:[%s8155_s19 + $0xb0] sm:$0xf] }
0x1272   : > { %v5426_v48 = vor.u32 %v5863_v47, %v5425_v46  ;;  %v5854_v61 = vld [vmem:[%s8156_s14 + $0x70] sm:$0xff] }
0x1273   : > { %v3233_v3 = vpack.c.bf16 %v3232_v63, %v3232_v63  ;;  %v5852_v63 = vld [vmem:[%s8156_s14 + $0x60] sm:$0xff] }
0x1274   : > { %3560 = vmatpush.bf16.msra.mxu3 %v5426_v48 }
0x1278   : > { %v3070_v62 = vpop.f32.mrf.mxu2  ;;  %3561 = vmatpush.bf16.msra.mxu3 %v5418_v50  ;;  %v5868_v50 = vld [vmem:[%s8155_s19 + $0xe4] sm:$0xf] }
0x1279   : > { %v5853_v62 = vld [vmem:[%s8156_s14 + $0x68] sm:$0xff] }
0x127c   : > { %v3235_v6 = vpop.permute.xlu0 %3234  ;;  %3562 = vmatpush.bf16.msra.mxu3 %v5410_v52  ;;  %v5451_v52 = vld [vmem:[%s8155_s19 + $0xe8] sm:$0xf0] }
0x127d   : > { %v3240_v1 = vsel %vm1571_vm5, %v3235_v6, 0  ;;  %v5851_v6 = vld [vmem:[%s8156_s14 + $0x58] sm:$0xff]  ;;  %v5454_v55 = vor.u32 %v5868_v50, %v5451_v52 }
0x127e   : > { %3249 = vmatpush.bf16.msrb.mxu0 %v3240_v1  ;;  %v5850_v1 = vld [vmem:[%s8156_s14 + $0x50] sm:$0xff] }
0x1280   : > { %3563 = vmatpush.bf16.msra.mxu3 %v5402_v58 }
0x1281   : > { %5301 = vmatmul.msk.bf16.vlgmr.msrb.gmra.mxu0 %vm1555_vm7, %v3233_v3  ;;  %v5849_v3 = vld [vmem:[%s8156_s14 + $0x48] sm:$0xff] }
0x1282   : > { %3570 = vmatpush.bf16.msra.mxu0 %v5462_v51 }
0x1283   : > { %3564 = vmatmul.bf16.vlgmr.msra.gmra.mxu3 %v7595_v9 }
0x1286   : > { %3571 = vmatpush.bf16.msra.mxu0 %v5454_v55 }
0x12e2   : > { %v3135_v5 = vpop.f32.mrf.mxu0 }
0x12e3   : > { %v3193_v7 = vpop.f32.mrf.mxu2  ;;  %3256 = vrot.lane.b32.xlu1 %v3135_v5, %s6926_s28  ;;  %v5848_v5 = vld [vmem:[%s8156_s14 + $0x40] sm:$0xff] }
0x12e4   : > { %3260 = vrot.lane.b32.xlu0 %v3193_v7, %s6924_s9 }
0x12ea   : > { %v3137_v10 = vpop.f32.mrf.mxu0 }
0x12eb   : > { %v3195_v11 = vpop.f32.mrf.mxu2 }
0x12fe   : > { %v3251_v16 = vpop.f32.mrf.mxu0 }
0x12ff   : > { %3264 = vrot.lane.b32.xlu2 %v3251_v16, %s6925_s7 }
0x1306   : > { %v3253_v17 = vpop.f32.mrf.mxu0 }
0x1307   : > { %v3565_v17 = vpop.f32.mrf.mxu3 }
0x1355   : > { %v3257_v22 = vpop.permute.xlu1 %3256 }
0x1356   : > { %v3267_v23 = vsel %vm1533_vm4, %v3068_v60, %v3257_v22  ;;  %v3261_v24 = vpop.permute.xlu0 %3260  ;;  %v3566_v22 = vadd.f32 %v3565_v17, %v3472_v14 }
0x1357   : > { %v3268_v27 = vsel %vm1784_vm8, %v3267_v23, %v3261_v24 }
0x1359   : > { %v3265_v28 = vpop.permute.xlu2 %3264 }
0x135a   : > { %v3269_v29 = vsel %vm1786_vm9, %v3268_v27, %v3265_v28  ;;  %v6170_v27 = vld [vmem:[#allocation17 + $0x1] ss:$0 sm:$0xff] }
0x135b   : > { %v3270_v31 = vpack.c.bf16 %v3269_v29, %v3269_v29  ;;  %v3604_v29 = vpack.c.bf16 %v3566_v22, %v3566_v22 }
0x135d   : > { %3330 = vmatmul.bf16.vlgmr.msra.gmra.mxu1 %v3270_v31  ;;  %v3567_v31 = vpop.f32.mrf.mxu3 }
0x13da   : > { %v3331_v33 = vpop.f32.mrf.mxu1 }
0x13db   : > { %v3332_v34 = vadd.f32 %v6168_v32, %v3331_v33  ;;  %v3568_v33 = vadd.f32 %v3567_v31, %v3472_v14  ;;  %v5403_v14 = vld [vmem:[%s8155_s19 + $0x88] sm:$0xf0] }
0x13dd   : > { %v7860_v35 = vadd.f32 %v3332_v34, %v7740_v53  ;;  %v5855_v53 = vld [vmem:[%s8156_s14 + $0x78] sm:$0xff]  ;;  %v3605_v37 = vpack.c.bf16 %v3568_v33, %v3568_v33 }
0x13de   : > { %3439 = vmatpush.bf16.msrb.mxu2 %v5855_v53 }
0x13df   : > { %3340 = vadd.xlane.f32.xlu1 %v7860_v35  ;;  %v3611_v38 = vunpack.c.l.b16 %v3605_v37 }
0x13e2   : > { %v3333_v36 = vpop.f32.mrf.mxu1  ;;  %3440 = vmatpush.bf16.msrb.mxu2 %v5854_v61 }
0x13e3   : > { %v3610_v36 = vunpack.c.l.b16 %v3604_v29 }
0x13e5   : > { %v3612_v0 = vpack.c.b16 %v3611_v38, %v3610_v36 }
0x13e6   : > { %3441 = vmatpush.bf16.msrb.mxu2 %v5853_v62 }
0x13e7   : > { %3673 = vrot.lane.b32.xlu2 %v3612_v0, %s6925_s7  ;;  %v3617_v40 = vsel %vm1533_vm4, %v3612_v0, 0 }
0x13e8   : > { %3626 = vmatpush.bf16.xpose.msrb.mxu1 %v3617_v40 }
0x13ea   : > { %3442 = vmatpush.bf16.msrb.mxu2 %v5852_v63  ;;  %v5862_v63 = vld [vmem:[%s8155_s19 + $0xb4] sm:$0xf] }
0x13ee   : > { %3443 = vmatpush.bf16.msrb.mxu2 %v5851_v6  ;;  %v5427_v6 = vld [vmem:[%s8155_s19 + $0xb8] sm:$0xf0] }
0x13ef   : > { %3729 = vrot.lane.b32.xlu2 %v3612_v0, %s6924_s9 }
0x13f2   : > { %3444 = vmatpush.bf16.msrb.mxu2 %v5850_v1  ;;  %v5430_v1 = vor.u32 %v5862_v63, %v5427_v6 }
0x13f6   : > { %3445 = vmatpush.bf16.msrb.mxu2 %v5849_v3  ;;  %v5860_v3 = vld [vmem:[%s8155_s19 + $0xa4] sm:$0xf] }
0x13fa   : > { %3446 = vmatpush.bf16.msrb.mxu2 %v5848_v5  ;;  %v5419_v5 = vld [vmem:[%s8155_s19 + $0xa8] sm:$0xf0] }
0x1441   : > { %v3674_v41 = vpop.permute.xlu2 %3673 }
0x1442   : > { %v3679_v39 = vsel %vm1533_vm4, %v3674_v41, 0 }
0x1443   : > { %3688 = vmatpush.bf16.xpose.msrb.mxu3 %v3679_v39 }
0x1449   : > { %v3730_v42 = vpop.permute.xlu2 %3729 }
0x144a   : > { %v3735_v43 = vsel %vm1533_vm4, %v3730_v42, 0  ;;  %v3473_v42 = vperm.slane %v7892_v13, 1 }
0x144b   : > { %3744 = vmatpush.bf16.xpose.msra.mxu1 %v3735_v43 }
0x1452   : > { %v3341_v56 = vpop.xlane.xlu1 %3340 }
0x1453   : > { %v3342_v57 = vmul.f32 %v3341_v56, %v7446_v18  ;;  %v5866_v56 = vld [vmem:[%s8155_s19 + $0xd4] sm:$0xf] }
0x1455   : > { %v3343_v59 = vsub.f32 %v7860_v35, %v3342_v57  ;;  %v5443_v57 = vld [vmem:[%s8155_s19 + $0xd8] sm:$0xf0] }
0x1456   : > { %v5446_v58 = vor.u32 %v5866_v56, %v5443_v57 }
0x1457   : > { %v3344_v60 = vmul.f32 %v3343_v59, %v3343_v59 }
0x1458   : > { %3572 = vmatpush.bf16.msra.mxu0 %v5446_v58 }
0x1459   : > { %3345 = vadd.xlane.f32.xlu0 %v3344_v60  ;;  %v5435_v60 = vld [vmem:[%s8155_s19 + $0xc8] sm:$0xf0] }
0x14cc   : > { %v3346_v7 = vpop.xlane.xlu0 %3345 }
0x14cd   : > { %v3347_v8 = vmul.f32 %v3346_v7, %v7446_v18 }
0x14cf   : > { %v3348_v26 = vadd.f32 1e-06, %v3347_v8  ;;  %v5422_v8 = vor.u32 %v5860_v3, %v5419_v5 }
0x14d1   : > { %6237 = vrsqrt.f32 %v3348_v26  ;;  %vm3355_vm6 = vweird.f32 %v3348_v26 }
0x14d7   : > { %v6238_v10 = vpop.eup %6237 }
0x14d8   : > { %v3350_v11 = vmul.f32 %v6238_v10, %v3348_v26  ;;  %vm3356_vm5 = vweird.f32 %v6238_v10  ;;  %v5858_v26 = vld [vmem:[%s8155_s19 + $0x94] sm:$0xf] }
0x14d9   : > { %vm3357_vm7 = vmor %vm3355_vm6, %vm3356_vm5 }
0x14da   : > { %v3351_v12 = vmul.f32 %v6238_v10, %v3350_v11 }
0x14dc   : > { %v3352_v25 = vmul.f32 0.5, %v3351_v12 }
0x14de   : > { %v3353_v16 = vsub.f32 1.5, %v3352_v25  ;;  %v5856_v25 = vld [vmem:[%s8155_s19 + $0x84] sm:$0xf] }
0x14e0   : > { %v3354_v19 = vmul.f32 %v6238_v10, %v3353_v16 }
0x14e2   : > { %v3358_v23 = vsel %vm3357_vm7, %v6238_v10, %v3354_v19  ;;  %v5411_v10 = vld [vmem:[%s8155_s19 + $0x98] sm:$0xf0]  ;;  %v5406_v19 = vor.u32 %v5856_v25, %v5403_v14 }
0x14e3   : > { %v3359_v24 = vmul.f32 %v3358_v23, %v3343_v59  ;;  %v5864_v59 = vld [vmem:[%s8155_s19 + $0xc4] sm:$0xf]  ;;  %v5414_v11 = vor.u32 %v5858_v26, %v5411_v10 }
0x14e4   : > { %v5438_v62 = vor.u32 %v5864_v59, %v5435_v60 }
0x14e5   : > { %v3363_v28 = vmul.f32 %v6169_v20, %v3359_v24 }
0x14e6   : > { %3573 = vmatpush.bf16.msra.mxu0 %v5438_v62 }
0x14e7   : > { %v3367_v32 = vadd.f32 %v6170_v27, %v3363_v28 }
0x14e9   : > { %v3368_v34 = vpack.c.bf16 %v3367_v32, %v3367_v32 }
0x14ea   : > { %3574 = vmatpush.bf16.msra.mxu0 %v5430_v1 }
0x14eb   : > { %3447 = vmatmul.bf16.vlgmr.msrb.gmra.mxu2 %v3368_v34 }
0x14ee   : > { %3575 = vmatpush.bf16.msra.mxu0 %v5422_v8 }
0x14f2   : > { %3576 = vmatpush.bf16.msra.mxu0 %v5414_v11 }
0x14f6   : > { %3577 = vmatpush.bf16.msra.mxu0 %v5406_v19 }
0x14f9   : > { %3578 = vmatmul.bf16.vlgmr.msra.gmra.mxu0 %v7595_v9 }
0x156e   : > { %v3448_v15 = vpop.f32.mrf.mxu2 }
0x156f   : > { %v3449_v53 = vadd.f32 %v6171_v4, %v3448_v15 }
0x1571   : > { %v3603_v44 = vpack.c.bf16 %v3449_v53, %v3449_v53 }
0x1573   : > { %v3669_v45 = vunpack.c.l.b16 %v3603_v44  ;;  %5463 = vmatmul.msk.bf16.vlgmr.msrb.gmra.mxu1 %vm1533_vm4, %v3603_v44 }
0x1575   : > { %v3670_v46 = vpack.c.b16 %v3669_v45, %v3669_v45 }
0x1576   : > { %v3450_v47 = vpop.f32.mrf.mxu2  ;;  %v3579_v43 = vpop.f32.mrf.mxu0 }
0x1577   : > { %3783 = vrot.lane.b32.xlu1 %v3670_v46, %s6926_s28  ;;  %3671 = vrot.lane.b32.xlu2 %v3670_v46, %s6925_s7  ;;  %v3580_v44 = vadd.f32 %v3579_v43, %v3473_v42 }
0x1579   : > { %v3606_v45 = vpack.c.bf16 %v3580_v44, %v3580_v44 }
0x157f   : > { %3785 = vrot.lane.b32.xlu2 %v3612_v0, %s6926_s28 }
0x1587   : > { %3727 = vrot.lane.b32.xlu2 %v3670_v46, %s6924_s9  ;;  %v3581_v46 = vpop.f32.mrf.mxu0 }
0x1588   : > { %v3582_v47 = vadd.f32 %v3581_v46, %v3473_v42 }
0x158a   : > { %v3607_v49 = vpack.c.bf16 %v3582_v47, %v3582_v47  ;;  %v6172_v47 = vld [vmem:[#allocation11 + $0x1] ss:$0 sm:$0xff] }
0x158c   : > { %v3649_v2 = vunpack.c.l.b16 %v3607_v49 }
0x15d1   : > { %v3672_v48 = vpop.permute.xlu2 %3671 }
0x15d2   : > { %5465 = vmatmul.msk.bf16.vlgmr.msrb.gmra.mxu3 %vm1533_vm4, %v3672_v48  ;;  %v3648_v48 = vunpack.c.l.b16 %v3606_v45 }
0x15d4   : > { %v3650_v30 = vpack.c.b16 %v3649_v2, %v3648_v48 }
0x15d6   : > { %3662 = vmatpush.bf16.msra.mxu2 %v3650_v30 }
0x15d9   : > { %v3786_v21 = vpop.permute.xlu2 %3785 }
0x15da   : > { %v3791_v54 = vsel %vm1533_vm4, %v3786_v21, 0 }
0x15db   : > { %3800 = vmatpush.bf16.xpose.msra.mxu3 %v3791_v54 }
0x15e1   : > { %v3728_v61 = vpop.permute.xlu2 %3727 }
0x15e2   : > { %5467 = vmatmul.msk.bf16.vlgmr.msra.gmra.mxu1 %vm1533_vm4, %v3728_v61 }
0x15e9   : > { %v3784_v7 = vpop.permute.xlu1 %3783 }
0x15ea   : > { %5469 = vmatmul.msk.bf16.vlgmr.msra.gmra.mxu3 %vm1533_vm4, %v3784_v7 }
0x15f0   : > { %v3628_v12 = vpop.f32.mrf.mxu1 }
0x15f1   : > { %v3632_v16 = vmul.f32 0.17677669, %v3628_v12 }
0x15f3   : > { %v3633_v17 = vsel %vm7640_vm14, %v3632_v16, -1e+09 }
0x15f4   : > { %v3634_v20 = vsel %vm2147_vm15, %v3633_v17, -inf }
0x15f5   : > { %3635 = vmax.xlane.f32.xlu0 %v3634_v20 }
0x15f8   : > { %v3630_v22 = vpop.f32.mrf.mxu1 }
0x1655   : > { %v3690_v23 = vpop.f32.mrf.mxu3 }
0x1656   : > { %v3694_v24 = vmul.f32 0.17677669, %v3690_v23 }
0x1658   : > { %v3695_v27 = vsel %vm7640_vm14, %v3694_v24, -1e+09 }
0x1659   : > { %v3696_v28 = vsel %vm2147_vm15, %v3695_v27, -inf }
0x165a   : > { %3697 = vmax.xlane.f32.xlu2 %v3696_v28 }
0x165d   : > { %v3692_v29 = vpop.f32.mrf.mxu3 }
0x165f   : > { %v3746_v31 = vpop.f32.mrf.mxu1 }
0x1660   : > { %v3750_v32 = vmul.f32 0.17677669, %v3746_v31  ;;  %v5879_v31 = vld [vmem:[#allocation10 + $0x78] sm:$0xff] }
0x1661   : > { %3906 = vmatpush.bf16.msrb.mxu1 %v5879_v31  ;;  %v5540_v31 = vld [vmem:[%s8162_s4 + $0xa8] sm:$0xf0] }
0x1662   : > { %v3751_v33 = vsel %vm7640_vm14, %v3750_v32, -1e+09 }
0x1663   : > { %v3752_v34 = vsel %vm2147_vm15, %v3751_v33, -inf }
0x1664   : > { %3753 = vmax.xlane.f32.xlu0 %v3752_v34 }
0x1667   : > { %v3748_v36 = vpop.f32.mrf.mxu1 }
0x1668   : > { %v3636_v37 = vpop.xlane.xlu0 %3635 }
0x1669   : > { %v3637_v9 = vsub.f32 %v3633_v17, %v3636_v37 }
0x166b   : > { %v3638_v38 = vmul.f32 1.442695, %v3637_v9  ;;  %v5878_v9 = vld [vmem:[#allocation10 + $0x70] sm:$0xff] }
0x166c   : > { %3907 = vmatpush.bf16.msrb.mxu1 %v5878_v9  ;;  %v5532_v9 = vld [vmem:[%s8162_s4 + $0x98] sm:$0xf0] }
0x166d   : > { %6239 = vpow2.f32 %v3638_v38  ;;  %v3802_v0 = vpop.f32.mrf.mxu3  ;;  %v5877_v38 = vld [vmem:[#allocation10 + $0x68] sm:$0xff] }
0x166e   : > { %v3806_v40 = vmul.f32 0.17677669, %v3802_v0  ;;  %v5876_v0 = vld [vmem:[#allocation10 + $0x60] sm:$0xff] }
0x1670   : > { %v3807_v41 = vsel %vm7640_vm14, %v3806_v40, -1e+09  ;;  %3908 = vmatpush.bf16.msrb.mxu1 %v5877_v38  ;;  %v5875_v40 = vld [vmem:[#allocation10 + $0x58] sm:$0xff] }
0x1671   : > { %v3808_v39 = vsel %vm2147_vm15, %v3807_v41, -inf }
0x1672   : > { %3809 = vmax.xlane.f32.xlu0 %v3808_v39  ;;  %v5873_v39 = vld [vmem:[#allocation10 + $0x48] sm:$0xff] }
0x1673   : > { %v6240_v4 = vpop.eup %6239 }
0x1674   : > { %v3640_v15 = vsel %vm2147_vm15, %v6240_v4, 0.0  ;;  %3909 = vmatpush.bf16.msrb.mxu1 %v5876_v0  ;;  %v5522_v0 = vld [vmem:[%s8162_s4 + $0x80] sm:$0xf] }
0x1675   : > { %v3804_v53 = vpop.f32.mrf.mxu3  ;;  %3641 = vadd.xlane.f32.xlu1 %v3640_v15 }
0x1678   : > { %3910 = vmatpush.bf16.msrb.mxu1 %v5875_v40  ;;  %v5881_v40 = vld [vmem:[%s8162_s4 + $0x84] sm:$0xf0] }
0x1686   : > { %3708 = vrot.lane.b32.xlu0 %v3650_v30, %s6925_s7 }
0x16cd   : > { %v3698_v50 = vpop.xlane.xlu2 %3697 }
0x16ce   : > { %v3699_v21 = vsub.f32 %v3695_v27, %v3698_v50  ;;  %v5578_v50 = vld [vmem:[%s8162_s4 + $0xf0] sm:$0xf] }
0x16d0   : > { %v3700_v51 = vmul.f32 1.442695, %v3699_v21  ;;  %v5895_v21 = vld [vmem:[%s8162_s4 + $0xf4] sm:$0xf0] }
0x16d2   : > { %6241 = vpow2.f32 %v3700_v51  ;;  %v5894_v51 = vld [vmem:[%s8162_s4 + $0xf4] sm:$0xf] }
0x16d7   : > { %v3754_v52 = vpop.xlane.xlu0 %3753 }
0x16d8   : > { %v6242_v54 = vpop.eup %6241  ;;  %v3755_v55 = vsub.f32 %v3751_v33, %v3754_v52  ;;  %v5579_v52 = vor.u32 %v5895_v21, %v5578_v50  ;;  %v5908_v50 = vld [vmem:[%s8163_s6 + $0xe0] sm:$0xff] }
0x16d9   : > { %v3702_v13 = vsel %vm2147_vm15, %v6242_v54, 0.0 }
0x16da   : > { %v3756_v56 = vmul.f32 1.442695, %v3755_v55  ;;  %3703 = vadd.xlane.f32.xlu0 %v3702_v13 }
0x16dc   : > { %6243 = vpow2.f32 %v3756_v56 }
0x16e2   : > { %v6244_v57 = vpop.eup %6243 }
0x16e3   : > { %v3758_v58 = vsel %vm2147_vm15, %v6244_v57, 0.0 }
0x16e4   : > { %3759 = vadd.xlane.f32.xlu2 %v3758_v58  ;;  %v5570_v58 = vld [vmem:[%s8162_s4 + $0xe0] sm:$0xf] }
0x16e5   : > { %v3810_v59 = vpop.xlane.xlu0 %3809 }
0x16e6   : > { %v3811_v60 = vsub.f32 %v3807_v41, %v3810_v59  ;;  %v5874_v41 = vld [vmem:[#allocation10 + $0x50] sm:$0xff]  ;;  %v5893_v59 = vld [vmem:[%s8162_s4 + $0xe4] sm:$0xf0] }
0x16e7   : > { %3911 = vmatpush.bf16.msrb.mxu1 %v5874_v41  ;;  %v5880_v41 = vld [vmem:[%s8162_s4 + $0x84] sm:$0xf] }
0x16e8   : > { %v3812_v61 = vmul.f32 1.442695, %v3811_v60  ;;  %v3642_v62 = vpop.xlane.xlu1 %3641  ;;  %v5892_v60 = vld [vmem:[%s8162_s4 + $0xe4] sm:$0xf] }
0x16e9   : > { %6245 = vrcp.f32 %v3642_v62  ;;  %v5572_v62 = vld [vmem:[%s8162_s4 + $0xe8] sm:$0xf0] }
0x16ea   : > { %6247 = vpow2.f32 %v3812_v61  ;;  %v5571_v61 = vor.u32 %v5893_v59, %v5570_v58 }
0x16eb   : > { %3912 = vmatpush.bf16.msrb.mxu1 %v5873_v39  ;;  %v5523_v39 = vor.u32 %v5881_v40, %v5522_v0 }
0x16ee   : > { %3764 = vrot.lane.b32.xlu0 %v3650_v30, %s6924_s9 }
0x16ef   : > { %v6246_v63 = vpop.eup %6245 }
0x16f0   : > { %v6248_v6 = vpop.eup %6247  ;;  %v3644_v1 = vmul.f32 %v6246_v63, %v6240_v4  ;;  %v5872_v4 = vld [vmem:[#allocation10 + $0x40] sm:$0xff]  ;;  %v5575_v63 = vor.u32 %v5892_v60, %v5572_v62  ;;  %v6173_v60 = vld [vmem:[#allocation19 + $0x1] ss:$0 sm:$0xff] }
0x16f1   : > { %v3814_v3 = vsel %vm2147_vm15, %v6248_v6, 0.0  ;;  %3913 = vmatpush.bf16.msrb.mxu1 %v5872_v4  ;;  %v5524_v4 = vld [vmem:[%s8162_s4 + $0x88] sm:$0xf0] }
0x16f2   : > { %v3645_v5 = vpack.c.bf16 %v3644_v1, %v3644_v1  ;;  %3815 = vadd.xlane.f32.xlu2 %v3814_v3  ;;  %v5891_v1 = vld [vmem:[%s8162_s4 + $0xd4] sm:$0xf0]  ;;  %v5890_v3 = vld [vmem:[%s8162_s4 + $0xd4] sm:$0xf] }
0x16f4   : > { %5464 = vmatmul.msk.bf16.vlgmr.msra.gmra.mxu2 %vm2147_vm15, %v3645_v5 }
0x16f8   : > { %v3709_v7 = vpop.permute.xlu0 %3708 }
0x16f9   : > { %3721 = vmatpush.bf16.msrb.mxu0 %v3709_v7  ;;  %v5564_v7 = vld [vmem:[%s8162_s4 + $0xd8] sm:$0xf0] }
0x170a   : > { %3820 = vrot.lane.b32.xlu2 %v3650_v30, %s6926_s28 }
0x174d   : > { %v3704_v8 = vpop.xlane.xlu0 %3703 }
0x174e   : > { %6249 = vrcp.f32 %v3704_v8  ;;  %v5567_v8 = vor.u32 %v5890_v3, %v5564_v7  ;;  %v5905_v7 = vld [vmem:[%s8163_s6 + $0xc8] sm:$0xff] }
0x1754   : > { %v6250_v26 = vpop.eup %6249 }
0x1755   : > { %v3706_v10 = vmul.f32 %v6250_v26, %v6242_v54  ;;  %v5580_v54 = vld [vmem:[%s8162_s4 + $0xf8] sm:$0xf0]  ;;  %v5554_v26 = vld [vmem:[%s8162_s4 + $0xc0] sm:$0xf] }
0x1756   : > { %v5583_v55 = vor.u32 %v5894_v51, %v5580_v54  ;;  %v5907_v54 = vld [vmem:[%s8163_s6 + $0xd8] sm:$0xff] }
0x1757   : > { %v3707_v11 = vpack.c.bf16 %v3706_v10, %v3706_v10  ;;  %v3760_v12 = vpop.xlane.xlu2 %3759  ;;  %v5889_v10 = vld [vmem:[%s8162_s4 + $0xc4] sm:$0xf0] }
0x1758   : > { %6251 = vrcp.f32 %v3760_v12  ;;  %4070 = vmatpush.bf16.msrb.mxu3 %v5583_v55  ;;  %v5555_v12 = vor.u32 %v5889_v10, %v5554_v26  ;;  %v5904_v26 = vld [vmem:[%s8163_s6 + $0xc0] sm:$0xff] }
0x1759   : > { %5466 = vmatmul.msk.bf16.vlgmr.msrb.gmra.mxu0 %vm2147_vm15, %v3707_v11  ;;  %v5888_v11 = vld [vmem:[%s8162_s4 + $0xc4] sm:$0xf]  ;;  %v5519_v10 = vld [vmem:[%s8164_s21 + $0x2] sm:$0x3] }
0x175c   : > { %4071 = vmatpush.bf16.msrb.mxu3 %v5575_v63  ;;  %v6174_v63 = vld [vmem:[#allocation20 + $0x1] ss:$0 sm:$0xff] }
0x175e   : > { %v6252_v25 = vpop.eup %6251 }
0x175f   : > { %v3762_v14 = vmul.f32 %v6252_v25, %v6244_v57  ;;  %v5556_v25 = vld [vmem:[%s8162_s4 + $0xc8] sm:$0xf0] }
0x1760   : > { %v3765_v16 = vpop.permute.xlu0 %3764  ;;  %4072 = vmatpush.bf16.msrb.mxu3 %v5567_v8  ;;  %v5896_v8 = vld [vmem:[%s8163_s6 + $0x80] sm:$0xff] }
0x1761   : > { %v3763_v17 = vpack.c.bf16 %v3762_v14, %v3762_v14  ;;  %3777 = vmatpush.bf16.msrb.mxu2 %v3765_v16  ;;  %v5559_v14 = vor.u32 %v5888_v11, %v5556_v25  ;;  %v5546_v16 = vld [vmem:[%s8162_s4 + $0xb0] sm:$0xf]  ;;  %v3973_v11 = vperm.slane %v5519_v10, 0 }
0x1764   : > { %5468 = vmatmul.msk.bf16.vlgmr.msrb.gmra.mxu2 %vm2147_vm15, %v3763_v17  ;;  %4073 = vmatpush.bf16.msrb.mxu3 %v5559_v14  ;;  %v5887_v17 = vld [vmem:[%s8162_s4 + $0xb4] sm:$0xf0] }
0x1765   : > { %v3816_v19 = vpop.xlane.xlu2 %3815  ;;  %4057 = vmatpush.bf16.msra.mxu2 %v5579_v52  ;;  %v5899_v52 = vld [vmem:[%s8163_s6 + $0x98] sm:$0xff] }
0x1766   : > { %6253 = vrcp.f32 %v3816_v19  ;;  %v5886_v19 = vld [vmem:[%s8162_s4 + $0xb4] sm:$0xf] }
0x1769   : > { %4058 = vmatpush.bf16.msra.mxu2 %v5571_v61 }
0x176c   : > { %v6254_v20 = vpop.eup %6253 }
0x176d   : > { %v3818_v22 = vmul.f32 %v6254_v20, %v6248_v6  ;;  %v3821_v23 = vpop.permute.xlu2 %3820  ;;  %v5562_v6 = vld [vmem:[%s8162_s4 + $0xd0] sm:$0xf]  ;;  %v5547_v20 = vor.u32 %v5887_v17, %v5546_v16 }
0x176e   : > { %3833 = vmatpush.bf16.msra.mxu0 %v3821_v23  ;;  %v5563_v5 = vor.u32 %v5891_v1, %v5562_v6 }
0x176f   : > { %v3819_v24 = vpack.c.bf16 %v3818_v22, %v3818_v22  ;;  %v5548_v22 = vld [vmem:[%s8162_s4 + $0xb8] sm:$0xf0] }
0x1770   : > { %4059 = vmatpush.bf16.msra.mxu2 %v5563_v5  ;;  %v5551_v23 = vor.u32 %v5886_v19, %v5548_v22  ;;  %v5897_v5 = vld [vmem:[%s8163_s6 + $0x88] sm:$0xff] }
0x1771   : > { %5470 = vmatmul.msk.bf16.vlgmr.msra.gmra.mxu0 %vm2147_vm15, %v3819_v24  ;;  %v5538_v24 = vld [vmem:[%s8162_s4 + $0xa0] sm:$0xf] }
0x1772   : > { %4074 = vmatpush.bf16.msrb.mxu3 %v5551_v23 }
0x1774   : > { %4060 = vmatpush.bf16.msra.mxu2 %v5555_v12  ;;  %v3974_v12 = vperm.slane %v5519_v10, 1 }
0x1777   : > { %v3664_v27 = vpop.f32.mrf.mxu2 }
0x1778   : > { %4061 = vmatpush.bf16.msra.mxu2 %v5547_v20 }
0x177f   : > { %v3666_v28 = vpop.f32.mrf.mxu2 }
0x1780   : > { %v5884_v28 = vld [vmem:[%s8162_s4 + $0xa4] sm:$0xf] }
0x17d6   : > { %v3723_v29 = vpop.f32.mrf.mxu0 }
0x17d7   : > { %3840 = vrot.lane.b32.xlu0 %v3723_v29, %s6926_s28  ;;  %s5715_s28 = sshll.u32 %s7112_s23, 3 }
0x17de   : > { %v3725_v32 = vpop.f32.mrf.mxu0 }
0x17df   : > { %v5543_v32 = vor.u32 %v5884_v28, %v5540_v31 }
0x17e1   : > { %4075 = vmatpush.bf16.msrb.mxu3 %v5543_v32 }
0x17e7   : > { %v3779_v33 = vpop.f32.mrf.mxu2 }
0x17e8   : > { %3844 = vrot.lane.b32.xlu1 %v3779_v33, %s6924_s9  ;;  %v5530_v33 = vld [vmem:[%s8162_s4 + $0x90] sm:$0xf]  ;;  %s8166_s9 = sld [smem:[#allocation69_spill]] }
0x17ee   : > { %v3835_v34 = vpop.f32.mrf.mxu0  ;;  %s4392_s20 = scalar_lea.hbm %s8166_s9, %s5715_s28  ;;  %s6759_s8 = scalar_lea.hbm %s8166_s9, 16 }
0x17ef   : > { %3848 = vrot.lane.b32.xlu0 %v3835_v34, %s6925_s7  ;;  %v3781_v36 = vpop.f32.mrf.mxu2  ;;  %v5883_v34 = vld [vmem:[%s8162_s4 + $0x94] sm:$0xf0]  ;;  %s1248_s7 = scalar_lea.vmem [#allocation29], %s7390_s12  ;;  %s4396_s3 = sshll.u32 %s4392_s20, 4  ;;  %s4397_s3 = int_to_ptr.hbm [resolvable:$true] %s4396_s3 }
0x17f0   : > { %v5882_v36 = vld [vmem:[%s8162_s4 + $0x94] sm:$0xf]  ;;  %s4394_s2 = sshll.u32 %s1248_s7, 4  ;;  %s6753_s5 = sshra.s32 %s4397_s3, 4  ;;  %s4395_s2 = int_to_ptr.vmem [resolvable:$true] %s4394_s2  ;;  %s6754_s5 = int_to_ptr.hbm [resolvable:$true] %s6753_s5 }
0x17f1   : > { %v5535_v38 = vor.u32 %v5882_v36, %v5532_v9  ;;  %p6760_p7 = scmp.lt.s32.totalorder %s6754_s5, %s8166_s9 }
0x17f3   : > { %4076 = vmatpush.bf16.msrb.mxu3 %v5535_v38 }
0x17f6   : > { %v3837_v37 = vpop.f32.mrf.mxu0 }
0x17f7   : > { %v5531_v37 = vor.u32 %v5883_v34, %v5530_v33 }
0x1849   : > { %v3841_v15 = vpop.permute.xlu0 %3840 }
0x184a   : > { %v3851_v42 = vsel %vm1533_vm4, %v3664_v27, %v3841_v15  ;;  %v5885_v27 = vld [vmem:[%s8162_s4 + $0xa4] sm:$0xf0]  ;;  %v5527_v15 = vor.u32 %v5880_v41, %v5524_v4  ;;  %v5916_v4 = vld [vmem:[#allocation25 + $0x20] sm:$0xff]  ;;  %s4368_s4 = scalar_lea.sflag [#allocation30], %s7387_s13 }
0x184b   : > { %v5539_v29 = vor.u32 %v5885_v27, %v5538_v24  ;;  %v6175_v27 = vld [vmem:[%s8165_s10 + $0x1] ss:$0 sm:$0xff]  ;;  %v5918_v41 = vld [vmem:[#allocation25 + $0x30] sm:$0xff] }
0x184c   : > { %4077 = vmatpush.bf16.msrb.mxu3 %v5527_v15  ;;  %v5915_v15 = vld [vmem:[#allocation25 + $0x18] sm:$0xff] }
0x184d   : > { %4062 = vmatpush.bf16.msra.mxu2 %v5539_v29 }
0x1851   : > { %4063 = vmatpush.bf16.msra.mxu2 %v5531_v37  ;;  %v5919_v37 = vld [vmem:[#allocation25 + $0x38] sm:$0xff] }
0x1855   : > { %4064 = vmatpush.bf16.msra.mxu2 %v5523_v39  ;;  %v5917_v39 = vld [vmem:[#allocation25 + $0x28] sm:$0xff] }
0x1859   : > { %4348 = vmatpush.bf16.msrb.mxu2 %v5919_v37 }
0x185a   : > { %v3845_v53 = vpop.permute.xlu1 %3844 }
0x185b   : > { %v3852_v43 = vsel %vm1784_vm8, %v3851_v42, %v3845_v53  ;;  %v5903_v53 = vld [vmem:[%s8163_s6 + $0xb8] sm:$0xff] }
0x185c   : > { %v5911_v42 = vld [vmem:[%s8163_s6 + $0xf8] sm:$0xff]  ;;  %4221 = vmatpush.bf16.msrb.mxu0 %v5903_v53 }
0x185d   : > { %4234 = vmatpush.bf16.msra.mxu1 %v5911_v42  ;;  %4349 = vmatpush.bf16.msrb.mxu2 %v5918_v41  ;;  %v5913_v53 = vld [vmem:[#allocation25 + $0x8] sm:$0xff]  ;;  %v5912_v42 = vld [vmem:[#allocation25] sm:$0xff] }
0x1861   : > { %v3849_v44 = vpop.permute.xlu0 %3848  ;;  %4350 = vmatpush.bf16.msrb.mxu2 %v5917_v39 }
0x1862   : > { %v3853_v45 = vsel %vm1786_vm9, %v3852_v43, %v3849_v44 }
0x1863   : > { %v3854_v46 = vpack.c.bf16 %v3853_v45, %v3853_v45  ;;  %v5902_v45 = vld [vmem:[%s8163_s6 + $0xb0] sm:$0xff] }
0x1864   : > { %4222 = vmatpush.bf16.msrb.mxu0 %v5902_v45 }
0x1865   : > { %3914 = vmatmul.bf16.vlgmr.msrb.gmra.mxu1 %v3854_v46  ;;  %v5910_v46 = vld [vmem:[%s8163_s6 + $0xf0] sm:$0xff]  ;;  %4351 = vmatpush.bf16.msrb.mxu2 %v5916_v4 }
0x1866   : > { %4235 = vmatpush.bf16.msra.mxu1 %v5910_v46 }
0x1869   : > { %4352 = vmatpush.bf16.msrb.mxu2 %v5915_v15 }
0x18e2   : > { %v3915_v48 = vpop.f32.mrf.mxu1 }
0x18e3   : > { %v3916_v49 = vadd.f32 %v6172_v47, %v3915_v48  ;;  %v5901_v48 = vld [vmem:[%s8163_s6 + $0xa8] sm:$0xff] }
0x18e4   : > { %4223 = vmatpush.bf16.msrb.mxu0 %v5901_v48 }
0x18e5   : > { %v7957_v2 = vadd.f32 %v3916_v49, %v7860_v35  ;;  %v5909_v49 = vld [vmem:[%s8163_s6 + $0xe8] sm:$0xff] }
0x18e6   : > { %4236 = vmatpush.bf16.msra.mxu1 %v5909_v49 }
0x18e7   : > { %3924 = vadd.xlane.f32.xlu0 %v7957_v2 }
0x18ea   : > { %v3917_v30 = vpop.f32.mrf.mxu1  ;;  %4237 = vmatpush.bf16.msra.mxu1 %v5908_v50 }
0x18eb   : > { %v5900_v30 = vld [vmem:[%s8163_s6 + $0xa0] sm:$0xff] }
0x18ec   : > { %4224 = vmatpush.bf16.msrb.mxu0 %v5900_v30 }
0x18ee   : > { %4238 = vmatpush.bf16.msra.mxu1 %v5907_v54 }
0x18f0   : > { %4225 = vmatpush.bf16.msrb.mxu0 %v5899_v52  ;;  %v6177_v52 = vld [vmem:[#allocation23] ss:$0 sm:$0xff] }
0x195a   : > { %v3925_v35 = vpop.xlane.xlu0 %3924 }
0x195b   : > { %v3926_v13 = vmul.f32 %v3925_v35, %v7446_v18 }
0x195d   : > { %v7966_v56 = vsub.f32 %v7957_v2, %v3926_v13  ;;  %v5898_v13 = vld [vmem:[%s8163_s6 + $0x90] sm:$0xff] }
0x195e   : > { %4226 = vmatpush.bf16.msrb.mxu0 %v5898_v13 }
0x195f   : > { %v3928_v57 = vmul.f32 %v7966_v56, %v7966_v56 }
0x1961   : > { %3929 = vadd.xlane.f32.xlu2 %v3928_v57  ;;  %v5906_v57 = vld [vmem:[%s8163_s6 + $0xd0] sm:$0xff]  ;;  %s6755_s6 = scalar_lea.hbm %s6754_s5, 8 }
0x1962   : > { %4239 = vmatpush.bf16.msra.mxu1 %v5906_v57  ;;  %4227 = vmatpush.bf16.msrb.mxu0 %v5897_v5  ;;  %p6756_p3 = scmp.ne.s32.totalorder %s6754_s5, %s6755_s6  ;;  %p6761_p4 = scmp.lt.s32.totalorder %s6759_s8, %s6755_s6 }
0x1964   : > { %p6757_p6 = pnand %p6756_p3, %p7346_p0  ;;  %p6762_p5 = por %p6761_p4, %p6760_p7 }
0x1966   : > { %4240 = vmatpush.bf16.msra.mxu1 %v5905_v7  ;;  %4228 = vmatpush.bf16.msrb.mxu0 %v5896_v8  ;;  %p6758_p8 = pneg %p6757_p6 }
0x1968   : > { %p6763_p9 = pnand %p6762_p5, %p6758_p8 }
0x196a   : > { %4241 = vmatpush.bf16.msra.mxu1 %v5904_v26 }
0x19d4   : > { %v3930_v43 = vpop.xlane.xlu2 %3929 }
0x19d5   : > { %v3931_v44 = vmul.f32 %v3930_v43, %v7446_v18 }
0x19d7   : > { %v3932_v47 = vadd.f32 1e-06, %v3931_v44 }
0x19d9   : > { %6255 = vrsqrt.f32 %v3932_v47  ;;  %vm3939_vm8 = vweird.f32 %v3932_v47 }
0x19df   : > { %v6256_v21 = vpop.eup %6255 }
0x19e0   : > { %v3934_v51 = vmul.f32 %v6256_v21, %v3932_v47  ;;  %vm3940_vm4 = vweird.f32 %v6256_v21 }
0x19e1   : > { %vm3941_vm9 = vmor %vm3939_vm8, %vm3940_vm4 }
0x19e2   : > { %v3935_v55 = vmul.f32 %v6256_v21, %v3934_v51 }
0x19e4   : > { %v3936_v35 = vmul.f32 0.5, %v3935_v55 }
0x19e6   : > { %v3937_v58 = vsub.f32 1.5, %v3936_v35 }
0x19e8   : > { %v3938_v59 = vmul.f32 %v6256_v21, %v3937_v58 }
0x19ea   : > { %v3942_v61 = vsel %vm3941_vm9, %v6256_v21, %v3938_v59  ;;  %v6176_v21 = vld [vmem:[#allocation22] ss:$0 sm:$0xff] }
0x19eb   : > { %v3943_v62 = vmul.f32 %v3942_v61, %v7966_v56 }
0x19ed   : > { %v3947_v6 = vmul.f32 %v6173_v60, %v3943_v62 }
0x19ef   : > { %v3951_v1 = vadd.f32 %v6174_v63, %v3947_v6 }
0x19f1   : > { %v3952_v3 = vpack.c.bf16 %v3951_v1, %v3951_v1 }
0x19f3   : > { %4065 = vmatmul.bf16.vlgmr.msra.gmra.mxu2 %v3952_v3  ;;  %4078 = vmatmul.bf16.vlgmr.msrb.gmra.mxu3 %v3952_v3 }
0x1a76   : > { %v4066_v25 = vpop.f32.mrf.mxu2  ;;  %v4079_v56 = vpop.f32.mrf.mxu3 }
0x1a77   : > { %v4067_v14 = vadd.f32 %v4066_v25, %v3973_v11  ;;  %v4080_v16 = vadd.f32 %v4079_v56, %v3974_v12 }
0x1a79   : > { %v4083_v17 = vmax.f32 %v4067_v14, 0.0  ;;  %v4084_v19 = vmax.f32 %v4080_v16, 0.0 }
0x1a7b   : > { %v4085_v20 = vpack.c.bf16 %v4083_v17, %v4083_v17  ;;  %v4086_v22 = vpack.c.bf16 %v4084_v19, %v4084_v19 }
0x1a7d   : > { %4229 = vmatmul.bf16.vlgmr.msrb.gmra.mxu0 %v4085_v20  ;;  %4242 = vmatmul.bf16.vlgmr.msra.gmra.mxu1 %v4086_v22 }
0x1a7e   : > { %v4068_v23 = vpop.f32.mrf.mxu2  ;;  %v4081_v24 = vpop.f32.mrf.mxu3 }
0x1afa   : > { %v4230_v28 = vpop.f32.mrf.mxu0  ;;  %v4243_v29 = vpop.f32.mrf.mxu1 }
0x1afb   : > { %v4231_v31 = vadd.f32 %v6175_v27, %v4230_v28 }
0x1afd   : > { %v4244_v32 = vadd.f32 %v4243_v29, %v4231_v31 }
0x1aff   : > { %v4247_v33 = vadd.f32 %v4244_v32, %v7957_v2  ;;  %v5914_v2 = vld [vmem:[#allocation25 + $0x10] sm:$0xff] }
0x1b00   : > { %4353 = vmatpush.bf16.msrb.mxu2 %v5914_v2 }
0x1b01   : > { %4250 = vadd.xlane.f32.xlu1 %v4247_v33 }
0x1b02   : > { %v4232_v34 = vpop.f32.mrf.mxu0  ;;  %v4245_v36 = vpop.f32.mrf.mxu1 }
0x1b04   : > { %4354 = vmatpush.bf16.msrb.mxu2 %v5913_v53 }
0x1b08   : > { %4355 = vmatpush.bf16.msrb.mxu2 %v5912_v42 }
0x1b74   : > { %v4251_v9 = vpop.xlane.xlu1 %4250 }
0x1b75   : > { %v4252_v38 = vmul.f32 %v4251_v9, %v7446_v18 }
0x1b77   : > { %v4253_v0 = vsub.f32 %v4247_v33, %v4252_v38 }
0x1b79   : > { %v4254_v40 = vmul.f32 %v4253_v0, %v4253_v0 }
0x1b7b   : > { %4255 = vadd.xlane.f32.xlu0 %v4254_v40 }
0x1bee   : > { %v4256_v43 = vpop.xlane.xlu0 %4255 }
0x1bef   : > { %v4257_v44 = vmul.f32 %v4256_v43, %v7446_v18 }
0x1bf1   : > { %v4258_v45 = vadd.f32 1e-06, %v4257_v44 }
0x1bf3   : > { %6257 = vrsqrt.f32 %v4258_v45  ;;  %vm4265_vm13 = vweird.f32 %v4258_v45 }
0x1bf9   : > { %v6258_v46 = vpop.eup %6257 }
0x1bfa   : > { %v4260_v47 = vmul.f32 %v6258_v46, %v4258_v45  ;;  %vm4266_vm12 = vweird.f32 %v6258_v46 }
0x1bfb   : > { %vm4267_vm14 = vmor %vm4265_vm13, %vm4266_vm12 }
0x1bfc   : > { %v4261_v48 = vmul.f32 %v6258_v46, %v4260_v47 }
0x1bfe   : > { %v4262_v49 = vmul.f32 0.5, %v4261_v48 }
0x1c00   : > { %v4263_v30 = vsub.f32 1.5, %v4262_v49 }
0x1c02   : > { %v4264_v50 = vmul.f32 %v6258_v46, %v4263_v30 }
0x1c04   : > { %v4268_v51 = vsel %vm4267_vm14, %v6258_v46, %v4264_v50 }
0x1c05   : > { %v4269_v54 = vmul.f32 %v4268_v51, %v4253_v0 }
0x1c07   : > { %v4273_v18 = vmul.f32 %v6176_v21, %v4269_v54 }
0x1c09   : > { %v4277_v55 = vadd.f32 %v6177_v52, %v4273_v18 }
0x1c0b   : > { %v4279_v35 = vpack.c.bf16 %v4277_v55, %v4277_v55  ;;  %4278 = vst [vmem:[%s1248_s7] sm:$0xff] %v4277_v55 }
0x1c0d   : > { %4356 = vmatmul.bf16.vlgmr.msrb.gmra.mxu2 %v4279_v35 }
0x1c0e   : > { %6766 = shalt.err (!%p6763_p9)
}
0x1c0f   : > { %s8167_s23 = sld [smem:[#allocation68_spill]]  ;;  %v6178_v13 = vld [vmem:[#allocation26] ss:$0 sm:$0xff]  ;;  %s1241_s20 = scalar_lea.vmem [#allocation28], %s7390_s12 }
0x1c10   : > { %5981 = dma.vmem_to_hbm [thread:$0]  (%p7346_p0), %s4395_s2, 128, %s4397_s3, %s4368_s4  }
0x1c11   : > { %s4380_s10 = sshll.u32 %s1241_s20, 4  ;;  %s4363_s5 = scalar_lea.sflag [#allocation4], %s7387_s13  ;;  %s4381_s10 = int_to_ptr.vmem [resolvable:$true] %s4380_s10 }
0x1c15   : > { %s4378_s7 = scalar_lea.hbm %s8167_s23, %s5715_s28  ;;  %s6787_s2 = scalar_lea.hbm %s8167_s23, 16 }
0x1c16   : > { %s4382_s14 = sshll.u32 %s4378_s7, 4  ;;  %s4383_s14 = int_to_ptr.hbm [resolvable:$true] %s4382_s14 }
0x1c17   : > { %s6781_s8 = sshra.s32 %s4383_s14, 4  ;;  %s6782_s8 = int_to_ptr.hbm [resolvable:$true] %s6781_s8 }
0x1c18   : > { %s6783_s6 = scalar_lea.hbm %s6782_s8, 8  ;;  %p6788_p13 = scmp.lt.s32.totalorder %s6782_s8, %s8167_s23 }
0x1c19   : > { %p6784_p11 = scmp.ne.s32.totalorder %s6782_s8, %s6783_s6  ;;  %p6789_p1 = scmp.lt.s32.totalorder %s6787_s2, %s6783_s6 }
0x1c1b   : > { %p6785_p10 = pnand %p6784_p11, %p7346_p0  ;;  %p6790_p3 = por %p6789_p1, %p6788_p13 }
0x1c1d   : > { %p6786_p12 = pneg %p6785_p10 }
0x1c1f   : > { %p6791_p6 = pnand %p6790_p3, %p6786_p12 }
0x1c90   : > { %v4357_v57 = vpop.f32.mrf.mxu2 }
0x1c91   : > { %v4358_v58 = vadd.f32 %v6178_v13, %v4357_v57 }
0x1c93   : > { %4361 = vst [vmem:[%s1241_s20] sm:$0xff] %v4358_v58 }
0x1c94   : > { %6794 = shalt.err (!%p6791_p6)
}
0x1c95   : > { %5980 = dma.vmem_to_hbm [thread:$0]  (%p7346_p0), %s4381_s10, 128, %s4383_s14, %s4363_s5  }
0x1c98   : > { %v4359_v59 = vpop.f32.mrf.mxu2 }
0x1c99 PF: > { %s4408_s13 = sand.u32 1, %s6861_s15   ;;  %p8168_p8 = scmp.ge.s32.totalorder %s6873_s18, 2 }
0x1c9a   : > { %s4409_s12 = scalar_lea.sflag [#allocation4], %s4408_s13 }
0x1c9b   : > { %p6035_p7 = pnand %p8168_p8, %p7350_p2 }
0x1c9d   : > { %p6036_p4 = pneg %p6035_p7 }
0x1c9f   : > { %6852 = dma.done.wait (%p6036_p4), %s4409_s12, 128  }
0x1ca0   : > { %6854 = vsyncadd (%p6036_p4), %s4409_s12, 4294967168  ;;  %s4419_s3 = scalar_lea.sflag [#allocation30], %s4408_s13 }
0x1ca1   : > { %6856 = dma.done.wait (%p6036_p4), %s4419_s3, 128  }
0x1ca2   : > { %6858 = vsyncadd (%p6036_p4), %s4419_s3, 4294967168  ;;  %p88_p0 = scmp.ge.s32.totalorder %s7320_s25, 4   ;;  %s8169_s15 = smov %s6865_s16 }
0x1ca3   : > { %s8170_s16 = smov %s6869_s0  ;;  %s8171_s0 = smov %s7331_s22 }
0x1ca4   : > { %s8172_s18 = smov %s7320_s25  ;;  %90 = sbr.rel (!%p88_p0) target bundleno = 78 (0x4e), region = 323 }
0x1ca9   :  { %4425 = vsyncpa [#allocation3], 1 }
0x1caa   :  { %4427 = vsyncpa [#allocation3 + $0x1], 1 }
0x1cab   :  { %4428 = vsyncpa [#allocation6], 1 }
0x1cac   :  { %4430 = vsyncpa [#allocation6 + $0x1], 1 }
0x1cad   :  { %4431 = vsyncpa [#allocation9], 1 }
0x1cae   :  { %4432 = vsyncpa [#allocation12], 1 }
0x1caf   :  { %4433 = vsyncpa [#allocation15], 1 }
0x1cb0   :  { %4434 = vsyncpa [#allocation18], 1 }
0x1cb1   :  { %4435 = vsyncpa [#allocation21], 1 }
0x1cb2   :  { %4436 = vsyncpa [#allocation24], 1 }
0x1cb3   :  { %4437 = vsyncpa [#allocation27], 1 }
0x1cb4   :  { %4438 = vsyncpa [#allocation4], 1 }
0x1cb5   :  { %4440 = vsyncpa [#allocation4 + $0x1], 1 }
0x1cb6   :  { %4441 = vsyncpa [#allocation30], 1 }
0x1cb7   :  { %4443 = vsyncpa [#allocation30 + $0x1], 1 }

</bundles_post_ra>
